<compile_context>
chip_gen: v7x
topology: tpu7x:2x2x1
jax: 0.10.0
libtpu: 0.0.40
codegen_flags: <defaults>
</compile_context>

<pallas_src>
import functools

import jax
import jax.numpy as jnp
from jax import lax
from jax.experimental import pallas as pl
from jax.experimental.pallas import tpu as pltpu

EPS = 1e-5  # nn.BatchNorm2d default eps


def _round_up(x, m):
    return (x + m - 1) // m * m


def _cdiv(a, b):
    return (a + b - 1) // b


# ----------------------------- Pallas kernels ------------------------------ #

def _conv_pairs(x_ref, m_ref, n, Hh):
    """Conv output (f32) for image `n` in pair layout: (Hh, 4*Wh*Cout).

    x_ref[n] is the height-padded input with two padded rows per VMEM row
    (row k = padded rows 2k, 2k+1 in lanes).  The 5x5 conv then reduces to the
    three pair-row shifts d = 0,1,2, each one MXU matmul against the banded
    weight matrix m_ref[d] (bf16 in, f32 accumulation).
    """
    xn = x_ref[n]                                          # (Hh+2, K2p) bf16
    acc = jnp.dot(xn[0:Hh], m_ref[0], preferred_element_type=jnp.float32)
    acc = acc + jnp.dot(xn[1:Hh + 1], m_ref[1],
                        preferred_element_type=jnp.float32)
    acc = acc + jnp.dot(xn[2:Hh + 2], m_ref[2],
                        preferred_element_type=jnp.float32)
    return acc


def _conv_stats_kernel(x_ref, m_ref, stat_ref, *, nb, Hh):
    # Pass 1: per-lane sum / sum-of-squares of the (bias-free) conv output,
    # accumulated in f32 over the nb images of this grid step.  The conv
    # output itself never goes to HBM.
    nl = m_ref.shape[2]
    s = jnp.zeros((1, nl), jnp.float32)
    ss = jnp.zeros((1, nl), jnp.float32)
    for n in range(nb):
        acc = _conv_pairs(x_ref, m_ref, n, Hh)
        s = s + jnp.sum(acc, axis=0, keepdims=True)
        ss = ss + jnp.sum(acc * acc, axis=0, keepdims=True)
    stat_ref[0] = jnp.concatenate([s, ss], axis=0)         # (2, nl)


def _conv_bn_pool_kernel(x_ref, m_ref, sc_ref, sh_ref, o_ref, *, nb, Hh, Q):
    # Pass 2: recompute the conv, BN affine + ReLU in f32, 2x2 max-pool as a
    # max over the four static lane quarters, store pooled bf16 rows.
    for n in range(nb):
        acc = _conv_pairs(x_ref, m_ref, n, Hh)
        z = jnp.maximum(acc * sc_ref[...] + sh_ref[...], 0.0)
        m01 = jnp.maximum(z[:, 0:Q], z[:, Q:2 * Q])
        m23 = jnp.maximum(z[:, 2 * Q:3 * Q], z[:, 3 * Q:4 * Q])
        o_ref[n] = jnp.maximum(m01, m23).astype(o_ref.dtype)


def _fc_kernel(x_ref, w_ref, b_ref, o_ref):
    o_ref[...] = jnp.dot(x_ref[...], w_ref[...],
                         preferred_element_type=jnp.float32) + b_ref[...]


# --------------------------- banded weight build ---------------------------- #

def _build_banded(w_oihw, W_in):
    """Banded conv matrices, one per pair-row shift d = 0,1,2.

    Row index    q = p*(W_in*Cin) + w_in*Cin + ci   (p = parity inside the
                 padded-row pair held by one input VMEM row).
    Column index j = ((a*2 + b)*Wh + wh)*Cout + co  (a/b = output row/col
                 parity), so the four 2x2-pool partners of pooled position
                 (wh, co) occupy the four lane quarters of the conv output.
    Width padding is folded into the matrices (out-of-range taps are zero);
    height padding comes from the zero pair-rows of the input.
    """
    Cout, Cin, KH, KW = w_oihw.shape
    Wh = W_in // 2
    d = jnp.arange(3).reshape(3, 1, 1, 1, 1, 1, 1, 1)
    p = jnp.arange(2).reshape(1, 2, 1, 1, 1, 1, 1, 1)
    w_in = jnp.arange(W_in).reshape(1, 1, W_in, 1, 1, 1, 1, 1)
    ci = jnp.arange(Cin).reshape(1, 1, 1, Cin, 1, 1, 1, 1)
    a = jnp.arange(2).reshape(1, 1, 1, 1, 2, 1, 1, 1)
    b = jnp.arange(2).reshape(1, 1, 1, 1, 1, 2, 1, 1)
    wh = jnp.arange(Wh).reshape(1, 1, 1, 1, 1, 1, Wh, 1)
    co = jnp.arange(Cout).reshape(1, 1, 1, 1, 1, 1, 1, Cout)
    dh = 2 * d + p - a                       # kernel row tap
    dw = w_in - 2 * wh - b + 2               # kernel col tap
    valid = (dh >= 0) & (dh < KH) & (dw >= 0) & (dw < KW)
    vals = w_oihw[co, ci, jnp.clip(dh, 0, KH - 1), jnp.clip(dw, 0, KW - 1)]
    vals = jnp.where(valid, vals, 0.0)       # (3,2,W_in,Cin,2,2,Wh,Cout)
    return vals.reshape(3, 2 * W_in * Cin, 4 * Wh * Cout)


# ------------------------------ layer wrappers ------------------------------ #

def _conv_bn_relu_pool(x_rows, w_oihw, gamma, beta, *, H_in, W_in):
    """Conv(5x5, pad 2) + BatchNorm(train) + ReLU + MaxPool(2).

    x_rows: (N, H_in, W_in*Cin) bf16, lane order w*Cin + ci.
    Returns pooled activation (N, H_in//2, (W_in//2)*Cout) bf16, same (w, c)
    lane order, ready to be the next layer's x_rows (or the FC input).
    """
    N = x_rows.shape[0]
    Cout, Cin = w_oihw.shape[0], w_oihw.shape[1]
    Hh, Wh = H_in // 2, W_in // 2
    K2 = 2 * W_in * Cin
    K2p = _round_up(K2, 16)        # bf16 sublane packing of the contraction
    NL = 4 * Wh * Cout             # conv-output lanes per pair row
    Q = Wh * Cout                  # pooled lanes per row
    assert x_rows.shape[1:] == (H_in, W_in * Cin)

    # Pair layout + height padding: row k of x2 holds padded input rows 2k and
    # 2k+1 side by side in lanes; rows 0 and Hh+1 are the zero pad rows.
    xp = jnp.pad(x_rows.astype(jnp.bfloat16), ((0, 0), (2, 2), (0, 0)))
    x2 = xp.reshape(N, Hh + 2, K2)
    if K2p != K2:
        x2 = jnp.pad(x2, ((0, 0), (0, 0), (0, K2p - K2)))

    # Images per grid step: >= 2 grid steps whenever N >= 2 (v7x: 2 TCs), at
    # most 8 images/step to amortize the ~0.35us per-step overhead.
    nb = min(8, max(1, _cdiv(N, 2)))
    g = _cdiv(N, nb)
    n_pad = g * nb
    if n_pad != N:
        # Zero images add zero to the BN sums (no conv bias), so the stats
        # stay exact when divided by the true element count below.
        x2 = jnp.pad(x2, ((0, n_pad - N), (0, 0), (0, 0)))

    m = _build_banded(w_oihw, W_in)
    if K2p != K2:
        m = jnp.pad(m, ((0, 0), (0, K2p - K2), (0, 0)))
    m = m.astype(jnp.bfloat16)

    x_spec = pl.BlockSpec((nb, Hh + 2, K2p), lambda i: (i, 0, 0))
    m_spec = pl.BlockSpec((3, K2p, NL), lambda i: (0, 0, 0))

    # Pass 1: streaming BN statistics (conv output never hits HBM).
    stats = pl.pallas_call(
        functools.partial(_conv_stats_kernel, nb=nb, Hh=Hh),
        grid=(g,),
        out_shape=jax.ShapeDtypeStruct((g, 2, NL), jnp.float32),
        in_specs=[x_spec, m_spec],
        out_specs=pl.BlockSpec((1, 2, NL), lambda i: (i, 0, 0)),
        compiler_params=pltpu.CompilerParams(
            dimension_semantics=("parallel",)),
    )(x2, m)

    # Tiny reduction: per-lane sums -> per-channel scale/shift.  Training-mode
    # BN with biased variance; E[x^2]-E[x]^2 in f32 is fine at these sizes.
    stats = jnp.sum(stats, axis=0)                          # (2, NL)
    count = N * H_in * W_in
    s_c = stats[0].reshape(NL // Cout, Cout).sum(axis=0)
    ss_c = stats[1].reshape(NL // Cout, Cout).sum(axis=0)
    mean = s_c / count
    var = jnp.maximum(ss_c / count - mean * mean, 0.0)
    scale = gamma * lax.rsqrt(var + EPS)
    shift = beta - mean * scale
    sc_l = jnp.tile(scale, NL // Cout).reshape(1, NL).astype(jnp.float32)
    sh_l = jnp.tile(shift, NL // Cout).reshape(1, NL).astype(jnp.float32)

    # Pass 2: recompute conv + BN + ReLU + 2x2 pool, write pooled bf16 rows.
    out = pl.pallas_call(
        functools.partial(_conv_bn_pool_kernel, nb=nb, Hh=Hh, Q=Q),
        grid=(g,),
        out_shape=jax.ShapeDtypeStruct((n_pad, Hh, Q), jnp.bfloat16),
        in_specs=[x_spec, m_spec,
                  pl.BlockSpec((1, NL), lambda i: (0, 0)),
                  pl.BlockSpec((1, NL), lambda i: (0, 0))],
        out_specs=pl.BlockSpec((nb, Hh, Q), lambda i: (i, 0, 0)),
        compiler_params=pltpu.CompilerParams(
            dimension_semantics=("parallel",)),
    )(x2, m, sc_l, sh_l)
    return out[:N]


def fc(x, w, b):
    """x:(N,K) bf16, w:(K,P) bf16, b:(1,P) f32 -> (N,P) f32."""
    N, K = x.shape
    P = w.shape[1]
    # Row tiles: multiples of 8 sublanes, >= 2 grid steps when N > 1 (v7x),
    # capped at 256 rows/step.
    tn = min(256, max(8, _round_up(_cdiv(N, 2), 8)))
    g = max(2 if N > 1 else 1, _cdiv(N, tn))
    n_pad = g * tn
    if n_pad != N:
        x = jnp.pad(x, ((0, n_pad - N), (0, 0)))
    out = pl.pallas_call(
        _fc_kernel,
        grid=(g,),
        out_shape=jax.ShapeDtypeStruct((n_pad, P), jnp.float32),
        in_specs=[pl.BlockSpec((tn, K), lambda i: (i, 0)),
                  pl.BlockSpec((K, P), lambda i: (0, 0)),
                  pl.BlockSpec((1, P), lambda i: (0, 0))],
        out_specs=pl.BlockSpec((tn, P), lambda i: (i, 0)),
        compiler_params=pltpu.CompilerParams(
            dimension_semantics=("parallel",)),
    )(x, w, b)
    return out[:N]


# ------------------------------- full forward ------------------------------- #

def cnn_forward(x_nchw, p):
    N = x_nchw.shape[0]
    # NCHW (Cin=1) -> row layout (N, H, W*C) with (w, c) lane order.
    x1 = x_nchw.reshape(N, 28, 28).astype(jnp.bfloat16)

    # layer1: Conv2d(1,16,5,pad=2)+BN(16)+ReLU+MaxPool(2)  -> (N, 14, 14*16)
    h1 = _conv_bn_relu_pool(x1, p["w1"], p["g1"], p["be1"], H_in=28, W_in=28)
    # layer2: Conv2d(16,32,5,pad=2)+BN(32)+ReLU+MaxPool(2) -> (N, 7, 7*32)
    h2 = _conv_bn_relu_pool(h1, p["w2"], p["g2"], p["be2"], H_in=14, W_in=14)

    # fc: permute the tiny weight from NCHW (c,h,w) flatten order to the
    # (h,w,c) order of h2, pad the 10 outputs to 128 lanes, slice back after.
    wfc = p["wfc"].reshape(10, 32, 7, 7).transpose(0, 2, 3, 1).reshape(10, -1)
    w_t = jnp.pad(wfc.T, ((0, 0), (0, 128 - 10))).astype(jnp.bfloat16)
    b_p = jnp.pad(p["bfc"], (0, 128 - 10)).reshape(1, 128).astype(jnp.float32)
    flat = h2.reshape(N, 7 * 7 * 32)
    return fc(flat, w_t, b_p)[:, :10]


# ------------------------- pure-JAX reference check ------------------------- #

def _ref_forward(x_nchw, p):
    def conv(x, w, b):
        y = lax.conv_general_dilated(x, w, (1, 1), ((2, 2), (2, 2)),
                                     dimension_numbers=("NCHW", "OIHW", "NCHW"))
        return y + b[None, :, None, None]

    def bn(y, g, b):
        m = jnp.mean(y, axis=(0, 2, 3), keepdims=True)
        v = jnp.mean(jnp.square(y - m), axis=(0, 2, 3), keepdims=True)
        return (y - m) * lax.rsqrt(v + EPS) * g[None, :, None, None] + b[None, :, None, None]

    def pool(y):
        return lax.reduce_window(y, -jnp.inf, lax.max,
                                 (1, 1, 2, 2), (1, 1, 2, 2), "VALID")

    y = pool(jnp.maximum(bn(conv(x_nchw, p["w1"], p["b1"]), p["g1"], p["be1"]), 0.0))
    y = pool(jnp.maximum(bn(conv(y, p["w2"], p["b2"]), p["g2"], p["be2"]), 0.0))
    flat = y.reshape(y.shape[0], -1)
    return flat @ p["wfc"].T + p["bfc"]


if __name__ == "__main__":
    key = jax.random.PRNGKey(0)
    ks = jax.random.split(key, 12)
    # Shapes implied by the module: input (N,1,28,28) so fc sees 7*7*32 features.
    x = jax.random.normal(ks[0], (2, 1, 28, 28), jnp.float32)
    p = {
        "w1": 0.1 * jax.random.normal(ks[1], (16, 1, 5, 5), jnp.float32),
        "b1": 0.1 * jax.random.normal(ks[2], (16,), jnp.float32),
        "g1": 1.0 + 0.1 * jax.random.normal(ks[3], (16,), jnp.float32),
        "be1": 0.1 * jax.random.normal(ks[4], (16,), jnp.float32),
        "w2": 0.05 * jax.random.normal(ks[5], (32, 16, 5, 5), jnp.float32),
        "b2": 0.1 * jax.random.normal(ks[6], (32,), jnp.float32),
        "g2": 1.0 + 0.1 * jax.random.normal(ks[7], (32,), jnp.float32),
        "be2": 0.1 * jax.random.normal(ks[8], (32,), jnp.float32),
        "wfc": 0.05 * jax.random.normal(ks[9], (10, 7 * 7 * 32), jnp.float32),
        "bfc": 0.1 * jax.random.normal(ks[10], (10,), jnp.float32),
    }

    out = jax.block_until_ready(jax.jit(cnn_forward)(x, p))
    assert out.shape == (2, 10) and out.dtype == jnp.float32

    ref = _ref_forward(x, p)
    # bf16 MXU inputs / bf16 inter-layer activations (vs the f32 reference)
    # give ~1e-2-level differences after two BN-normalized conv layers.
    assert jnp.allclose(out, ref, rtol=1e-1, atol=1e-1), (
        f"max abs diff {float(jnp.max(jnp.abs(out - ref)))}")
    print("KERNEL_OK")
</pallas_src>

<mosaic_0001>
module attributes {stable_mosaic.version = 11 : i64} {
  func.func @_conv_stats_kernel(%arg0: i32, %arg1: memref<1x16x64xbf16, #tpu.memory_space<vmem>>, %arg2: memref<3x64x896xbf16, #tpu.memory_space<vmem>>, %arg3: memref<1x2x896xf32, #tpu.memory_space<vmem>>) attributes {dimension_semantics = [#tpu.dimension_semantics<parallel>], iteration_bounds = array<i64: 2>, scalar_prefetch = 0 : i64, scratch_operands = 0 : i64, tpu.core_type = #tpu.core_type<tc>, window_params = [{transform_indices = @transform_0, window_bounds = array<i64: 1, 16, 64>}, {pipeline_mode = #tpu.pipeline_mode<synchronous>, transform_indices = @transform_1, window_bounds = array<i64: 3, 64, 896>}, {transform_indices = @transform_2, window_bounds = array<i64: 1, 2, 896>}]} {
    %cst = arith.constant 0.000000e+00 : f32
    %0 = vector.broadcast %cst : f32 to vector<1x896xf32>
    %cst_0 = arith.constant 0.000000e+00 : f32
    %1 = vector.broadcast %cst_0 : f32 to vector<1x896xf32>
    %c0 = arith.constant 0 : index
    %c0_1 = arith.constant 0 : index
    %c0_2 = arith.constant 0 : index
    %2 = vector.load %arg1[%c0, %c0_1, %c0_2] : memref<1x16x64xbf16, #tpu.memory_space<vmem>>, vector<1x16x64xbf16>
    %3 = vector.shape_cast %2 : vector<1x16x64xbf16> to vector<16x64xbf16>
    %4 = vector.extract_strided_slice %3 {offsets = [0, 0], sizes = [14, 64], strides = [1, 1]} : vector<16x64xbf16> to vector<14x64xbf16>
    %c0_3 = arith.constant 0 : index
    %c0_4 = arith.constant 0 : index
    %c0_5 = arith.constant 0 : index
    %5 = vector.load %arg2[%c0_3, %c0_4, %c0_5] : memref<3x64x896xbf16, #tpu.memory_space<vmem>>, vector<1x64x896xbf16>
    %6 = vector.shape_cast %5 : vector<1x64x896xbf16> to vector<64x896xbf16>
    %cst_6 = arith.constant dense<0.000000e+00> : vector<14x896xf32>
    %7 = tpu.matmul %4, %6, %cst_6 {dimension_numbers = #tpu.dot_dimension_numbers<[1], [0], [0], [1], [0, 0, 1, 1], [], []>} : vector<14x64xbf16>, vector<64x896xbf16>, vector<14x896xf32> -> vector<14x896xf32>
    %8 = vector.extract_strided_slice %3 {offsets = [1, 0], sizes = [14, 64], strides = [1, 1]} : vector<16x64xbf16> to vector<14x64xbf16>
    %c1 = arith.constant 1 : index
    %c0_7 = arith.constant 0 : index
    %c0_8 = arith.constant 0 : index
    %9 = vector.load %arg2[%c1, %c0_7, %c0_8] : memref<3x64x896xbf16, #tpu.memory_space<vmem>>, vector<1x64x896xbf16>
    %10 = vector.shape_cast %9 : vector<1x64x896xbf16> to vector<64x896xbf16>
    %cst_9 = arith.constant dense<0.000000e+00> : vector<14x896xf32>
    %11 = tpu.matmul %8, %10, %cst_9 {dimension_numbers = #tpu.dot_dimension_numbers<[1], [0], [0], [1], [0, 0, 1, 1], [], []>} : vector<14x64xbf16>, vector<64x896xbf16>, vector<14x896xf32> -> vector<14x896xf32>
    %12 = arith.addf %7, %11 : vector<14x896xf32>
    %13 = vector.extract_strided_slice %3 {offsets = [2, 0], sizes = [14, 64], strides = [1, 1]} : vector<16x64xbf16> to vector<14x64xbf16>
    %c2 = arith.constant 2 : index
    %c0_10 = arith.constant 0 : index
    %c0_11 = arith.constant 0 : index
    %14 = vector.load %arg2[%c2, %c0_10, %c0_11] : memref<3x64x896xbf16, #tpu.memory_space<vmem>>, vector<1x64x896xbf16>
    %15 = vector.shape_cast %14 : vector<1x64x896xbf16> to vector<64x896xbf16>
    %cst_12 = arith.constant dense<0.000000e+00> : vector<14x896xf32>
    %16 = tpu.matmul %13, %15, %cst_12 {dimension_numbers = #tpu.dot_dimension_numbers<[1], [0], [0], [1], [0, 0, 1, 1], [], []>} : vector<14x64xbf16>, vector<64x896xbf16>, vector<14x896xf32> -> vector<14x896xf32>
    %17 = arith.addf %12, %16 : vector<14x896xf32>
    %cst_13 = arith.constant dense<0.000000e+00> : vector<896xf32>
    %18 = vector.multi_reduction <add>, %17, %cst_13 [0] : vector<14x896xf32> to vector<896xf32>
    %19 = vector.shape_cast %18 : vector<896xf32> to vector<1x896xf32>
    %20 = arith.addf %0, %19 : vector<1x896xf32>
    %21 = arith.mulf %17, %17 : vector<14x896xf32>
    %cst_14 = arith.constant dense<0.000000e+00> : vector<896xf32>
    %22 = vector.multi_reduction <add>, %21, %cst_14 [0] : vector<14x896xf32> to vector<896xf32>
    %23 = vector.shape_cast %22 : vector<896xf32> to vector<1x896xf32>
    %24 = arith.addf %1, %23 : vector<1x896xf32>
    %25 = tpu.concatenate %20, %24 in 0 : vector<1x896xf32>, vector<1x896xf32> -> vector<2x896xf32>
    %c0_15 = arith.constant 0 : index
    %c0_16 = arith.constant 0 : index
    %c0_17 = arith.constant 0 : index
    %26 = vector.load %arg3[%c0_15, %c0_16, %c0_17] : memref<1x2x896xf32, #tpu.memory_space<vmem>>, vector<1x2x896xf32>
    %27 = vector.shape_cast %26 : vector<1x2x896xf32> to vector<2x896xf32>
    %28 = vector.shape_cast %25 : vector<2x896xf32> to vector<1x2x896xf32>
    tpu.vector_store %arg3[%c0_15, %c0_16, %c0_17], %28 {strides = array<i32>} : memref<1x2x896xf32, #tpu.memory_space<vmem>>, vector<1x2x896xf32>,
    return
  }
  func.func @transform_0(%arg0: i32) -> (i32, i32, i32) {
    %c0_i32 = arith.constant 0 : i32
    %c0_i32_0 = arith.constant 0 : i32
    %c0_i32_1 = arith.constant 0 : i32
    return %arg0, %c0_i32, %c0_i32_0 : i32, i32, i32
  }
  func.func @transform_1(%arg0: i32) -> (i32, i32, i32) {
    %c0_i32 = arith.constant 0 : i32
    %c0_i32_0 = arith.constant 0 : i32
    %c0_i32_1 = arith.constant 0 : i32
    %c0_i32_2 = arith.constant 0 : i32
    return %c0_i32, %c0_i32_0, %c0_i32_1 : i32, i32, i32
  }
  func.func @transform_2(%arg0: i32) -> (i32, i32, i32) {
    %c0_i32 = arith.constant 0 : i32
    %c0_i32_0 = arith.constant 0 : i32
    %c0_i32_1 = arith.constant 0 : i32
    return %arg0, %c0_i32, %c0_i32_0 : i32, i32, i32
  }
}

module attributes {stable_mosaic.version = 11 : i64} {
  func.func @_conv_bn_pool_kernel(%arg0: i32, %arg1: memref<1x16x64xbf16, #tpu.memory_space<vmem>>, %arg2: memref<3x64x896xbf16, #tpu.memory_space<vmem>>, %arg3: memref<1x896xf32, #tpu.memory_space<vmem>>, %arg4: memref<1x896xf32, #tpu.memory_space<vmem>>, %arg5: memref<1x14x224xbf16, #tpu.memory_space<vmem>>) attributes {dimension_semantics = [#tpu.dimension_semantics<parallel>], iteration_bounds = array<i64: 2>, scalar_prefetch = 0 : i64, scratch_operands = 0 : i64, tpu.core_type = #tpu.core_type<tc>, window_params = [{transform_indices = @transform_0, window_bounds = array<i64: 1, 16, 64>}, {pipeline_mode = #tpu.pipeline_mode<synchronous>, transform_indices = @transform_1, window_bounds = array<i64: 3, 64, 896>}, {pipeline_mode = #tpu.pipeline_mode<synchronous>, transform_indices = @transform_2, window_bounds = array<i64: 1, 896>}, {pipeline_mode = #tpu.pipeline_mode<synchronous>, transform_indices = @transform_3, window_bounds = array<i64: 1, 896>}, {transform_indices = @transform_4, window_bounds = array<i64: 1, 14, 224>}]} {
    %c0 = arith.constant 0 : index
    %c0_0 = arith.constant 0 : index
    %c0_1 = arith.constant 0 : index
    %0 = vector.load %arg1[%c0, %c0_0, %c0_1] : memref<1x16x64xbf16, #tpu.memory_space<vmem>>, vector<1x16x64xbf16>
    %1 = vector.shape_cast %0 : vector<1x16x64xbf16> to vector<16x64xbf16>
    %2 = vector.extract_strided_slice %1 {offsets = [0, 0], sizes = [14, 64], strides = [1, 1]} : vector<16x64xbf16> to vector<14x64xbf16>
    %c0_2 = arith.constant 0 : index
    %c0_3 = arith.constant 0 : index
    %c0_4 = arith.constant 0 : index
    %3 = vector.load %arg2[%c0_2, %c0_3, %c0_4] : memref<3x64x896xbf16, #tpu.memory_space<vmem>>, vector<1x64x896xbf16>
    %4 = vector.shape_cast %3 : vector<1x64x896xbf16> to vector<64x896xbf16>
    %cst = arith.constant dense<0.000000e+00> : vector<14x896xf32>
    %5 = tpu.matmul %2, %4, %cst {dimension_numbers = #tpu.dot_dimension_numbers<[1], [0], [0], [1], [0, 0, 1, 1], [], []>} : vector<14x64xbf16>, vector<64x896xbf16>, vector<14x896xf32> -> vector<14x896xf32>
    %6 = vector.extract_strided_slice %1 {offsets = [1, 0], sizes = [14, 64], strides = [1, 1]} : vector<16x64xbf16> to vector<14x64xbf16>
    %c1 = arith.constant 1 : index
    %c0_5 = arith.constant 0 : index
    %c0_6 = arith.constant 0 : index
    %7 = vector.load %arg2[%c1, %c0_5, %c0_6] : memref<3x64x896xbf16, #tpu.memory_space<vmem>>, vector<1x64x896xbf16>
    %8 = vector.shape_cast %7 : vector<1x64x896xbf16> to vector<64x896xbf16>
    %cst_7 = arith.constant dense<0.000000e+00> : vector<14x896xf32>
    %9 = tpu.matmul %6, %8, %cst_7 {dimension_numbers = #tpu.dot_dimension_numbers<[1], [0], [0], [1], [0, 0, 1, 1], [], []>} : vector<14x64xbf16>, vector<64x896xbf16>, vector<14x896xf32> -> vector<14x896xf32>
    %10 = arith.addf %5, %9 : vector<14x896xf32>
    %11 = vector.extract_strided_slice %1 {offsets = [2, 0], sizes = [14, 64], strides = [1, 1]} : vector<16x64xbf16> to vector<14x64xbf16>
    %c2 = arith.constant 2 : index
    %c0_8 = arith.constant 0 : index
    %c0_9 = arith.constant 0 : index
    %12 = vector.load %arg2[%c2, %c0_8, %c0_9] : memref<3x64x896xbf16, #tpu.memory_space<vmem>>, vector<1x64x896xbf16>
    %13 = vector.shape_cast %12 : vector<1x64x896xbf16> to vector<64x896xbf16>
    %cst_10 = arith.constant dense<0.000000e+00> : vector<14x896xf32>
    %14 = tpu.matmul %11, %13, %cst_10 {dimension_numbers = #tpu.dot_dimension_numbers<[1], [0], [0], [1], [0, 0, 1, 1], [], []>} : vector<14x64xbf16>, vector<64x896xbf16>, vector<14x896xf32> -> vector<14x896xf32>
    %15 = arith.addf %10, %14 : vector<14x896xf32>
    %c0_11 = arith.constant 0 : index
    %c0_12 = arith.constant 0 : index
    %16 = vector.load %arg3[%c0_11, %c0_12] : memref<1x896xf32, #tpu.memory_space<vmem>>, vector<1x896xf32>
    %17 = vector.broadcast %16 : vector<1x896xf32> to vector<14x896xf32>
    %18 = arith.mulf %15, %17 : vector<14x896xf32>
    %c0_13 = arith.constant 0 : index
    %c0_14 = arith.constant 0 : index
    %19 = vector.load %arg4[%c0_13, %c0_14] : memref<1x896xf32, #tpu.memory_space<vmem>>, vector<1x896xf32>
    %20 = vector.broadcast %19 : vector<1x896xf32> to vector<14x896xf32>
    %21 = arith.addf %18, %20 : vector<14x896xf32>
    %cst_15 = arith.constant 0.000000e+00 : f32
    %22 = vector.broadcast %cst_15 : f32 to vector<14x896xf32>
    %23 = arith.maximumf %21, %22 : vector<14x896xf32>
    %24 = vector.extract_strided_slice %23 {offsets = [0, 0], sizes = [14, 224], strides = [1, 1]} : vector<14x896xf32> to vector<14x224xf32>
    %25 = vector.extract_strided_slice %23 {offsets = [0, 224], sizes = [14, 224], strides = [1, 1]} : vector<14x896xf32> to vector<14x224xf32>
    %26 = arith.maximumf %24, %25 : vector<14x224xf32>
    %27 = vector.extract_strided_slice %23 {offsets = [0, 448], sizes = [14, 224], strides = [1, 1]} : vector<14x896xf32> to vector<14x224xf32>
    %28 = vector.extract_strided_slice %23 {offsets = [0, 672], sizes = [14, 224], strides = [1, 1]} : vector<14x896xf32> to vector<14x224xf32>
    %29 = arith.maximumf %27, %28 : vector<14x224xf32>
    %30 = arith.maximumf %26, %29 : vector<14x224xf32>
    %31 = arith.truncf %30 : vector<14x224xf32> to vector<14x224xbf16>
    %c0_16 = arith.constant 0 : index
    %c0_17 = arith.constant 0 : index
    %c0_18 = arith.constant 0 : index
    %32 = vector.load %arg5[%c0_16, %c0_17, %c0_18] : memref<1x14x224xbf16, #tpu.memory_space<vmem>>, vector<1x14x224xbf16>
    %33 = vector.shape_cast %32 : vector<1x14x224xbf16> to vector<14x224xbf16>
    %34 = vector.shape_cast %31 : vector<14x224xbf16> to vector<1x14x224xbf16>
    tpu.vector_store %arg5[%c0_16, %c0_17, %c0_18], %34 {strides = array<i32>} : memref<1x14x224xbf16, #tpu.memory_space<vmem>>, vector<1x14x224xbf16>,
    return
  }
  func.func @transform_0(%arg0: i32) -> (i32, i32, i32) {
    %c0_i32 = arith.constant 0 : i32
    %c0_i32_0 = arith.constant 0 : i32
    %c0_i32_1 = arith.constant 0 : i32
    return %arg0, %c0_i32, %c0_i32_0 : i32, i32, i32
  }
  func.func @transform_1(%arg0: i32) -> (i32, i32, i32) {
    %c0_i32 = arith.constant 0 : i32
    %c0_i32_0 = arith.constant 0 : i32
    %c0_i32_1 = arith.constant 0 : i32
    %c0_i32_2 = arith.constant 0 : i32
    return %c0_i32, %c0_i32_0, %c0_i32_1 : i32, i32, i32
  }
  func.func @transform_2(%arg0: i32) -> (i32, i32) {
    %c0_i32 = arith.constant 0 : i32
    %c0_i32_0 = arith.constant 0 : i32
    %c0_i32_1 = arith.constant 0 : i32
    return %c0_i32, %c0_i32_0 : i32, i32
  }
  func.func @transform_3(%arg0: i32) -> (i32, i32) {
    %c0_i32 = arith.constant 0 : i32
    %c0_i32_0 = arith.constant 0 : i32
    %c0_i32_1 = arith.constant 0 : i32
    return %c0_i32, %c0_i32_0 : i32, i32
  }
  func.func @transform_4(%arg0: i32) -> (i32, i32, i32) {
    %c0_i32 = arith.constant 0 : i32
    %c0_i32_0 = arith.constant 0 : i32
    %c0_i32_1 = arith.constant 0 : i32
    return %arg0, %c0_i32, %c0_i32_0 : i32, i32, i32
  }
}

module attributes {stable_mosaic.version = 11 : i64} {
  func.func @_conv_stats_kernel(%arg0: i32, %arg1: memref<1x9x448xbf16, #tpu.memory_space<vmem>>, %arg2: memref<3x448x896xbf16, #tpu.memory_space<vmem>>, %arg3: memref<1x2x896xf32, #tpu.memory_space<vmem>>) attributes {dimension_semantics = [#tpu.dimension_semantics<parallel>], iteration_bounds = array<i64: 2>, scalar_prefetch = 0 : i64, scratch_operands = 0 : i64, tpu.core_type = #tpu.core_type<tc>, window_params = [{transform_indices = @transform_0, window_bounds = array<i64: 1, 9, 448>}, {pipeline_mode = #tpu.pipeline_mode<synchronous>, transform_indices = @transform_1, window_bounds = array<i64: 3, 448, 896>}, {transform_indices = @transform_2, window_bounds = array<i64: 1, 2, 896>}]} {
    %cst = arith.constant 0.000000e+00 : f32
    %0 = vector.broadcast %cst : f32 to vector<1x896xf32>
    %cst_0 = arith.constant 0.000000e+00 : f32
    %1 = vector.broadcast %cst_0 : f32 to vector<1x896xf32>
    %c0 = arith.constant 0 : index
    %c0_1 = arith.constant 0 : index
    %c0_2 = arith.constant 0 : index
    %2 = vector.load %arg1[%c0, %c0_1, %c0_2] : memref<1x9x448xbf16, #tpu.memory_space<vmem>>, vector<1x9x448xbf16>
    %3 = vector.shape_cast %2 : vector<1x9x448xbf16> to vector<9x448xbf16>
    %4 = vector.extract_strided_slice %3 {offsets = [0, 0], sizes = [7, 448], strides = [1, 1]} : vector<9x448xbf16> to vector<7x448xbf16>
    %c0_3 = arith.constant 0 : index
    %c0_4 = arith.constant 0 : index
    %c0_5 = arith.constant 0 : index
    %5 = vector.load %arg2[%c0_3, %c0_4, %c0_5] : memref<3x448x896xbf16, #tpu.memory_space<vmem>>, vector<1x448x896xbf16>
    %6 = vector.shape_cast %5 : vector<1x448x896xbf16> to vector<448x896xbf16>
    %cst_6 = arith.constant dense<0.000000e+00> : vector<7x896xf32>
    %7 = tpu.matmul %4, %6, %cst_6 {dimension_numbers = #tpu.dot_dimension_numbers<[1], [0], [0], [1], [0, 0, 1, 1], [], []>} : vector<7x448xbf16>, vector<448x896xbf16>, vector<7x896xf32> -> vector<7x896xf32>
    %8 = vector.extract_strided_slice %3 {offsets = [1, 0], sizes = [7, 448], strides = [1, 1]} : vector<9x448xbf16> to vector<7x448xbf16>
    %c1 = arith.constant 1 : index
    %c0_7 = arith.constant 0 : index
    %c0_8 = arith.constant 0 : index
    %9 = vector.load %arg2[%c1, %c0_7, %c0_8] : memref<3x448x896xbf16, #tpu.memory_space<vmem>>, vector<1x448x896xbf16>
    %10 = vector.shape_cast %9 : vector<1x448x896xbf16> to vector<448x896xbf16>
    %cst_9 = arith.constant dense<0.000000e+00> : vector<7x896xf32>
    %11 = tpu.matmul %8, %10, %cst_9 {dimension_numbers = #tpu.dot_dimension_numbers<[1], [0], [0], [1], [0, 0, 1, 1], [], []>} : vector<7x448xbf16>, vector<448x896xbf16>, vector<7x896xf32> -> vector<7x896xf32>
    %12 = arith.addf %7, %11 : vector<7x896xf32>
    %13 = vector.extract_strided_slice %3 {offsets = [2, 0], sizes = [7, 448], strides = [1, 1]} : vector<9x448xbf16> to vector<7x448xbf16>
    %c2 = arith.constant 2 : index
    %c0_10 = arith.constant 0 : index
    %c0_11 = arith.constant 0 : index
    %14 = vector.load %arg2[%c2, %c0_10, %c0_11] : memref<3x448x896xbf16, #tpu.memory_space<vmem>>, vector<1x448x896xbf16>
    %15 = vector.shape_cast %14 : vector<1x448x896xbf16> to vector<448x896xbf16>
    %cst_12 = arith.constant dense<0.000000e+00> : vector<7x896xf32>
    %16 = tpu.matmul %13, %15, %cst_12 {dimension_numbers = #tpu.dot_dimension_numbers<[1], [0], [0], [1], [0, 0, 1, 1], [], []>} : vector<7x448xbf16>, vector<448x896xbf16>, vector<7x896xf32> -> vector<7x896xf32>
    %17 = arith.addf %12, %16 : vector<7x896xf32>
    %cst_13 = arith.constant dense<0.000000e+00> : vector<896xf32>
    %18 = vector.multi_reduction <add>, %17, %cst_13 [0] : vector<7x896xf32> to vector<896xf32>
    %19 = vector.shape_cast %18 : vector<896xf32> to vector<1x896xf32>
    %20 = arith.addf %0, %19 : vector<1x896xf32>
    %21 = arith.mulf %17, %17 : vector<7x896xf32>
    %cst_14 = arith.constant dense<0.000000e+00> : vector<896xf32>
    %22 = vector.multi_reduction <add>, %21, %cst_14 [0] : vector<7x896xf32> to vector<896xf32>
    %23 = vector.shape_cast %22 : vector<896xf32> to vector<1x896xf32>
    %24 = arith.addf %1, %23 : vector<1x896xf32>
    %25 = tpu.concatenate %20, %24 in 0 : vector<1x896xf32>, vector<1x896xf32> -> vector<2x896xf32>
    %c0_15 = arith.constant 0 : index
    %c0_16 = arith.constant 0 : index
    %c0_17 = arith.constant 0 : index
    %26 = vector.load %arg3[%c0_15, %c0_16, %c0_17] : memref<1x2x896xf32, #tpu.memory_space<vmem>>, vector<1x2x896xf32>
    %27 = vector.shape_cast %26 : vector<1x2x896xf32> to vector<2x896xf32>
    %28 = vector.shape_cast %25 : vector<2x896xf32> to vector<1x2x896xf32>
    tpu.vector_store %arg3[%c0_15, %c0_16, %c0_17], %28 {strides = array<i32>} : memref<1x2x896xf32, #tpu.memory_space<vmem>>, vector<1x2x896xf32>,
    return
  }
  func.func @transform_0(%arg0: i32) -> (i32, i32, i32) {
    %c0_i32 = arith.constant 0 : i32
    %c0_i32_0 = arith.constant 0 : i32
    %c0_i32_1 = arith.constant 0 : i32
    return %arg0, %c0_i32, %c0_i32_0 : i32, i32, i32
  }
  func.func @transform_1(%arg0: i32) -> (i32, i32, i32) {
    %c0_i32 = arith.constant 0 : i32
    %c0_i32_0 = arith.constant 0 : i32
    %c0_i32_1 = arith.constant 0 : i32
    %c0_i32_2 = arith.constant 0 : i32
    return %c0_i32, %c0_i32_0, %c0_i32_1 : i32, i32, i32
  }
  func.func @transform_2(%arg0: i32) -> (i32, i32, i32) {
    %c0_i32 = arith.constant 0 : i32
    %c0_i32_0 = arith.constant 0 : i32
    %c0_i32_1 = arith.constant 0 : i32
    return %arg0, %c0_i32, %c0_i32_0 : i32, i32, i32
  }
}

module attributes {stable_mosaic.version = 11 : i64} {
  func.func @_conv_bn_pool_kernel(%arg0: i32, %arg1: memref<1x9x448xbf16, #tpu.memory_space<vmem>>, %arg2: memref<3x448x896xbf16, #tpu.memory_space<vmem>>, %arg3: memref<1x896xf32, #tpu.memory_space<vmem>>, %arg4: memref<1x896xf32, #tpu.memory_space<vmem>>, %arg5: memref<1x7x224xbf16, #tpu.memory_space<vmem>>) attributes {dimension_semantics = [#tpu.dimension_semantics<parallel>], iteration_bounds = array<i64: 2>, scalar_prefetch = 0 : i64, scratch_operands = 0 : i64, tpu.core_type = #tpu.core_type<tc>, window_params = [{transform_indices = @transform_0, window_bounds = array<i64: 1, 9, 448>}, {pipeline_mode = #tpu.pipeline_mode<synchronous>, transform_indices = @transform_1, window_bounds = array<i64: 3, 448, 896>}, {pipeline_mode = #tpu.pipeline_mode<synchronous>, transform_indices = @transform_2, window_bounds = array<i64: 1, 896>}, {pipeline_mode = #tpu.pipeline_mode<synchronous>, transform_indices = @transform_3, window_bounds = array<i64: 1, 896>}, {transform_indices = @transform_4, window_bounds = array<i64: 1, 7, 224>}]} {
    %c0 = arith.constant 0 : index
    %c0_0 = arith.constant 0 : index
    %c0_1 = arith.constant 0 : index
    %0 = vector.load %arg1[%c0, %c0_0, %c0_1] : memref<1x9x448xbf16, #tpu.memory_space<vmem>>, vector<1x9x448xbf16>
    %1 = vector.shape_cast %0 : vector<1x9x448xbf16> to vector<9x448xbf16>
    %2 = vector.extract_strided_slice %1 {offsets = [0, 0], sizes = [7, 448], strides = [1, 1]} : vector<9x448xbf16> to vector<7x448xbf16>
    %c0_2 = arith.constant 0 : index
    %c0_3 = arith.constant 0 : index
    %c0_4 = arith.constant 0 : index
    %3 = vector.load %arg2[%c0_2, %c0_3, %c0_4] : memref<3x448x896xbf16, #tpu.memory_space<vmem>>, vector<1x448x896xbf16>
    %4 = vector.shape_cast %3 : vector<1x448x896xbf16> to vector<448x896xbf16>
    %cst = arith.constant dense<0.000000e+00> : vector<7x896xf32>
    %5 = tpu.matmul %2, %4, %cst {dimension_numbers = #tpu.dot_dimension_numbers<[1], [0], [0], [1], [0, 0, 1, 1], [], []>} : vector<7x448xbf16>, vector<448x896xbf16>, vector<7x896xf32> -> vector<7x896xf32>
    %6 = vector.extract_strided_slice %1 {offsets = [1, 0], sizes = [7, 448], strides = [1, 1]} : vector<9x448xbf16> to vector<7x448xbf16>
    %c1 = arith.constant 1 : index
    %c0_5 = arith.constant 0 : index
    %c0_6 = arith.constant 0 : index
    %7 = vector.load %arg2[%c1, %c0_5, %c0_6] : memref<3x448x896xbf16, #tpu.memory_space<vmem>>, vector<1x448x896xbf16>
    %8 = vector.shape_cast %7 : vector<1x448x896xbf16> to vector<448x896xbf16>
    %cst_7 = arith.constant dense<0.000000e+00> : vector<7x896xf32>
    %9 = tpu.matmul %6, %8, %cst_7 {dimension_numbers = #tpu.dot_dimension_numbers<[1], [0], [0], [1], [0, 0, 1, 1], [], []>} : vector<7x448xbf16>, vector<448x896xbf16>, vector<7x896xf32> -> vector<7x896xf32>
    %10 = arith.addf %5, %9 : vector<7x896xf32>
    %11 = vector.extract_strided_slice %1 {offsets = [2, 0], sizes = [7, 448], strides = [1, 1]} : vector<9x448xbf16> to vector<7x448xbf16>
    %c2 = arith.constant 2 : index
    %c0_8 = arith.constant 0 : index
    %c0_9 = arith.constant 0 : index
    %12 = vector.load %arg2[%c2, %c0_8, %c0_9] : memref<3x448x896xbf16, #tpu.memory_space<vmem>>, vector<1x448x896xbf16>
    %13 = vector.shape_cast %12 : vector<1x448x896xbf16> to vector<448x896xbf16>
    %cst_10 = arith.constant dense<0.000000e+00> : vector<7x896xf32>
    %14 = tpu.matmul %11, %13, %cst_10 {dimension_numbers = #tpu.dot_dimension_numbers<[1], [0], [0], [1], [0, 0, 1, 1], [], []>} : vector<7x448xbf16>, vector<448x896xbf16>, vector<7x896xf32> -> vector<7x896xf32>
    %15 = arith.addf %10, %14 : vector<7x896xf32>
    %c0_11 = arith.constant 0 : index
    %c0_12 = arith.constant 0 : index
    %16 = vector.load %arg3[%c0_11, %c0_12] : memref<1x896xf32, #tpu.memory_space<vmem>>, vector<1x896xf32>
    %17 = vector.broadcast %16 : vector<1x896xf32> to vector<7x896xf32>
    %18 = arith.mulf %15, %17 : vector<7x896xf32>
    %c0_13 = arith.constant 0 : index
    %c0_14 = arith.constant 0 : index
    %19 = vector.load %arg4[%c0_13, %c0_14] : memref<1x896xf32, #tpu.memory_space<vmem>>, vector<1x896xf32>
    %20 = vector.broadcast %19 : vector<1x896xf32> to vector<7x896xf32>
    %21 = arith.addf %18, %20 : vector<7x896xf32>
    %cst_15 = arith.constant 0.000000e+00 : f32
    %22 = vector.broadcast %cst_15 : f32 to vector<7x896xf32>
    %23 = arith.maximumf %21, %22 : vector<7x896xf32>
    %24 = vector.extract_strided_slice %23 {offsets = [0, 0], sizes = [7, 224], strides = [1, 1]} : vector<7x896xf32> to vector<7x224xf32>
    %25 = vector.extract_strided_slice %23 {offsets = [0, 224], sizes = [7, 224], strides = [1, 1]} : vector<7x896xf32> to vector<7x224xf32>
    %26 = arith.maximumf %24, %25 : vector<7x224xf32>
    %27 = vector.extract_strided_slice %23 {offsets = [0, 448], sizes = [7, 224], strides = [1, 1]} : vector<7x896xf32> to vector<7x224xf32>
    %28 = vector.extract_strided_slice %23 {offsets = [0, 672], sizes = [7, 224], strides = [1, 1]} : vector<7x896xf32> to vector<7x224xf32>
    %29 = arith.maximumf %27, %28 : vector<7x224xf32>
    %30 = arith.maximumf %26, %29 : vector<7x224xf32>
    %31 = arith.truncf %30 : vector<7x224xf32> to vector<7x224xbf16>
    %c0_16 = arith.constant 0 : index
    %c0_17 = arith.constant 0 : index
    %c0_18 = arith.constant 0 : index
    %32 = vector.load %arg5[%c0_16, %c0_17, %c0_18] : memref<1x7x224xbf16, #tpu.memory_space<vmem>>, vector<1x7x224xbf16>
    %33 = vector.shape_cast %32 : vector<1x7x224xbf16> to vector<7x224xbf16>
    %34 = vector.shape_cast %31 : vector<7x224xbf16> to vector<1x7x224xbf16>
    tpu.vector_store %arg5[%c0_16, %c0_17, %c0_18], %34 {strides = array<i32>} : memref<1x7x224xbf16, #tpu.memory_space<vmem>>, vector<1x7x224xbf16>,
    return
  }
  func.func @transform_0(%arg0: i32) -> (i32, i32, i32) {
    %c0_i32 = arith.constant 0 : i32
    %c0_i32_0 = arith.constant 0 : i32
    %c0_i32_1 = arith.constant 0 : i32
    return %arg0, %c0_i32, %c0_i32_0 : i32, i32, i32
  }
  func.func @transform_1(%arg0: i32) -> (i32, i32, i32) {
    %c0_i32 = arith.constant 0 : i32
    %c0_i32_0 = arith.constant 0 : i32
    %c0_i32_1 = arith.constant 0 : i32
    %c0_i32_2 = arith.constant 0 : i32
    return %c0_i32, %c0_i32_0, %c0_i32_1 : i32, i32, i32
  }
  func.func @transform_2(%arg0: i32) -> (i32, i32) {
    %c0_i32 = arith.constant 0 : i32
    %c0_i32_0 = arith.constant 0 : i32
    %c0_i32_1 = arith.constant 0 : i32
    return %c0_i32, %c0_i32_0 : i32, i32
  }
  func.func @transform_3(%arg0: i32) -> (i32, i32) {
    %c0_i32 = arith.constant 0 : i32
    %c0_i32_0 = arith.constant 0 : i32
    %c0_i32_1 = arith.constant 0 : i32
    return %c0_i32, %c0_i32_0 : i32, i32
  }
  func.func @transform_4(%arg0: i32) -> (i32, i32, i32) {
    %c0_i32 = arith.constant 0 : i32
    %c0_i32_0 = arith.constant 0 : i32
    %c0_i32_1 = arith.constant 0 : i32
    return %arg0, %c0_i32, %c0_i32_0 : i32, i32, i32
  }
}

module attributes {stable_mosaic.version = 11 : i64} {
  func.func @_fc_kernel(%arg0: i32, %arg1: memref<8x1568xbf16, #tpu.memory_space<vmem>>, %arg2: memref<1568x128xbf16, #tpu.memory_space<vmem>>, %arg3: memref<1x128xf32, #tpu.memory_space<vmem>>, %arg4: memref<8x128xf32, #tpu.memory_space<vmem>>) attributes {dimension_semantics = [#tpu.dimension_semantics<parallel>], iteration_bounds = array<i64: 2>, scalar_prefetch = 0 : i64, scratch_operands = 0 : i64, tpu.core_type = #tpu.core_type<tc>, window_params = [{transform_indices = @transform_0, window_bounds = array<i64: 8, 1568>}, {pipeline_mode = #tpu.pipeline_mode<synchronous>, transform_indices = @transform_1, window_bounds = array<i64: 1568, 128>}, {pipeline_mode = #tpu.pipeline_mode<synchronous>, transform_indices = @transform_2, window_bounds = array<i64: 1, 128>}, {transform_indices = @transform_3, window_bounds = array<i64: 8, 128>}]} {
    %c0 = arith.constant 0 : index
    %c0_0 = arith.constant 0 : index
    %0 = vector.load %arg1[%c0, %c0_0] : memref<8x1568xbf16, #tpu.memory_space<vmem>>, vector<8x1568xbf16>
    %c0_1 = arith.constant 0 : index
    %c0_2 = arith.constant 0 : index
    %1 = vector.load %arg2[%c0_1, %c0_2] : memref<1568x128xbf16, #tpu.memory_space<vmem>>, vector<1568x128xbf16>
    %cst = arith.constant dense<0.000000e+00> : vector<8x128xf32>
    %2 = tpu.matmul %0, %1, %cst {dimension_numbers = #tpu.dot_dimension_numbers<[1], [0], [0], [1], [0, 0, 1, 1], [], []>} : vector<8x1568xbf16>, vector<1568x128xbf16>, vector<8x128xf32> -> vector<8x128xf32>
    %c0_3 = arith.constant 0 : index
    %c0_4 = arith.constant 0 : index
    %3 = vector.load %arg3[%c0_3, %c0_4] : memref<1x128xf32, #tpu.memory_space<vmem>>, vector<1x128xf32>
    %4 = vector.broadcast %3 : vector<1x128xf32> to vector<8x128xf32>
    %5 = arith.addf %2, %4 : vector<8x128xf32>
    %c0_5 = arith.constant 0 : index
    %c0_6 = arith.constant 0 : index
    %6 = vector.load %arg4[%c0_5, %c0_6] : memref<8x128xf32, #tpu.memory_space<vmem>>, vector<8x128xf32>
    tpu.vector_store %arg4[%c0_5, %c0_6], %5 {strides = array<i32>} : memref<8x128xf32, #tpu.memory_space<vmem>>, vector<8x128xf32>,
    return
  }
  func.func @transform_0(%arg0: i32) -> (i32, i32) {
    %c0_i32 = arith.constant 0 : i32
    %c0_i32_0 = arith.constant 0 : i32
    return %arg0, %c0_i32 : i32, i32
  }
  func.func @transform_1(%arg0: i32) -> (i32, i32) {
    %c0_i32 = arith.constant 0 : i32
    %c0_i32_0 = arith.constant 0 : i32
    %c0_i32_1 = arith.constant 0 : i32
    return %c0_i32, %c0_i32_0 : i32, i32
  }
  func.func @transform_2(%arg0: i32) -> (i32, i32) {
    %c0_i32 = arith.constant 0 : i32
    %c0_i32_0 = arith.constant 0 : i32
    %c0_i32_1 = arith.constant 0 : i32
    return %c0_i32, %c0_i32_0 : i32, i32
  }
  func.func @transform_3(%arg0: i32) -> (i32, i32) {
    %c0_i32 = arith.constant 0 : i32
    %c0_i32_0 = arith.constant 0 : i32
    return %arg0, %c0_i32 : i32, i32
  }
}

</mosaic_0001>

<bundles_post_ra>
// kernel: cnn_forward.5
= control target key start
LH: loop header
LB: loop body
LE: loop exit
PB: predicated region body
PF: predicated region fallthrough
CT: control target
= control target key end

     0   :  { %s1887_s9 = smov 0   ;;  %s2247_s0 = inlined_call_operand.vmem [shape: bf16[2,16,64], index: 0, kind: input, shape index: {}]   ;;  %s2248_s1 = inlined_call_operand.vmem [shape: bf16[3,64,896], index: 1, kind: input, shape index: {}]   ;;  %s2249_s2 = inlined_call_operand.vmem [shape: f32[2,2,896], index: 2, kind: output, shape index: {}]  }
   0x1 LB: > { %s1471_s10 = sadd.s32 4294967295, %s1866_s9   ;;  %p1475_p0 = scmp.ge.s32.totalorder %s1866_s9, 1  ;;  %s1866_s9 = sphi %s1887_s9, %s12_s9  }
   0x2   : > { %p112_p1 = scmp.lt.s32.totalorder %s1866_s9, 3 }
   0x4   : > { %p113_p2 = pnand %p1475_p0, %p112_p1 }
   0x5   : > { %v1739_v0 = vld [vmem:[%s2248_s1 + $0xe4] ss:$28 sps:$4 sm:$0xff] (!%p113_p2)   ;;  %v1741_v1 = vld [vmem:[%s2248_s1 + $0xec] ss:$28 sps:$4 sm:$0xff] (!%p113_p2)   ;;  %v1868_v2 = vmov (!%p113_p2), 0   ;;  %p134_p3 = scmp.lt.s32.totalorder (!%p113_p2), %s1471_s10, 1 }
   0x6   : > { %116 = sbr.rel (%p113_p2) target bundleno = 350 (0x15e), region = 28  ;;  %404 = vmatprep.mubr.bf16.mxu0 (!%p113_p2), %v1868_v2  ;;  %447 = vmatprep.mubr.bf16.mxu1 (!%p113_p2), %v1868_v2  ;;  %v1743_v3 = vld [vmem:[%s2248_s1 + $0xe0] ss:$28 sps:$4 sm:$0xff] (!%p113_p2)   ;;  %v1744_v4 = vld [vmem:[%s2248_s1 + $0xe8] ss:$28 sps:$4 sm:$0xff] (!%p113_p2)   ;;  %vm368_vm0 = vcmask (!%p113_p2), 523264  }
   0x7   : > { %372 = vmatprep.subr.bf16.mxu0 (!%p113_p2), %v1739_v0  ;;  %415 = vmatprep.subr.bf16.mxu1 (!%p113_p2), %v1741_v1  ;;  %v1745_v5 = vld [vmem:[%s2248_s1 + $0x11c] ss:$28 sps:$4 sm:$0xff] (!%p113_p2)   ;;  %v1747_v6 = vld [vmem:[%s2248_s1 + $0x124] ss:$28 sps:$4 sm:$0xff] (!%p113_p2)   ;;  %v1751_v9 = vld [vmem:[%s2248_s1 + $0x154] ss:$28 sps:$4 sm:$0xff] (!%p113_p2)  }
   0x8   : > { %373 = vmatpush1.bf16.msra.mxu0 (!%p113_p2), %v1743_v3  ;;  %416 = vmatpush1.bf16.msra.mxu1 (!%p113_p2), %v1744_v4  ;;  %v1749_v7 = vld [vmem:[%s2248_s1 + $0x118] ss:$28 sps:$4 sm:$0xff] (!%p113_p2)   ;;  %v1750_v8 = vld [vmem:[%s2248_s1 + $0x120] ss:$28 sps:$4 sm:$0xff] (!%p113_p2)   ;;  %v1755_v11 = vld [vmem:[%s2248_s1 + $0x150] ss:$28 sps:$4 sm:$0xff] (!%p113_p2)  }
   0x9   : > { %374 = vmatprep.subr.bf16.mxu0 (!%p113_p2), %v1745_v5  ;;  %417 = vmatprep.subr.bf16.mxu1 (!%p113_p2), %v1747_v6  ;;  %v1753_v10 = vld [vmem:[%s2248_s1 + $0x15c] ss:$28 sps:$4 sm:$0xff] (!%p113_p2)   ;;  %v1757_v13 = vld [vmem:[%s2248_s1 + $0x18c] ss:$28 sps:$4 sm:$0xff] (!%p113_p2)   ;;  %v1759_v14 = vld [vmem:[%s2248_s1 + $0x194] ss:$28 sps:$4 sm:$0xff] (!%p113_p2)  }
   0xa   : > { %v1756_v12 = vld [vmem:[%s2248_s1 + $0x158] ss:$28 sps:$4 sm:$0xff] (!%p113_p2)   ;;  %v1761_v15 = vld [vmem:[%s2248_s1 + $0x188] ss:$28 sps:$4 sm:$0xff] (!%p113_p2)   ;;  %v1762_v16 = vld [vmem:[%s2248_s1 + $0x190] ss:$28 sps:$4 sm:$0xff] (!%p113_p2)  }
   0xb   : > { %v1765_v18 = vld [vmem:[%s2248_s1 + $0xf4] ss:$28 sps:$4 sm:$0xff] (!%p113_p2)   ;;  %v1869_v23 = vmov (!%p113_p2), 0.0   ;;  %v1770_v26 = vld [vmem:[%s2248_s1 + $0x12c] ss:$28 sps:$4 sm:$0xff] (!%p113_p2)   ;;  %vm1870_vm1 = vmmov (!%p113_p2), 0  }
   0xc   : > { %375 = vmatpush1.bf16.msra.mxu0 (!%p113_p2), %v1749_v7  ;;  %418 = vmatpush1.bf16.msra.mxu1 (!%p113_p2), %v1750_v8  ;;  %v1763_v22 = vld [vmem:[%s2248_s1 + $0xf0] ss:$28 sps:$4 sm:$0xff] (!%p113_p2)   ;;  %v1767_v24 = vld [vmem:[%s2248_s1 + $0xf8] ss:$28 sps:$4 sm:$0xff] (!%p113_p2)   ;;  %v1768_v27 = vld [vmem:[%s2248_s1 + $0x128] ss:$28 sps:$4 sm:$0xff] (!%p113_p2)  }
   0xd   : > { %s2251_s10 = smov (!%p134_p3, %s1471_s10), 1  ;;  %376 = vmatprep.subr.bf16.mxu0 %v1751_v9  ;;  %419 = vmatprep.subr.bf16.mxu1 %v1753_v10  ;;  %v1771_v28 = vld [vmem:[%s2248_s1 + $0x130] ss:$28 sps:$4 sm:$0xff]   ;;  %v1774_v29 = vld [vmem:[%s2248_s1 + $0x164] ss:$28 sps:$4 sm:$0xff]   ;;  %vm1223_vm2 = vcmask 1045504  }
   0xe   : > { %s1642_s29 = sshll.u32 %s2251_s10, 3  ;;  %v1772_v30 = vld [vmem:[%s2248_s1 + $0x160] ss:$28 sps:$4 sm:$0xff]   ;;  %v1775_v31 = vld [vmem:[%s2248_s1 + $0x168] ss:$28 sps:$4 sm:$0xff]   ;;  %vm1364_vm3 = vcmask 1040384  }
   0xf   : > { %s138_s16 = scalar_lea.vmem %s2247_s0, %s1642_s29  ;;  %v1778_v32 = vld [vmem:[%s2248_s1 + $0x19c] ss:$28 sps:$4 sm:$0xff]   ;;  %v1782_v35 = vld [vmem:[%s2248_s1 + $0x4] ss:$28 sps:$4 sm:$0xff]   ;;  %v1785_v36 = vld [vmem:[%s2248_s1 + $0xc] ss:$28 sps:$4 sm:$0xff]  }
  0x10   : > { %377 = vmatpush1.bf16.msra.mxu0 %v1755_v11  ;;  %420 = vmatpush1.bf16.msra.mxu1 %v1756_v12  ;;  %v1951_v17 = vld [vmem:[%s138_s16] sm:$0xff]   ;;  %v1776_v33 = vld [vmem:[%s2248_s1 + $0x198] ss:$28 sps:$4 sm:$0xff]   ;;  %v1792_v45 = vld [vmem:[%s2248_s1 + $0x70] ss:$28 sps:$4 sm:$0xff]   ;;  %s1726_s27 = smul.u32 14, %s2251_s10 }
  0x11   : > { %378 = vmatprep.subr.bf16.mxu0 %v1757_v13  ;;  %421 = vmatprep.subr.bf16.mxu1 %v1759_v14  ;;  %v218_v19 = vshrl.u32 %v1951_v17, 16  ;;  %v220_v20 = vshll.u32 %v1951_v17, 16  ;;  %v1779_v34 = vld [vmem:[%s2248_s1 + $0x1a0] ss:$28 sps:$4 sm:$0xff]   ;;  %v1783_v38 = vld [vmem:[%s2248_s1 + $0x8] ss:$28 sps:$4 sm:$0xff]  }
  0x12   : > { %v1780_v37 = vld [vmem:[%s2248_s1] ss:$28 sps:$4 sm:$0xff]   ;;  %v1786_v41 = vld [vmem:[%s2248_s1 + $0x38] ss:$28 sps:$4 sm:$0xff]   ;;  %v1800_v47 = vld [vmem:[%s2248_s1 + $0xac] ss:$28 sps:$4 sm:$0xff]   ;;  %s2234_s10 = scalar_lea.vmem %s2249_s2, %s1726_s27 }
  0x13   : > { %v222_v21 = vrot.slane %v220_v20, 1  ;;  %v1788_v39 = vld [vmem:[%s2248_s1 + $0x3c] ss:$28 sps:$4 sm:$0xff]   ;;  %v1791_v40 = vld [vmem:[%s2248_s1 + $0x44] ss:$28 sps:$4 sm:$0xff]  }
  0x14   : > { %379 = vmatpush1.bf16.msra.mxu0 %v1761_v15  ;;  %422 = vmatpush1.bf16.msra.mxu1 %v1762_v16  ;;  %v1789_v42 = vld [vmem:[%s2248_s1 + $0x40] ss:$28 sps:$4 sm:$0xff]   ;;  %v1794_v43 = vld [vmem:[%s2248_s1 + $0x74] ss:$28 sps:$4 sm:$0xff]   ;;  %v1798_v49 = vld [vmem:[%s2248_s1 + $0xa8] ss:$28 sps:$4 sm:$0xff]  }
  0x15   : > { %458 = vmatprep.subr.bf16.mxu0 %v1765_v18  ;;  %1658 = vmatprep.subr.bf16.mxu1 %v1869_v23  ;;  %v223_v25 = vor.u32 %v222_v21, %v218_v19  ;;  %v1797_v44 = vld [vmem:[%s2248_s1 + $0x7c] ss:$28 sps:$4 sm:$0xff]   ;;  %v1803_v48 = vld [vmem:[%s2248_s1 + $0xb4] ss:$28 sps:$4 sm:$0xff]   ;;  %v1810_v54 = vld [vmem:[%s2248_s1 + $0x4c] ss:$28 sps:$4 sm:$0xff]  }
  0x16   : > { %v1795_v46 = vld [vmem:[%s2248_s1 + $0x78] ss:$28 sps:$4 sm:$0xff]   ;;  %v1801_v50 = vld [vmem:[%s2248_s1 + $0xb0] ss:$28 sps:$4 sm:$0xff]   ;;  %v1808_v55 = vld [vmem:[%s2248_s1 + $0x48] ss:$28 sps:$4 sm:$0xff]  }
  0x17   : > { %1540 = vmatmul.mubr.msk.bf16.vlgmr.msra.gmra.mrb[0].mxu0 %vm368_vm0, %v223_v25  ;;  %1541 = vmatmul.mubr.msk.bf16.vlgmr.msra.gmra.mrb[0].mxu1 %vm368_vm0, %v223_v25  ;;  %v1806_v51 = vld [vmem:[%s2248_s1 + $0x14] ss:$28 sps:$4 sm:$0xff]   ;;  %v1814_v57 = vld [vmem:[%s2248_s1 + $0x84] ss:$28 sps:$4 sm:$0xff]   ;;  %v1818_v60 = vld [vmem:[%s2248_s1 + $0xbc] ss:$28 sps:$4 sm:$0xff]  }
  0x18   : > { %459 = vmatpush1.bf16.msra.mxu0 %v1763_v22  ;;  %1659 = vmatpush3.bf16.msra.mxu1 %v1767_v24  ;;  %v1804_v52 = vld [vmem:[%s2248_s1 + $0x10] ss:$28 sps:$4 sm:$0xff]   ;;  %v1807_v53 = vld [vmem:[%s2248_s1 + $0x18] ss:$28 sps:$4 sm:$0xff]   ;;  %v1812_v58 = vld [vmem:[%s2248_s1 + $0x80] ss:$28 sps:$4 sm:$0xff]  }
  0x19   : > { %460 = vmatprep.subr.bf16.mxu0 %v1770_v26  ;;  %1660 = vmatprep.subr.bf16.mxu1 %v1869_v23  ;;  %v1811_v56 = vld [vmem:[%s2248_s1 + $0x50] ss:$28 sps:$4 sm:$0xff]   ;;  %v1815_v59 = vld [vmem:[%s2248_s1 + $0x88] ss:$28 sps:$4 sm:$0xff]   ;;  %v1816_v61 = vld [vmem:[%s2248_s1 + $0xb8] ss:$28 sps:$4 sm:$0xff]  }
  0x1a   : > { %490 = vmatprep.mubr.bf16.mxu0 %v1868_v2  ;;  %1666 = vmatprep.mubr.msk.bf16.mxu1 %vm1870_vm1, %v1869_v23  ;;  %v1819_v62 = vld [vmem:[%s2248_s1 + $0xc0] ss:$28 sps:$4 sm:$0xff]   ;;  %v1825_v0 = vld [vmem:[%s2248_s1 + $0x1cc] ss:$28 sps:$4 sm:$0xff]   ;;  %v1826_v6 = vld [vmem:[%s2248_s1 + $0x1f8] ss:$28 sps:$4 sm:$0xff]  }
  0x1b   : > { %v1822_v63 = vld [vmem:[%s2248_s1 + $0x1c4] ss:$28 sps:$4 sm:$0xff]   ;;  %v1828_v4 = vld [vmem:[%s2248_s1 + $0x1fc] ss:$28 sps:$4 sm:$0xff]   ;;  %v1834_v8 = vld [vmem:[%s2248_s1 + $0x234] ss:$28 sps:$4 sm:$0xff]  }
  0x1c   : > { %461 = vmatpush1.bf16.msra.mxu0 %v1768_v27  ;;  %1661 = vmatpush3.bf16.msra.mxu1 %v1771_v28  ;;  %v1820_v1 = vld [vmem:[%s2248_s1 + $0x1c0] ss:$28 sps:$4 sm:$0xff]   ;;  %v1823_v3 = vld [vmem:[%s2248_s1 + $0x1c8] ss:$28 sps:$4 sm:$0xff]   ;;  %v1832_v10 = vld [vmem:[%s2248_s1 + $0x230] ss:$28 sps:$4 sm:$0xff]  }
  0x1d   : > { %462 = vmatprep.subr.bf16.mxu0 %v1774_v29  ;;  %1662 = vmatprep.subr.bf16.mxu1 %v1869_v23  ;;  %v1831_v5 = vld [vmem:[%s2248_s1 + $0x204] ss:$28 sps:$4 sm:$0xff]   ;;  %v1837_v9 = vld [vmem:[%s2248_s1 + $0x23c] ss:$28 sps:$4 sm:$0xff]   ;;  %v1840_v12 = vld [vmem:[%s2248_s1 + $0x26c] ss:$28 sps:$4 sm:$0xff]  }
  0x1e   : > { %v1829_v7 = vld [vmem:[%s2248_s1 + $0x200] ss:$28 sps:$4 sm:$0xff]   ;;  %v1835_v11 = vld [vmem:[%s2248_s1 + $0x238] ss:$28 sps:$4 sm:$0xff]   ;;  %v1838_v14 = vld [vmem:[%s2248_s1 + $0x268] ss:$28 sps:$4 sm:$0xff]  }
  0x1f   : > { %v1843_v13 = vld [vmem:[%s2248_s1 + $0x274] ss:$28 sps:$4 sm:$0xff]   ;;  %v891_v18 = vrot.slane %v1951_v17, 1  ;;  %v1850_v21 = vld [vmem:[%s2248_s1 + $0x20c] ss:$28 sps:$4 sm:$0xff]  }
  0x20   : > { %463 = vmatpush1.bf16.msra.mxu0 %v1772_v30  ;;  %1663 = vmatpush3.bf16.msra.mxu1 %v1775_v31  ;;  %v1841_v15 = vld [vmem:[%s2248_s1 + $0x270] ss:$28 sps:$4 sm:$0xff]   ;;  %v1847_v20 = vld [vmem:[%s2248_s1 + $0x1d8] ss:$28 sps:$4 sm:$0xff]   ;;  %v1854_v24 = vld [vmem:[%s2248_s1 + $0x244] ss:$28 sps:$4 sm:$0xff]   ;;  %v1384_v31 = vlaneseq }
  0x21   : > { %464 = vmatprep.subr.bf16.mxu0 %v1778_v32  ;;  %1664 = vmatprep.subr.bf16.mxu1 %v1869_v23  ;;  %v1846_v16 = vld [vmem:[%s2248_s1 + $0x1d4] ss:$28 sps:$4 sm:$0xff]   ;;  %v1855_v26 = vld [vmem:[%s2248_s1 + $0x248] ss:$28 sps:$4 sm:$0xff]   ;;  %v1859_v28 = vld [vmem:[%s2248_s1 + $0x280] ss:$28 sps:$4 sm:$0xff]  }
  0x22   : > { %v1844_v19 = vld [vmem:[%s2248_s1 + $0x1d0] ss:$28 sps:$4 sm:$0xff]   ;;  %v1856_v27 = vld [vmem:[%s2248_s1 + $0x278] ss:$28 sps:$4 sm:$0xff]   ;;  %v1871_v29 = vmov 1983009808  }
  0x23   : > { %v1851_v22 = vld [vmem:[%s2248_s1 + $0x210] ss:$28 sps:$4 sm:$0xff]   ;;  %v2201_v30 = vunpack.c.l.s4 %v1871_v29 }
  0x24   : > { %465 = vmatpush1.bf16.msra.mxu0 %v1776_v33  ;;  %1665 = vmatpush3.bf16.msra.mxu1 %v1779_v34 }
  0x25   : > { %688 = vmatprep.subr.bf16.mxu0 %v1782_v35  ;;  %731 = vmatprep.subr.bf16.mxu1 %v1785_v36  ;;  %v1383_v36 = vunpack.c.0.s8 %v2201_v30 }
  0x27   : > { %1542 = vmatmul.mubr.msk.bf16.vlgmr.msra.gmra.mrb[4].mxu0 %vm368_vm0, %v223_v25  ;;  %1667 = vmatmul.mubr.msk.bf16.vlgmr.msra.gmra.mrb[4].mxu1 %vm368_vm0, %v223_v25  ;;  %v1852_v25 = vld [vmem:[%s2248_s1 + $0x240] ss:$28 sps:$4 sm:$0xff]  }
  0x28   : > { %689 = vmatpush1.bf16.msra.mxu0 %v1780_v37  ;;  %732 = vmatpush1.bf16.msra.mxu1 %v1783_v38  ;;  %v2204_v37 = vshrl.u32 %v1384_v31, 7 }
  0x29   : > { %690 = vmatprep.subr.bf16.mxu0 %v1788_v39  ;;  %733 = vmatprep.subr.bf16.mxu1 %v1791_v40 }
  0x2a   : > { %720 = vmatprep.mubr.bf16.mxu0 %v1868_v2  ;;  %763 = vmatprep.mubr.bf16.mxu1 %v1868_v2 }
  0x2c   : > { %691 = vmatpush1.bf16.msra.mxu0 %v1786_v41  ;;  %734 = vmatpush1.bf16.msra.mxu1 %v1789_v42 }
  0x2d   : > { %692 = vmatprep.subr.bf16.mxu0 %v1794_v43  ;;  %735 = vmatprep.subr.bf16.mxu1 %v1797_v44 }
  0x30   : > { %693 = vmatpush1.bf16.msra.mxu0 %v1792_v45  ;;  %736 = vmatpush1.bf16.msra.mxu1 %v1795_v46 }
  0x31   : > { %694 = vmatprep.subr.bf16.mxu0 %v1800_v47  ;;  %737 = vmatprep.subr.bf16.mxu1 %v1803_v48 }
  0x34   : > { %695 = vmatpush1.bf16.msra.mxu0 %v1798_v49  ;;  %738 = vmatpush1.bf16.msra.mxu1 %v1801_v50 }
  0x35   : > { %774 = vmatprep.subr.bf16.mxu0 %v1806_v51  ;;  %1670 = vmatprep.subr.bf16.mxu1 %v1869_v23 }
  0x37   : > { %1572 = vmatmul.mubr.msk.bf16.vlgmr.msra.gmra.mrb[0].mxu0 %vm368_vm0, %v1951_v17  ;;  %1573 = vmatmul.mubr.msk.bf16.vlgmr.msra.gmra.mrb[0].mxu1 %vm368_vm0, %v1951_v17 }
  0x38   : > { %775 = vmatpush1.bf16.msra.mxu0 %v1804_v52  ;;  %1671 = vmatpush3.bf16.msra.mxu1 %v1807_v53 }
  0x39   : > { %776 = vmatprep.subr.bf16.mxu0 %v1810_v54  ;;  %1672 = vmatprep.subr.bf16.mxu1 %v1869_v23 }
  0x3a   : > { %806 = vmatprep.mubr.bf16.mxu0 %v1868_v2  ;;  %1678 = vmatprep.mubr.msk.bf16.mxu1 %vm1870_vm1, %v1869_v23 }
  0x3c   : > { %777 = vmatpush1.bf16.msra.mxu0 %v1808_v55  ;;  %1673 = vmatpush3.bf16.msra.mxu1 %v1811_v56 }
  0x3d   : > { %778 = vmatprep.subr.bf16.mxu0 %v1814_v57  ;;  %1674 = vmatprep.subr.bf16.mxu1 %v1869_v23 }
  0x40   : > { %779 = vmatpush1.bf16.msra.mxu0 %v1812_v58  ;;  %1675 = vmatpush3.bf16.msra.mxu1 %v1815_v59 }
  0x41   : > { %780 = vmatprep.subr.bf16.mxu0 %v1818_v60  ;;  %1676 = vmatprep.subr.bf16.mxu1 %v1869_v23 }
  0x44   : > { %781 = vmatpush1.bf16.msra.mxu0 %v1816_v61  ;;  %1677 = vmatpush3.bf16.msra.mxu1 %v1819_v62 }
  0x45   : > { %1039 = vmatprep.subr.bf16.mxu0 %v1822_v63  ;;  %1082 = vmatprep.subr.bf16.mxu1 %v1825_v0 }
  0x47   : > { %1574 = vmatmul.mubr.msk.bf16.vlgmr.msra.gmra.mrb[4].mxu0 %vm368_vm0, %v1951_v17  ;;  %1679 = vmatmul.mubr.msk.bf16.vlgmr.msra.gmra.mrb[4].mxu1 %vm368_vm0, %v1951_v17  ;;  %v1848_v17 = vld [vmem:[%s2248_s1 + $0x208] ss:$28 sps:$4 sm:$0xff]  }
  0x48   : > { %1040 = vmatpush1.bf16.msra.mxu0 %v1820_v1  ;;  %1083 = vmatpush1.bf16.msra.mxu1 %v1823_v3 }
  0x49   : > { %1041 = vmatprep.subr.bf16.mxu0 %v1828_v4  ;;  %1084 = vmatprep.subr.bf16.mxu1 %v1831_v5 }
  0x4a   : > { %1071 = vmatprep.mubr.bf16.mxu0 %v1868_v2  ;;  %1114 = vmatprep.mubr.bf16.mxu1 %v1868_v2 }
  0x4c   : > { %1042 = vmatpush1.bf16.msra.mxu0 %v1826_v6  ;;  %1085 = vmatpush1.bf16.msra.mxu1 %v1829_v7 }
  0x4d   : > { %1043 = vmatprep.subr.bf16.mxu0 %v1834_v8  ;;  %1086 = vmatprep.subr.bf16.mxu1 %v1837_v9 }
  0x50   : > { %1044 = vmatpush1.bf16.msra.mxu0 %v1832_v10  ;;  %1087 = vmatpush1.bf16.msra.mxu1 %v1835_v11 }
  0x51   : > { %1045 = vmatprep.subr.bf16.mxu0 %v1840_v12  ;;  %1088 = vmatprep.subr.bf16.mxu1 %v1843_v13 }
  0x54   : > { %1046 = vmatpush1.bf16.msra.mxu0 %v1838_v14  ;;  %1089 = vmatpush1.bf16.msra.mxu1 %v1841_v15 }
  0x55   : > { %1125 = vmatprep.subr.bf16.mxu0 %v1846_v16  ;;  %1682 = vmatprep.subr.bf16.mxu1 %v1869_v23 }
  0x57   : > { %1636 = vmatmul.mubr.msk.bf16.vlgmr.msra.gmra.mrb[0].mxu0 %vm368_vm0, %v891_v18  ;;  %1637 = vmatmul.mubr.msk.bf16.vlgmr.msra.gmra.mrb[0].mxu1 %vm368_vm0, %v891_v18 }
  0x58   : > { %1126 = vmatpush1.bf16.msra.mxu0 %v1844_v19  ;;  %1683 = vmatpush3.bf16.msra.mxu1 %v1847_v20 }
  0x59   : > { %1127 = vmatprep.subr.bf16.mxu0 %v1850_v21  ;;  %1684 = vmatprep.subr.bf16.mxu1 %v1869_v23 }
  0x5a   : > { %1157 = vmatprep.mubr.bf16.mxu0 %v1868_v2  ;;  %1690 = vmatprep.mubr.msk.bf16.mxu1 %vm1870_vm1, %v1869_v23  ;;  %v1858_v2 = vld [vmem:[%s2248_s1 + $0x27c] ss:$28 sps:$4 sm:$0xff]  }
  0x5c   : > { %1128 = vmatpush1.bf16.msra.mxu0 %v1848_v17  ;;  %1685 = vmatpush3.bf16.msra.mxu1 %v1851_v22 }
  0x5d   : > { %1129 = vmatprep.subr.bf16.mxu0 %v1854_v24  ;;  %1686 = vmatprep.subr.bf16.mxu1 %v1869_v23 }
  0x60   : > { %1130 = vmatpush1.bf16.msra.mxu0 %v1852_v25  ;;  %1687 = vmatpush3.bf16.msra.mxu1 %v1855_v26 }
  0x61   : > { %1131 = vmatprep.subr.bf16.mxu0 %v1858_v2  ;;  %1688 = vmatprep.subr.bf16.mxu1 %v1869_v23 }
  0x64   : > { %1132 = vmatpush1.bf16.msra.mxu0 %v1856_v27  ;;  %1689 = vmatpush3.bf16.msra.mxu1 %v1859_v28 }
  0x67   : > { %1638 = vmatmul.mubr.msk.bf16.vlgmr.msra.gmra.mrb[4].mxu0 %vm368_vm0, %v891_v18  ;;  %1691 = vmatmul.mubr.msk.bf16.vlgmr.msra.gmra.mrb[4].mxu1 %vm368_vm0, %v891_v18 }
 0x12a   : > { %v1073_v32 = vpop.f32.mrb[0].mxu0  ;;  %v1116_v33 = vpop.f32.mrb[0].mxu1 }
 0x12b   : > { %v1075_v34 = vpop.f32.mrb[1].mxu0  ;;  %v1118_v35 = vpop.f32.mrb[1].mxu1  ;;  %v1287_v23 = vmul.f32 %v1073_v32, %v1073_v32  ;;  %v1289_v38 = vmul.f32 %v1116_v33, %v1116_v33 }
 0x12c   : > { %v1288_v39 = vmul.f32 %v1075_v34, %v1075_v34  ;;  %v1290_v40 = vmul.f32 %v1118_v35, %v1118_v35  ;;  %v1077_v41 = vpop.f32.mrb[2].mxu0  ;;  %v1120_v42 = vpop.f32.mrb[2].mxu1 }
 0x12d   : > { %v1224_v43 = vsel %vm1223_vm2, %v1077_v41, 0.0  ;;  %v1294_v44 = vmul.f32 %v1077_v41, %v1077_v41  ;;  %v1240_v45 = vsel %vm1223_vm2, %v1120_v42, 0.0  ;;  %v1296_v46 = vmul.f32 %v1120_v42, %v1120_v42  ;;  %v1079_v47 = vpop.f32.mrb[3].mxu0  ;;  %v1122_v48 = vpop.f32.mrb[3].mxu1 }
 0x12e   : > { %v1225_v49 = vadd.f32 %v1224_v43, %v1073_v32  ;;  %v1241_v50 = vadd.f32 %v1240_v45, %v1116_v33  ;;  %v1232_v51 = vsel %vm1223_vm2, %v1079_v47, 0.0  ;;  %v1295_v52 = vmul.f32 %v1079_v47, %v1079_v47 }
 0x12f   : > { %v1301_v53 = vsel %vm1223_vm2, %v1294_v44, 0.0  ;;  %v1317_v54 = vsel %vm1223_vm2, %v1296_v46, 0.0  ;;  %v1233_v55 = vadd.f32 %v1232_v51, %v1075_v34  ;;  %v1248_v56 = vsel %vm1223_vm2, %v1122_v48, 0.0 }
 0x130   : > { %v1226_v57 = vrot.slane %v1225_v49, 4  ;;  %v1302_v58 = vadd.f32 %v1301_v53, %v1287_v23  ;;  %v1242_v59 = vrot.slane %v1241_v50, 4  ;;  %v1318_v60 = vadd.f32 %v1317_v54, %v1289_v38 }
 0x131   : > { %v1234_v61 = vrot.slane %v1233_v55, 4  ;;  %v1309_v62 = vsel %vm1223_vm2, %v1295_v52, 0.0  ;;  %v1249_v63 = vadd.f32 %v1248_v56, %v1118_v35  ;;  %v1297_v0 = vmul.f32 %v1122_v48, %v1122_v48 }
 0x132   : > { %v1227_v1 = vadd.f32 %v1226_v57, %v1225_v49  ;;  %v1303_v3 = vrot.slane %v1302_v58, 4  ;;  %v1243_v4 = vadd.f32 %v1242_v59, %v1241_v50  ;;  %v1319_v5 = vrot.slane %v1318_v60, 4 }
 0x133   : > { %v1235_v6 = vadd.f32 %v1234_v61, %v1233_v55  ;;  %v1310_v7 = vadd.f32 %v1309_v62, %v1288_v39  ;;  %v1250_v8 = vrot.slane %v1249_v63, 4  ;;  %v1325_v9 = vsel %vm1223_vm2, %v1297_v0, 0.0 }
 0x134   : > { %v1228_v10 = vrot.slane %v1227_v1, 2  ;;  %v1304_v11 = vadd.f32 %v1303_v3, %v1302_v58  ;;  %v1244_v12 = vrot.slane %v1243_v4, 2  ;;  %v1320_v13 = vadd.f32 %v1319_v5, %v1318_v60 }
 0x135   : > { %v1236_v14 = vrot.slane %v1235_v6, 2  ;;  %v1311_v15 = vrot.slane %v1310_v7, 4  ;;  %v1251_v16 = vadd.f32 %v1250_v8, %v1249_v63  ;;  %v1326_v18 = vadd.f32 %v1325_v9, %v1290_v40 }
 0x136   : > { %v1229_v19 = vadd.f32 %v1228_v10, %v1227_v1  ;;  %v1305_v20 = vrot.slane %v1304_v11, 2  ;;  %v1245_v21 = vadd.f32 %v1244_v12, %v1243_v4  ;;  %v1321_v17 = vrot.slane %v1320_v13, 2 }
 0x137   : > { %v1237_v22 = vadd.f32 %v1236_v14, %v1235_v6  ;;  %v1312_v24 = vadd.f32 %v1311_v15, %v1310_v7  ;;  %v1252_v25 = vrot.slane %v1251_v16, 2  ;;  %v1327_v26 = vrot.slane %v1326_v18, 4 }
 0x138   : > { %v1230_v2 = vrot.slane %v1229_v19, 1  ;;  %v1306_v27 = vadd.f32 %v1305_v20, %v1304_v11  ;;  %v1246_v28 = vrot.slane %v1245_v21, 1  ;;  %v1322_v29 = vadd.f32 %v1321_v17, %v1320_v13 }
 0x139   : > { %v1238_v31 = vrot.slane %v1237_v22, 1  ;;  %v1313_v32 = vrot.slane %v1312_v24, 2  ;;  %v1253_v33 = vadd.f32 %v1252_v25, %v1251_v16  ;;  %v1328_v34 = vadd.f32 %v1327_v26, %v1326_v18 }
 0x13a   : > { %v1231_v35 = vadd.f32 %v1230_v2, %v1229_v19  ;;  %v1307_v23 = vrot.slane %v1306_v27, 1  ;;  %v1323_v38 = vrot.slane %v1322_v29, 1  ;;  %v2217_v39 = vsub.s32 %v1383_v36, %v2204_v37  ;;  %v1159_v40 = vpop.f32.mrb[4].mxu0  ;;  %v1202_v41 = vpop.f32.mrb[4].mxu1 }
 0x13b   : > { %v1247_v42 = vadd.f32 %v1246_v28, %v1245_v21  ;;  %v1314_v43 = vadd.f32 %v1313_v32, %v1312_v24  ;;  %v1254_v44 = vrot.slane %v1253_v33, 1  ;;  %v1329_v45 = vrot.slane %v1328_v34, 2  ;;  %v1161_v46 = vpop.f32.mrb[5].mxu0  ;;  %v1692_v47 = vpop.f32.mrb[5].mxu1 }
 0x13c   : > { %v1308_v48 = vadd.f32 %v1307_v23, %v1306_v27  ;;  %v1324_v49 = vadd.f32 %v1323_v38, %v1322_v29  ;;  %v1239_v50 = vadd.f32 %v1238_v31, %v1237_v22  ;;  %v1291_v51 = vmul.f32 %v1159_v40, %v1159_v40  ;;  %v1163_v52 = vpop.f32.mrb[6].mxu0  ;;  %v1205_v53 = vpop.f32.mrb[6].mxu1 }
 0x13d   : > { %v1315_v54 = vrot.slane %v1314_v43, 1  ;;  %v1255_v55 = vadd.f32 %v1254_v44, %v1253_v33  ;;  %v1330_v56 = vadd.f32 %v1329_v45, %v1328_v34  ;;  %v1293_v30 = vmul.f32 %v1202_v41, %v1202_v41  ;;  %v1165_v36 = vpop.f32.mrb[7].mxu0  ;;  %v1693_v37 = vpop.f32.mrb[7].mxu1 }
 0x13e   : > { %v1365_v57 = vsel %vm1364_vm3, %v1231_v35, %v1308_v48  ;;  %v1367_v58 = vsel %vm1364_vm3, %v1247_v42, %v1324_v49  ;;  %v1256_v59 = vsel %vm1223_vm2, %v1163_v52, 0.0  ;;  %v1298_v60 = vmul.f32 %v1163_v52, %v1163_v52 }
 0x13f   : > { %v1316_v61 = vadd.f32 %v1315_v54, %v1314_v43  ;;  %v1331_v62 = vrot.slane %v1330_v56, 1  ;;  %v1257_v63 = vadd.f32 %v1256_v59, %v1159_v40  ;;  %v1272_v0 = vsel %vm1223_vm2, %v1205_v53, 0.0 }
 0x140   : > { %v1333_v1 = vsel %vm1223_vm2, %v1298_v60, 0.0  ;;  %v1273_v3 = vadd.f32 %v1272_v0, %v1202_v41  ;;  %v1300_v4 = vmul.f32 %v1205_v53, %v1205_v53  ;;  %v1264_v5 = vsel %vm1223_vm2, %v1165_v36, 0.0 }
 0x141   : > { %v1366_v6 = vsel %vm1364_vm3, %v1239_v50, %v1316_v61  ;;  %v1332_v7 = vadd.f32 %v1331_v62, %v1330_v56  ;;  %v1258_v8 = vrot.slane %v1257_v63, 4  ;;  %v1334_v9 = vadd.f32 %v1333_v1, %v1291_v51 }
 0x142   : > { %v1379_v10 = vcombine.low %v1365_v57, %v1366_v6  ;;  %v1274_v11 = vrot.slane %v1273_v3, 4  ;;  %v1349_v12 = vsel %vm1223_vm2, %v1300_v4, 0.0  ;;  %v1265_v13 = vadd.f32 %v1264_v5, %v1161_v46 }
 0x143   : > { %v1368_v14 = vsel %vm1364_vm3, %v1255_v55, %v1332_v7  ;;  %v1259_v15 = vadd.f32 %v1258_v8, %v1257_v63  ;;  %v1335_v16 = vrot.slane %v1334_v9, 4  ;;  %v1350_v18 = vadd.f32 %v1349_v12, %v1293_v30 }
 0x144   : > { %v1387_v19 = vrot.slane %v1379_v10, %v2217_v39  ;;  %v1380_v20 = vcombine.low %v1367_v58, %v1368_v14  ;;  %v1275_v21 = vadd.f32 %v1274_v11, %v1273_v3  ;;  %v1266_v17 = vrot.slane %v1265_v13, 4 }
 0x145   : > { %v1260_v22 = vrot.slane %v1259_v15, 2  ;;  %v1336_v24 = vadd.f32 %v1335_v16, %v1334_v9  ;;  %v1351_v25 = vrot.slane %v1350_v18, 4  ;;  %v1299_v26 = vmul.f32 %v1165_v36, %v1165_v36 }
 0x146   : > { %v1394_v2 = vrot.slane %v1380_v20, %v2217_v39  ;;  %v1292_v27 = vmul.f32 %v1161_v46, %v1161_v46  ;;  %v1276_v28 = vrot.slane %v1275_v21, 2  ;;  %v1267_v29 = vadd.f32 %v1266_v17, %v1265_v13 }
 0x147   : > { %v1261_v31 = vadd.f32 %v1260_v22, %v1259_v15  ;;  %v1337_v32 = vrot.slane %v1336_v24, 2  ;;  %v1352_v33 = vadd.f32 %v1351_v25, %v1350_v18  ;;  %v1341_v34 = vsel %vm1223_vm2, %v1299_v26, 0.0 }
 0x148   : > { %v1395_v35 = vcombine.low %v1387_v19, %v1394_v2  ;;  %v1277_v23 = vadd.f32 %v1276_v28, %v1275_v21  ;;  %v1268_v38 = vrot.slane %v1267_v29, 2  ;;  %v1342_v40 = vadd.f32 %v1341_v34, %v1292_v27 }
 0x149   : > { %v1262_v41 = vrot.slane %v1261_v31, 1  ;;  %v1338_v42 = vadd.f32 %v1337_v32, %v1336_v24  ;;  %v1353_v43 = vrot.slane %v1352_v33, 2 }
 0x14a   : > { %v1343_v44 = vrot.slane %v1342_v40, 4  ;;  %1414 = vst [vmem:[%s2234_s10] sm:$0xff] %v1395_v35  ;;  %v1278_v46 = vrot.slane %v1277_v23, 1  ;;  %v1269_v48 = vadd.f32 %v1268_v38, %v1267_v29 }
 0x14b   : > { %v1339_v45 = vrot.slane %v1338_v42, 1  ;;  %v1354_v47 = vadd.f32 %v1353_v43, %v1352_v33  ;;  %v1263_v50 = vadd.f32 %v1262_v41, %v1261_v31 }
 0x14c   : > { %v1344_v49 = vadd.f32 %v1343_v44, %v1342_v40  ;;  %v1279_v55 = vadd.f32 %v1278_v46, %v1277_v23  ;;  %v1270_v30 = vrot.slane %v1269_v48, 1 }
 0x14d   : > { %v1340_v51 = vadd.f32 %v1339_v45, %v1338_v42  ;;  %v1355_v52 = vrot.slane %v1354_v47, 1 }
 0x14e   : > { %v1345_v53 = vrot.slane %v1344_v49, 2  ;;  %v1271_v58 = vadd.f32 %v1270_v30, %v1269_v48 }
 0x14f   : > { %v1369_v54 = vsel %vm1364_vm3, %v1263_v50, %v1340_v51  ;;  %v1356_v56 = vadd.f32 %v1355_v52, %v1354_v47 }
 0x150   : > { %v1346_v36 = vadd.f32 %v1345_v53, %v1344_v49 }
 0x151   : > { %v1371_v37 = vsel %vm1364_vm3, %v1279_v55, %v1356_v56 }
 0x152   : > { %v1347_v57 = vrot.slane %v1346_v36, 1  ;;  %v1410_v62 = vrot.slane %v1371_v37, %v2217_v39 }
 0x154   : > { %v1348_v59 = vadd.f32 %v1347_v57, %v1346_v36 }
 0x156   : > { %v1370_v60 = vsel %vm1364_vm3, %v1271_v58, %v1348_v59 }
 0x157   : > { %v1396_v61 = vcombine.low %v1369_v54, %v1370_v60 }
 0x159   : > { %v1403_v63 = vrot.slane %v1396_v61, %v2217_v39 }
 0x15b   : > { %v1411_v0 = vcombine.low %v1403_v63, %v1410_v62 }
 0x15d   : > { %1415 = vst [vmem:[%s2234_s10 + $0x8] sm:$0x3f] %v1411_v0 }
 0x15e PF: > { %s12_s9 = sadd.s32 1, %s1866_s9  }
 0x15f   : > { %p9_p4 = scmp.ge.s32.totalorder %s12_s9, 4  }
 0x161   :  { %11 = sbr.rel (!%p9_p4) target bundleno = 1 (0x1), region = 60 }

// kernel: squeeze.4
= control target key start
LH: loop header
LB: loop body
LE: loop exit
PB: predicated region body
PF: predicated region fallthrough
CT: control target
= control target key end

     0   :  { %vm3_vm0 = vcmask 130048   ;;  %s83_s12 = smov 112   ;;  %s84_s13 = smov 80   ;;  %s188_s0 = inlined_call_operand.vmem [shape: f32[896], index: 0, kind: input, shape index: {}]   ;;  %s189_s1 = inlined_call_operand.vmem [shape: f32[56,16], index: 1, kind: output, shape index: {}]  }
   0x1   :  { %v6_v0 = vld [vmem:[%s188_s0] sm:$0x7f]   ;;  %s85_s22 = smov 96   ;;  %s86_s23 = smov 64  }
   0x2   :  { %v22_v1 = vld [vmem:[%s188_s0] sm:$0x7f]   ;;  %7 = vrot.lane.b32.xlu0 %v6_v0, %s83_s12  ;;  %s87_s28 = smov 48   ;;  %s88_s29 = smov 32  }
   0x3   :  { %v2_v2 = vld [vmem:[%s188_s0] sm:$0x7f]   ;;  %23 = vrot.lane.b32.xlu1 %v22_v1, %s84_s13 }
   0x4   :  { %4 = vst.msk [vmem:[%s189_s1] ss:$8 sm:$0xf] %vm3_vm0, %v2_v2   ;;  %5 = vst.msk [vmem:[%s189_s1] ss:$8 sm:$0x70] %vm3_vm0, %v2_v2  }
   0x5   :  { %v14_v3 = vld [vmem:[%s188_s0] sm:$0x7f]  }
   0x6   :  { %v30_v4 = vld [vmem:[%s188_s0] sm:$0x7f]   ;;  %15 = vrot.lane.b32.xlu0 %v14_v3, %s85_s22 }
   0x7   :  { %31 = vrot.lane.b32.xlu1 %v30_v4, %s86_s23  ;;  %v38_v5 = vld [vmem:[%s188_s0] sm:$0x7f]  }
   0x8   :  { %v46_v6 = vld [vmem:[%s188_s0] sm:$0x7f]  }
   0x9   :  { %v54_v7 = vld [vmem:[%s188_s0] sm:$0x7f]   ;;  %s89_s0 = smov 16  }
   0xa   :  { %39 = vrot.lane.b32.xlu0 %v38_v5, %s87_s28 }
   0xb   :  { %47 = vrot.lane.b32.xlu1 %v46_v6, %s88_s29 }
   0xe   :  { %55 = vrot.lane.b32.xlu0 %v54_v7, %s89_s0 }
  0x74   :  { %v8_v8 = vpop.permute.xlu0 %7  }
  0x75   :  { %v24_v9 = vpop.permute.xlu1 %23   ;;  %62 = vst.msk [vmem:[%s189_s1 + $0x1] ss:$8 sm:$0xf] %vm3_vm0, %v8_v8   ;;  %63 = vst.msk [vmem:[%s189_s1 + $0x1] ss:$8 sm:$0x70] %vm3_vm0, %v8_v8  }
  0x76   :  { %66 = vst.msk [vmem:[%s189_s1 + $0x3] ss:$8 sm:$0xf] %vm3_vm0, %v24_v9   ;;  %67 = vst.msk [vmem:[%s189_s1 + $0x3] ss:$8 sm:$0x70] %vm3_vm0, %v24_v9  }
  0x78   :  { %v16_v10 = vpop.permute.xlu0 %15  }
  0x79   :  { %v32_v11 = vpop.permute.xlu1 %31   ;;  %64 = vst.msk [vmem:[%s189_s1 + $0x2] ss:$8 sm:$0xf] %vm3_vm0, %v16_v10   ;;  %65 = vst.msk [vmem:[%s189_s1 + $0x2] ss:$8 sm:$0x70] %vm3_vm0, %v16_v10  }
  0x7a   :  { %68 = vst.msk [vmem:[%s189_s1 + $0x4] ss:$8 sm:$0xf] %vm3_vm0, %v32_v11   ;;  %69 = vst.msk [vmem:[%s189_s1 + $0x4] ss:$8 sm:$0x70] %vm3_vm0, %v32_v11  }
  0x7c   :  { %v40_v12 = vpop.permute.xlu0 %39  }
  0x7d   :  { %v48_v13 = vpop.permute.xlu1 %47   ;;  %70 = vst.msk [vmem:[%s189_s1 + $0x5] ss:$8 sm:$0xf] %vm3_vm0, %v40_v12   ;;  %71 = vst.msk [vmem:[%s189_s1 + $0x5] ss:$8 sm:$0x70] %vm3_vm0, %v40_v12  }
  0x7e   :  { %72 = vst.msk [vmem:[%s189_s1 + $0x6] ss:$8 sm:$0xf] %vm3_vm0, %v48_v13   ;;  %73 = vst.msk [vmem:[%s189_s1 + $0x6] ss:$8 sm:$0x70] %vm3_vm0, %v48_v13  }
  0x80   :  { %v56_v14 = vpop.permute.xlu0 %55  }
  0x81   :  { %74 = vst.msk [vmem:[%s189_s1 + $0x7] ss:$8 sm:$0xf] %vm3_vm0, %v56_v14   ;;  %75 = vst.msk [vmem:[%s189_s1 + $0x7] ss:$8 sm:$0x70] %vm3_vm0, %v56_v14  }

// kernel: tile.23
= control target key start
LH: loop header
LB: loop body
LE: loop exit
PB: predicated region body
PF: predicated region fallthrough
CT: control target
= control target key end

     0   :  { %s58_s0 = inlined_call_operand.vmem [shape: f32[16], index: 0, kind: input, shape index: {}]   ;;  %s59_s1 = inlined_call_operand.vmem [shape: f32[56,16], index: 1, kind: output, shape index: {}]  }
   0x1   :  { %v4_v0 = vld [vmem:[%s58_s0] ss:$0 sm:$0xff] }
   0x2   :  { %5 = vst [vmem:[%s59_s1] sm:$0xff] %v4_v0  ;;  %18 = vst [vmem:[%s59_s1 + $0x8] sm:$0xff] %v4_v0 }
   0x3   :  { %19 = vst [vmem:[%s59_s1 + $0x10] sm:$0xff] %v4_v0  ;;  %20 = vst [vmem:[%s59_s1 + $0x18] sm:$0xff] %v4_v0 }
   0x4   :  { %21 = vst [vmem:[%s59_s1 + $0x20] sm:$0xff] %v4_v0  ;;  %22 = vst [vmem:[%s59_s1 + $0x28] sm:$0xff] %v4_v0 }
   0x5   :  { %23 = vst [vmem:[%s59_s1 + $0x30] sm:$0xff] %v4_v0 }

// kernel: tile.24
= control target key start
LH: loop header
LB: loop body
LE: loop exit
PB: predicated region body
PF: predicated region fallthrough
CT: control target
= control target key end

     0   :  { %vm4_vm0 = vcmask 1046532   ;;  %s159_s16 = smov 112   ;;  %s160_s19 = smov 80   ;;  %vm6_vm1 = vcmask 130048   ;;  %vm17_vm2 = vcmask 1048448   ;;  %vm28_vm3 = vcmask 917248   ;;  %s253_s0 = inlined_call_operand.vmem [shape: f32[56,16], index: 0, kind: input, shape index: {}]   ;;  %s254_s1 = inlined_call_operand.vmem [shape: f32[1,896], index: 1, kind: output, shape index: {}]  }
   0x1   :  { %v132_v0 = vld [vmem:[%s253_s0 + $0x7] ss:$8 sm:$0xf]   ;;  %v136_v2 = vld [vmem:[%s253_s0 + $0x5] ss:$8 sm:$0xf]  }
   0x2   :  { %v133_v1 = vld [vmem:[%s253_s0 + $0x7] ss:$8 sm:$0x70]   ;;  %v137_v4 = vld [vmem:[%s253_s0 + $0x5] ss:$8 sm:$0x70]  }
   0x3   :  { %v14_v3 = vsel %vm4_vm0, %v133_v1, %v132_v0  ;;  %v134_v5 = vld [vmem:[%s253_s0 + $0x6] ss:$8 sm:$0xf]   ;;  %v36_v6 = vsel %vm4_vm0, %v137_v4, %v136_v2  ;;  %v138_v9 = vld [vmem:[%s253_s0 + $0x4] ss:$8 sm:$0xf]  }
   0x4   :  { %15 = vrot.lane.b32.xlu0 %v14_v3, %s159_s16  ;;  %v135_v7 = vld [vmem:[%s253_s0 + $0x6] ss:$8 sm:$0x70]   ;;  %37 = vrot.lane.b32.xlu1 %v36_v6, %s160_s19  ;;  %v139_v10 = vld [vmem:[%s253_s0 + $0x4] ss:$8 sm:$0x70]  }
   0x5   :  { %v25_v8 = vsel %vm4_vm0, %v135_v7, %v134_v5  ;;  %v47_v11 = vsel %vm4_vm0, %v139_v10, %v138_v9  ;;  %v140_v12 = vld [vmem:[%s253_s0 + $0x3] ss:$8 sm:$0xf]   ;;  %v142_v14 = vld [vmem:[%s253_s0 + $0x2] ss:$8 sm:$0xf]  }
   0x6   :  { %v141_v13 = vld [vmem:[%s253_s0 + $0x3] ss:$8 sm:$0x70]   ;;  %s161_s30 = smov 96   ;;  %s162_s4 = smov 64   ;;  %vm39_vm4 = vcmask 786048  }
   0x7   :  { %v143_v15 = vld [vmem:[%s253_s0 + $0x2] ss:$8 sm:$0x70]   ;;  %v58_v16 = vsel %vm4_vm0, %v141_v13, %v140_v12  ;;  %v144_v17 = vld [vmem:[%s253_s0 + $0x1] ss:$8 sm:$0xf]  }
   0x8   :  { %26 = vrot.lane.b32.xlu0 %v25_v8, %s161_s30  ;;  %48 = vrot.lane.b32.xlu1 %v47_v11, %s162_s4  ;;  %v145_v18 = vld [vmem:[%s253_s0 + $0x1] ss:$8 sm:$0x70]   ;;  %v69_v19 = vsel %vm4_vm0, %v143_v15, %v142_v14  ;;  %v2_v20 = vld [vmem:[%s253_s0] ss:$8 sm:$0xf]  }
   0x9   :  { %v3_v21 = vld [vmem:[%s253_s0] ss:$8 sm:$0x70]   ;;  %s163_s0 = smov 48   ;;  %s164_s13 = smov 32   ;;  %v80_v23 = vsel %vm4_vm0, %v145_v18, %v144_v17  ;;  %vm50_vm5 = vcmask 654848  }
   0xa   :  { %v5_v22 = vsel %vm4_vm0, %v3_v21, %v2_v20  ;;  %s165_s14 = smov 16   ;;  %vm61_vm6 = vcmask 523648   ;;  %vm72_vm7 = vcmask 392448   ;;  %vm83_vm8 = vcmask 261248  }
   0xb   :  { %7 = vst.msk [vmem:[#allocation0] ss:$8 sm:$0xf] %vm6_vm1, %v5_v22   ;;  %8 = vst.msk [vmem:[#allocation0] ss:$8 sm:$0x70] %vm6_vm1, %v5_v22  }
   0xc   :  { %59 = vrot.lane.b32.xlu0 %v58_v16, %s163_s0  ;;  %70 = vrot.lane.b32.xlu1 %v69_v19, %s164_s13 }
  0x10   :  { %81 = vrot.lane.b32.xlu0 %v80_v23, %s165_s14 }
  0x76   :  { %v16_v24 = vpop.permute.xlu0 %15   ;;  %v38_v25 = vpop.permute.xlu1 %37  }
  0x77   :  { %18 = vst.msk [vmem:[#allocation0] ss:$8 sm:$0xf] %vm17_vm2, %v16_v24   ;;  %19 = vst.msk [vmem:[#allocation0] ss:$8 sm:$0x70] %vm17_vm2, %v16_v24  }
  0x7a   :  { %v27_v26 = vpop.permute.xlu0 %26   ;;  %v49_v27 = vpop.permute.xlu1 %48  }
  0x7b   :  { %29 = vst.msk [vmem:[#allocation0] ss:$8 sm:$0xf] %vm28_vm3, %v27_v26   ;;  %30 = vst.msk [vmem:[#allocation0] ss:$8 sm:$0x70] %vm28_vm3, %v27_v26  }
  0x7c   :  { %40 = vst.msk [vmem:[#allocation0] ss:$8 sm:$0xf] %vm39_vm4, %v38_v25   ;;  %41 = vst.msk [vmem:[#allocation0] ss:$8 sm:$0x70] %vm39_vm4, %v38_v25  }
  0x7d   :  { %51 = vst.msk [vmem:[#allocation0] ss:$8 sm:$0xf] %vm50_vm5, %v49_v27   ;;  %52 = vst.msk [vmem:[#allocation0] ss:$8 sm:$0x70] %vm50_vm5, %v49_v27  }
  0x7e   :  { %v60_v28 = vpop.permute.xlu0 %59   ;;  %v71_v29 = vpop.permute.xlu1 %70  }
  0x7f   :  { %62 = vst.msk [vmem:[#allocation0] ss:$8 sm:$0xf] %vm61_vm6, %v60_v28   ;;  %63 = vst.msk [vmem:[#allocation0] ss:$8 sm:$0x70] %vm61_vm6, %v60_v28  }
  0x80   :  { %73 = vst.msk [vmem:[#allocation0] ss:$8 sm:$0xf] %vm72_vm7, %v71_v29   ;;  %74 = vst.msk [vmem:[#allocation0] ss:$8 sm:$0x70] %vm72_vm7, %v71_v29  }
  0x82   :  { %v82_v30 = vpop.permute.xlu0 %81  }
  0x83   :  { %84 = vst.msk [vmem:[#allocation0] ss:$8 sm:$0xf] %vm83_vm8, %v82_v30   ;;  %85 = vst.msk [vmem:[#allocation0] ss:$8 sm:$0x70] %vm83_vm8, %v82_v30  }
  0x8a   :  { %v89_v31 = vld [vmem:[#allocation0] sm:$0x1]  ;;  %v93_v32 = vld [vmem:[#allocation0 + $0x8] sm:$0x1]  ;;  %v98_v33 = vld [vmem:[#allocation0 + $0x10] sm:$0x1] }
  0x8b   :  { %91 = vst [vmem:[%s254_s1] sm:$0x1] %v89_v31  ;;  %146 = vst [vmem:[%s254_s1 + $0x1] sm:$0x1] %v93_v32  ;;  %v104_v34 = vld [vmem:[#allocation0 + $0x18] sm:$0x1] }
  0x8c   :  { %147 = vst [vmem:[%s254_s1 + $0x2] sm:$0x1] %v98_v33  ;;  %v110_v35 = vld [vmem:[#allocation0 + $0x20] sm:$0x1]  ;;  %v116_v36 = vld [vmem:[#allocation0 + $0x28] sm:$0x1] }
  0x8d   :  { %148 = vst [vmem:[%s254_s1 + $0x3] sm:$0x1] %v104_v34  ;;  %149 = vst [vmem:[%s254_s1 + $0x4] sm:$0x1] %v110_v35  ;;  %v122_v37 = vld [vmem:[#allocation0 + $0x30] sm:$0x1] }
  0x8e   :  { %150 = vst [vmem:[%s254_s1 + $0x5] sm:$0x1] %v116_v36  ;;  %151 = vst [vmem:[%s254_s1 + $0x6] sm:$0x1] %v122_v37 }

// kernel: cnn_forward.6
= control target key start
LH: loop header
LB: loop body
LE: loop exit
PB: predicated region body
PF: predicated region fallthrough
CT: control target
= control target key end

     0   :  { %s2028_s15 = smov 0   ;;  %s2397_s0 = inlined_call_operand.vmem [shape: bf16[2,16,64], index: 0, kind: input, shape index: {}]   ;;  %s2398_s1 = inlined_call_operand.vmem [shape: bf16[3,64,896], index: 1, kind: input, shape index: {}]   ;;  %s2399_s2 = inlined_call_operand.vmem [shape: f32[1,896], index: 2, kind: input, shape index: {}]   ;;  %s2400_s3 = inlined_call_operand.vmem [shape: f32[1,896], index: 3, kind: input, shape index: {}]   ;;  %s2401_s4 = inlined_call_operand.vmem [shape: bf16[2,14,224], index: 4, kind: output, shape index: {}]  }
   0x1 LB: > { %s1555_s16 = sadd.s32 4294967295, %s1996_s15   ;;  %p1559_p0 = scmp.ge.s32.totalorder %s1996_s15, 1  ;;  %s1996_s15 = sphi %s2028_s15, %s14_s15  }
   0x2   : > { %p162_p1 = scmp.lt.s32.totalorder %s1996_s15, 3 }
   0x4   : > { %p163_p2 = pnand %p1559_p0, %p162_p1 }
   0x5   : > { %v1869_v0 = vld [vmem:[%s2398_s1 + $0xe4] ss:$28 sps:$4 sm:$0xff] (!%p163_p2)   ;;  %v1871_v1 = vld [vmem:[%s2398_s1 + $0xec] ss:$28 sps:$4 sm:$0xff] (!%p163_p2)   ;;  %v1998_v2 = vmov (!%p163_p2), 0   ;;  %p188_p3 = scmp.lt.s32.totalorder (!%p163_p2), %s1555_s16, 1 }
   0x6   : > { %166 = sbr.rel (%p163_p2) target bundleno = 573 (0x23d), region = 36  ;;  %458 = vmatprep.mubr.bf16.mxu0 (!%p163_p2), %v1998_v2  ;;  %501 = vmatprep.mubr.bf16.mxu1 (!%p163_p2), %v1998_v2  ;;  %v1873_v3 = vld [vmem:[%s2398_s1 + $0xe0] ss:$28 sps:$4 sm:$0xff] (!%p163_p2)   ;;  %v1874_v4 = vld [vmem:[%s2398_s1 + $0xe8] ss:$28 sps:$4 sm:$0xff] (!%p163_p2)   ;;  %vm422_vm0 = vcmask (!%p163_p2), 523264  }
   0x7   : > { %426 = vmatprep.subr.bf16.mxu0 (!%p163_p2), %v1869_v0  ;;  %469 = vmatprep.subr.bf16.mxu1 (!%p163_p2), %v1871_v1  ;;  %v1875_v5 = vld [vmem:[%s2398_s1 + $0x11c] ss:$28 sps:$4 sm:$0xff] (!%p163_p2)   ;;  %v1877_v6 = vld [vmem:[%s2398_s1 + $0x124] ss:$28 sps:$4 sm:$0xff] (!%p163_p2)   ;;  %v1881_v9 = vld [vmem:[%s2398_s1 + $0x154] ss:$28 sps:$4 sm:$0xff] (!%p163_p2)  }
   0x8   : > { %427 = vmatpush1.bf16.msra.mxu0 (!%p163_p2), %v1873_v3  ;;  %470 = vmatpush1.bf16.msra.mxu1 (!%p163_p2), %v1874_v4  ;;  %v1879_v7 = vld [vmem:[%s2398_s1 + $0x118] ss:$28 sps:$4 sm:$0xff] (!%p163_p2)   ;;  %v1880_v8 = vld [vmem:[%s2398_s1 + $0x120] ss:$28 sps:$4 sm:$0xff] (!%p163_p2)   ;;  %v1885_v11 = vld [vmem:[%s2398_s1 + $0x150] ss:$28 sps:$4 sm:$0xff] (!%p163_p2)  }
   0x9   : > { %428 = vmatprep.subr.bf16.mxu0 (!%p163_p2), %v1875_v5  ;;  %471 = vmatprep.subr.bf16.mxu1 (!%p163_p2), %v1877_v6  ;;  %v1883_v10 = vld [vmem:[%s2398_s1 + $0x15c] ss:$28 sps:$4 sm:$0xff] (!%p163_p2)   ;;  %v1887_v13 = vld [vmem:[%s2398_s1 + $0x18c] ss:$28 sps:$4 sm:$0xff] (!%p163_p2)   ;;  %v1889_v14 = vld [vmem:[%s2398_s1 + $0x194] ss:$28 sps:$4 sm:$0xff] (!%p163_p2)  }
   0xa   : > { %v1886_v12 = vld [vmem:[%s2398_s1 + $0x158] ss:$28 sps:$4 sm:$0xff] (!%p163_p2)   ;;  %v1891_v15 = vld [vmem:[%s2398_s1 + $0x188] ss:$28 sps:$4 sm:$0xff] (!%p163_p2)   ;;  %v1892_v16 = vld [vmem:[%s2398_s1 + $0x190] ss:$28 sps:$4 sm:$0xff] (!%p163_p2)  }
   0xb   : > { %v1895_v18 = vld [vmem:[%s2398_s1 + $0xf4] ss:$28 sps:$4 sm:$0xff] (!%p163_p2)   ;;  %v1999_v23 = vmov (!%p163_p2), 0.0   ;;  %v1900_v26 = vld [vmem:[%s2398_s1 + $0x12c] ss:$28 sps:$4 sm:$0xff] (!%p163_p2)   ;;  %vm2000_vm1 = vmmov (!%p163_p2), 0  }
   0xc   : > { %429 = vmatpush1.bf16.msra.mxu0 (!%p163_p2), %v1879_v7  ;;  %472 = vmatpush1.bf16.msra.mxu1 (!%p163_p2), %v1880_v8  ;;  %v1893_v22 = vld [vmem:[%s2398_s1 + $0xf0] ss:$28 sps:$4 sm:$0xff] (!%p163_p2)   ;;  %v1897_v24 = vld [vmem:[%s2398_s1 + $0xf8] ss:$28 sps:$4 sm:$0xff] (!%p163_p2)   ;;  %v1898_v27 = vld [vmem:[%s2398_s1 + $0x128] ss:$28 sps:$4 sm:$0xff] (!%p163_p2)  }
   0xd   : > { %s2403_s16 = smov (!%p188_p3, %s1555_s16), 1  ;;  %430 = vmatprep.subr.bf16.mxu0 %v1881_v9  ;;  %473 = vmatprep.subr.bf16.mxu1 %v1883_v10  ;;  %v1901_v28 = vld [vmem:[%s2398_s1 + $0x130] ss:$28 sps:$4 sm:$0xff]   ;;  %v1904_v29 = vld [vmem:[%s2398_s1 + $0x164] ss:$28 sps:$4 sm:$0xff]   ;;  %s2001_s25 = smov 32  }
   0xe   : > { %s1729_s9 = sshll.u32 %s2403_s16, 3  ;;  %v1902_v30 = vld [vmem:[%s2398_s1 + $0x160] ss:$28 sps:$4 sm:$0xff]   ;;  %v1905_v31 = vld [vmem:[%s2398_s1 + $0x168] ss:$28 sps:$4 sm:$0xff]   ;;  %vm1411_vm2 = vcmask 261120  }
   0xf   : > { %s192_s24 = scalar_lea.vmem %s2397_s0, %s1729_s9  ;;  %v1908_v32 = vld [vmem:[%s2398_s1 + $0x19c] ss:$28 sps:$4 sm:$0xff]   ;;  %v1912_v35 = vld [vmem:[%s2398_s1 + $0x4] ss:$28 sps:$4 sm:$0xff]   ;;  %v1915_v36 = vld [vmem:[%s2398_s1 + $0xc] ss:$28 sps:$4 sm:$0xff]  }
  0x10   : > { %431 = vmatpush1.bf16.msra.mxu0 %v1885_v11  ;;  %474 = vmatpush1.bf16.msra.mxu1 %v1886_v12  ;;  %v2092_v17 = vld [vmem:[%s192_s24] sm:$0xff]   ;;  %v1906_v33 = vld [vmem:[%s2398_s1 + $0x198] ss:$28 sps:$4 sm:$0xff]   ;;  %v1922_v45 = vld [vmem:[%s2398_s1 + $0x70] ss:$28 sps:$4 sm:$0xff]   ;;  %s2002_s26 = smov 64  }
  0x11   : > { %432 = vmatprep.subr.bf16.mxu0 %v1887_v13  ;;  %475 = vmatprep.subr.bf16.mxu1 %v1889_v14  ;;  %v272_v19 = vshrl.u32 %v2092_v17, 16  ;;  %v274_v20 = vshll.u32 %v2092_v17, 16  ;;  %v1909_v34 = vld [vmem:[%s2398_s1 + $0x1a0] ss:$28 sps:$4 sm:$0xff]   ;;  %v1913_v38 = vld [vmem:[%s2398_s1 + $0x8] ss:$28 sps:$4 sm:$0xff]  }
  0x12   : > { %v1910_v37 = vld [vmem:[%s2398_s1] ss:$28 sps:$4 sm:$0xff]   ;;  %v1916_v41 = vld [vmem:[%s2398_s1 + $0x38] ss:$28 sps:$4 sm:$0xff]   ;;  %v1930_v47 = vld [vmem:[%s2398_s1 + $0xac] ss:$28 sps:$4 sm:$0xff]  }
  0x13   : > { %v276_v21 = vrot.slane %v274_v20, 1  ;;  %v1918_v39 = vld [vmem:[%s2398_s1 + $0x3c] ss:$28 sps:$4 sm:$0xff]   ;;  %v1921_v40 = vld [vmem:[%s2398_s1 + $0x44] ss:$28 sps:$4 sm:$0xff]   ;;  %s1730_s27 = sshll.u32 %s2403_s16, 4 }
  0x14   : > { %433 = vmatpush1.bf16.msra.mxu0 %v1891_v15  ;;  %476 = vmatpush1.bf16.msra.mxu1 %v1892_v16  ;;  %v1919_v42 = vld [vmem:[%s2398_s1 + $0x40] ss:$28 sps:$4 sm:$0xff]   ;;  %v1924_v43 = vld [vmem:[%s2398_s1 + $0x74] ss:$28 sps:$4 sm:$0xff]   ;;  %v1928_v49 = vld [vmem:[%s2398_s1 + $0xa8] ss:$28 sps:$4 sm:$0xff]   ;;  %s197_s16 = scalar_lea.vmem %s2401_s4, %s1730_s27 }
  0x15   : > { %512 = vmatprep.subr.bf16.mxu0 %v1895_v18  ;;  %1748 = vmatprep.subr.bf16.mxu1 %v1999_v23  ;;  %v277_v25 = vor.u32 %v276_v21, %v272_v19  ;;  %v1927_v44 = vld [vmem:[%s2398_s1 + $0x7c] ss:$28 sps:$4 sm:$0xff]   ;;  %v1933_v48 = vld [vmem:[%s2398_s1 + $0xb4] ss:$28 sps:$4 sm:$0xff]   ;;  %v1940_v54 = vld [vmem:[%s2398_s1 + $0x4c] ss:$28 sps:$4 sm:$0xff]  }
  0x16   : > { %v1925_v46 = vld [vmem:[%s2398_s1 + $0x78] ss:$28 sps:$4 sm:$0xff]   ;;  %v1931_v50 = vld [vmem:[%s2398_s1 + $0xb0] ss:$28 sps:$4 sm:$0xff]   ;;  %v1938_v55 = vld [vmem:[%s2398_s1 + $0x48] ss:$28 sps:$4 sm:$0xff]  }
  0x17   : > { %1625 = vmatmul.mubr.msk.bf16.vlgmr.msra.gmra.mrb[0].mxu0 %vm422_vm0, %v277_v25  ;;  %1626 = vmatmul.mubr.msk.bf16.vlgmr.msra.gmra.mrb[0].mxu1 %vm422_vm0, %v277_v25  ;;  %v1936_v51 = vld [vmem:[%s2398_s1 + $0x14] ss:$28 sps:$4 sm:$0xff]   ;;  %v1944_v57 = vld [vmem:[%s2398_s1 + $0x84] ss:$28 sps:$4 sm:$0xff]   ;;  %v1948_v60 = vld [vmem:[%s2398_s1 + $0xbc] ss:$28 sps:$4 sm:$0xff]  }
  0x18   : > { %513 = vmatpush1.bf16.msra.mxu0 %v1893_v22  ;;  %1749 = vmatpush3.bf16.msra.mxu1 %v1897_v24  ;;  %v1934_v52 = vld [vmem:[%s2398_s1 + $0x10] ss:$28 sps:$4 sm:$0xff]   ;;  %v1937_v53 = vld [vmem:[%s2398_s1 + $0x18] ss:$28 sps:$4 sm:$0xff]   ;;  %v1942_v58 = vld [vmem:[%s2398_s1 + $0x80] ss:$28 sps:$4 sm:$0xff]  }
  0x19   : > { %514 = vmatprep.subr.bf16.mxu0 %v1900_v26  ;;  %1750 = vmatprep.subr.bf16.mxu1 %v1999_v23  ;;  %v1941_v56 = vld [vmem:[%s2398_s1 + $0x50] ss:$28 sps:$4 sm:$0xff]   ;;  %v1945_v59 = vld [vmem:[%s2398_s1 + $0x88] ss:$28 sps:$4 sm:$0xff]   ;;  %v1946_v61 = vld [vmem:[%s2398_s1 + $0xb8] ss:$28 sps:$4 sm:$0xff]  }
  0x1a   : > { %544 = vmatprep.mubr.bf16.mxu0 %v1998_v2  ;;  %1756 = vmatprep.mubr.msk.bf16.mxu1 %vm2000_vm1, %v1999_v23  ;;  %v1949_v62 = vld [vmem:[%s2398_s1 + $0xc0] ss:$28 sps:$4 sm:$0xff]   ;;  %v1955_v0 = vld [vmem:[%s2398_s1 + $0x1cc] ss:$28 sps:$4 sm:$0xff]   ;;  %v1956_v6 = vld [vmem:[%s2398_s1 + $0x1f8] ss:$28 sps:$4 sm:$0xff]  }
  0x1b   : > { %v1952_v63 = vld [vmem:[%s2398_s1 + $0x1c4] ss:$28 sps:$4 sm:$0xff]   ;;  %v1958_v4 = vld [vmem:[%s2398_s1 + $0x1fc] ss:$28 sps:$4 sm:$0xff]   ;;  %v1964_v8 = vld [vmem:[%s2398_s1 + $0x234] ss:$28 sps:$4 sm:$0xff]  }
  0x1c   : > { %515 = vmatpush1.bf16.msra.mxu0 %v1898_v27  ;;  %1751 = vmatpush3.bf16.msra.mxu1 %v1901_v28  ;;  %v1950_v1 = vld [vmem:[%s2398_s1 + $0x1c0] ss:$28 sps:$4 sm:$0xff]   ;;  %v1953_v3 = vld [vmem:[%s2398_s1 + $0x1c8] ss:$28 sps:$4 sm:$0xff]   ;;  %v1962_v10 = vld [vmem:[%s2398_s1 + $0x230] ss:$28 sps:$4 sm:$0xff]  }
  0x1d   : > { %516 = vmatprep.subr.bf16.mxu0 %v1904_v29  ;;  %1752 = vmatprep.subr.bf16.mxu1 %v1999_v23  ;;  %v1961_v5 = vld [vmem:[%s2398_s1 + $0x204] ss:$28 sps:$4 sm:$0xff]   ;;  %v1967_v9 = vld [vmem:[%s2398_s1 + $0x23c] ss:$28 sps:$4 sm:$0xff]   ;;  %v1970_v12 = vld [vmem:[%s2398_s1 + $0x26c] ss:$28 sps:$4 sm:$0xff]   ;;  %v1279_v29 = vlaneseq }
  0x1e   : > { %v1959_v7 = vld [vmem:[%s2398_s1 + $0x200] ss:$28 sps:$4 sm:$0xff]   ;;  %v1965_v11 = vld [vmem:[%s2398_s1 + $0x238] ss:$28 sps:$4 sm:$0xff]   ;;  %v1968_v14 = vld [vmem:[%s2398_s1 + $0x268] ss:$28 sps:$4 sm:$0xff]  }
  0x1f   : > { %v1973_v13 = vld [vmem:[%s2398_s1 + $0x274] ss:$28 sps:$4 sm:$0xff]   ;;  %v945_v18 = vrot.slane %v2092_v17, 1  ;;  %v1980_v21 = vld [vmem:[%s2398_s1 + $0x20c] ss:$28 sps:$4 sm:$0xff]   ;;  %vm1492_vm3 = vcmask 1043456  }
  0x20   : > { %517 = vmatpush1.bf16.msra.mxu0 %v1902_v30  ;;  %1753 = vmatpush3.bf16.msra.mxu1 %v1905_v31  ;;  %v1971_v15 = vld [vmem:[%s2398_s1 + $0x270] ss:$28 sps:$4 sm:$0xff]   ;;  %v1977_v20 = vld [vmem:[%s2398_s1 + $0x1d8] ss:$28 sps:$4 sm:$0xff]   ;;  %v1984_v24 = vld [vmem:[%s2398_s1 + $0x244] ss:$28 sps:$4 sm:$0xff]  }
  0x21   : > { %518 = vmatprep.subr.bf16.mxu0 %v1908_v32  ;;  %1754 = vmatprep.subr.bf16.mxu1 %v1999_v23  ;;  %v1976_v16 = vld [vmem:[%s2398_s1 + $0x1d4] ss:$28 sps:$4 sm:$0xff]   ;;  %v1985_v26 = vld [vmem:[%s2398_s1 + $0x248] ss:$28 sps:$4 sm:$0xff]   ;;  %v1989_v28 = vld [vmem:[%s2398_s1 + $0x280] ss:$28 sps:$4 sm:$0xff]  }
  0x22   : > { %v1974_v19 = vld [vmem:[%s2398_s1 + $0x1d0] ss:$28 sps:$4 sm:$0xff]   ;;  %v1986_v27 = vld [vmem:[%s2398_s1 + $0x278] ss:$28 sps:$4 sm:$0xff]   ;;  %v1280_v30 = vshrl.u32 %v1279_v29, 7  ;;  %v1277_v32 = vld [vmem:[%s2399_s2] sm:$0xff] }
  0x23   : > { %v1981_v22 = vld [vmem:[%s2398_s1 + $0x210] ss:$28 sps:$4 sm:$0xff]   ;;  %vm1493_vm4 = vcmask 785412   ;;  %vm1496_vm5 = vcmask 1042432   ;;  %vm1497_vm6 = vcmask 784388  }
  0x24   : > { %519 = vmatpush1.bf16.msra.mxu0 %v1906_v33  ;;  %1755 = vmatpush3.bf16.msra.mxu1 %v1909_v34  ;;  %v1281_v31 = vsub.s32 0, %v1280_v30  ;;  %v1328_v34 = vld [vmem:[%s2400_s3] sm:$0xff]  ;;  %vm1494_vm7 = vmor %vm1493_vm4, %vm1492_vm3 }
  0x25   : > { %742 = vmatprep.subr.bf16.mxu0 %v1912_v35  ;;  %785 = vmatprep.subr.bf16.mxu1 %v1915_v36  ;;  %vm1498_vm8 = vmor %vm1497_vm6, %vm1496_vm5 }
  0x26   : > { %v1282_v33 = vrot.slane %v1277_v32, %v1281_v31  ;;  %v1333_v35 = vrot.slane %v1328_v34, %v1281_v31 }
  0x27   : > { %1627 = vmatmul.mubr.msk.bf16.vlgmr.msra.gmra.mrb[4].mxu0 %vm422_vm0, %v277_v25  ;;  %1757 = vmatmul.mubr.msk.bf16.vlgmr.msra.gmra.mrb[4].mxu1 %vm422_vm0, %v277_v25  ;;  %v1982_v25 = vld [vmem:[%s2398_s1 + $0x240] ss:$28 sps:$4 sm:$0xff]  }
  0x28   : > { %743 = vmatpush1.bf16.msra.mxu0 %v1910_v37  ;;  %786 = vmatpush1.bf16.msra.mxu1 %v1913_v38  ;;  %v1289_v38 = vsub.s32 2, %v1280_v30 }
  0x29   : > { %744 = vmatprep.subr.bf16.mxu0 %v1918_v39  ;;  %787 = vmatprep.subr.bf16.mxu1 %v1921_v40  ;;  %v1285_v39 = vsub.s32 1, %v1280_v30  ;;  %v1293_v40 = vsub.s32 3, %v1280_v30 }
  0x2a   : > { %774 = vmatprep.mubr.bf16.mxu0 %v1998_v2  ;;  %817 = vmatprep.mubr.bf16.mxu1 %v1998_v2 }
  0x2c   : > { %745 = vmatpush1.bf16.msra.mxu0 %v1916_v41  ;;  %788 = vmatpush1.bf16.msra.mxu1 %v1919_v42  ;;  %v1290_v41 = vrot.slane %v1277_v32, %v1289_v38  ;;  %v1286_v42 = vrot.slane %v1277_v32, %v1285_v39 }
  0x2d   : > { %746 = vmatprep.subr.bf16.mxu0 %v1924_v43  ;;  %789 = vmatprep.subr.bf16.mxu1 %v1927_v44  ;;  %v1294_v43 = vrot.slane %v1277_v32, %v1293_v40  ;;  %v1341_v44 = vrot.slane %v1328_v34, %v1289_v38 }
  0x30   : > { %747 = vmatpush1.bf16.msra.mxu0 %v1922_v45  ;;  %790 = vmatpush1.bf16.msra.mxu1 %v1925_v46 }
  0x31   : > { %748 = vmatprep.subr.bf16.mxu0 %v1930_v47  ;;  %791 = vmatprep.subr.bf16.mxu1 %v1933_v48  ;;  %v1337_v47 = vrot.slane %v1328_v34, %v1285_v39 }
  0x34   : > { %749 = vmatpush1.bf16.msra.mxu0 %v1928_v49  ;;  %792 = vmatpush1.bf16.msra.mxu1 %v1931_v50 }
  0x35   : > { %828 = vmatprep.subr.bf16.mxu0 %v1936_v51  ;;  %1760 = vmatprep.subr.bf16.mxu1 %v1999_v23 }
  0x37   : > { %1657 = vmatmul.mubr.msk.bf16.vlgmr.msra.gmra.mrb[0].mxu0 %vm422_vm0, %v2092_v17  ;;  %1658 = vmatmul.mubr.msk.bf16.vlgmr.msra.gmra.mrb[0].mxu1 %vm422_vm0, %v2092_v17 }
  0x38   : > { %829 = vmatpush1.bf16.msra.mxu0 %v1934_v52  ;;  %1761 = vmatpush3.bf16.msra.mxu1 %v1937_v53 }
  0x39   : > { %830 = vmatprep.subr.bf16.mxu0 %v1940_v54  ;;  %1762 = vmatprep.subr.bf16.mxu1 %v1999_v23  ;;  %v1345_v54 = vrot.slane %v1328_v34, %v1293_v40 }
  0x3a   : > { %860 = vmatprep.mubr.bf16.mxu0 %v1998_v2  ;;  %1768 = vmatprep.mubr.msk.bf16.mxu1 %vm2000_vm1, %v1999_v23 }
  0x3c   : > { %831 = vmatpush1.bf16.msra.mxu0 %v1938_v55  ;;  %1763 = vmatpush3.bf16.msra.mxu1 %v1941_v56 }
  0x3d   : > { %832 = vmatprep.subr.bf16.mxu0 %v1944_v57  ;;  %1764 = vmatprep.subr.bf16.mxu1 %v1999_v23 }
  0x40   : > { %833 = vmatpush1.bf16.msra.mxu0 %v1942_v58  ;;  %1765 = vmatpush3.bf16.msra.mxu1 %v1945_v59 }
  0x41   : > { %834 = vmatprep.subr.bf16.mxu0 %v1948_v60  ;;  %1766 = vmatprep.subr.bf16.mxu1 %v1999_v23 }
  0x44   : > { %835 = vmatpush1.bf16.msra.mxu0 %v1946_v61  ;;  %1767 = vmatpush3.bf16.msra.mxu1 %v1949_v62 }
  0x45   : > { %1093 = vmatprep.subr.bf16.mxu0 %v1952_v63  ;;  %1136 = vmatprep.subr.bf16.mxu1 %v1955_v0 }
  0x47   : > { %1659 = vmatmul.mubr.msk.bf16.vlgmr.msra.gmra.mrb[4].mxu0 %vm422_vm0, %v2092_v17  ;;  %1769 = vmatmul.mubr.msk.bf16.vlgmr.msra.gmra.mrb[4].mxu1 %vm422_vm0, %v2092_v17  ;;  %v1978_v17 = vld [vmem:[%s2398_s1 + $0x208] ss:$28 sps:$4 sm:$0xff]  }
  0x48   : > { %1094 = vmatpush1.bf16.msra.mxu0 %v1950_v1  ;;  %1137 = vmatpush1.bf16.msra.mxu1 %v1953_v3 }
  0x49   : > { %1095 = vmatprep.subr.bf16.mxu0 %v1958_v4  ;;  %1138 = vmatprep.subr.bf16.mxu1 %v1961_v5 }
  0x4a   : > { %1125 = vmatprep.mubr.bf16.mxu0 %v1998_v2  ;;  %1168 = vmatprep.mubr.bf16.mxu1 %v1998_v2 }
  0x4c   : > { %1096 = vmatpush1.bf16.msra.mxu0 %v1956_v6  ;;  %1139 = vmatpush1.bf16.msra.mxu1 %v1959_v7 }
  0x4d   : > { %1097 = vmatprep.subr.bf16.mxu0 %v1964_v8  ;;  %1140 = vmatprep.subr.bf16.mxu1 %v1967_v9  ;;  %v1305_v8 = vsub.s32 6, %v1280_v30 }
  0x50   : > { %1098 = vmatpush1.bf16.msra.mxu0 %v1962_v10  ;;  %1141 = vmatpush1.bf16.msra.mxu1 %v1965_v11  ;;  %v1301_v10 = vsub.s32 5, %v1280_v30 }
  0x51   : > { %1099 = vmatprep.subr.bf16.mxu0 %v1970_v12  ;;  %1142 = vmatprep.subr.bf16.mxu1 %v1973_v13  ;;  %v1306_v12 = vrot.slane %v1277_v32, %v1305_v8 }
  0x52   : > { %v1302_v13 = vrot.slane %v1277_v32, %v1301_v10 }
  0x54   : > { %1100 = vmatpush1.bf16.msra.mxu0 %v1968_v14  ;;  %1143 = vmatpush1.bf16.msra.mxu1 %v1971_v15  ;;  %v1357_v14 = vrot.slane %v1328_v34, %v1305_v8 }
  0x55   : > { %1179 = vmatprep.subr.bf16.mxu0 %v1976_v16  ;;  %1772 = vmatprep.subr.bf16.mxu1 %v1999_v23 }
  0x57   : > { %1721 = vmatmul.mubr.msk.bf16.vlgmr.msra.gmra.mrb[0].mxu0 %vm422_vm0, %v945_v18  ;;  %1722 = vmatmul.mubr.msk.bf16.vlgmr.msra.gmra.mrb[0].mxu1 %vm422_vm0, %v945_v18 }
  0x58   : > { %1180 = vmatpush1.bf16.msra.mxu0 %v1974_v19  ;;  %1773 = vmatpush3.bf16.msra.mxu1 %v1977_v20 }
  0x59   : > { %1181 = vmatprep.subr.bf16.mxu0 %v1980_v21  ;;  %1774 = vmatprep.subr.bf16.mxu1 %v1999_v23 }
  0x5a   : > { %1211 = vmatprep.mubr.bf16.mxu0 %v1998_v2  ;;  %1780 = vmatprep.mubr.msk.bf16.mxu1 %vm2000_vm1, %v1999_v23  ;;  %v1988_v2 = vld [vmem:[%s2398_s1 + $0x27c] ss:$28 sps:$4 sm:$0xff]  }
  0x5c   : > { %1182 = vmatpush1.bf16.msra.mxu0 %v1978_v17  ;;  %1775 = vmatpush3.bf16.msra.mxu1 %v1981_v22 }
  0x5d   : > { %1183 = vmatprep.subr.bf16.mxu0 %v1984_v24  ;;  %1776 = vmatprep.subr.bf16.mxu1 %v1999_v23 }
  0x60   : > { %1184 = vmatpush1.bf16.msra.mxu0 %v1982_v25  ;;  %1777 = vmatpush3.bf16.msra.mxu1 %v1985_v26 }
  0x61   : > { %1185 = vmatprep.subr.bf16.mxu0 %v1988_v2  ;;  %1778 = vmatprep.subr.bf16.mxu1 %v1999_v23  ;;  %v1297_v23 = vsub.s32 4, %v1280_v30 }
  0x63   : > { %v1298_v36 = vrot.slane %v1277_v32, %v1297_v23  ;;  %v2348_v37 = vrot.slane %v1328_v34, %v1297_v23 }
  0x64   : > { %1186 = vmatpush1.bf16.msra.mxu0 %v1986_v27  ;;  %1779 = vmatpush3.bf16.msra.mxu1 %v1989_v28 }
  0x67   : > { %1723 = vmatmul.mubr.msk.bf16.vlgmr.msra.gmra.mrb[4].mxu0 %vm422_vm0, %v945_v18  ;;  %1781 = vmatmul.mubr.msk.bf16.vlgmr.msra.gmra.mrb[4].mxu1 %vm422_vm0, %v945_v18  ;;  %v1353_v18 = vrot.slane %v1328_v34, %v1301_v10 }
 0x12a   : > { %v1127_v45 = vpop.f32.mrb[0].mxu0  ;;  %v1170_v46 = vpop.f32.mrb[0].mxu1 }
 0x12b   : > { %v1314_v48 = vmul.f32 %v1282_v33, %v1127_v45  ;;  %v1316_v49 = vmul.f32 %v1290_v41, %v1170_v46  ;;  %v1129_v50 = vpop.f32.mrb[1].mxu0  ;;  %v1172_v51 = vpop.f32.mrb[1].mxu1 }
 0x12c   : > { %v1315_v52 = vmul.f32 %v1286_v42, %v1129_v50  ;;  %v1317_v53 = vmul.f32 %v1294_v43, %v1172_v51  ;;  %v1131_v55 = vpop.f32.mrb[2].mxu0  ;;  %v1174_v56 = vpop.f32.mrb[2].mxu1 }
 0x12d   : > { %v2350_v57 = vadd.f32 %v1333_v35, %v1314_v48  ;;  %v1367_v58 = vadd.f32 %v1341_v44, %v1316_v49  ;;  %v1321_v59 = vmul.f32 %v1282_v33, %v1131_v55  ;;  %v1133_v60 = vpop.f32.mrb[3].mxu0  ;;  %v1176_v61 = vpop.f32.mrb[3].mxu1  ;;  %v1323_v22 = vmul.f32 %v1290_v41, %v1174_v56 }
 0x12e   : > { %v2352_v62 = vadd.f32 %v1337_v47, %v1315_v52  ;;  %v1322_v63 = vmul.f32 %v1286_v42, %v1133_v60  ;;  %v2357_v4 = vadd.f32 %v1345_v54, %v1317_v53  ;;  %v1324_v32 = vmul.f32 %v1294_v43, %v1176_v61 }
 0x12f   : > { %v1381_v0 = vmax.f32 %v1367_v58, 0.0  ;;  %v2354_v1 = vadd.f32 %v1333_v35, %v1321_v59  ;;  %v1374_v41 = vadd.f32 %v1341_v44, %v1323_v22  ;;  %v1379_v44 = vmax.f32 %v2350_v57, 0.0 }
 0x130   : > { %v1380_v3 = vmax.f32 %v2352_v62, 0.0  ;;  %v2359_v5 = vadd.f32 %v1337_v47, %v1322_v63  ;;  %v1382_v9 = vmax.f32 %v2357_v4, 0.0  ;;  %v1375_v42 = vadd.f32 %v1345_v54, %v1324_v32 }
 0x132   : > { %v1387_v6 = vmax.f32 %v2359_v5, 0.0  ;;  %v1839_v7 = vpack.i.bf16 %v1381_v0, %v1380_v3  ;;  %v1389_v48 = vmax.f32 %v1375_v42, 0.0 }
 0x134   : > { %1840 = vrot.lane.b32.xlu1 %v1839_v7, %s2001_s25  ;;  %v1844_v11 = vpack.i.bf16 %v1387_v6, %v1382_v9 }
 0x138   : > { %1845 = vrot.lane.b32.xlu1 %v1844_v11, %s2001_s25 }
 0x13a   : > { %v1213_v15 = vpop.f32.mrb[4].mxu0  ;;  %v1256_v16 = vpop.f32.mrb[4].mxu1 }
 0x13b   : > { %v1318_v19 = vmul.f32 %v1298_v36, %v1213_v15  ;;  %v1320_v20 = vmul.f32 %v1306_v12, %v1256_v16  ;;  %v1215_v21 = vpop.f32.mrb[5].mxu0  ;;  %v1782_v17 = vpop.f32.mrb[5].mxu1 }
 0x13c   : > { %v1319_v24 = vmul.f32 %v1302_v13, %v1215_v21  ;;  %v1217_v25 = vpop.f32.mrb[6].mxu0  ;;  %v1259_v26 = vpop.f32.mrb[6].mxu1 }
 0x13d   : > { %v1369_v2 = vadd.f32 %v2348_v37, %v1318_v19  ;;  %v1371_v27 = vadd.f32 %v1357_v14, %v1320_v20  ;;  %v1325_v28 = vmul.f32 %v1298_v36, %v1217_v25  ;;  %v1327_v29 = vmul.f32 %v1306_v12, %v1259_v26  ;;  %v1219_v30 = vpop.f32.mrb[7].mxu0  ;;  %v1783_v31 = vpop.f32.mrb[7].mxu1 }
 0x13e   : > { %v1370_v33 = vadd.f32 %v1353_v18, %v1319_v24  ;;  %v1326_v35 = vmul.f32 %v1302_v13, %v1219_v30  ;;  %v1388_v36 = vmax.f32 %v1374_v41, 0.0 }
 0x13f   : > { %v1385_v23 = vmax.f32 %v1371_v27, 0.0  ;;  %v1376_v34 = vadd.f32 %v2348_v37, %v1325_v28  ;;  %v1378_v38 = vadd.f32 %v1357_v14, %v1327_v29  ;;  %v1383_v58 = vmax.f32 %v1369_v2, 0.0 }
 0x140   : > { %v1384_v39 = vmax.f32 %v1370_v33, 0.0  ;;  %v1377_v40 = vadd.f32 %v1353_v18, %v1326_v35  ;;  %v1849_v43 = vpack.i.bf16 %v1389_v48, %v1388_v36 }
 0x141   : > { %v1392_v45 = vmax.f32 %v1378_v38, 0.0  ;;  %v1390_v7 = vmax.f32 %v1376_v34, 0.0 }
 0x142   : > { %v1391_v46 = vmax.f32 %v1377_v40, 0.0  ;;  %v1829_v47 = vpack.i.bf16 %v1385_v23, %v1384_v39 }
 0x144   : > { %1830 = vrot.lane.b32.xlu0 %v1829_v47, %s2001_s25  ;;  %v1834_v49 = vpack.i.bf16 %v1392_v45, %v1391_v46 }
 0x148   : > { %1835 = vrot.lane.b32.xlu0 %v1834_v49, %s2001_s25 }
 0x14c   : > { %1850 = vrot.lane.b32.xlu0 %v1849_v43, %s2001_s25 }
 0x1a6   : > { %v1841_v37 = vpop.permute.xlu1 %1840 }
 0x1a7   : > { %v1843_v50 = vunpack.i.h.bf16 %v1841_v37  ;;  %v1842_v51 = vunpack.i.l.bf16 %v1841_v37 }
 0x1a9   : > { %v1412_v52 = vsel %vm1411_vm2, %v1842_v51, %v1843_v50 }
 0x1aa   : > { %v1420_v53 = vmax.f32 %v1379_v44, %v1412_v52  ;;  %v1846_v8 = vpop.permute.xlu1 %1845 }
 0x1ab   : > { %v1848_v16 = vunpack.i.h.bf16 %v1846_v8  ;;  %v1847_v22 = vunpack.i.l.bf16 %v1846_v8 }
 0x1ad   : > { %v1413_v26 = vsel %vm1411_vm2, %v1843_v50, %v1847_v22 }
 0x1b6   : > { %v1831_v54 = vpop.permute.xlu0 %1830 }
 0x1b7   : > { %v1833_v55 = vunpack.i.h.bf16 %v1831_v54  ;;  %v1832_v56 = vunpack.i.l.bf16 %v1831_v54 }
 0x1b9   : > { %v1436_v59 = vsel %vm1411_vm2, %v1832_v56, %v1833_v55  ;;  %v1444_v60 = vmax.f32 %v1382_v9, %v1832_v56  ;;  %v1446_v11 = vmax.f32 %v1384_v39, %v1833_v55  ;;  %v1386_v9 = vmax.f32 %v2354_v1, 0.0 }
 0x1ba   : > { %v1836_v61 = vpop.permute.xlu0 %1835  ;;  %v1445_v63 = vmax.f32 %v1383_v58, %v1436_v59  ;;  %v1421_v1 = vmax.f32 %v1380_v3, %v1413_v26 }
 0x1bb   : > { %v1838_v0 = vunpack.i.h.bf16 %v1836_v61  ;;  %v1837_v4 = vunpack.i.l.bf16 %v1836_v61 }
 0x1bc   : > { %v1854_v10 = vpack.i.bf16 %v1445_v63, %v1444_v60 }
 0x1bd   : > { %v1449_v12 = vmax.f32 %v1391_v46, %v1838_v0  ;;  %v1437_v57 = vsel %vm1411_vm2, %v1837_v4, %v1838_v0  ;;  %v1447_v13 = vmax.f32 %v1389_v48, %v1837_v4 }
 0x1be   : > { %1855 = vrot.lane.b32.xlu1 %v1854_v10, %s2002_s26  ;;  %v1851_v14 = vpop.permute.xlu0 %1850  ;;  %v1448_v15 = vmax.f32 %v1390_v7, %v1437_v57 }
 0x1bf   : > { %v1852_v18 = vunpack.i.l.bf16 %v1851_v14  ;;  %v1859_v19 = vpack.i.bf16 %v1447_v13, %v1446_v11  ;;  %v1853_v24 = vunpack.i.h.bf16 %v1851_v14 }
 0x1c0   : > { %v1864_v20 = vpack.i.bf16 %v1449_v12, %v1448_v15 }
 0x1c1   : > { %v1414_v21 = vsel %vm1411_vm2, %v1848_v16, %v1852_v18  ;;  %1860 = vrot.lane.b32.xlu0 %v1859_v19, %s2002_s26  ;;  %v1415_v28 = vsel %vm1411_vm2, %v1852_v18, %v1853_v24 }
 0x1c2   : > { %v1422_v17 = vmax.f32 %v1386_v9, %v1414_v21  ;;  %1865 = vrot.lane.b32.xlu1 %v1864_v20, %s2002_s26  ;;  %v1423_v34 = vmax.f32 %v1387_v6, %v1415_v28 }
 0x230   : > { %v1856_v25 = vpop.permute.xlu1 %1855 }
 0x231   : > { %v1858_v2 = vunpack.i.h.bf16 %v1856_v25  ;;  %v1857_v27 = vunpack.i.l.bf16 %v1856_v25 }
 0x233   : > { %v1861_v29 = vpop.permute.xlu0 %1860  ;;  %v1468_v30 = vsel %vm422_vm0, %v1857_v27, %v1858_v2 }
 0x234   : > { %v1863_v31 = vunpack.i.h.bf16 %v1861_v29  ;;  %v1862_v32 = vunpack.i.l.bf16 %v1861_v29  ;;  %v1866_v33 = vpop.permute.xlu1 %1865  ;;  %v1476_v39 = vmax.f32 %v1420_v53, %v1468_v30 }
 0x235   : > { %v1868_v35 = vunpack.i.h.bf16 %v1866_v33  ;;  %v1867_v23 = vunpack.i.l.bf16 %v1866_v33 }
 0x236   : > { %v1469_v38 = vsel %vm422_vm0, %v1858_v2, %v1862_v32 }
 0x237   : > { %v1477_v62 = vmax.f32 %v1421_v1, %v1469_v38  ;;  %v1470_v3 = vsel %vm422_vm0, %v1863_v31, %v1867_v23  ;;  %v1471_v40 = vsel %vm422_vm0, %v1867_v23, %v1868_v35 }
 0x238   : > { %v1478_v41 = vmax.f32 %v1422_v17, %v1470_v3  ;;  %v1479_v42 = vmax.f32 %v1423_v34, %v1471_v40 }
 0x239   : > { %v1731_v45 = vpack.c.bf16 %v1477_v62, %v1476_v39 }
 0x23a   : > { %v1732_v5 = vpack.c.bf16 %v1479_v42, %v1478_v41 }
 0x23b   : > { %1495 = vst.msk [vmem:[%s197_s16] sm:$0xff] %vm1494_vm7, %v1731_v45 }
 0x23c   : > { %1499 = vst.msk [vmem:[%s197_s16 + $0x8] sm:$0x77] %vm1498_vm8, %v1732_v5 }
 0x23d PF: > { %s14_s15 = sadd.s32 1, %s1996_s15  }
 0x23e   : > { %p11_p4 = scmp.ge.s32.totalorder %s14_s15, 4  }
 0x240   :  { %13 = sbr.rel (!%p11_p4) target bundleno = 1 (0x1), region = 68 }

// kernel: cnn_forward.7
= control target key start
LH: loop header
LB: loop body
LE: loop exit
PB: predicated region body
PF: predicated region fallthrough
CT: control target
= control target key end

     0   :  { %s7215_s9 = smov 0   ;;  %s9199_s0 = inlined_call_operand.vmem [shape: bf16[2,9,448], index: 0, kind: input, shape index: {}]   ;;  %s9200_s1 = inlined_call_operand.vmem [shape: bf16[3,448,896], index: 1, kind: input, shape index: {}]   ;;  %s9201_s2 = inlined_call_operand.vmem [shape: f32[2,2,896], index: 2, kind: output, shape index: {}]  }
   0x1 LB: > { %s5129_s10 = sadd.s32 4294967295, %s7196_s9   ;;  %p5133_p0 = scmp.ge.s32.totalorder %s7196_s9, 1  ;;  %s7196_s9 = sphi %s7215_s9, %s12_s9  }
   0x2   : > { %p112_p1 = scmp.lt.s32.totalorder %s7196_s9, 3 }
   0x4   : > { %p113_p2 = pnand %p5133_p0, %p112_p1 }
   0x5   : > { %v6340_v0 = vld [vmem:[%s9200_s1 + $0x624] ss:$28 sps:$4 sm:$0xff] (!%p113_p2)   ;;  %v6346_v4 = vld [vmem:[%s9200_s1 + $0x65c] ss:$28 sps:$4 sm:$0xff] (!%p113_p2)   ;;  %v6352_v8 = vld [vmem:[%s9200_s1 + $0x694] ss:$28 sps:$4 sm:$0xff] (!%p113_p2)  }
   0x6   : > { %116 = sbr.rel (%p113_p2) target bundleno = 868 (0x364), region = 28  ;;  %v6342_v1 = vld [vmem:[%s9200_s1 + $0x9a4] ss:$28 sps:$4 sm:$0xff] (!%p113_p2)   ;;  %1651 = vmatprep.subr.bf16.mxu0 (!%p113_p2), %v6340_v0  ;;  %v6348_v5 = vld [vmem:[%s9200_s1 + $0x9dc] ss:$28 sps:$4 sm:$0xff] (!%p113_p2)   ;;  %p134_p3 = scmp.lt.s32.totalorder (!%p113_p2), %s5129_s10, 1 }
   0x7   : > { %v6344_v2 = vld [vmem:[%s9200_s1 + $0x620] ss:$28 sps:$4 sm:$0xff] (!%p113_p2)   ;;  %1692 = vmatprep.subr.bf16.mxu1 (!%p113_p2), %v6342_v1  ;;  %v6350_v6 = vld [vmem:[%s9200_s1 + $0x658] ss:$28 sps:$4 sm:$0xff] (!%p113_p2)   ;;  %v6356_v10 = vld [vmem:[%s9200_s1 + $0x690] ss:$28 sps:$4 sm:$0xff] (!%p113_p2)  }
   0x8   : > { %v6345_v3 = vld [vmem:[%s9200_s1 + $0x9a0] ss:$28 sps:$4 sm:$0xff] (!%p113_p2)   ;;  %1652 = vmatpush1.bf16.msra.mxu0 (!%p113_p2), %v6344_v2  ;;  %v6351_v7 = vld [vmem:[%s9200_s1 + $0x9d8] ss:$28 sps:$4 sm:$0xff] (!%p113_p2)   ;;  %v6357_v11 = vld [vmem:[%s9200_s1 + $0xa10] ss:$28 sps:$4 sm:$0xff] (!%p113_p2)  }
   0x9   : > { %1693 = vmatpush1.bf16.msra.mxu1 (!%p113_p2), %v6345_v3  ;;  %1653 = vmatprep.subr.bf16.mxu0 (!%p113_p2), %v6346_v4  ;;  %v6354_v9 = vld [vmem:[%s9200_s1 + $0xa14] ss:$28 sps:$4 sm:$0xff] (!%p113_p2)   ;;  %v6358_v12 = vld [vmem:[%s9200_s1 + $0x6cc] ss:$28 sps:$4 sm:$0xff] (!%p113_p2)   ;;  %v6364_v16 = vld [vmem:[%s9200_s1 + $0x704] ss:$28 sps:$4 sm:$0xff] (!%p113_p2)  }
   0xa   : > { %1694 = vmatprep.subr.bf16.mxu1 (!%p113_p2), %v6348_v5  ;;  %v6360_v13 = vld [vmem:[%s9200_s1 + $0xa4c] ss:$28 sps:$4 sm:$0xff] (!%p113_p2)   ;;  %v6366_v17 = vld [vmem:[%s9200_s1 + $0xa84] ss:$28 sps:$4 sm:$0xff] (!%p113_p2)   ;;  %v6370_v20 = vld [vmem:[%s9200_s1 + $0x73c] ss:$28 sps:$4 sm:$0xff] (!%p113_p2)  }
   0xb   : > { %v6362_v14 = vld [vmem:[%s9200_s1 + $0x6c8] ss:$28 sps:$4 sm:$0xff] (!%p113_p2)   ;;  %v6368_v18 = vld [vmem:[%s9200_s1 + $0x700] ss:$28 sps:$4 sm:$0xff] (!%p113_p2)   ;;  %v6374_v22 = vld [vmem:[%s9200_s1 + $0x738] ss:$28 sps:$4 sm:$0xff] (!%p113_p2)  }
   0xc   : > { %1654 = vmatpush1.bf16.msra.mxu0 (!%p113_p2), %v6350_v6  ;;  %v6363_v15 = vld [vmem:[%s9200_s1 + $0xa48] ss:$28 sps:$4 sm:$0xff] (!%p113_p2)   ;;  %v6369_v19 = vld [vmem:[%s9200_s1 + $0xa80] ss:$28 sps:$4 sm:$0xff] (!%p113_p2)   ;;  %v6375_v23 = vld [vmem:[%s9200_s1 + $0xab8] ss:$28 sps:$4 sm:$0xff] (!%p113_p2)  }
   0xd   : > { %1695 = vmatpush1.bf16.msra.mxu1 %v6351_v7  ;;  %1655 = vmatprep.subr.bf16.mxu0 %v6352_v8  ;;  %v6372_v21 = vld [vmem:[%s9200_s1 + $0xabc] ss:$28 sps:$4 sm:$0xff]   ;;  %v6376_v24 = vld [vmem:[%s9200_s1 + $0x774] ss:$28 sps:$4 sm:$0xff]   ;;  %s9203_s10 = smov (!%p134_p3, %s5129_s10), 1  ;;  %vm1647_vm0 = vcmask 523264  }
   0xe   : > { %1696 = vmatprep.subr.bf16.mxu1 %v6354_v9  ;;  %v6378_v25 = vld [vmem:[%s9200_s1 + $0xaf4] ss:$28 sps:$4 sm:$0xff]   ;;  %v6382_v28 = vld [vmem:[%s9200_s1 + $0x7ac] ss:$28 sps:$4 sm:$0xff]   ;;  %s6195_s19 = sshll.u32 %s9203_s10, 5  ;;  %vm4902_vm1 = vcmask 1046528  }
   0xf   : > { %v6380_v26 = vld [vmem:[%s9200_s1 + $0x770] ss:$28 sps:$4 sm:$0xff]   ;;  %v6386_v30 = vld [vmem:[%s9200_s1 + $0x7a8] ss:$28 sps:$4 sm:$0xff]   ;;  %s7335_s30 = scalar_lea.vmem %s9199_s0, %s6195_s19  ;;  %v6392_v34 = vld [vmem:[%s9200_s1 + $0x7e0] ss:$28 sps:$4 sm:$0xff]  }
  0x10   : > { %1656 = vmatpush1.bf16.msra.mxu0 %v6356_v10  ;;  %v6381_v27 = vld [vmem:[%s9200_s1 + $0xaf0] ss:$28 sps:$4 sm:$0xff]   ;;  %v6387_v31 = vld [vmem:[%s9200_s1 + $0xb28] ss:$28 sps:$4 sm:$0xff]   ;;  %v6393_v35 = vld [vmem:[%s9200_s1 + $0xb60] ss:$28 sps:$4 sm:$0xff]  }
  0x11   : > { %1697 = vmatpush1.bf16.msra.mxu1 %v6357_v11  ;;  %1657 = vmatprep.subr.bf16.mxu0 %v6358_v12  ;;  %v6384_v29 = vld [vmem:[%s9200_s1 + $0xb2c] ss:$28 sps:$4 sm:$0xff]   ;;  %v6388_v32 = vld [vmem:[%s9200_s1 + $0x7e4] ss:$28 sps:$4 sm:$0xff]   ;;  %v6394_v36 = vld [vmem:[%s9200_s1 + $0x81c] ss:$28 sps:$4 sm:$0xff]  }
  0x12   : > { %1698 = vmatprep.subr.bf16.mxu1 %v6360_v13  ;;  %v6390_v33 = vld [vmem:[%s9200_s1 + $0xb64] ss:$28 sps:$4 sm:$0xff]   ;;  %v146_v37 = vld [vmem:[%s7335_s30 + $0x8] sm:$0xff]  ;;  %v6396_v38 = vld [vmem:[%s9200_s1 + $0xb9c] ss:$28 sps:$4 sm:$0xff]   ;;  %vm5022_vm2 = vcmask 1040384  }
  0x13   : > { %v7350_v39 = vcombine.high %v146_v37, %v146_v37  ;;  %v6398_v40 = vld [vmem:[%s9200_s1 + $0x818] ss:$28 sps:$4 sm:$0xff]   ;;  %v7357_v43 = vcombine.low %v146_v37, %v146_v37  ;;  %v6404_v50 = vld [vmem:[%s9200_s1 + $0x850] ss:$28 sps:$4 sm:$0xff]   ;;  %v6410_v54 = vld [vmem:[%s9200_s1 + $0x888] ss:$28 sps:$4 sm:$0xff]  }
  0x14   : > { %1658 = vmatpush1.bf16.msra.mxu0 %v6362_v14  ;;  %v6399_v44 = vld [vmem:[%s9200_s1 + $0xb98] ss:$28 sps:$4 sm:$0xff]   ;;  %v6405_v51 = vld [vmem:[%s9200_s1 + $0xbd0] ss:$28 sps:$4 sm:$0xff]   ;;  %v6411_v55 = vld [vmem:[%s9200_s1 + $0xc08] ss:$28 sps:$4 sm:$0xff]  }
  0x15   : > { %1699 = vmatpush1.bf16.msra.mxu1 %v6363_v15  ;;  %1659 = vmatprep.subr.bf16.mxu0 %v6364_v16  ;;  %v630_v41 = vshrl.u32 %v7350_v39, 16  ;;  %v632_v42 = vshll.u32 %v7350_v39, 16  ;;  %v6400_v45 = vld [vmem:[%s9200_s1 + $0x854] ss:$28 sps:$4 sm:$0xff]   ;;  %v625_v49 = vshll.u32 %v7357_v43, 16  ;;  %v623_v56 = vshrl.u32 %v7357_v43, 16 }
  0x16   : > { %1700 = vmatprep.subr.bf16.mxu1 %v6366_v17  ;;  %v6402_v46 = vld [vmem:[%s9200_s1 + $0xbd4] ss:$28 sps:$4 sm:$0xff]   ;;  %v6406_v52 = vld [vmem:[%s9200_s1 + $0x88c] ss:$28 sps:$4 sm:$0xff]   ;;  %v145_v58 = vld [vmem:[%s7335_s30] sm:$0xff]  ;;  %s6329_s26 = smul.u32 14, %s9203_s10 }
  0x17   : > { %v634_v47 = vrot.slane %v632_v42, 1  ;;  %v6408_v53 = vld [vmem:[%s9200_s1 + $0xc0c] ss:$28 sps:$4 sm:$0xff]   ;;  %v627_v57 = vrot.slane %v625_v49, 1  ;;  %v6413_v59 = vld [vmem:[%s9200_s1 + $0x8c4] ss:$28 sps:$4 sm:$0xff]   ;;  %v7396_v60 = vcombine.high %v145_v58, %v145_v58  ;;  %v7423_v8 = vcombine.low %v145_v58, %v145_v58 }
  0x18   : > { %1660 = vmatpush1.bf16.msra.mxu0 %v6368_v18  ;;  %v6418_v61 = vld [vmem:[%s9200_s1 + $0x62c] ss:$28 sps:$4 sm:$0xff]   ;;  %v6419_v2 = vld [vmem:[%s9200_s1 + $0x8c0] ss:$28 sps:$4 sm:$0xff]   ;;  %v6425_v9 = vld [vmem:[%s9200_s1 + $0x8f8] ss:$28 sps:$4 sm:$0xff]   ;;  %s9180_s29 = scalar_lea.vmem %s9201_s2, %s6329_s26 }
  0x19   : > { %1701 = vmatpush1.bf16.msra.mxu1 %v6369_v19  ;;  %1661 = vmatprep.subr.bf16.mxu0 %v6370_v20  ;;  %v7368_v48 = vor.u32 %v634_v47, %v630_v41  ;;  %v616_v62 = vshrl.u32 %v7396_v60, 16  ;;  %v618_v63 = vshll.u32 %v7396_v60, 16  ;;  %v7403_v0 = vor.u32 %v627_v57, %v623_v56  ;;  %v6416_v1 = vld [vmem:[%s9200_s1 + $0x628] ss:$28 sps:$4 sm:$0xff]   ;;  %v6420_v3 = vld [vmem:[%s9200_s1 + $0x8fc] ss:$28 sps:$4 sm:$0xff]  }
  0x1a   : > { %1702 = vmatprep.subr.bf16.mxu1 %v6372_v21  ;;  %v6424_v5 = vld [vmem:[%s9200_s1 + $0x664] ss:$28 sps:$4 sm:$0xff]   ;;  %v6426_v10 = vld [vmem:[%s9200_s1 + $0x934] ss:$28 sps:$4 sm:$0xff]   ;;  %v6430_v11 = vld [vmem:[%s9200_s1 + $0x69c] ss:$28 sps:$4 sm:$0xff]  }
  0x1b   : > { %5561 = vmatprep.mubr.msk.bf16.mxu1 %vm1647_vm0, %v7368_v48  ;;  %v620_v4 = vrot.slane %v618_v63, 1  ;;  %v6422_v7 = vld [vmem:[%s9200_s1 + $0x660] ss:$28 sps:$4 sm:$0xff]   ;;  %v6428_v12 = vld [vmem:[%s9200_s1 + $0x698] ss:$28 sps:$4 sm:$0xff]   ;;  %v611_v13 = vshll.u32 %v7423_v8, 16 }
  0x1c   : > { %1662 = vmatpush1.bf16.msra.mxu0 %v6374_v22  ;;  %v6431_v14 = vld [vmem:[%s9200_s1 + $0x930] ss:$28 sps:$4 sm:$0xff]   ;;  %v609_v18 = vshrl.u32 %v7423_v8, 16  ;;  %v6437_v20 = vld [vmem:[%s9200_s1 + $0x968] ss:$28 sps:$4 sm:$0xff]  }
  0x1d   : > { %1703 = vmatpush1.bf16.msra.mxu1 %v6375_v23  ;;  %1663 = vmatprep.subr.bf16.mxu0 %v6376_v24  ;;  %v7417_v6 = vor.u32 %v620_v4, %v616_v62  ;;  %v6432_v15 = vld [vmem:[%s9200_s1 + $0x96c] ss:$28 sps:$4 sm:$0xff]   ;;  %v6436_v16 = vld [vmem:[%s9200_s1 + $0x6d4] ss:$28 sps:$4 sm:$0xff]   ;;  %v613_v19 = vrot.slane %v611_v13, 1 }
  0x1e   : > { %1704 = vmatprep.subr.bf16.mxu1 %v6378_v25  ;;  %v6434_v17 = vld [vmem:[%s9200_s1 + $0x6d0] ss:$28 sps:$4 sm:$0xff]   ;;  %v6440_v24 = vld [vmem:[%s9200_s1 + $0x708] ss:$28 sps:$4 sm:$0xff]   ;;  %v6461_v37 = vld [vmem:[%s9200_s1 + $0x6d8] ss:$28 sps:$4 sm:$0xff]  }
  0x1f   : > { %1683 = vmatprep.mubr.bf16.mxu0 %v7417_v6  ;;  %v6442_v21 = vld [vmem:[%s9200_s1 + $0x70c] ss:$28 sps:$4 sm:$0xff]   ;;  %v6445_v22 = vld [vmem:[%s9200_s1 + $0x634] ss:$28 sps:$4 sm:$0xff]   ;;  %v7462_v23 = vor.u32 %v613_v19, %v609_v18  ;;  %v6478_v49 = vld [vmem:[%s9200_s1 + $0x85c] ss:$28 sps:$4 sm:$0xff]  }
  0x20   : > { %1664 = vmatpush1.bf16.msra.mxu0 %v6380_v26  ;;  %v6443_v25 = vld [vmem:[%s9200_s1 + $0x630] ss:$28 sps:$4 sm:$0xff]   ;;  %v6448_v26 = vld [vmem:[%s9200_s1 + $0x744] ss:$28 sps:$4 sm:$0xff]   ;;  %v6485_v56 = vld [vmem:[%s9200_s1 + $0x7b8] ss:$28 sps:$4 sm:$0xff]  }
  0x21   : > { %1705 = vmatpush1.bf16.msra.mxu1 %v6381_v27  ;;  %1665 = vmatprep.subr.bf16.mxu0 %v6382_v28  ;;  %v6451_v27 = vld [vmem:[%s9200_s1 + $0x66c] ss:$28 sps:$4 sm:$0xff]   ;;  %v6446_v28 = vld [vmem:[%s9200_s1 + $0x740] ss:$28 sps:$4 sm:$0xff]   ;;  %v6493_v58 = vld [vmem:[%s9200_s1 + $0x7f4] ss:$28 sps:$4 sm:$0xff]  }
  0x22   : > { %1706 = vmatprep.subr.bf16.mxu1 %v6384_v29  ;;  %v6449_v29 = vld [vmem:[%s9200_s1 + $0x668] ss:$28 sps:$4 sm:$0xff]   ;;  %v6467_v42 = vld [vmem:[%s9200_s1 + $0x710] ss:$28 sps:$4 sm:$0xff]   ;;  %v6518_v19 = vld [vmem:[%s9200_s1 + $0x9e0] ss:$28 sps:$4 sm:$0xff]  }
  0x23   : > { %v6464_v41 = vld [vmem:[%s9200_s1 + $0x7e8] ss:$28 sps:$4 sm:$0xff]  }
  0x24   : > { %1666 = vmatpush1.bf16.msra.mxu0 %v6386_v30  ;;  %v6454_v30 = vld [vmem:[%s9200_s1 + $0x77c] ss:$28 sps:$4 sm:$0xff]   ;;  %v6473_v47 = vld [vmem:[%s9200_s1 + $0x748] ss:$28 sps:$4 sm:$0xff]  }
  0x25   : > { %1707 = vmatpush1.bf16.msra.mxu1 %v6387_v31  ;;  %1667 = vmatprep.subr.bf16.mxu0 %v6388_v32  ;;  %v6457_v31 = vld [vmem:[%s9200_s1 + $0x6a4] ss:$28 sps:$4 sm:$0xff]   ;;  %v6452_v32 = vld [vmem:[%s9200_s1 + $0x778] ss:$28 sps:$4 sm:$0xff]   ;;  %v6490_v57 = vld [vmem:[%s9200_s1 + $0x8cc] ss:$28 sps:$4 sm:$0xff]  }
  0x26   : > { %1708 = vmatprep.subr.bf16.mxu1 %v6390_v33  ;;  %v6455_v33 = vld [vmem:[%s9200_s1 + $0x6a0] ss:$28 sps:$4 sm:$0xff]   ;;  %v6499_v63 = vld [vmem:[%s9200_s1 + $0x82c] ss:$28 sps:$4 sm:$0xff]  }
  0x27   : > { %v6496_v62 = vld [vmem:[%s9200_s1 + $0x904] ss:$28 sps:$4 sm:$0xff]   ;;  %v6514_v13 = vld [vmem:[%s9200_s1 + $0x9ac] ss:$28 sps:$4 sm:$0xff]  }
  0x28   : > { %1668 = vmatpush1.bf16.msra.mxu0 %v6392_v34  ;;  %v6460_v34 = vld [vmem:[%s9200_s1 + $0x7b4] ss:$28 sps:$4 sm:$0xff]   ;;  %v6505_v4 = vld [vmem:[%s9200_s1 + $0x864] ss:$28 sps:$4 sm:$0xff]   ;;  %v6523_v18 = vld [vmem:[%s9200_s1 + $0x90c] ss:$28 sps:$4 sm:$0xff]  }
  0x29   : > { %1709 = vmatpush1.bf16.msra.mxu1 %v6393_v35  ;;  %1669 = vmatprep.subr.bf16.mxu0 %v6394_v36  ;;  %v6463_v35 = vld [vmem:[%s9200_s1 + $0x6dc] ss:$28 sps:$4 sm:$0xff]   ;;  %v6458_v36 = vld [vmem:[%s9200_s1 + $0x7b0] ss:$28 sps:$4 sm:$0xff]  }
  0x2a   : > { %1710 = vmatprep.subr.bf16.mxu1 %v6396_v38  ;;  %v6466_v38 = vld [vmem:[%s9200_s1 + $0x7ec] ss:$28 sps:$4 sm:$0xff]  }
  0x2c   : > { %1670 = vmatpush1.bf16.msra.mxu0 %v6398_v40  ;;  %v6469_v40 = vld [vmem:[%s9200_s1 + $0x714] ss:$28 sps:$4 sm:$0xff]  }
  0x2d   : > { %1711 = vmatpush1.bf16.msra.mxu1 %v6399_v44  ;;  %1671 = vmatprep.subr.bf16.mxu0 %v6400_v45  ;;  %v6472_v44 = vld [vmem:[%s9200_s1 + $0x824] ss:$28 sps:$4 sm:$0xff]   ;;  %v6475_v45 = vld [vmem:[%s9200_s1 + $0x74c] ss:$28 sps:$4 sm:$0xff]  }
  0x2e   : > { %1712 = vmatprep.subr.bf16.mxu1 %v6402_v46  ;;  %v6470_v46 = vld [vmem:[%s9200_s1 + $0x820] ss:$28 sps:$4 sm:$0xff]  }
  0x30   : > { %1672 = vmatpush1.bf16.msra.mxu0 %v6404_v50  ;;  %v6481_v50 = vld [vmem:[%s9200_s1 + $0x784] ss:$28 sps:$4 sm:$0xff]  }
  0x31   : > { %1713 = vmatpush1.bf16.msra.mxu1 %v6405_v51  ;;  %1673 = vmatprep.subr.bf16.mxu0 %v6406_v52  ;;  %v6476_v51 = vld [vmem:[%s9200_s1 + $0x858] ss:$28 sps:$4 sm:$0xff]   ;;  %v6479_v52 = vld [vmem:[%s9200_s1 + $0x780] ss:$28 sps:$4 sm:$0xff]  }
  0x32   : > { %1714 = vmatprep.subr.bf16.mxu1 %v6408_v53  ;;  %v6484_v53 = vld [vmem:[%s9200_s1 + $0x894] ss:$28 sps:$4 sm:$0xff]  }
  0x34   : > { %1674 = vmatpush1.bf16.msra.mxu0 %v6410_v54  ;;  %v6487_v54 = vld [vmem:[%s9200_s1 + $0x7bc] ss:$28 sps:$4 sm:$0xff]  }
  0x35   : > { %1715 = vmatpush1.bf16.msra.mxu1 %v6411_v55  ;;  %1675 = vmatprep.subr.bf16.mxu0 %v6413_v59  ;;  %v6482_v55 = vld [vmem:[%s9200_s1 + $0x890] ss:$28 sps:$4 sm:$0xff]   ;;  %v6488_v59 = vld [vmem:[%s9200_s1 + $0x8c8] ss:$28 sps:$4 sm:$0xff]  }
  0x36   : > { %1733 = vmatprep.subr.bf16.mxu1 %v6418_v61  ;;  %v6491_v61 = vld [vmem:[%s9200_s1 + $0x7f0] ss:$28 sps:$4 sm:$0xff]  }
  0x38   : > { %1725 = vmatmul.mubr.bf16.vlgmr.msra.gmra.mrb[0].mxu1 %v7403_v0  ;;  %1676 = vmatpush1.bf16.msra.mxu0 %v6419_v2  ;;  %v6497_v2 = vld [vmem:[%s9200_s1 + $0x828] ss:$28 sps:$4 sm:$0xff]  }
  0x39   : > { %1734 = vmatpush1.bf16.msra.mxu1 %v6416_v1  ;;  %1677 = vmatprep.subr.bf16.mxu0 %v6420_v3  ;;  %v6494_v1 = vld [vmem:[%s9200_s1 + $0x900] ss:$28 sps:$4 sm:$0xff]  }
  0x3a   : > { %1735 = vmatprep.subr.bf16.mxu1 %v6424_v5  ;;  %1765 = vmatprep.mubr.bf16.mxu1 %v7417_v6  ;;  %v6502_v3 = vld [vmem:[%s9200_s1 + $0x93c] ss:$28 sps:$4 sm:$0xff]  }
  0x3b   : > { %v6500_v5 = vld [vmem:[%s9200_s1 + $0x938] ss:$28 sps:$4 sm:$0xff]  }
  0x3c   : > { %1678 = vmatpush1.bf16.msra.mxu0 %v6425_v9  ;;  %v6508_v9 = vld [vmem:[%s9200_s1 + $0x974] ss:$28 sps:$4 sm:$0xff]  }
  0x3d   : > { %1736 = vmatpush1.bf16.msra.mxu1 %v6422_v7  ;;  %1679 = vmatprep.subr.bf16.mxu0 %v6426_v10  ;;  %v6503_v7 = vld [vmem:[%s9200_s1 + $0x860] ss:$28 sps:$4 sm:$0xff]  }
  0x3e   : > { %1737 = vmatprep.subr.bf16.mxu1 %v6430_v11  ;;  %v6511_v10 = vld [vmem:[%s9200_s1 + $0x89c] ss:$28 sps:$4 sm:$0xff]   ;;  %v6506_v11 = vld [vmem:[%s9200_s1 + $0x970] ss:$28 sps:$4 sm:$0xff]  }
  0x40   : > { %1680 = vmatpush1.bf16.msra.mxu0 %v6431_v14  ;;  %v6517_v14 = vld [vmem:[%s9200_s1 + $0x8d4] ss:$28 sps:$4 sm:$0xff]  }
  0x41   : > { %1738 = vmatpush1.bf16.msra.mxu1 %v6428_v12  ;;  %1681 = vmatprep.subr.bf16.mxu0 %v6432_v15  ;;  %v6509_v12 = vld [vmem:[%s9200_s1 + $0x898] ss:$28 sps:$4 sm:$0xff]   ;;  %v6512_v15 = vld [vmem:[%s9200_s1 + $0x9a8] ss:$28 sps:$4 sm:$0xff]  }
  0x42   : > { %1739 = vmatprep.subr.bf16.mxu1 %v6436_v16  ;;  %v6515_v16 = vld [vmem:[%s9200_s1 + $0x8d0] ss:$28 sps:$4 sm:$0xff]  }
  0x44   : > { %1682 = vmatpush1.bf16.msra.mxu0 %v6437_v20  ;;  %v6521_v20 = vld [vmem:[%s9200_s1 + $0x908] ss:$28 sps:$4 sm:$0xff]  }
  0x45   : > { %1740 = vmatpush1.bf16.msra.mxu1 %v6434_v17  ;;  %1815 = vmatprep.subr.bf16.mxu0 %v6445_v22  ;;  %v6520_v17 = vld [vmem:[%s9200_s1 + $0x9e4] ss:$28 sps:$4 sm:$0xff]  }
  0x46   : > { %1741 = vmatprep.subr.bf16.mxu1 %v6442_v21  ;;  %v6526_v21 = vld [vmem:[%s9200_s1 + $0xa1c] ss:$28 sps:$4 sm:$0xff]   ;;  %v6529_v22 = vld [vmem:[%s9200_s1 + $0x944] ss:$28 sps:$4 sm:$0xff]  }
  0x47   : > { %1684 = vmatmul.mubr.bf16.vlgmr.msra.gmra.mrb[0].mxu0 %v7462_v23 }
  0x48   : > { %1816 = vmatpush1.bf16.msra.mxu0 %v6443_v25  ;;  %1847 = vmatprep.mubr.bf16.mxu0 %v7417_v6  ;;  %v6527_v25 = vld [vmem:[%s9200_s1 + $0x940] ss:$28 sps:$4 sm:$0xff]  }
  0x49   : > { %1742 = vmatpush1.bf16.msra.mxu1 %v6440_v24  ;;  %1817 = vmatprep.subr.bf16.mxu0 %v6451_v27  ;;  %v6524_v24 = vld [vmem:[%s9200_s1 + $0xa18] ss:$28 sps:$4 sm:$0xff]  }
  0x4a   : > { %1743 = vmatprep.subr.bf16.mxu1 %v6448_v26  ;;  %v6532_v26 = vld [vmem:[%s9200_s1 + $0xa54] ss:$28 sps:$4 sm:$0xff]   ;;  %v6535_v27 = vld [vmem:[%s9200_s1 + $0x97c] ss:$28 sps:$4 sm:$0xff]  }
  0x4c   : > { %1818 = vmatpush1.bf16.msra.mxu0 %v6449_v29  ;;  %v6533_v29 = vld [vmem:[%s9200_s1 + $0x978] ss:$28 sps:$4 sm:$0xff]  }
  0x4d   : > { %1744 = vmatpush1.bf16.msra.mxu1 %v6446_v28  ;;  %1819 = vmatprep.subr.bf16.mxu0 %v6457_v31  ;;  %v6530_v28 = vld [vmem:[%s9200_s1 + $0xa50] ss:$28 sps:$4 sm:$0xff]  }
  0x4e   : > { %1745 = vmatprep.subr.bf16.mxu1 %v6454_v30  ;;  %v6538_v30 = vld [vmem:[%s9200_s1 + $0xa8c] ss:$28 sps:$4 sm:$0xff]   ;;  %v6541_v31 = vld [vmem:[%s9200_s1 + $0x9b4] ss:$28 sps:$4 sm:$0xff]  }
  0x50   : > { %1820 = vmatpush1.bf16.msra.mxu0 %v6455_v33  ;;  %v6539_v33 = vld [vmem:[%s9200_s1 + $0x9b0] ss:$28 sps:$4 sm:$0xff]  }
  0x51   : > { %1746 = vmatpush1.bf16.msra.mxu1 %v6452_v32  ;;  %1821 = vmatprep.subr.bf16.mxu0 %v6463_v35  ;;  %v6536_v32 = vld [vmem:[%s9200_s1 + $0xa88] ss:$28 sps:$4 sm:$0xff]  }
  0x52   : > { %1747 = vmatprep.subr.bf16.mxu1 %v6460_v34  ;;  %v6544_v34 = vld [vmem:[%s9200_s1 + $0xac4] ss:$28 sps:$4 sm:$0xff]   ;;  %v6547_v35 = vld [vmem:[%s9200_s1 + $0x9ec] ss:$28 sps:$4 sm:$0xff]  }
  0x54   : > { %1822 = vmatpush1.bf16.msra.mxu0 %v6461_v37  ;;  %v6545_v37 = vld [vmem:[%s9200_s1 + $0x9e8] ss:$28 sps:$4 sm:$0xff]  }
  0x55   : > { %1748 = vmatpush1.bf16.msra.mxu1 %v6458_v36  ;;  %1823 = vmatprep.subr.bf16.mxu0 %v6469_v40  ;;  %v6542_v36 = vld [vmem:[%s9200_s1 + $0xac0] ss:$28 sps:$4 sm:$0xff]  }
  0x56   : > { %1749 = vmatprep.subr.bf16.mxu1 %v6466_v38  ;;  %v6550_v38 = vld [vmem:[%s9200_s1 + $0xafc] ss:$28 sps:$4 sm:$0xff]   ;;  %v6553_v40 = vld [vmem:[%s9200_s1 + $0xa24] ss:$28 sps:$4 sm:$0xff]  }
  0x58   : > { %1824 = vmatpush1.bf16.msra.mxu0 %v6467_v42  ;;  %v6551_v42 = vld [vmem:[%s9200_s1 + $0xa20] ss:$28 sps:$4 sm:$0xff]  }
  0x59   : > { %1750 = vmatpush1.bf16.msra.mxu1 %v6464_v41  ;;  %1825 = vmatprep.subr.bf16.mxu0 %v6475_v45  ;;  %v6548_v41 = vld [vmem:[%s9200_s1 + $0xaf8] ss:$28 sps:$4 sm:$0xff]  }
  0x5a   : > { %1751 = vmatprep.subr.bf16.mxu1 %v6472_v44  ;;  %v6556_v44 = vld [vmem:[%s9200_s1 + $0xb34] ss:$28 sps:$4 sm:$0xff]   ;;  %v6559_v45 = vld [vmem:[%s9200_s1 + $0xa5c] ss:$28 sps:$4 sm:$0xff]  }
  0x5c   : > { %1826 = vmatpush1.bf16.msra.mxu0 %v6473_v47  ;;  %v6557_v47 = vld [vmem:[%s9200_s1 + $0xa58] ss:$28 sps:$4 sm:$0xff]  }
  0x5d   : > { %1752 = vmatpush1.bf16.msra.mxu1 %v6470_v46  ;;  %1827 = vmatprep.subr.bf16.mxu0 %v6481_v50  ;;  %v6554_v46 = vld [vmem:[%s9200_s1 + $0xb30] ss:$28 sps:$4 sm:$0xff]  }
  0x5e   : > { %1753 = vmatprep.subr.bf16.mxu1 %v6478_v49  ;;  %v6562_v49 = vld [vmem:[%s9200_s1 + $0xb6c] ss:$28 sps:$4 sm:$0xff]   ;;  %v6565_v50 = vld [vmem:[%s9200_s1 + $0xa94] ss:$28 sps:$4 sm:$0xff]  }
  0x60   : > { %1828 = vmatpush1.bf16.msra.mxu0 %v6479_v52  ;;  %v6563_v52 = vld [vmem:[%s9200_s1 + $0xa90] ss:$28 sps:$4 sm:$0xff]  }
  0x61   : > { %1754 = vmatpush1.bf16.msra.mxu1 %v6476_v51  ;;  %1829 = vmatprep.subr.bf16.mxu0 %v6487_v54  ;;  %v6560_v51 = vld [vmem:[%s9200_s1 + $0xb68] ss:$28 sps:$4 sm:$0xff]  }
  0x62   : > { %1755 = vmatprep.subr.bf16.mxu1 %v6484_v53  ;;  %v6568_v53 = vld [vmem:[%s9200_s1 + $0xba4] ss:$28 sps:$4 sm:$0xff]   ;;  %v6571_v54 = vld [vmem:[%s9200_s1 + $0xacc] ss:$28 sps:$4 sm:$0xff]  }
  0x64   : > { %1830 = vmatpush1.bf16.msra.mxu0 %v6485_v56  ;;  %v6569_v56 = vld [vmem:[%s9200_s1 + $0xac8] ss:$28 sps:$4 sm:$0xff]  }
  0x65   : > { %1756 = vmatpush1.bf16.msra.mxu1 %v6482_v55  ;;  %1831 = vmatprep.subr.bf16.mxu0 %v6493_v58  ;;  %v6566_v55 = vld [vmem:[%s9200_s1 + $0xba0] ss:$28 sps:$4 sm:$0xff]  }
  0x66   : > { %1757 = vmatprep.subr.bf16.mxu1 %v6490_v57  ;;  %v6574_v57 = vld [vmem:[%s9200_s1 + $0xbdc] ss:$28 sps:$4 sm:$0xff]   ;;  %v6577_v58 = vld [vmem:[%s9200_s1 + $0xb04] ss:$28 sps:$4 sm:$0xff]  }
  0x68   : > { %1832 = vmatpush1.bf16.msra.mxu0 %v6491_v61  ;;  %v6575_v61 = vld [vmem:[%s9200_s1 + $0xb00] ss:$28 sps:$4 sm:$0xff]  }
  0x69   : > { %1758 = vmatpush1.bf16.msra.mxu1 %v6488_v59  ;;  %1833 = vmatprep.subr.bf16.mxu0 %v6499_v63  ;;  %v6572_v59 = vld [vmem:[%s9200_s1 + $0xbd8] ss:$28 sps:$4 sm:$0xff]  }
  0x6a   : > { %1759 = vmatprep.subr.bf16.mxu1 %v6496_v62  ;;  %v6580_v62 = vld [vmem:[%s9200_s1 + $0xc14] ss:$28 sps:$4 sm:$0xff]   ;;  %v6583_v63 = vld [vmem:[%s9200_s1 + $0xb3c] ss:$28 sps:$4 sm:$0xff]  }
  0x6c   : > { %1834 = vmatpush1.bf16.msra.mxu0 %v6497_v2  ;;  %v6581_v2 = vld [vmem:[%s9200_s1 + $0xb38] ss:$28 sps:$4 sm:$0xff]  }
  0x6d   : > { %1760 = vmatpush1.bf16.msra.mxu1 %v6494_v1  ;;  %1835 = vmatprep.subr.bf16.mxu0 %v6505_v4  ;;  %v6578_v1 = vld [vmem:[%s9200_s1 + $0xc10] ss:$28 sps:$4 sm:$0xff]   ;;  %v6587_v4 = vld [vmem:[%s9200_s1 + $0x7f8] ss:$28 sps:$4 sm:$0xff]  }
  0x6e   : > { %1761 = vmatprep.subr.bf16.mxu1 %v6502_v3  ;;  %v6586_v3 = vld [vmem:[%s9200_s1 + $0xb74] ss:$28 sps:$4 sm:$0xff]  }
  0x70   : > { %1836 = vmatpush1.bf16.msra.mxu0 %v6503_v7  ;;  %v6588_v7 = vld [vmem:[%s9200_s1 + $0x638] ss:$28 sps:$4 sm:$0xff]  }
  0x71   : > { %1762 = vmatpush1.bf16.msra.mxu1 %v6500_v5  ;;  %1837 = vmatprep.subr.bf16.mxu0 %v6511_v10  ;;  %v6584_v5 = vld [vmem:[%s9200_s1 + $0xb70] ss:$28 sps:$4 sm:$0xff]  }
  0x72   : > { %1763 = vmatprep.subr.bf16.mxu1 %v6508_v9  ;;  %v6591_v9 = vld [vmem:[%s9200_s1 + $0xbac] ss:$28 sps:$4 sm:$0xff]  }
  0x73   : > { %v6592_v10 = vld [vmem:[%s9200_s1 + $0x830] ss:$28 sps:$4 sm:$0xff]  }
  0x74   : > { %1838 = vmatpush1.bf16.msra.mxu0 %v6509_v12  ;;  %v6593_v12 = vld [vmem:[%s9200_s1 + $0x670] ss:$28 sps:$4 sm:$0xff]  }
  0x75   : > { %1764 = vmatpush1.bf16.msra.mxu1 %v6506_v11  ;;  %1839 = vmatprep.subr.bf16.mxu0 %v6517_v14  ;;  %v6589_v11 = vld [vmem:[%s9200_s1 + $0xba8] ss:$28 sps:$4 sm:$0xff]  }
  0x76   : > { %1774 = vmatprep.subr.bf16.mxu1 %v6514_v13  ;;  %v6596_v13 = vld [vmem:[%s9200_s1 + $0xbe4] ss:$28 sps:$4 sm:$0xff]  }
  0x77   : > { %v6597_v14 = vld [vmem:[%s9200_s1 + $0x868] ss:$28 sps:$4 sm:$0xff]  }
  0x78   : > { %1766 = vmatmul.mubr.bf16.vlgmr.msra.gmra.mrb[4].mxu1 %v7462_v23  ;;  %1840 = vmatpush1.bf16.msra.mxu0 %v6515_v16  ;;  %v6598_v16 = vld [vmem:[%s9200_s1 + $0x6a8] ss:$28 sps:$4 sm:$0xff]  }
  0x79   : > { %1775 = vmatpush1.bf16.msra.mxu1 %v6512_v15  ;;  %1841 = vmatprep.subr.bf16.mxu0 %v6523_v18  ;;  %v6594_v15 = vld [vmem:[%s9200_s1 + $0xbe0] ss:$28 sps:$4 sm:$0xff]   ;;  %v6599_v18 = vld [vmem:[%s9200_s1 + $0xc18] ss:$28 sps:$4 sm:$0xff]  }
  0x7a   : > { %1776 = vmatprep.subr.bf16.mxu1 %v6520_v17  ;;  %5562 = vmatprep.mubr.msk.bf16.mxu1 %vm1647_vm0, %v7368_v48  ;;  %v6601_v17 = vld [vmem:[%s9200_s1 + $0xc1c] ss:$28 sps:$4 sm:$0xff]  }
  0x7c   : > { %1842 = vmatpush1.bf16.msra.mxu0 %v6521_v20  ;;  %v6604_v20 = vld [vmem:[%s9200_s1 + $0x8d8] ss:$28 sps:$4 sm:$0xff]  }
  0x7d   : > { %1777 = vmatpush1.bf16.msra.mxu1 %v6518_v19  ;;  %1843 = vmatprep.subr.bf16.mxu0 %v6529_v22  ;;  %v6603_v19 = vld [vmem:[%s9200_s1 + $0x6e0] ss:$28 sps:$4 sm:$0xff]  }
  0x7e   : > { %1778 = vmatprep.subr.bf16.mxu1 %v6526_v21  ;;  %v6607_v21 = vld [vmem:[%s9200_s1 + $0x4] ss:$28 sps:$4 sm:$0xff]  }
  0x7f   : > { %v6605_v22 = vld [vmem:[%s9200_s1] ss:$28 sps:$4 sm:$0xff]  }
  0x80   : > { %1844 = vmatpush1.bf16.msra.mxu0 %v6527_v25  ;;  %v6609_v25 = vld [vmem:[%s9200_s1 + $0x910] ss:$28 sps:$4 sm:$0xff]  }
  0x81   : > { %1779 = vmatpush1.bf16.msra.mxu1 %v6524_v24  ;;  %1845 = vmatprep.subr.bf16.mxu0 %v6535_v27  ;;  %v6608_v24 = vld [vmem:[%s9200_s1 + $0x718] ss:$28 sps:$4 sm:$0xff]  }
  0x82   : > { %1780 = vmatprep.subr.bf16.mxu1 %v6532_v26  ;;  %v6612_v26 = vld [vmem:[%s9200_s1 + $0x3c] ss:$28 sps:$4 sm:$0xff]  }
  0x83   : > { %v6610_v27 = vld [vmem:[%s9200_s1 + $0x38] ss:$28 sps:$4 sm:$0xff]  }
  0x84   : > { %1846 = vmatpush1.bf16.msra.mxu0 %v6533_v29  ;;  %v6614_v29 = vld [vmem:[%s9200_s1 + $0x948] ss:$28 sps:$4 sm:$0xff]  }
  0x85   : > { %1781 = vmatpush1.bf16.msra.mxu1 %v6530_v28  ;;  %1856 = vmatprep.subr.bf16.mxu0 %v6541_v31  ;;  %v6613_v28 = vld [vmem:[%s9200_s1 + $0x750] ss:$28 sps:$4 sm:$0xff]  }
  0x86   : > { %1782 = vmatprep.subr.bf16.mxu1 %v6538_v30  ;;  %v6617_v30 = vld [vmem:[%s9200_s1 + $0x74] ss:$28 sps:$4 sm:$0xff]  }
  0x87   : > { %1848 = vmatmul.mubr.bf16.vlgmr.msra.gmra.mrb[4].mxu0 %v7462_v23  ;;  %v6615_v31 = vld [vmem:[%s9200_s1 + $0x70] ss:$28 sps:$4 sm:$0xff]  }
  0x88   : > { %1857 = vmatpush1.bf16.msra.mxu0 %v6539_v33  ;;  %5563 = vmatprep.mubr.msk.bf16.mxu0 %vm1647_vm0, %v7368_v48  ;;  %v6619_v33 = vld [vmem:[%s9200_s1 + $0x980] ss:$28 sps:$4 sm:$0xff]  }
  0x89   : > { %1783 = vmatpush1.bf16.msra.mxu1 %v6536_v32  ;;  %1858 = vmatprep.subr.bf16.mxu0 %v6547_v35  ;;  %v6618_v32 = vld [vmem:[%s9200_s1 + $0x788] ss:$28 sps:$4 sm:$0xff]  }
  0x8a   : > { %1784 = vmatprep.subr.bf16.mxu1 %v6544_v34  ;;  %v6622_v34 = vld [vmem:[%s9200_s1 + $0xac] ss:$28 sps:$4 sm:$0xff]  }
  0x8b   : > { %v6620_v35 = vld [vmem:[%s9200_s1 + $0xa8] ss:$28 sps:$4 sm:$0xff]  }
  0x8c   : > { %1859 = vmatpush1.bf16.msra.mxu0 %v6545_v37  ;;  %v6626_v37 = vld [vmem:[%s9200_s1 + $0xe4] ss:$28 sps:$4 sm:$0xff]  }
  0x8d   : > { %1785 = vmatpush1.bf16.msra.mxu1 %v6542_v36  ;;  %1860 = vmatprep.subr.bf16.mxu0 %v6553_v40  ;;  %v6623_v36 = vld [vmem:[%s9200_s1 + $0x7c0] ss:$28 sps:$4 sm:$0xff]   ;;  %v6627_v40 = vld [vmem:[%s9200_s1 + $0x9b8] ss:$28 sps:$4 sm:$0xff]  }
  0x8e   : > { %1786 = vmatprep.subr.bf16.mxu1 %v6550_v38  ;;  %v6624_v38 = vld [vmem:[%s9200_s1 + $0xe0] ss:$28 sps:$4 sm:$0xff]  }
  0x90   : > { %1861 = vmatpush1.bf16.msra.mxu0 %v6551_v42  ;;  %v6630_v42 = vld [vmem:[%s9200_s1 + $0x11c] ss:$28 sps:$4 sm:$0xff]  }
  0x91   : > { %1787 = vmatpush1.bf16.msra.mxu1 %v6548_v41  ;;  %1862 = vmatprep.subr.bf16.mxu0 %v6559_v45  ;;  %v7198_v41 = vmov 0   ;;  %v6631_v45 = vld [vmem:[%s9200_s1 + $0x9f0] ss:$28 sps:$4 sm:$0xff]  }
  0x92   : > { %1788 = vmatprep.subr.bf16.mxu1 %v6556_v44  ;;  %v6628_v44 = vld [vmem:[%s9200_s1 + $0x118] ss:$28 sps:$4 sm:$0xff]  }
  0x94   : > { %1863 = vmatpush1.bf16.msra.mxu0 %v6557_v47  ;;  %v6635_v47 = vld [vmem:[%s9200_s1 + $0xa28] ss:$28 sps:$4 sm:$0xff]  }
  0x95   : > { %1789 = vmatpush1.bf16.msra.mxu1 %v6554_v46  ;;  %1864 = vmatprep.subr.bf16.mxu0 %v6565_v50  ;;  %v6634_v46 = vld [vmem:[%s9200_s1 + $0x154] ss:$28 sps:$4 sm:$0xff]   ;;  %v6639_v50 = vld [vmem:[%s9200_s1 + $0xa60] ss:$28 sps:$4 sm:$0xff]  }
  0x96   : > { %1790 = vmatprep.subr.bf16.mxu1 %v6562_v49  ;;  %v6638_v49 = vld [vmem:[%s9200_s1 + $0x18c] ss:$28 sps:$4 sm:$0xff]  }
  0x98   : > { %1865 = vmatpush1.bf16.msra.mxu0 %v6563_v52  ;;  %v6640_v52 = vld [vmem:[%s9200_s1 + $0x1c0] ss:$28 sps:$4 sm:$0xff]  }
  0x99   : > { %1791 = vmatpush1.bf16.msra.mxu1 %v6560_v51  ;;  %1866 = vmatprep.subr.bf16.mxu0 %v6571_v54  ;;  %v6642_v51 = vld [vmem:[%s9200_s1 + $0x1c4] ss:$28 sps:$4 sm:$0xff]   ;;  %v6646_v54 = vld [vmem:[%s9200_s1 + $0x1fc] ss:$28 sps:$4 sm:$0xff]  }
  0x9a   : > { %1792 = vmatprep.subr.bf16.mxu1 %v6568_v53  ;;  %v6643_v53 = vld [vmem:[%s9200_s1 + $0xa98] ss:$28 sps:$4 sm:$0xff]  }
  0x9c   : > { %1867 = vmatpush1.bf16.msra.mxu0 %v6569_v56  ;;  %v6647_v56 = vld [vmem:[%s9200_s1 + $0xad0] ss:$28 sps:$4 sm:$0xff]  }
  0x9d   : > { %1793 = vmatpush1.bf16.msra.mxu1 %v6566_v55  ;;  %1868 = vmatprep.subr.bf16.mxu0 %v6577_v58  ;;  %v6644_v55 = vld [vmem:[%s9200_s1 + $0x1f8] ss:$28 sps:$4 sm:$0xff]   ;;  %v6648_v58 = vld [vmem:[%s9200_s1 + $0x230] ss:$28 sps:$4 sm:$0xff]  }
  0x9e   : > { %1794 = vmatprep.subr.bf16.mxu1 %v6574_v57  ;;  %v6650_v57 = vld [vmem:[%s9200_s1 + $0x234] ss:$28 sps:$4 sm:$0xff]  }
  0xa0   : > { %1869 = vmatpush1.bf16.msra.mxu0 %v6575_v61  ;;  %v6654_v61 = vld [vmem:[%s9200_s1 + $0x26c] ss:$28 sps:$4 sm:$0xff]  }
  0xa1   : > { %1795 = vmatpush1.bf16.msra.mxu1 %v6572_v59  ;;  %1870 = vmatprep.subr.bf16.mxu0 %v6583_v63  ;;  %v6651_v59 = vld [vmem:[%s9200_s1 + $0xb08] ss:$28 sps:$4 sm:$0xff]   ;;  %v6655_v63 = vld [vmem:[%s9200_s1 + $0xb40] ss:$28 sps:$4 sm:$0xff]  }
  0xa2   : > { %1796 = vmatprep.subr.bf16.mxu1 %v6580_v62  ;;  %v6652_v62 = vld [vmem:[%s9200_s1 + $0x268] ss:$28 sps:$4 sm:$0xff]  }
  0xa4   : > { %1871 = vmatpush1.bf16.msra.mxu0 %v6581_v2  ;;  %v6656_v2 = vld [vmem:[%s9200_s1 + $0x2a0] ss:$28 sps:$4 sm:$0xff]  }
  0xa5   : > { %1797 = vmatpush1.bf16.msra.mxu1 %v6578_v1  ;;  %1872 = vmatprep.subr.bf16.mxu0 %v6586_v3  ;;  %v6658_v1 = vld [vmem:[%s9200_s1 + $0x2a4] ss:$28 sps:$4 sm:$0xff]   ;;  %v6659_v3 = vld [vmem:[%s9200_s1 + $0xb78] ss:$28 sps:$4 sm:$0xff]  }
  0xa6   : > { %6196 = vmatprep.subr.bf16.mxu1 %v6587_v4  ;;  %v6662_v4 = vld [vmem:[%s9200_s1 + $0x2dc] ss:$28 sps:$4 sm:$0xff]  }
  0xa8   : > { %1807 = vmatmul.mubr.bf16.vlgmr.msra.gmra.mrb[4].mxu1 %v7403_v0  ;;  %1873 = vmatpush1.bf16.msra.mxu0 %v6584_v5  ;;  %v6660_v5 = vld [vmem:[%s9200_s1 + $0x2d8] ss:$28 sps:$4 sm:$0xff]  }
  0xa9   : > { %6197 = vmatpush3.bf16.msra.mxu1 %v6588_v7  ;;  %1874 = vmatprep.subr.bf16.mxu0 %v6591_v9  ;;  %v6663_v7 = vld [vmem:[%s9200_s1 + $0xbb0] ss:$28 sps:$4 sm:$0xff]  }
  0xaa   : > { %6198 = vmatprep.subr.bf16.mxu1 %v6592_v10  ;;  %1929 = vmatprep.mubr.bf16.mxu1 %v7417_v6  ;;  %v6602_v6 = vld [vmem:[%s9200_s1 + $0x8a0] ss:$28 sps:$4 sm:$0xff]   ;;  %v6666_v9 = vld [vmem:[%s9200_s1 + $0x314] ss:$28 sps:$4 sm:$0xff]  }
  0xab   : > { %v6664_v10 = vld [vmem:[%s9200_s1 + $0x310] ss:$28 sps:$4 sm:$0xff]  }
  0xac   : > { %1875 = vmatpush1.bf16.msra.mxu0 %v6589_v11  ;;  %v6667_v11 = vld [vmem:[%s9200_s1 + $0xbe8] ss:$28 sps:$4 sm:$0xff]  }
  0xad   : > { %6199 = vmatpush3.bf16.msra.mxu1 %v6593_v12  ;;  %1876 = vmatprep.subr.bf16.mxu0 %v6596_v13  ;;  %v6670_v12 = vld [vmem:[%s9200_s1 + $0x34c] ss:$28 sps:$4 sm:$0xff]  }
  0xae   : > { %6200 = vmatprep.subr.bf16.mxu1 %v6597_v14  ;;  %v6668_v13 = vld [vmem:[%s9200_s1 + $0x348] ss:$28 sps:$4 sm:$0xff]   ;;  %v6671_v14 = vld [vmem:[%s9200_s1 + $0xc20] ss:$28 sps:$4 sm:$0xff]  }
  0xb0   : > { %1877 = vmatpush1.bf16.msra.mxu0 %v6594_v15  ;;  %v6674_v15 = vld [vmem:[%s9200_s1 + $0x384] ss:$28 sps:$4 sm:$0xff]  }
  0xb1   : > { %6201 = vmatpush3.bf16.msra.mxu1 %v6598_v16  ;;  %1878 = vmatprep.subr.bf16.mxu0 %v6601_v17  ;;  %v6677_v16 = vld [vmem:[%s9200_s1 + $0xc] ss:$28 sps:$4 sm:$0xff]   ;;  %v6672_v17 = vld [vmem:[%s9200_s1 + $0x380] ss:$28 sps:$4 sm:$0xff]  }
  0xb2   : > { %6202 = vmatprep.subr.bf16.mxu1 %v6602_v6  ;;  %v6675_v6 = vld [vmem:[%s9200_s1 + $0x8] ss:$28 sps:$4 sm:$0xff]  }
  0xb4   : > { %1879 = vmatpush1.bf16.msra.mxu0 %v6599_v18  ;;  %v6680_v18 = vld [vmem:[%s9200_s1 + $0x3bc] ss:$28 sps:$4 sm:$0xff]  }
  0xb5   : > { %6203 = vmatpush3.bf16.msra.mxu1 %v6603_v19  ;;  %2990 = vmatprep.subr.bf16.mxu0 %v6607_v21  ;;  %v6683_v19 = vld [vmem:[%s9200_s1 + $0x44] ss:$28 sps:$4 sm:$0xff]  }
  0xb6   : > { %6204 = vmatprep.subr.bf16.mxu1 %v6604_v20  ;;  %v6678_v20 = vld [vmem:[%s9200_s1 + $0x3b8] ss:$28 sps:$4 sm:$0xff]   ;;  %v6681_v21 = vld [vmem:[%s9200_s1 + $0x40] ss:$28 sps:$4 sm:$0xff]  }
  0xb7   : > { %1889 = vmatmul.mubr.bf16.vlgmr.msra.gmra.mrb[4].mxu0 %v7403_v0 }
  0xb8   : > { %2991 = vmatpush1.bf16.msra.mxu0 %v6605_v22  ;;  %3022 = vmatprep.mubr.bf16.mxu0 %v7396_v60  ;;  %v6686_v22 = vld [vmem:[%s9200_s1 + $0x3f4] ss:$28 sps:$4 sm:$0xff]  }
  0xb9   : > { %6205 = vmatpush3.bf16.msra.mxu1 %v6608_v24  ;;  %2992 = vmatprep.subr.bf16.mxu0 %v6612_v26  ;;  %v6689_v24 = vld [vmem:[%s9200_s1 + $0x7c] ss:$28 sps:$4 sm:$0xff]   ;;  %v6692_v26 = vld [vmem:[%s9200_s1 + $0x42c] ss:$28 sps:$4 sm:$0xff]  }
  0xba   : > { %6206 = vmatprep.subr.bf16.mxu1 %v6609_v25  ;;  %v6687_v25 = vld [vmem:[%s9200_s1 + $0x78] ss:$28 sps:$4 sm:$0xff]  }
  0xbc   : > { %2993 = vmatpush1.bf16.msra.mxu0 %v6610_v27  ;;  %v6695_v27 = vld [vmem:[%s9200_s1 + $0xb4] ss:$28 sps:$4 sm:$0xff]  }
  0xbd   : > { %6207 = vmatpush3.bf16.msra.mxu1 %v6613_v28  ;;  %2994 = vmatprep.subr.bf16.mxu0 %v6617_v30  ;;  %v6690_v28 = vld [vmem:[%s9200_s1 + $0x428] ss:$28 sps:$4 sm:$0xff]  }
  0xbe   : > { %6208 = vmatprep.subr.bf16.mxu1 %v6614_v29  ;;  %v6693_v29 = vld [vmem:[%s9200_s1 + $0xb0] ss:$28 sps:$4 sm:$0xff]   ;;  %v6698_v30 = vld [vmem:[%s9200_s1 + $0x464] ss:$28 sps:$4 sm:$0xff]  }
  0xc0   : > { %2995 = vmatpush1.bf16.msra.mxu0 %v6615_v31  ;;  %v6701_v31 = vld [vmem:[%s9200_s1 + $0xec] ss:$28 sps:$4 sm:$0xff]  }
  0xc1   : > { %6209 = vmatpush3.bf16.msra.mxu1 %v6618_v32  ;;  %2996 = vmatprep.subr.bf16.mxu0 %v6622_v34  ;;  %v6696_v32 = vld [vmem:[%s9200_s1 + $0x460] ss:$28 sps:$4 sm:$0xff]  }
  0xc2   : > { %6210 = vmatprep.subr.bf16.mxu1 %v6619_v33  ;;  %v6699_v33 = vld [vmem:[%s9200_s1 + $0xe8] ss:$28 sps:$4 sm:$0xff]   ;;  %v6704_v34 = vld [vmem:[%s9200_s1 + $0x49c] ss:$28 sps:$4 sm:$0xff]  }
  0xc4   : > { %2997 = vmatpush1.bf16.msra.mxu0 %v6620_v35  ;;  %v6707_v35 = vld [vmem:[%s9200_s1 + $0x124] ss:$28 sps:$4 sm:$0xff]  }
  0xc5   : > { %6211 = vmatpush3.bf16.msra.mxu1 %v6623_v36  ;;  %2998 = vmatprep.subr.bf16.mxu0 %v6626_v37  ;;  %v6702_v36 = vld [vmem:[%s9200_s1 + $0x498] ss:$28 sps:$4 sm:$0xff]   ;;  %v6705_v37 = vld [vmem:[%s9200_s1 + $0x120] ss:$28 sps:$4 sm:$0xff]  }
  0xc6   : > { %1937 = vmatprep.subr.bf16.mxu1 %v7198_v41 }
  0xc8   : > { %1930 = vmatmul.mubr.bf16.vlgmr.msra.gmra.mrb[8].mxu1 %v7462_v23  ;;  %2999 = vmatpush1.bf16.msra.mxu0 %v6624_v38  ;;  %v6632_v23 = vld [vmem:[%s9200_s1 + $0x150] ss:$28 sps:$4 sm:$0xff]  }
  0xc9   : > { %1938 = vmatpush1.bf16.msra.mxu1 %v6627_v40  ;;  %3000 = vmatprep.subr.bf16.mxu0 %v6630_v42  ;;  %v6710_v38 = vld [vmem:[%s9200_s1 + $0x4d4] ss:$28 sps:$4 sm:$0xff]   ;;  %v6713_v40 = vld [vmem:[%s9200_s1 + $0x15c] ss:$28 sps:$4 sm:$0xff]  }
  0xca   : > { %1939 = vmatprep.subr.bf16.mxu1 %v7198_v41  ;;  %5564 = vmatprep.mubr.msk.bf16.mxu1 %vm1647_vm0, %v7368_v48  ;;  %v6636_v48 = vld [vmem:[%s9200_s1 + $0x188] ss:$28 sps:$4 sm:$0xff]  }
  0xcc   : > { %3001 = vmatpush1.bf16.msra.mxu0 %v6628_v44  ;;  %v6708_v44 = vld [vmem:[%s9200_s1 + $0x4d0] ss:$28 sps:$4 sm:$0xff]  }
  0xcd   : > { %1940 = vmatpush1.bf16.msra.mxu1 %v6631_v45  ;;  %3002 = vmatprep.subr.bf16.mxu0 %v6634_v46  ;;  %v6711_v45 = vld [vmem:[%s9200_s1 + $0x158] ss:$28 sps:$4 sm:$0xff]  }
  0xce   : > { %1941 = vmatprep.subr.bf16.mxu1 %v7198_v41 }
  0xd0   : > { %3003 = vmatpush1.bf16.msra.mxu0 %v6632_v23 }
  0xd1   : > { %1942 = vmatpush1.bf16.msra.mxu1 %v6635_v47  ;;  %3004 = vmatprep.subr.bf16.mxu0 %v6638_v49  ;;  %v6716_v47 = vld [vmem:[%s9200_s1 + $0x50c] ss:$28 sps:$4 sm:$0xff]  }
  0xd2   : > { %1943 = vmatprep.subr.bf16.mxu1 %v7198_v41 }
  0xd4   : > { %3005 = vmatpush1.bf16.msra.mxu0 %v6636_v48  ;;  %v6719_v48 = vld [vmem:[%s9200_s1 + $0x194] ss:$28 sps:$4 sm:$0xff]  }
  0xd5   : > { %1944 = vmatpush1.bf16.msra.mxu1 %v6639_v50  ;;  %3006 = vmatprep.subr.bf16.mxu0 %v6642_v51  ;;  %v6714_v50 = vld [vmem:[%s9200_s1 + $0x508] ss:$28 sps:$4 sm:$0xff]   ;;  %v6717_v51 = vld [vmem:[%s9200_s1 + $0x190] ss:$28 sps:$4 sm:$0xff]  }
  0xd6   : > { %1945 = vmatprep.subr.bf16.mxu1 %v7198_v41 }
  0xd8   : > { %3007 = vmatpush1.bf16.msra.mxu0 %v6640_v52  ;;  %v6722_v52 = vld [vmem:[%s9200_s1 + $0x544] ss:$28 sps:$4 sm:$0xff]  }
  0xd9   : > { %1946 = vmatpush1.bf16.msra.mxu1 %v6643_v53  ;;  %3008 = vmatprep.subr.bf16.mxu0 %v6646_v54  ;;  %v6725_v53 = vld [vmem:[%s9200_s1 + $0x1cc] ss:$28 sps:$4 sm:$0xff]   ;;  %v6720_v54 = vld [vmem:[%s9200_s1 + $0x540] ss:$28 sps:$4 sm:$0xff]  }
  0xda   : > { %1947 = vmatprep.subr.bf16.mxu1 %v7198_v41 }
  0xdc   : > { %3009 = vmatpush1.bf16.msra.mxu0 %v6644_v55  ;;  %v6723_v55 = vld [vmem:[%s9200_s1 + $0x1c8] ss:$28 sps:$4 sm:$0xff]  }
  0xdd   : > { %1948 = vmatpush1.bf16.msra.mxu1 %v6647_v56  ;;  %3010 = vmatprep.subr.bf16.mxu0 %v6650_v57  ;;  %v6728_v56 = vld [vmem:[%s9200_s1 + $0x57c] ss:$28 sps:$4 sm:$0xff]   ;;  %v6731_v57 = vld [vmem:[%s9200_s1 + $0x204] ss:$28 sps:$4 sm:$0xff]  }
  0xde   : > { %1949 = vmatprep.subr.bf16.mxu1 %v7198_v41 }
  0xe0   : > { %3011 = vmatpush1.bf16.msra.mxu0 %v6648_v58  ;;  %v6726_v58 = vld [vmem:[%s9200_s1 + $0x578] ss:$28 sps:$4 sm:$0xff]  }
  0xe1   : > { %1950 = vmatpush1.bf16.msra.mxu1 %v6651_v59  ;;  %3012 = vmatprep.subr.bf16.mxu0 %v6654_v61  ;;  %v6729_v59 = vld [vmem:[%s9200_s1 + $0x200] ss:$28 sps:$4 sm:$0xff]   ;;  %v6734_v61 = vld [vmem:[%s9200_s1 + $0x5b4] ss:$28 sps:$4 sm:$0xff]  }
  0xe2   : > { %1951 = vmatprep.subr.bf16.mxu1 %v7198_v41 }
  0xe4   : > { %3013 = vmatpush1.bf16.msra.mxu0 %v6652_v62  ;;  %v6737_v62 = vld [vmem:[%s9200_s1 + $0x23c] ss:$28 sps:$4 sm:$0xff]  }
  0xe5   : > { %1952 = vmatpush1.bf16.msra.mxu1 %v6655_v63  ;;  %3014 = vmatprep.subr.bf16.mxu0 %v6658_v1  ;;  %v6732_v1 = vld [vmem:[%s9200_s1 + $0x5b0] ss:$28 sps:$4 sm:$0xff]  }
  0xe6   : > { %1953 = vmatprep.subr.bf16.mxu1 %v7198_v41 }
  0xe8   : > { %3015 = vmatpush1.bf16.msra.mxu0 %v6656_v2 }
  0xe9   : > { %1954 = vmatpush1.bf16.msra.mxu1 %v6659_v3  ;;  %3016 = vmatprep.subr.bf16.mxu0 %v6662_v4  ;;  %v6735_v4 = vld [vmem:[%s9200_s1 + $0x238] ss:$28 sps:$4 sm:$0xff]  }
  0xea   : > { %1955 = vmatprep.subr.bf16.mxu1 %v7198_v41 }
  0xec   : > { %3017 = vmatpush1.bf16.msra.mxu0 %v6660_v5 }
  0xed   : > { %1956 = vmatpush1.bf16.msra.mxu1 %v6663_v7  ;;  %3018 = vmatprep.subr.bf16.mxu0 %v6666_v9 }
  0xee   : > { %1957 = vmatprep.subr.bf16.mxu1 %v7198_v41 }
  0xf0   : > { %3019 = vmatpush1.bf16.msra.mxu0 %v6664_v10  ;;  %v6740_v10 = vld [vmem:[%s9200_s1 + $0x5ec] ss:$28 sps:$4 sm:$0xff]  }
  0xf1   : > { %1958 = vmatpush1.bf16.msra.mxu1 %v6667_v11  ;;  %3020 = vmatprep.subr.bf16.mxu0 %v6670_v12  ;;  %v6743_v11 = vld [vmem:[%s9200_s1 + $0x274] ss:$28 sps:$4 sm:$0xff]   ;;  %v6738_v12 = vld [vmem:[%s9200_s1 + $0x5e8] ss:$28 sps:$4 sm:$0xff]  }
  0xf2   : > { %1959 = vmatprep.subr.bf16.mxu1 %v7198_v41 }
  0xf4   : > { %3021 = vmatpush1.bf16.msra.mxu0 %v6668_v13  ;;  %v6741_v13 = vld [vmem:[%s9200_s1 + $0x270] ss:$28 sps:$4 sm:$0xff]  }
  0xf5   : > { %1960 = vmatpush1.bf16.msra.mxu1 %v6671_v14  ;;  %3031 = vmatprep.subr.bf16.mxu0 %v6674_v15  ;;  %v6746_v14 = vld [vmem:[%s9200_s1 + $0x2ac] ss:$28 sps:$4 sm:$0xff]   ;;  %v6749_v15 = vld [vmem:[%s9200_s1 + $0x14] ss:$28 sps:$4 sm:$0xff]  }
  0xf6   : > { %3072 = vmatprep.subr.bf16.mxu1 %v6677_v16  ;;  %v6744_v16 = vld [vmem:[%s9200_s1 + $0x2a8] ss:$28 sps:$4 sm:$0xff]  }
  0xf7   : > { %3023 = vmatmul.mubr.bf16.vlgmr.msra.gmra.mrb[8].mxu0 %v7423_v8 }
  0xf8   : > { %1970 = vmatmul.mubr.bf16.vlgmr.msra.gmra.mrb[12].mxu1 %v7403_v0  ;;  %3032 = vmatpush1.bf16.msra.mxu0 %v6672_v17  ;;  %v6684_v0 = vld [vmem:[%s9200_s1 + $0x3f0] ss:$28 sps:$4 sm:$0xff]  }
  0xf9   : > { %3073 = vmatpush1.bf16.msra.mxu1 %v6675_v6  ;;  %3033 = vmatprep.subr.bf16.mxu0 %v6680_v18  ;;  %v6747_v17 = vld [vmem:[%s9200_s1 + $0x10] ss:$28 sps:$4 sm:$0xff]   ;;  %v6752_v6 = vld [vmem:[%s9200_s1 + $0x2e4] ss:$28 sps:$4 sm:$0xff]  }
  0xfa   : > { %3074 = vmatprep.subr.bf16.mxu1 %v6683_v19  ;;  %5761 = vmatprep.mubr.msk.bf16.mxu0 %vm1647_vm0, %v7350_v39  ;;  %v6755_v18 = vld [vmem:[%s9200_s1 + $0x4c] ss:$28 sps:$4 sm:$0xff]   ;;  %v6750_v19 = vld [vmem:[%s9200_s1 + $0x2e0] ss:$28 sps:$4 sm:$0xff]  }
  0xfb   : > { %3104 = vmatprep.mubr.bf16.mxu1 %v7396_v60 }
  0xfc   : > { %3034 = vmatpush1.bf16.msra.mxu0 %v6678_v20  ;;  %v6753_v20 = vld [vmem:[%s9200_s1 + $0x48] ss:$28 sps:$4 sm:$0xff]  }
  0xfd   : > { %3075 = vmatpush1.bf16.msra.mxu1 %v6681_v21  ;;  %3035 = vmatprep.subr.bf16.mxu0 %v6686_v22  ;;  %v6758_v21 = vld [vmem:[%s9200_s1 + $0x31c] ss:$28 sps:$4 sm:$0xff]   ;;  %v6761_v22 = vld [vmem:[%s9200_s1 + $0x84] ss:$28 sps:$4 sm:$0xff]  }
  0xfe   : > { %3076 = vmatprep.subr.bf16.mxu1 %v6689_v24  ;;  %v6756_v24 = vld [vmem:[%s9200_s1 + $0x318] ss:$28 sps:$4 sm:$0xff]  }
 0x100   : > { %3036 = vmatpush1.bf16.msra.mxu0 %v6684_v0  ;;  %v6759_v0 = vld [vmem:[%s9200_s1 + $0x80] ss:$28 sps:$4 sm:$0xff]  }
 0x101   : > { %3077 = vmatpush1.bf16.msra.mxu1 %v6687_v25  ;;  %3037 = vmatprep.subr.bf16.mxu0 %v6692_v26  ;;  %v6764_v25 = vld [vmem:[%s9200_s1 + $0x354] ss:$28 sps:$4 sm:$0xff]   ;;  %v6767_v26 = vld [vmem:[%s9200_s1 + $0xbc] ss:$28 sps:$4 sm:$0xff]  }
 0x102   : > { %3078 = vmatprep.subr.bf16.mxu1 %v6695_v27  ;;  %v6762_v27 = vld [vmem:[%s9200_s1 + $0x350] ss:$28 sps:$4 sm:$0xff]  }
 0x104   : > { %3038 = vmatpush1.bf16.msra.mxu0 %v6690_v28  ;;  %v6765_v28 = vld [vmem:[%s9200_s1 + $0xb8] ss:$28 sps:$4 sm:$0xff]  }
 0x105   : > { %3079 = vmatpush1.bf16.msra.mxu1 %v6693_v29  ;;  %3039 = vmatprep.subr.bf16.mxu0 %v6698_v30  ;;  %v6770_v29 = vld [vmem:[%s9200_s1 + $0x38c] ss:$28 sps:$4 sm:$0xff]   ;;  %v6773_v30 = vld [vmem:[%s9200_s1 + $0xf4] ss:$28 sps:$4 sm:$0xff]  }
 0x106   : > { %3080 = vmatprep.subr.bf16.mxu1 %v6701_v31  ;;  %v6768_v31 = vld [vmem:[%s9200_s1 + $0x388] ss:$28 sps:$4 sm:$0xff]  }
 0x108   : > { %3040 = vmatpush1.bf16.msra.mxu0 %v6696_v32  ;;  %v6771_v32 = vld [vmem:[%s9200_s1 + $0xf0] ss:$28 sps:$4 sm:$0xff]  }
 0x109   : > { %3081 = vmatpush1.bf16.msra.mxu1 %v6699_v33  ;;  %3041 = vmatprep.subr.bf16.mxu0 %v6704_v34  ;;  %v6776_v33 = vld [vmem:[%s9200_s1 + $0x3c4] ss:$28 sps:$4 sm:$0xff]   ;;  %v6779_v34 = vld [vmem:[%s9200_s1 + $0x12c] ss:$28 sps:$4 sm:$0xff]  }
 0x10a   : > { %3082 = vmatprep.subr.bf16.mxu1 %v6707_v35  ;;  %v6774_v35 = vld [vmem:[%s9200_s1 + $0x3c0] ss:$28 sps:$4 sm:$0xff]  }
 0x10b   : > { %v1726_v42 = vpop.f32.mrb[0].mxu1 }
 0x10c   : > { %v1728_v46 = vpop.f32.mrb[1].mxu1  ;;  %3042 = vmatpush1.bf16.msra.mxu0 %v6702_v36  ;;  %v6777_v36 = vld [vmem:[%s9200_s1 + $0x128] ss:$28 sps:$4 sm:$0xff]  }
 0x10d   : > { %v1730_v23 = vpop.f32.mrb[2].mxu1  ;;  %3083 = vmatpush1.bf16.msra.mxu1 %v6705_v37  ;;  %3043 = vmatprep.subr.bf16.mxu0 %v6710_v38  ;;  %v6782_v37 = vld [vmem:[%s9200_s1 + $0x3fc] ss:$28 sps:$4 sm:$0xff]   ;;  %v6785_v38 = vld [vmem:[%s9200_s1 + $0x164] ss:$28 sps:$4 sm:$0xff]  }
 0x10e   : > { %v1731_v49 = vpop.f32.mrb[3].mxu1  ;;  %3084 = vmatprep.subr.bf16.mxu1 %v6713_v40  ;;  %v6780_v40 = vld [vmem:[%s9200_s1 + $0x3f8] ss:$28 sps:$4 sm:$0xff]  }
 0x10f   : > { %v6789_v23 = vld [vmem:[%s9200_s1 + $0x198] ss:$28 sps:$4 sm:$0xff]  }
 0x110   : > { %3044 = vmatpush1.bf16.msra.mxu0 %v6708_v44  ;;  %v6788_v44 = vld [vmem:[%s9200_s1 + $0x434] ss:$28 sps:$4 sm:$0xff]  }
 0x111   : > { %3085 = vmatpush1.bf16.msra.mxu1 %v6711_v45  ;;  %3045 = vmatprep.subr.bf16.mxu0 %v6716_v47  ;;  %v6791_v45 = vld [vmem:[%s9200_s1 + $0x19c] ss:$28 sps:$4 sm:$0xff]   ;;  %v6794_v47 = vld [vmem:[%s9200_s1 + $0x46c] ss:$28 sps:$4 sm:$0xff]   ;;  %v6797_v49 = vld [vmem:[%s9200_s1 + $0x1d4] ss:$28 sps:$4 sm:$0xff]  }
 0x112   : > { %3086 = vmatprep.subr.bf16.mxu1 %v6719_v48  ;;  %v6792_v48 = vld [vmem:[%s9200_s1 + $0x468] ss:$28 sps:$4 sm:$0xff]  }
 0x114   : > { %3046 = vmatpush1.bf16.msra.mxu0 %v6714_v50  ;;  %v6795_v50 = vld [vmem:[%s9200_s1 + $0x1d0] ss:$28 sps:$4 sm:$0xff]  }
 0x115   : > { %3087 = vmatpush1.bf16.msra.mxu1 %v6717_v51  ;;  %3047 = vmatprep.subr.bf16.mxu0 %v6722_v52  ;;  %v6800_v51 = vld [vmem:[%s9200_s1 + $0x4a4] ss:$28 sps:$4 sm:$0xff]   ;;  %v6803_v52 = vld [vmem:[%s9200_s1 + $0x20c] ss:$28 sps:$4 sm:$0xff]  }
 0x116   : > { %3088 = vmatprep.subr.bf16.mxu1 %v6725_v53  ;;  %v6798_v53 = vld [vmem:[%s9200_s1 + $0x4a0] ss:$28 sps:$4 sm:$0xff]  }
 0x118   : > { %3048 = vmatpush1.bf16.msra.mxu0 %v6720_v54  ;;  %v6801_v54 = vld [vmem:[%s9200_s1 + $0x208] ss:$28 sps:$4 sm:$0xff]  }
 0x119   : > { %3089 = vmatpush1.bf16.msra.mxu1 %v6723_v55  ;;  %3049 = vmatprep.subr.bf16.mxu0 %v6728_v56  ;;  %v6806_v55 = vld [vmem:[%s9200_s1 + $0x4dc] ss:$28 sps:$4 sm:$0xff]   ;;  %v6809_v56 = vld [vmem:[%s9200_s1 + $0x244] ss:$28 sps:$4 sm:$0xff]  }
 0x11a   : > { %3090 = vmatprep.subr.bf16.mxu1 %v6731_v57  ;;  %v1685_v63 = vpop.f32.mrb[0].mxu0  ;;  %v6804_v57 = vld [vmem:[%s9200_s1 + $0x4d8] ss:$28 sps:$4 sm:$0xff]  }
 0x11b   : > { %v8111_v2 = vadd.f32 %v1726_v42, %v1685_v63  ;;  %v1687_v3 = vpop.f32.mrb[1].mxu0  ;;  %v6783_v42 = vld [vmem:[%s9200_s1 + $0x160] ss:$28 sps:$4 sm:$0xff]   ;;  %v6813_v63 = vld [vmem:[%s9200_s1 + $0x278] ss:$28 sps:$4 sm:$0xff]  }
 0x11c   : > { %v8116_v5 = vadd.f32 %v1728_v46, %v1687_v3  ;;  %v1689_v7 = vpop.f32.mrb[2].mxu0  ;;  %3050 = vmatpush1.bf16.msra.mxu0 %v6726_v58  ;;  %v6786_v46 = vld [vmem:[%s9200_s1 + $0x430] ss:$28 sps:$4 sm:$0xff]   ;;  %v6807_v58 = vld [vmem:[%s9200_s1 + $0x240] ss:$28 sps:$4 sm:$0xff]  }
 0x11d   : > { %3091 = vmatpush1.bf16.msra.mxu1 %v6729_v59  ;;  %v1690_v9 = vpop.f32.mrb[3].mxu0  ;;  %3051 = vmatprep.subr.bf16.mxu0 %v6734_v61  ;;  %v6812_v59 = vld [vmem:[%s9200_s1 + $0x514] ss:$28 sps:$4 sm:$0xff]   ;;  %v6815_v61 = vld [vmem:[%s9200_s1 + $0x27c] ss:$28 sps:$4 sm:$0xff]  }
 0x11e   : > { %3092 = vmatprep.subr.bf16.mxu1 %v6737_v62  ;;  %v6810_v62 = vld [vmem:[%s9200_s1 + $0x510] ss:$28 sps:$4 sm:$0xff]   ;;  %v6824_v9 = vld [vmem:[%s9200_s1 + $0x584] ss:$28 sps:$4 sm:$0xff]  }
 0x11f   : > { %v6821_v3 = vld [vmem:[%s9200_s1 + $0x2b4] ss:$28 sps:$4 sm:$0xff]  }
 0x120   : > { %3052 = vmatpush1.bf16.msra.mxu0 %v6732_v1  ;;  %v6818_v1 = vld [vmem:[%s9200_s1 + $0x54c] ss:$28 sps:$4 sm:$0xff]  }
 0x121   : > { %3093 = vmatpush1.bf16.msra.mxu1 %v6735_v4  ;;  %3053 = vmatprep.subr.bf16.mxu0 %v6740_v10  ;;  %v6816_v4 = vld [vmem:[%s9200_s1 + $0x548] ss:$28 sps:$4 sm:$0xff]   ;;  %v6819_v7 = vld [vmem:[%s9200_s1 + $0x2b0] ss:$28 sps:$4 sm:$0xff]  }
 0x122   : > { %3094 = vmatprep.subr.bf16.mxu1 %v6743_v11  ;;  %v6827_v10 = vld [vmem:[%s9200_s1 + $0x2ec] ss:$28 sps:$4 sm:$0xff]   ;;  %v6822_v11 = vld [vmem:[%s9200_s1 + $0x580] ss:$28 sps:$4 sm:$0xff]  }
 0x124   : > { %3054 = vmatpush1.bf16.msra.mxu0 %v6738_v12  ;;  %v6825_v12 = vld [vmem:[%s9200_s1 + $0x2e8] ss:$28 sps:$4 sm:$0xff]  }
 0x125   : > { %3095 = vmatpush1.bf16.msra.mxu1 %v6741_v13  ;;  %3154 = vmatprep.subr.bf16.mxu0 %v6749_v15  ;;  %v6830_v13 = vld [vmem:[%s9200_s1 + $0x5bc] ss:$28 sps:$4 sm:$0xff]  }
 0x126   : > { %3096 = vmatprep.subr.bf16.mxu1 %v6746_v14  ;;  %v6833_v14 = vld [vmem:[%s9200_s1 + $0x324] ss:$28 sps:$4 sm:$0xff]   ;;  %v6828_v15 = vld [vmem:[%s9200_s1 + $0x5b8] ss:$28 sps:$4 sm:$0xff]  }
 0x127   : > { %3064 = vmatmul.mubr.bf16.vlgmr.msra.gmra.mrb[8].mxu0 %v7357_v43 }
 0x128   : > { %3155 = vmatpush1.bf16.msra.mxu0 %v6747_v17  ;;  %3186 = vmatprep.mubr.bf16.mxu0 %v7396_v60  ;;  %v6836_v17 = vld [vmem:[%s9200_s1 + $0x5f4] ss:$28 sps:$4 sm:$0xff]  }
 0x129   : > { %3097 = vmatpush1.bf16.msra.mxu1 %v6744_v16  ;;  %3156 = vmatprep.subr.bf16.mxu0 %v6755_v18  ;;  %v6831_v16 = vld [vmem:[%s9200_s1 + $0x320] ss:$28 sps:$4 sm:$0xff]   ;;  %v6834_v18 = vld [vmem:[%s9200_s1 + $0x5f0] ss:$28 sps:$4 sm:$0xff]  }
 0x12a   : > { %3098 = vmatprep.subr.bf16.mxu1 %v6752_v6  ;;  %v6839_v6 = vld [vmem:[%s9200_s1 + $0x35c] ss:$28 sps:$4 sm:$0xff]  }
 0x12c   : > { %3157 = vmatpush1.bf16.msra.mxu0 %v6753_v20  ;;  %v6842_v20 = vld [vmem:[%s9200_s1 + $0x394] ss:$28 sps:$4 sm:$0xff]  }
 0x12d   : > { %3099 = vmatpush1.bf16.msra.mxu1 %v6750_v19  ;;  %3158 = vmatprep.subr.bf16.mxu0 %v6761_v22  ;;  %v6837_v19 = vld [vmem:[%s9200_s1 + $0x358] ss:$28 sps:$4 sm:$0xff]   ;;  %v6840_v22 = vld [vmem:[%s9200_s1 + $0x390] ss:$28 sps:$4 sm:$0xff]  }
 0x12e   : > { %3100 = vmatprep.subr.bf16.mxu1 %v6758_v21  ;;  %v6843_v21 = vld [vmem:[%s9200_s1 + $0x1d8] ss:$28 sps:$4 sm:$0xff]  }
 0x130   : > { %3159 = vmatpush1.bf16.msra.mxu0 %v6759_v0  ;;  %v6847_v0 = vld [vmem:[%s9200_s1 + $0x3cc] ss:$28 sps:$4 sm:$0xff]  }
 0x131   : > { %3101 = vmatpush1.bf16.msra.mxu1 %v6756_v24  ;;  %3160 = vmatprep.subr.bf16.mxu0 %v6767_v26  ;;  %v6844_v24 = vld [vmem:[%s9200_s1 + $0x18] ss:$28 sps:$4 sm:$0xff]   ;;  %v6845_v26 = vld [vmem:[%s9200_s1 + $0x3c8] ss:$28 sps:$4 sm:$0xff]  }
 0x132   : > { %3102 = vmatprep.subr.bf16.mxu1 %v6764_v25  ;;  %v6848_v25 = vld [vmem:[%s9200_s1 + $0x210] ss:$28 sps:$4 sm:$0xff]  }
 0x134   : > { %3161 = vmatpush1.bf16.msra.mxu0 %v6765_v28  ;;  %v6852_v28 = vld [vmem:[%s9200_s1 + $0x404] ss:$28 sps:$4 sm:$0xff]  }
 0x135   : > { %3103 = vmatpush1.bf16.msra.mxu1 %v6762_v27  ;;  %3162 = vmatprep.subr.bf16.mxu0 %v6773_v30  ;;  %v6849_v27 = vld [vmem:[%s9200_s1 + $0x50] ss:$28 sps:$4 sm:$0xff]   ;;  %v6850_v30 = vld [vmem:[%s9200_s1 + $0x400] ss:$28 sps:$4 sm:$0xff]  }
 0x136   : > { %3113 = vmatprep.subr.bf16.mxu1 %v6770_v29  ;;  %v6853_v29 = vld [vmem:[%s9200_s1 + $0x248] ss:$28 sps:$4 sm:$0xff]  }
 0x138   : > { %3105 = vmatmul.mubr.bf16.vlgmr.msra.gmra.mrb[4].mxu1 %v7423_v8  ;;  %3163 = vmatpush1.bf16.msra.mxu0 %v6771_v32  ;;  %v6857_v32 = vld [vmem:[%s9200_s1 + $0x43c] ss:$28 sps:$4 sm:$0xff]  }
 0x139   : > { %3114 = vmatpush1.bf16.msra.mxu1 %v6768_v31  ;;  %3164 = vmatprep.subr.bf16.mxu0 %v6779_v34  ;;  %v6854_v31 = vld [vmem:[%s9200_s1 + $0x88] ss:$28 sps:$4 sm:$0xff]   ;;  %v6859_v34 = vld [vmem:[%s9200_s1 + $0xc0] ss:$28 sps:$4 sm:$0xff]  }
 0x13a   : > { %3115 = vmatprep.subr.bf16.mxu1 %v6776_v33  ;;  %5762 = vmatprep.mubr.msk.bf16.mxu1 %vm1647_vm0, %v7350_v39  ;;  %v6855_v33 = vld [vmem:[%s9200_s1 + $0x438] ss:$28 sps:$4 sm:$0xff]  }
 0x13c   : > { %3165 = vmatpush1.bf16.msra.mxu0 %v6777_v36  ;;  %v6863_v36 = vld [vmem:[%s9200_s1 + $0x2b8] ss:$28 sps:$4 sm:$0xff]  }
 0x13d   : > { %3116 = vmatpush1.bf16.msra.mxu1 %v6774_v35  ;;  %3166 = vmatprep.subr.bf16.mxu0 %v6785_v38  ;;  %v6862_v35 = vld [vmem:[%s9200_s1 + $0x474] ss:$28 sps:$4 sm:$0xff]  }
 0x13e   : > { %3117 = vmatprep.subr.bf16.mxu1 %v6782_v37  ;;  %v6860_v37 = vld [vmem:[%s9200_s1 + $0x470] ss:$28 sps:$4 sm:$0xff]   ;;  %v6864_v38 = vld [vmem:[%s9200_s1 + $0xf8] ss:$28 sps:$4 sm:$0xff]  }
 0x140   : > { %3167 = vmatpush1.bf16.msra.mxu0 %v6783_v42  ;;  %v6868_v42 = vld [vmem:[%s9200_s1 + $0x2f0] ss:$28 sps:$4 sm:$0xff]  }
 0x141   : > { %3118 = vmatpush1.bf16.msra.mxu1 %v6780_v40  ;;  %3168 = vmatprep.subr.bf16.mxu0 %v6791_v45  ;;  %v6867_v40 = vld [vmem:[%s9200_s1 + $0x4ac] ss:$28 sps:$4 sm:$0xff]  }
 0x142   : > { %3119 = vmatprep.subr.bf16.mxu1 %v6788_v44  ;;  %v6865_v44 = vld [vmem:[%s9200_s1 + $0x4a8] ss:$28 sps:$4 sm:$0xff]   ;;  %v6869_v45 = vld [vmem:[%s9200_s1 + $0x130] ss:$28 sps:$4 sm:$0xff]  }
 0x144   : > { %3169 = vmatpush1.bf16.msra.mxu0 %v6789_v23  ;;  %v6873_v23 = vld [vmem:[%s9200_s1 + $0x328] ss:$28 sps:$4 sm:$0xff]  }
 0x145   : > { %3120 = vmatpush1.bf16.msra.mxu1 %v6786_v46  ;;  %3170 = vmatprep.subr.bf16.mxu0 %v6797_v49  ;;  %v6872_v46 = vld [vmem:[%s9200_s1 + $0x4e4] ss:$28 sps:$4 sm:$0xff]  }
 0x146   : > { %3121 = vmatprep.subr.bf16.mxu1 %v6794_v47  ;;  %v6870_v47 = vld [vmem:[%s9200_s1 + $0x4e0] ss:$28 sps:$4 sm:$0xff]   ;;  %v6874_v49 = vld [vmem:[%s9200_s1 + $0x168] ss:$28 sps:$4 sm:$0xff]  }
 0x148   : > { %3171 = vmatpush1.bf16.msra.mxu0 %v6795_v50  ;;  %v6878_v50 = vld [vmem:[%s9200_s1 + $0x360] ss:$28 sps:$4 sm:$0xff]  }
 0x149   : > { %3122 = vmatpush1.bf16.msra.mxu1 %v6792_v48  ;;  %3172 = vmatprep.subr.bf16.mxu0 %v6803_v52  ;;  %v6877_v48 = vld [vmem:[%s9200_s1 + $0x51c] ss:$28 sps:$4 sm:$0xff]  }
 0x14a   : > { %3123 = vmatprep.subr.bf16.mxu1 %v6800_v51  ;;  %v6875_v51 = vld [vmem:[%s9200_s1 + $0x518] ss:$28 sps:$4 sm:$0xff]   ;;  %v6879_v52 = vld [vmem:[%s9200_s1 + $0x1a0] ss:$28 sps:$4 sm:$0xff]  }
 0x14c   : > { %3173 = vmatpush1.bf16.msra.mxu0 %v6801_v54  ;;  %v6880_v54 = vld [vmem:[%s9200_s1 + $0x550] ss:$28 sps:$4 sm:$0xff]  }
 0x14d   : > { %3124 = vmatpush1.bf16.msra.mxu1 %v6798_v53  ;;  %3174 = vmatprep.subr.bf16.mxu0 %v6809_v56  ;;  %v6882_v53 = vld [vmem:[%s9200_s1 + $0x554] ss:$28 sps:$4 sm:$0xff]   ;;  %v6886_v56 = vld [vmem:[%s9200_s1 + $0x58c] ss:$28 sps:$4 sm:$0xff]  }
 0x14e   : > { %3125 = vmatprep.subr.bf16.mxu1 %v6806_v55  ;;  %v6883_v55 = vld [vmem:[%s9200_s1 + $0x398] ss:$28 sps:$4 sm:$0xff]  }
 0x150   : > { %3175 = vmatpush1.bf16.msra.mxu0 %v6807_v58  ;;  %v6887_v58 = vld [vmem:[%s9200_s1 + $0x3d0] ss:$28 sps:$4 sm:$0xff]  }
 0x151   : > { %3126 = vmatpush1.bf16.msra.mxu1 %v6804_v57  ;;  %3176 = vmatprep.subr.bf16.mxu0 %v6815_v61  ;;  %v6884_v57 = vld [vmem:[%s9200_s1 + $0x588] ss:$28 sps:$4 sm:$0xff]  }
 0x152   : > { %3127 = vmatprep.subr.bf16.mxu1 %v6812_v59  ;;  %v6890_v59 = vld [vmem:[%s9200_s1 + $0x5c4] ss:$28 sps:$4 sm:$0xff]  }
 0x153   : > { %v6891_v61 = vld [vmem:[%s9200_s1 + $0x408] ss:$28 sps:$4 sm:$0xff]  }
 0x154   : > { %3177 = vmatpush1.bf16.msra.mxu0 %v6813_v63  ;;  %v8465_v63 = vld [vmem:[%s7335_s30 + $0x10] sm:$0x11] }
 0x155   : > { %3128 = vmatpush1.bf16.msra.mxu1 %v6810_v62  ;;  %3178 = vmatprep.subr.bf16.mxu0 %v6821_v3  ;;  %v6894_v62 = vld [vmem:[%s9200_s1 + $0x5fc] ss:$28 sps:$4 sm:$0xff]   ;;  %v6898_v3 = vld [vmem:[%s9200_s1 + $0xc44] ss:$28 sps:$4 sm:$0xff]  }
 0x156   : > { %3129 = vmatprep.subr.bf16.mxu1 %v6818_v1  ;;  %v6895_v1 = vld [vmem:[%s9200_s1 + $0x440] ss:$28 sps:$4 sm:$0xff]  }
 0x158   : > { %3179 = vmatpush1.bf16.msra.mxu0 %v6819_v7 }
 0x159   : > { %3130 = vmatpush1.bf16.msra.mxu1 %v6816_v4  ;;  %3180 = vmatprep.subr.bf16.mxu0 %v6827_v10  ;;  %v8478_v4 = vld [vmem:[%s7335_s30] sm:$0xff]  ;;  %v6899_v10 = vld [vmem:[%s9200_s1 + $0x478] ss:$28 sps:$4 sm:$0xff]  }
 0x15a   : > { %3131 = vmatprep.subr.bf16.mxu1 %v6824_v9  ;;  %v5990_v7 = vcombine.high %v8478_v4, %v8465_v63  ;;  %v6896_v9 = vld [vmem:[%s9200_s1 + $0xc40] ss:$28 sps:$4 sm:$0xff]  }
 0x15c   : > { %3181 = vmatpush1.bf16.msra.mxu0 %v6825_v12  ;;  %v8492_v12 = vrot.slane %v5990_v7, 1  ;;  %v6975_v7 = vld [vmem:[%s9200_s1 + $0xdd4] ss:$28 sps:$4 sm:$0xff]  }
 0x15d   : > { %3132 = vmatpush1.bf16.msra.mxu1 %v6822_v11  ;;  %3182 = vmatprep.subr.bf16.mxu0 %v6833_v14  ;;  %v6902_v11 = vld [vmem:[%s9200_s1 + $0xc7c] ss:$28 sps:$4 sm:$0xff]   ;;  %v6903_v14 = vld [vmem:[%s9200_s1 + $0x4b0] ss:$28 sps:$4 sm:$0xff]  }
 0x15e   : > { %3133 = vmatprep.subr.bf16.mxu1 %v6830_v13  ;;  %v6900_v13 = vld [vmem:[%s9200_s1 + $0xc78] ss:$28 sps:$4 sm:$0xff]  }
 0x160   : > { %3183 = vmatpush1.bf16.msra.mxu0 %v6831_v16 }
 0x161   : > { %3134 = vmatpush1.bf16.msra.mxu1 %v6828_v15  ;;  %3184 = vmatprep.subr.bf16.mxu0 %v6839_v6  ;;  %v6906_v15 = vld [vmem:[%s9200_s1 + $0xcb4] ss:$28 sps:$4 sm:$0xff]  }
 0x162   : > { %3135 = vmatprep.subr.bf16.mxu1 %v6836_v17 }
 0x164   : > { %3185 = vmatpush1.bf16.msra.mxu0 %v6837_v19  ;;  %v6904_v19 = vld [vmem:[%s9200_s1 + $0xcb0] ss:$28 sps:$4 sm:$0xff]  }
 0x165   : > { %3136 = vmatpush1.bf16.msra.mxu1 %v6834_v18  ;;  %3195 = vmatprep.subr.bf16.mxu0 %v6842_v20  ;;  %v6907_v20 = vld [vmem:[%s9200_s1 + $0x4e8] ss:$28 sps:$4 sm:$0xff]  }
 0x166   : > { %6218 = vmatprep.subr.bf16.mxu1 %v6843_v21 }
 0x167   : > { %3187 = vmatmul.mubr.bf16.vlgmr.msra.gmra.mrb[4].mxu0 %v7423_v8 }
 0x168   : > { %3146 = vmatmul.mubr.bf16.vlgmr.msra.gmra.mrb[4].mxu1 %v7357_v43  ;;  %3196 = vmatpush1.bf16.msra.mxu0 %v6840_v22  ;;  %v6910_v22 = vld [vmem:[%s9200_s1 + $0xcec] ss:$28 sps:$4 sm:$0xff]  }
 0x169   : > { %6219 = vmatpush3.bf16.msra.mxu1 %v6844_v24  ;;  %3197 = vmatprep.subr.bf16.mxu0 %v6847_v0  ;;  %v6908_v24 = vld [vmem:[%s9200_s1 + $0xce8] ss:$28 sps:$4 sm:$0xff]   ;;  %v6911_v0 = vld [vmem:[%s9200_s1 + $0x520] ss:$28 sps:$4 sm:$0xff]  }
 0x16a   : > { %6220 = vmatprep.subr.bf16.mxu1 %v6848_v25  ;;  %3268 = vmatprep.mubr.bf16.mxu1 %v7396_v60  ;;  %v6858_v60 = vld [vmem:[%s9200_s1 + $0x280] ss:$28 sps:$4 sm:$0xff]  }
 0x16b   : > { %5763 = vmatprep.mubr.msk.bf16.mxu0 %vm1647_vm0, %v7350_v39  ;;  %v6914_v25 = vld [vmem:[%s9200_s1 + $0xd24] ss:$28 sps:$4 sm:$0xff]  }
 0x16c   : > { %3198 = vmatpush1.bf16.msra.mxu0 %v6845_v26  ;;  %v6912_v26 = vld [vmem:[%s9200_s1 + $0xd20] ss:$28 sps:$4 sm:$0xff]  }
 0x16d   : > { %6221 = vmatpush3.bf16.msra.mxu1 %v6849_v27  ;;  %3199 = vmatprep.subr.bf16.mxu0 %v6852_v28  ;;  %v6915_v27 = vld [vmem:[%s9200_s1 + $0x558] ss:$28 sps:$4 sm:$0xff]  }
 0x16e   : > { %6222 = vmatprep.subr.bf16.mxu1 %v6853_v29  ;;  %v6918_v28 = vld [vmem:[%s9200_s1 + $0xd5c] ss:$28 sps:$4 sm:$0xff]  }
 0x16f   : > { %v6916_v29 = vld [vmem:[%s9200_s1 + $0xd58] ss:$28 sps:$4 sm:$0xff]  }
 0x170   : > { %3200 = vmatpush1.bf16.msra.mxu0 %v6850_v30  ;;  %v6919_v30 = vld [vmem:[%s9200_s1 + $0x590] ss:$28 sps:$4 sm:$0xff]  }
 0x171   : > { %6223 = vmatpush3.bf16.msra.mxu1 %v6854_v31  ;;  %3201 = vmatprep.subr.bf16.mxu0 %v6857_v32  ;;  %v6922_v31 = vld [vmem:[%s9200_s1 + $0xd94] ss:$28 sps:$4 sm:$0xff]  }
 0x172   : > { %6224 = vmatprep.subr.bf16.mxu1 %v6858_v60  ;;  %v6920_v32 = vld [vmem:[%s9200_s1 + $0xd90] ss:$28 sps:$4 sm:$0xff]   ;;  %v6923_v60 = vld [vmem:[%s9200_s1 + $0x5c8] ss:$28 sps:$4 sm:$0xff]  }
 0x174   : > { %3202 = vmatpush1.bf16.msra.mxu0 %v6855_v33  ;;  %v6926_v33 = vld [vmem:[%s9200_s1 + $0xdcc] ss:$28 sps:$4 sm:$0xff]  }
 0x175   : > { %6225 = vmatpush3.bf16.msra.mxu1 %v6859_v34  ;;  %3203 = vmatprep.subr.bf16.mxu0 %v6862_v35  ;;  %v6924_v34 = vld [vmem:[%s9200_s1 + $0xdc8] ss:$28 sps:$4 sm:$0xff]   ;;  %v6927_v35 = vld [vmem:[%s9200_s1 + $0x600] ss:$28 sps:$4 sm:$0xff]  }
 0x176   : > { %6226 = vmatprep.subr.bf16.mxu1 %v6863_v36  ;;  %v6930_v36 = vld [vmem:[%s9200_s1 + $0xe04] ss:$28 sps:$4 sm:$0xff]  }
 0x178   : > { %3204 = vmatpush1.bf16.msra.mxu0 %v6860_v37  ;;  %v6933_v37 = vld [vmem:[%s9200_s1 + $0xc4c] ss:$28 sps:$4 sm:$0xff]  }
 0x179   : > { %6227 = vmatpush3.bf16.msra.mxu1 %v6864_v38  ;;  %3205 = vmatprep.subr.bf16.mxu0 %v6867_v40  ;;  %v6928_v38 = vld [vmem:[%s9200_s1 + $0xe00] ss:$28 sps:$4 sm:$0xff]   ;;  %v6931_v40 = vld [vmem:[%s9200_s1 + $0xc48] ss:$28 sps:$4 sm:$0xff]  }
 0x17a   : > { %6228 = vmatprep.subr.bf16.mxu1 %v6868_v42  ;;  %v6936_v42 = vld [vmem:[%s9200_s1 + $0xe3c] ss:$28 sps:$4 sm:$0xff]  }
 0x17c   : > { %3206 = vmatpush1.bf16.msra.mxu0 %v6865_v44  ;;  %v6939_v44 = vld [vmem:[%s9200_s1 + $0xc84] ss:$28 sps:$4 sm:$0xff]  }
 0x17d   : > { %6229 = vmatpush3.bf16.msra.mxu1 %v6869_v45  ;;  %3207 = vmatprep.subr.bf16.mxu0 %v6872_v46  ;;  %v6934_v45 = vld [vmem:[%s9200_s1 + $0xe38] ss:$28 sps:$4 sm:$0xff]   ;;  %v6937_v46 = vld [vmem:[%s9200_s1 + $0xc80] ss:$28 sps:$4 sm:$0xff]  }
 0x17e   : > { %6230 = vmatprep.subr.bf16.mxu1 %v6873_v23  ;;  %v6942_v23 = vld [vmem:[%s9200_s1 + $0xe74] ss:$28 sps:$4 sm:$0xff]  }
 0x180   : > { %3208 = vmatpush1.bf16.msra.mxu0 %v6870_v47  ;;  %v6940_v47 = vld [vmem:[%s9200_s1 + $0xe70] ss:$28 sps:$4 sm:$0xff]  }
 0x181   : > { %6231 = vmatpush3.bf16.msra.mxu1 %v6874_v49  ;;  %3209 = vmatprep.subr.bf16.mxu0 %v6877_v48  ;;  %v6943_v49 = vld [vmem:[%s9200_s1 + $0xcb8] ss:$28 sps:$4 sm:$0xff]   ;;  %v6948_v48 = vld [vmem:[%s9200_s1 + $0xeac] ss:$28 sps:$4 sm:$0xff]  }
 0x182   : > { %6232 = vmatprep.subr.bf16.mxu1 %v6878_v50  ;;  %v6951_v50 = vld [vmem:[%s9200_s1 + $0xcf4] ss:$28 sps:$4 sm:$0xff]  }
 0x184   : > { %3210 = vmatpush1.bf16.msra.mxu0 %v6875_v51  ;;  %v6946_v51 = vld [vmem:[%s9200_s1 + $0xea8] ss:$28 sps:$4 sm:$0xff]  }
 0x185   : > { %6233 = vmatpush3.bf16.msra.mxu1 %v6879_v52  ;;  %3211 = vmatprep.subr.bf16.mxu0 %v6882_v53  ;;  %v6949_v52 = vld [vmem:[%s9200_s1 + $0xcf0] ss:$28 sps:$4 sm:$0xff]   ;;  %v6954_v53 = vld [vmem:[%s9200_s1 + $0xee4] ss:$28 sps:$4 sm:$0xff]  }
 0x186   : > { %3276 = vmatprep.subr.bf16.mxu1 %v7198_v41 }
 0x188   : > { %3269 = vmatmul.mubr.bf16.vlgmr.msra.gmra.mrb[16].mxu1 %v7423_v8  ;;  %3212 = vmatpush1.bf16.msra.mxu0 %v6880_v54  ;;  %v6888_v8 = vld [vmem:[%s9200_s1 + $0x5c0] ss:$28 sps:$4 sm:$0xff]   ;;  %v6957_v54 = vld [vmem:[%s9200_s1 + $0xd2c] ss:$28 sps:$4 sm:$0xff]  }
 0x189   : > { %3277 = vmatpush1.bf16.msra.mxu1 %v6883_v55  ;;  %3213 = vmatprep.subr.bf16.mxu0 %v6886_v56  ;;  %v6952_v55 = vld [vmem:[%s9200_s1 + $0xee0] ss:$28 sps:$4 sm:$0xff]   ;;  %v6955_v56 = vld [vmem:[%s9200_s1 + $0xd28] ss:$28 sps:$4 sm:$0xff]  }
 0x18a   : > { %3278 = vmatprep.subr.bf16.mxu1 %v7198_v41  ;;  %5764 = vmatprep.mubr.msk.bf16.mxu1 %vm1647_vm0, %v7350_v39  ;;  %v6892_v39 = vld [vmem:[%s9200_s1 + $0x5f8] ss:$28 sps:$4 sm:$0xff]  }
 0x18c   : > { %3214 = vmatpush1.bf16.msra.mxu0 %v6884_v57  ;;  %v6960_v57 = vld [vmem:[%s9200_s1 + $0xf1c] ss:$28 sps:$4 sm:$0xff]  }
 0x18d   : > { %3279 = vmatpush1.bf16.msra.mxu1 %v6887_v58  ;;  %3215 = vmatprep.subr.bf16.mxu0 %v6890_v59  ;;  %v6963_v58 = vld [vmem:[%s9200_s1 + $0xd64] ss:$28 sps:$4 sm:$0xff]   ;;  %v6958_v59 = vld [vmem:[%s9200_s1 + $0xf18] ss:$28 sps:$4 sm:$0xff]  }
 0x18e   : > { %3280 = vmatprep.subr.bf16.mxu1 %v7198_v41 }
 0x190   : > { %3216 = vmatpush1.bf16.msra.mxu0 %v6888_v8  ;;  %v6961_v8 = vld [vmem:[%s9200_s1 + $0xd60] ss:$28 sps:$4 sm:$0xff]  }
 0x191   : > { %3281 = vmatpush1.bf16.msra.mxu1 %v6891_v61  ;;  %3217 = vmatprep.subr.bf16.mxu0 %v6894_v62  ;;  %v6966_v61 = vld [vmem:[%s9200_s1 + $0xf54] ss:$28 sps:$4 sm:$0xff]   ;;  %v6969_v62 = vld [vmem:[%s9200_s1 + $0xd9c] ss:$28 sps:$4 sm:$0xff]  }
 0x192   : > { %3282 = vmatprep.subr.bf16.mxu1 %v7198_v41 }
 0x194   : > { %3218 = vmatpush1.bf16.msra.mxu0 %v6892_v39  ;;  %v6964_v39 = vld [vmem:[%s9200_s1 + $0xf50] ss:$28 sps:$4 sm:$0xff]  }
 0x195   : > { %3283 = vmatpush1.bf16.msra.mxu1 %v6895_v1  ;;  %4569 = vmatprep.subr.bf16.mxu0 %v6898_v3  ;;  %v6967_v1 = vld [vmem:[%s9200_s1 + $0xd98] ss:$28 sps:$4 sm:$0xff]   ;;  %v6972_v3 = vld [vmem:[%s9200_s1 + $0xf8c] ss:$28 sps:$4 sm:$0xff]  }
 0x196   : > { %3284 = vmatprep.subr.bf16.mxu1 %v7198_v41 }
 0x197   : > { %3228 = vmatmul.mubr.bf16.vlgmr.msra.gmra.mrb[4].mxu0 %v7357_v43 }
 0x198   : > { %4570 = vmatpush1.bf16.msra.mxu0 %v6896_v9  ;;  %4601 = vmatprep.mubr.bf16.mxu0 %v8492_v12  ;;  %v5989_v9 = vcombine.low %v8478_v4, %v8465_v63  ;;  %v6982_v63 = vld [vmem:[%s9200_s1 + $0xe0c] ss:$28 sps:$4 sm:$0xff]  }
 0x199   : > { %3285 = vmatpush1.bf16.msra.mxu1 %v6899_v10  ;;  %4571 = vmatprep.subr.bf16.mxu0 %v6902_v11  ;;  %v8660_v10 = vld [vmem:[%s7335_s30 + $0x18] sm:$0x11]  ;;  %v6970_v11 = vld [vmem:[%s9200_s1 + $0xf88] ss:$28 sps:$4 sm:$0xff]  }
 0x19a   : > { %3286 = vmatprep.subr.bf16.mxu1 %v7198_v41  ;;  %v8675_v4 = vld [vmem:[%s7335_s30 + $0x8] sm:$0xff] }
 0x19b   : > { %v6212_v16 = vpop.f32.mrb[8].mxu1 }
 0x19c   : > { %v6213_v17 = vpop.f32.mrb[9].mxu1  ;;  %4572 = vmatpush1.bf16.msra.mxu0 %v6900_v13  ;;  %v6973_v13 = vld [vmem:[%s9200_s1 + $0xdd0] ss:$28 sps:$4 sm:$0xff]  }
 0x19d   : > { %v8506_v6 = vadd.f32 %v6213_v17, %v6212_v16  ;;  %v6215_v18 = vpop.f32.mrb[10].mxu1  ;;  %3287 = vmatpush1.bf16.msra.mxu1 %v6903_v14  ;;  %4573 = vmatprep.subr.bf16.mxu0 %v6906_v15  ;;  %v6979_v14 = vld [vmem:[%s9200_s1 + $0xfc4] ss:$28 sps:$4 sm:$0xff]   ;;  %v5992_v15 = vcombine.high %v8675_v4, %v8660_v10  ;;  %v8679_v16 = vrot.slane %v5989_v9, 1 }
 0x19e   : > { %v6216_v21 = vpop.f32.mrb[11].mxu1  ;;  %3288 = vmatprep.subr.bf16.mxu1 %v7198_v41  ;;  %v6977_v17 = vld [vmem:[%s9200_s1 + $0xfc0] ss:$28 sps:$4 sm:$0xff]   ;;  %v6980_v18 = vld [vmem:[%s9200_s1 + $0xe08] ss:$28 sps:$4 sm:$0xff]  }
 0x19f   : > { %v8693_v21 = vrot.slane %v5992_v15, 1  ;;  %v7066_v15 = vld [vmem:[%s9200_s1 + $0x111c] ss:$28 sps:$4 sm:$0xff]  }
 0x1a0   : > { %4574 = vmatpush1.bf16.msra.mxu0 %v6904_v19  ;;  %v6986_v19 = vld [vmem:[%s9200_s1 + $0xffc] ss:$28 sps:$4 sm:$0xff]  }
 0x1a1   : > { %3289 = vmatpush1.bf16.msra.mxu1 %v6907_v20  ;;  %4575 = vmatprep.subr.bf16.mxu0 %v6910_v22  ;;  %v6989_v20 = vld [vmem:[%s9200_s1 + $0xe44] ss:$28 sps:$4 sm:$0xff]   ;;  %v6984_v22 = vld [vmem:[%s9200_s1 + $0xff8] ss:$28 sps:$4 sm:$0xff]  }
 0x1a2   : > { %3290 = vmatprep.subr.bf16.mxu1 %v7198_v41 }
 0x1a4   : > { %4576 = vmatpush1.bf16.msra.mxu0 %v6908_v24  ;;  %v6987_v24 = vld [vmem:[%s9200_s1 + $0xe40] ss:$28 sps:$4 sm:$0xff]  }
 0x1a5   : > { %3291 = vmatpush1.bf16.msra.mxu1 %v6911_v0  ;;  %4577 = vmatprep.subr.bf16.mxu0 %v6914_v25  ;;  %v6992_v0 = vld [vmem:[%s9200_s1 + $0x1034] ss:$28 sps:$4 sm:$0xff]   ;;  %v6995_v25 = vld [vmem:[%s9200_s1 + $0xe7c] ss:$28 sps:$4 sm:$0xff]  }
 0x1a6   : > { %3292 = vmatprep.subr.bf16.mxu1 %v7198_v41 }
 0x1a8   : > { %4578 = vmatpush1.bf16.msra.mxu0 %v6912_v26  ;;  %v6990_v26 = vld [vmem:[%s9200_s1 + $0x1030] ss:$28 sps:$4 sm:$0xff]  }
 0x1a9   : > { %3293 = vmatpush1.bf16.msra.mxu1 %v6915_v27  ;;  %4579 = vmatprep.subr.bf16.mxu0 %v6918_v28  ;;  %v6993_v27 = vld [vmem:[%s9200_s1 + $0xe78] ss:$28 sps:$4 sm:$0xff]   ;;  %v6998_v28 = vld [vmem:[%s9200_s1 + $0x106c] ss:$28 sps:$4 sm:$0xff]  }
 0x1aa   : > { %3294 = vmatprep.subr.bf16.mxu1 %v7198_v41 }
 0x1ac   : > { %4580 = vmatpush1.bf16.msra.mxu0 %v6916_v29  ;;  %v7001_v29 = vld [vmem:[%s9200_s1 + $0xeb4] ss:$28 sps:$4 sm:$0xff]  }
 0x1ad   : > { %3295 = vmatpush1.bf16.msra.mxu1 %v6919_v30  ;;  %4581 = vmatprep.subr.bf16.mxu0 %v6922_v31  ;;  %v6996_v30 = vld [vmem:[%s9200_s1 + $0x1068] ss:$28 sps:$4 sm:$0xff]   ;;  %v6999_v31 = vld [vmem:[%s9200_s1 + $0xeb0] ss:$28 sps:$4 sm:$0xff]  }
 0x1ae   : > { %3296 = vmatprep.subr.bf16.mxu1 %v7198_v41 }
 0x1b0   : > { %4582 = vmatpush1.bf16.msra.mxu0 %v6920_v32  ;;  %v7004_v32 = vld [vmem:[%s9200_s1 + $0x10a4] ss:$28 sps:$4 sm:$0xff]  }
 0x1b1   : > { %3297 = vmatpush1.bf16.msra.mxu1 %v6923_v60  ;;  %4583 = vmatprep.subr.bf16.mxu0 %v6926_v33  ;;  %v7007_v60 = vld [vmem:[%s9200_s1 + $0xeec] ss:$28 sps:$4 sm:$0xff]   ;;  %v7002_v33 = vld [vmem:[%s9200_s1 + $0x10a0] ss:$28 sps:$4 sm:$0xff]  }
 0x1b2   : > { %3298 = vmatprep.subr.bf16.mxu1 %v7198_v41 }
 0x1b4   : > { %4584 = vmatpush1.bf16.msra.mxu0 %v6924_v34  ;;  %v7005_v34 = vld [vmem:[%s9200_s1 + $0xee8] ss:$28 sps:$4 sm:$0xff]  }
 0x1b5   : > { %3299 = vmatpush1.bf16.msra.mxu1 %v6927_v35  ;;  %4585 = vmatprep.subr.bf16.mxu0 %v6930_v36  ;;  %v7010_v35 = vld [vmem:[%s9200_s1 + $0x10dc] ss:$28 sps:$4 sm:$0xff]   ;;  %v7013_v36 = vld [vmem:[%s9200_s1 + $0xf24] ss:$28 sps:$4 sm:$0xff]  }
 0x1b6   : > { %4651 = vmatprep.subr.bf16.mxu1 %v6933_v37  ;;  %v7008_v37 = vld [vmem:[%s9200_s1 + $0x10d8] ss:$28 sps:$4 sm:$0xff]  }
 0x1b8   : > { %3309 = vmatmul.mubr.bf16.vlgmr.msra.gmra.mrb[12].mxu1 %v7357_v43  ;;  %4586 = vmatpush1.bf16.msra.mxu0 %v6928_v38  ;;  %v6945_v43 = vld [vmem:[%s9200_s1 + $0xcbc] ss:$28 sps:$4 sm:$0xff]  }
 0x1b9   : > { %4652 = vmatpush1.bf16.msra.mxu1 %v6931_v40  ;;  %4587 = vmatprep.subr.bf16.mxu0 %v6936_v42  ;;  %v7011_v38 = vld [vmem:[%s9200_s1 + $0xf20] ss:$28 sps:$4 sm:$0xff]   ;;  %v7016_v40 = vld [vmem:[%s9200_s1 + $0x1114] ss:$28 sps:$4 sm:$0xff]  }
 0x1ba   : > { %4653 = vmatprep.subr.bf16.mxu1 %v6939_v44  ;;  %4683 = vmatprep.mubr.bf16.mxu1 %v8492_v12  ;;  %v7019_v42 = vld [vmem:[%s9200_s1 + $0xf5c] ss:$28 sps:$4 sm:$0xff]   ;;  %v7014_v44 = vld [vmem:[%s9200_s1 + $0x1110] ss:$28 sps:$4 sm:$0xff]  }
 0x1bc   : > { %4588 = vmatpush1.bf16.msra.mxu0 %v6934_v45  ;;  %v7017_v45 = vld [vmem:[%s9200_s1 + $0xf58] ss:$28 sps:$4 sm:$0xff]  }
 0x1bd   : > { %4654 = vmatpush1.bf16.msra.mxu1 %v6937_v46  ;;  %4589 = vmatprep.subr.bf16.mxu0 %v6942_v23  ;;  %v7022_v46 = vld [vmem:[%s9200_s1 + $0x114c] ss:$28 sps:$4 sm:$0xff]   ;;  %v7025_v23 = vld [vmem:[%s9200_s1 + $0xf94] ss:$28 sps:$4 sm:$0xff]  }
 0x1be   : > { %4655 = vmatprep.subr.bf16.mxu1 %v6945_v43  ;;  %v7020_v43 = vld [vmem:[%s9200_s1 + $0x1148] ss:$28 sps:$4 sm:$0xff]  }
 0x1c0   : > { %4590 = vmatpush1.bf16.msra.mxu0 %v6940_v47  ;;  %v7023_v47 = vld [vmem:[%s9200_s1 + $0xf90] ss:$28 sps:$4 sm:$0xff]  }
 0x1c1   : > { %4656 = vmatpush1.bf16.msra.mxu1 %v6943_v49  ;;  %4591 = vmatprep.subr.bf16.mxu0 %v6948_v48  ;;  %v7028_v49 = vld [vmem:[%s9200_s1 + $0x1184] ss:$28 sps:$4 sm:$0xff]   ;;  %v7031_v48 = vld [vmem:[%s9200_s1 + $0xfcc] ss:$28 sps:$4 sm:$0xff]  }
 0x1c2   : > { %4657 = vmatprep.subr.bf16.mxu1 %v6951_v50  ;;  %v7026_v50 = vld [vmem:[%s9200_s1 + $0x1180] ss:$28 sps:$4 sm:$0xff]  }
 0x1c4   : > { %4592 = vmatpush1.bf16.msra.mxu0 %v6946_v51  ;;  %v7029_v51 = vld [vmem:[%s9200_s1 + $0xfc8] ss:$28 sps:$4 sm:$0xff]  }
 0x1c5   : > { %4658 = vmatpush1.bf16.msra.mxu1 %v6949_v52  ;;  %4593 = vmatprep.subr.bf16.mxu0 %v6954_v53  ;;  %v7034_v52 = vld [vmem:[%s9200_s1 + $0x11bc] ss:$28 sps:$4 sm:$0xff]   ;;  %v7037_v53 = vld [vmem:[%s9200_s1 + $0x1004] ss:$28 sps:$4 sm:$0xff]  }
 0x1c6   : > { %4659 = vmatprep.subr.bf16.mxu1 %v6957_v54  ;;  %v7032_v54 = vld [vmem:[%s9200_s1 + $0x11b8] ss:$28 sps:$4 sm:$0xff]  }
 0x1c8   : > { %4594 = vmatpush1.bf16.msra.mxu0 %v6952_v55  ;;  %v7035_v55 = vld [vmem:[%s9200_s1 + $0x1000] ss:$28 sps:$4 sm:$0xff]  }
 0x1c9   : > { %4660 = vmatpush1.bf16.msra.mxu1 %v6955_v56  ;;  %4595 = vmatprep.subr.bf16.mxu0 %v6960_v57  ;;  %v7040_v56 = vld [vmem:[%s9200_s1 + $0x11f4] ss:$28 sps:$4 sm:$0xff]   ;;  %v7043_v57 = vld [vmem:[%s9200_s1 + $0x103c] ss:$28 sps:$4 sm:$0xff]  }
 0x1ca   : > { %4661 = vmatprep.subr.bf16.mxu1 %v6963_v58  ;;  %v7038_v58 = vld [vmem:[%s9200_s1 + $0x11f0] ss:$28 sps:$4 sm:$0xff]  }
 0x1cc   : > { %4596 = vmatpush1.bf16.msra.mxu0 %v6958_v59  ;;  %v7041_v59 = vld [vmem:[%s9200_s1 + $0x1038] ss:$28 sps:$4 sm:$0xff]  }
 0x1cd   : > { %4662 = vmatpush1.bf16.msra.mxu1 %v6961_v8  ;;  %4597 = vmatprep.subr.bf16.mxu0 %v6966_v61  ;;  %v7046_v8 = vld [vmem:[%s9200_s1 + $0x122c] ss:$28 sps:$4 sm:$0xff]   ;;  %v7049_v61 = vld [vmem:[%s9200_s1 + $0x1074] ss:$28 sps:$4 sm:$0xff]  }
 0x1ce   : > { %4663 = vmatprep.subr.bf16.mxu1 %v6969_v62  ;;  %v5991_v62 = vcombine.low %v8675_v4, %v8660_v10  ;;  %v7052_v10 = vld [vmem:[%s9200_s1 + $0x10a8] ss:$28 sps:$4 sm:$0xff]  }
 0x1cf   : > { %v7061_v4 = vld [vmem:[%s9200_s1 + $0xc88] ss:$28 sps:$4 sm:$0xff]  }
 0x1d0   : > { %4598 = vmatpush1.bf16.msra.mxu0 %v6964_v39  ;;  %v7044_v39 = vld [vmem:[%s9200_s1 + $0x1228] ss:$28 sps:$4 sm:$0xff]   ;;  %v8835_v9 = vrot.slane %v5991_v62, 1 }
 0x1d1   : > { %4664 = vmatpush1.bf16.msra.mxu1 %v6967_v1  ;;  %4599 = vmatprep.subr.bf16.mxu0 %v6972_v3  ;;  %v7047_v1 = vld [vmem:[%s9200_s1 + $0x1070] ss:$28 sps:$4 sm:$0xff]   ;;  %v7125_v62 = vld [vmem:[%s9200_s1 + $0xf28] ss:$28 sps:$4 sm:$0xff]  }
 0x1d2   : > { %4665 = vmatprep.subr.bf16.mxu1 %v6975_v7  ;;  %v7054_v3 = vld [vmem:[%s9200_s1 + $0x10ac] ss:$28 sps:$4 sm:$0xff]   ;;  %v7057_v7 = vld [vmem:[%s9200_s1 + $0xc54] ss:$28 sps:$4 sm:$0xff]  }
 0x1d4   : > { %4600 = vmatpush1.bf16.msra.mxu0 %v6970_v11  ;;  %v7055_v11 = vld [vmem:[%s9200_s1 + $0xc50] ss:$28 sps:$4 sm:$0xff]  }
 0x1d5   : > { %4666 = vmatpush1.bf16.msra.mxu1 %v6973_v13  ;;  %4610 = vmatprep.subr.bf16.mxu0 %v6979_v14  ;;  %v7060_v13 = vld [vmem:[%s9200_s1 + $0x10e4] ss:$28 sps:$4 sm:$0xff]   ;;  %v7063_v14 = vld [vmem:[%s9200_s1 + $0xc8c] ss:$28 sps:$4 sm:$0xff]  }
 0x1d6   : > { %4667 = vmatprep.subr.bf16.mxu1 %v6982_v63  ;;  %v7058_v63 = vld [vmem:[%s9200_s1 + $0x10e0] ss:$28 sps:$4 sm:$0xff]  }
 0x1d7   : > { %4602 = vmatmul.mubr.bf16.vlgmr.msra.gmra.mrb[8].mxu0 %v8679_v16 }
 0x1d8   : > { %4611 = vmatpush1.bf16.msra.mxu0 %v6977_v17  ;;  %6189 = vmatprep.mubr.msk.bf16.mxu0 %vm1647_vm0, %v8693_v21  ;;  %v7069_v17 = vld [vmem:[%s9200_s1 + $0xcc4] ss:$28 sps:$4 sm:$0xff]  }
 0x1d9   : > { %4668 = vmatpush1.bf16.msra.mxu1 %v6980_v18  ;;  %4612 = vmatprep.subr.bf16.mxu0 %v6986_v19  ;;  %v7064_v18 = vld [vmem:[%s9200_s1 + $0x1118] ss:$28 sps:$4 sm:$0xff]   ;;  %v7067_v19 = vld [vmem:[%s9200_s1 + $0xcc0] ss:$28 sps:$4 sm:$0xff]  }
 0x1da   : > { %4669 = vmatprep.subr.bf16.mxu1 %v6989_v20  ;;  %v7072_v20 = vld [vmem:[%s9200_s1 + $0x1154] ss:$28 sps:$4 sm:$0xff]  }
 0x1dc   : > { %4613 = vmatpush1.bf16.msra.mxu0 %v6984_v22  ;;  %v7075_v22 = vld [vmem:[%s9200_s1 + $0xcfc] ss:$28 sps:$4 sm:$0xff]  }
 0x1dd   : > { %4670 = vmatpush1.bf16.msra.mxu1 %v6987_v24  ;;  %4614 = vmatprep.subr.bf16.mxu0 %v6992_v0  ;;  %v7070_v24 = vld [vmem:[%s9200_s1 + $0x1150] ss:$28 sps:$4 sm:$0xff]   ;;  %v7073_v0 = vld [vmem:[%s9200_s1 + $0xcf8] ss:$28 sps:$4 sm:$0xff]  }
 0x1de   : > { %4671 = vmatprep.subr.bf16.mxu1 %v6995_v25  ;;  %v7078_v25 = vld [vmem:[%s9200_s1 + $0x118c] ss:$28 sps:$4 sm:$0xff]  }
 0x1e0   : > { %4615 = vmatpush1.bf16.msra.mxu0 %v6990_v26  ;;  %v7081_v26 = vld [vmem:[%s9200_s1 + $0xd34] ss:$28 sps:$4 sm:$0xff]  }
 0x1e1   : > { %4672 = vmatpush1.bf16.msra.mxu1 %v6993_v27  ;;  %4616 = vmatprep.subr.bf16.mxu0 %v6998_v28  ;;  %v7076_v27 = vld [vmem:[%s9200_s1 + $0x1188] ss:$28 sps:$4 sm:$0xff]   ;;  %v7079_v28 = vld [vmem:[%s9200_s1 + $0xd30] ss:$28 sps:$4 sm:$0xff]  }
 0x1e2   : > { %4673 = vmatprep.subr.bf16.mxu1 %v7001_v29  ;;  %v7084_v29 = vld [vmem:[%s9200_s1 + $0x11c4] ss:$28 sps:$4 sm:$0xff]  }
 0x1e4   : > { %4617 = vmatpush1.bf16.msra.mxu0 %v6996_v30  ;;  %v7087_v30 = vld [vmem:[%s9200_s1 + $0xd6c] ss:$28 sps:$4 sm:$0xff]  }
 0x1e5   : > { %4674 = vmatpush1.bf16.msra.mxu1 %v6999_v31  ;;  %4618 = vmatprep.subr.bf16.mxu0 %v7004_v32  ;;  %v7082_v31 = vld [vmem:[%s9200_s1 + $0x11c0] ss:$28 sps:$4 sm:$0xff]   ;;  %v7085_v32 = vld [vmem:[%s9200_s1 + $0xd68] ss:$28 sps:$4 sm:$0xff]  }
 0x1e6   : > { %4675 = vmatprep.subr.bf16.mxu1 %v7007_v60  ;;  %v7090_v60 = vld [vmem:[%s9200_s1 + $0x11fc] ss:$28 sps:$4 sm:$0xff]  }
 0x1e8   : > { %4619 = vmatpush1.bf16.msra.mxu0 %v7002_v33  ;;  %v7093_v33 = vld [vmem:[%s9200_s1 + $0xda4] ss:$28 sps:$4 sm:$0xff]  }
 0x1e9   : > { %4676 = vmatpush1.bf16.msra.mxu1 %v7005_v34  ;;  %4620 = vmatprep.subr.bf16.mxu0 %v7010_v35  ;;  %v7088_v34 = vld [vmem:[%s9200_s1 + $0x11f8] ss:$28 sps:$4 sm:$0xff]   ;;  %v7091_v35 = vld [vmem:[%s9200_s1 + $0xda0] ss:$28 sps:$4 sm:$0xff]  }
 0x1ea   : > { %4677 = vmatprep.subr.bf16.mxu1 %v7013_v36  ;;  %v7096_v36 = vld [vmem:[%s9200_s1 + $0x1234] ss:$28 sps:$4 sm:$0xff]  }
 0x1ec   : > { %4621 = vmatpush1.bf16.msra.mxu0 %v7008_v37  ;;  %v7099_v37 = vld [vmem:[%s9200_s1 + $0xddc] ss:$28 sps:$4 sm:$0xff]  }
 0x1ed   : > { %4678 = vmatpush1.bf16.msra.mxu1 %v7011_v38  ;;  %4622 = vmatprep.subr.bf16.mxu0 %v7016_v40  ;;  %v7094_v38 = vld [vmem:[%s9200_s1 + $0x1230] ss:$28 sps:$4 sm:$0xff]   ;;  %v7097_v40 = vld [vmem:[%s9200_s1 + $0xdd8] ss:$28 sps:$4 sm:$0xff]  }
 0x1ee   : > { %4679 = vmatprep.subr.bf16.mxu1 %v7019_v42  ;;  %v7102_v42 = vld [vmem:[%s9200_s1 + $0xe14] ss:$28 sps:$4 sm:$0xff]  }
 0x1f0   : > { %4623 = vmatpush1.bf16.msra.mxu0 %v7014_v44  ;;  %v7103_v44 = vld [vmem:[%s9200_s1 + $0xe18] ss:$28 sps:$4 sm:$0xff]  }
 0x1f1   : > { %4680 = vmatpush1.bf16.msra.mxu1 %v7017_v45  ;;  %4624 = vmatprep.subr.bf16.mxu0 %v7022_v46  ;;  %v7100_v45 = vld [vmem:[%s9200_s1 + $0xe10] ss:$28 sps:$4 sm:$0xff]   ;;  %v7104_v46 = vld [vmem:[%s9200_s1 + $0xc58] ss:$28 sps:$4 sm:$0xff]  }
 0x1f2   : > { %4681 = vmatprep.subr.bf16.mxu1 %v7025_v23  ;;  %v7107_v23 = vld [vmem:[%s9200_s1 + $0xe4c] ss:$28 sps:$4 sm:$0xff]  }
 0x1f4   : > { %4625 = vmatpush1.bf16.msra.mxu0 %v7020_v43  ;;  %v7108_v43 = vld [vmem:[%s9200_s1 + $0xe50] ss:$28 sps:$4 sm:$0xff]  }
 0x1f5   : > { %4682 = vmatpush1.bf16.msra.mxu1 %v7023_v47  ;;  %4626 = vmatprep.subr.bf16.mxu0 %v7028_v49  ;;  %v7105_v47 = vld [vmem:[%s9200_s1 + $0xe48] ss:$28 sps:$4 sm:$0xff]   ;;  %v7109_v49 = vld [vmem:[%s9200_s1 + $0xc90] ss:$28 sps:$4 sm:$0xff]  }
 0x1f6   : > { %4692 = vmatprep.subr.bf16.mxu1 %v7031_v48  ;;  %v7112_v48 = vld [vmem:[%s9200_s1 + $0xe84] ss:$28 sps:$4 sm:$0xff]  }
 0x1f8   : > { %4684 = vmatmul.mubr.bf16.vlgmr.msra.gmra.mrb[4].mxu1 %v8679_v16  ;;  %4627 = vmatpush1.bf16.msra.mxu0 %v7026_v50  ;;  %v7113_v50 = vld [vmem:[%s9200_s1 + $0xe88] ss:$28 sps:$4 sm:$0xff]  }
 0x1f9   : > { %4693 = vmatpush1.bf16.msra.mxu1 %v7029_v51  ;;  %4628 = vmatprep.subr.bf16.mxu0 %v7034_v52  ;;  %v7110_v51 = vld [vmem:[%s9200_s1 + $0xe80] ss:$28 sps:$4 sm:$0xff]   ;;  %v7114_v52 = vld [vmem:[%s9200_s1 + $0xcc8] ss:$28 sps:$4 sm:$0xff]  }
 0x1fa   : > { %4694 = vmatprep.subr.bf16.mxu1 %v7037_v53  ;;  %6190 = vmatprep.mubr.msk.bf16.mxu1 %vm1647_vm0, %v8693_v21  ;;  %v7117_v53 = vld [vmem:[%s9200_s1 + $0xebc] ss:$28 sps:$4 sm:$0xff]  }
 0x1fc   : > { %4629 = vmatpush1.bf16.msra.mxu0 %v7032_v54  ;;  %v7115_v54 = vld [vmem:[%s9200_s1 + $0xeb8] ss:$28 sps:$4 sm:$0xff]  }
 0x1fd   : > { %4695 = vmatpush1.bf16.msra.mxu1 %v7035_v55  ;;  %4630 = vmatprep.subr.bf16.mxu0 %v7040_v56  ;;  %v7119_v55 = vld [vmem:[%s9200_s1 + $0xd00] ss:$28 sps:$4 sm:$0xff]   ;;  %v7122_v56 = vld [vmem:[%s9200_s1 + $0xef4] ss:$28 sps:$4 sm:$0xff]  }
 0x1fe   : > { %4696 = vmatprep.subr.bf16.mxu1 %v7043_v57  ;;  %v7123_v57 = vld [vmem:[%s9200_s1 + $0xef8] ss:$28 sps:$4 sm:$0xff]  }
 0x200   : > { %4631 = vmatpush1.bf16.msra.mxu0 %v7038_v58  ;;  %v7120_v58 = vld [vmem:[%s9200_s1 + $0xef0] ss:$28 sps:$4 sm:$0xff]  }
 0x201   : > { %4697 = vmatpush1.bf16.msra.mxu1 %v7041_v59  ;;  %4632 = vmatprep.subr.bf16.mxu0 %v7046_v8  ;;  %v7124_v59 = vld [vmem:[%s9200_s1 + $0xd38] ss:$28 sps:$4 sm:$0xff]   ;;  %v7127_v8 = vld [vmem:[%s9200_s1 + $0xf2c] ss:$28 sps:$4 sm:$0xff]  }
 0x202   : > { %4698 = vmatprep.subr.bf16.mxu1 %v7049_v61  ;;  %v7128_v61 = vld [vmem:[%s9200_s1 + $0xf30] ss:$28 sps:$4 sm:$0xff]  }
 0x204   : > { %4633 = vmatpush1.bf16.msra.mxu0 %v7044_v39  ;;  %v7129_v39 = vld [vmem:[%s9200_s1 + $0xd70] ss:$28 sps:$4 sm:$0xff]  }
 0x205   : > { %4699 = vmatpush1.bf16.msra.mxu1 %v7047_v1  ;;  %4733 = vmatprep.subr.bf16.mxu0 %v7057_v7  ;;  %v7132_v1 = vld [vmem:[%s9200_s1 + $0xf64] ss:$28 sps:$4 sm:$0xff]  }
 0x206   : > { %4700 = vmatprep.subr.bf16.mxu1 %v7054_v3  ;;  %v7133_v3 = vld [vmem:[%s9200_s1 + $0xf68] ss:$28 sps:$4 sm:$0xff]   ;;  %v7130_v7 = vld [vmem:[%s9200_s1 + $0xf60] ss:$28 sps:$4 sm:$0xff]  }
 0x207   : > { %4643 = vmatmul.mubr.bf16.vlgmr.msra.gmra.mrb[8].mxu0 %v8835_v9 }
 0x208   : > { %4734 = vmatpush1.bf16.msra.mxu0 %v7055_v11  ;;  %4765 = vmatprep.mubr.bf16.mxu0 %v8492_v12  ;;  %v7137_v11 = vld [vmem:[%s9200_s1 + $0xf9c] ss:$28 sps:$4 sm:$0xff]  }
 0x209   : > { %4701 = vmatpush1.bf16.msra.mxu1 %v7052_v10  ;;  %4735 = vmatprep.subr.bf16.mxu0 %v7063_v14  ;;  %v7134_v10 = vld [vmem:[%s9200_s1 + $0xda8] ss:$28 sps:$4 sm:$0xff]   ;;  %v7135_v14 = vld [vmem:[%s9200_s1 + $0xf98] ss:$28 sps:$4 sm:$0xff]  }
 0x20a   : > { %4702 = vmatprep.subr.bf16.mxu1 %v7060_v13  ;;  %v7138_v13 = vld [vmem:[%s9200_s1 + $0xfa0] ss:$28 sps:$4 sm:$0xff]  }
 0x20c   : > { %4736 = vmatpush1.bf16.msra.mxu0 %v7061_v4  ;;  %v7142_v4 = vld [vmem:[%s9200_s1 + $0xfd4] ss:$28 sps:$4 sm:$0xff]  }
 0x20d   : > { %4703 = vmatpush1.bf16.msra.mxu1 %v7058_v63  ;;  %4737 = vmatprep.subr.bf16.mxu0 %v7069_v17  ;;  %v7139_v63 = vld [vmem:[%s9200_s1 + $0xde0] ss:$28 sps:$4 sm:$0xff]   ;;  %v7143_v17 = vld [vmem:[%s9200_s1 + $0xfd8] ss:$28 sps:$4 sm:$0xff]  }
 0x20e   : > { %4704 = vmatprep.subr.bf16.mxu1 %v7066_v15  ;;  %v7140_v15 = vld [vmem:[%s9200_s1 + $0xfd0] ss:$28 sps:$4 sm:$0xff]  }
 0x210   : > { %4738 = vmatpush1.bf16.msra.mxu0 %v7067_v19  ;;  %v7144_v19 = vld [vmem:[%s9200_s1 + $0x1008] ss:$28 sps:$4 sm:$0xff]  }
 0x211   : > { %4705 = vmatpush1.bf16.msra.mxu1 %v7064_v18  ;;  %4739 = vmatprep.subr.bf16.mxu0 %v7075_v22  ;;  %v7146_v18 = vld [vmem:[%s9200_s1 + $0x100c] ss:$28 sps:$4 sm:$0xff]   ;;  %v7150_v22 = vld [vmem:[%s9200_s1 + $0x1044] ss:$28 sps:$4 sm:$0xff]  }
 0x212   : > { %4706 = vmatprep.subr.bf16.mxu1 %v7072_v20  ;;  %v7147_v20 = vld [vmem:[%s9200_s1 + $0x1010] ss:$28 sps:$4 sm:$0xff]  }
 0x214   : > { %4740 = vmatpush1.bf16.msra.mxu0 %v7073_v0  ;;  %v7154_v0 = vld [vmem:[%s9200_s1 + $0x107c] ss:$28 sps:$4 sm:$0xff]  }
 0x215   : > { %4707 = vmatpush1.bf16.msra.mxu1 %v7070_v24  ;;  %4741 = vmatprep.subr.bf16.mxu0 %v7081_v26  ;;  %v7151_v24 = vld [vmem:[%s9200_s1 + $0x1048] ss:$28 sps:$4 sm:$0xff]   ;;  %v7158_v26 = vld [vmem:[%s9200_s1 + $0x10b4] ss:$28 sps:$4 sm:$0xff]  }
 0x216   : > { %4708 = vmatprep.subr.bf16.mxu1 %v7078_v25  ;;  %v7155_v25 = vld [vmem:[%s9200_s1 + $0x1080] ss:$28 sps:$4 sm:$0xff]  }
 0x218   : > { %4742 = vmatpush1.bf16.msra.mxu0 %v7079_v28  ;;  %v7159_v28 = vld [vmem:[%s9200_s1 + $0x10b8] ss:$28 sps:$4 sm:$0xff]  }
 0x219   : > { %4709 = vmatpush1.bf16.msra.mxu1 %v7076_v27  ;;  %4743 = vmatprep.subr.bf16.mxu0 %v7087_v30  ;;  %v7156_v27 = vld [vmem:[%s9200_s1 + $0x10b0] ss:$28 sps:$4 sm:$0xff]   ;;  %v7160_v30 = vld [vmem:[%s9200_s1 + $0x10e8] ss:$28 sps:$4 sm:$0xff]  }
 0x21a   : > { %4710 = vmatprep.subr.bf16.mxu1 %v7084_v29  ;;  %v7162_v29 = vld [vmem:[%s9200_s1 + $0x10ec] ss:$28 sps:$4 sm:$0xff]  }
 0x21c   : > { %4744 = vmatpush1.bf16.msra.mxu0 %v7085_v32  ;;  %v7166_v32 = vld [vmem:[%s9200_s1 + $0x1124] ss:$28 sps:$4 sm:$0xff]  }
 0x21d   : > { %4711 = vmatpush1.bf16.msra.mxu1 %v7082_v31  ;;  %4745 = vmatprep.subr.bf16.mxu0 %v7093_v33  ;;  %v7163_v31 = vld [vmem:[%s9200_s1 + $0x10f0] ss:$28 sps:$4 sm:$0xff]  }
 0x21e   : > { %4712 = vmatprep.subr.bf16.mxu1 %v7090_v60 }
 0x220   : > { %4746 = vmatpush1.bf16.msra.mxu0 %v7091_v35 }
 0x221   : > { %4713 = vmatpush1.bf16.msra.mxu1 %v7088_v34  ;;  %4747 = vmatprep.subr.bf16.mxu0 %v7099_v37  ;;  %v7167_v37 = vld [vmem:[%s9200_s1 + $0x1128] ss:$28 sps:$4 sm:$0xff]  }
 0x222   : > { %4714 = vmatprep.subr.bf16.mxu1 %v7096_v36  ;;  %v7164_v36 = vld [vmem:[%s9200_s1 + $0x1120] ss:$28 sps:$4 sm:$0xff]  }
 0x224   : > { %4748 = vmatpush1.bf16.msra.mxu0 %v7097_v40  ;;  %v7170_v40 = vld [vmem:[%s9200_s1 + $0x115c] ss:$28 sps:$4 sm:$0xff]  }
 0x225   : > { %4715 = vmatpush1.bf16.msra.mxu1 %v7094_v38  ;;  %4749 = vmatprep.subr.bf16.mxu0 %v7102_v42 }
 0x226   : > { %6240 = vmatprep.subr.bf16.mxu1 %v7103_v44  ;;  %v7168_v44 = vld [vmem:[%s9200_s1 + $0x1158] ss:$28 sps:$4 sm:$0xff]  }
 0x228   : > { %4725 = vmatmul.mubr.bf16.vlgmr.msra.gmra.mrb[4].mxu1 %v8835_v9  ;;  %4750 = vmatpush1.bf16.msra.mxu0 %v7100_v45  ;;  %v7171_v45 = vld [vmem:[%s9200_s1 + $0x1160] ss:$28 sps:$4 sm:$0xff]  }
 0x229   : > { %6241 = vmatpush3.bf16.msra.mxu1 %v7104_v46  ;;  %4751 = vmatprep.subr.bf16.mxu0 %v7107_v23  ;;  %v7174_v46 = vld [vmem:[%s9200_s1 + $0x1194] ss:$28 sps:$4 sm:$0xff]  }
 0x22a   : > { %6242 = vmatprep.subr.bf16.mxu1 %v7108_v43  ;;  %4847 = vmatprep.mubr.bf16.mxu1 %v8492_v12  ;;  %v7118_v12 = vld [vmem:[%s9200_s1 + $0xec0] ss:$28 sps:$4 sm:$0xff]   ;;  %v7175_v23 = vld [vmem:[%s9200_s1 + $0x1198] ss:$28 sps:$4 sm:$0xff]   ;;  %v7178_v43 = vld [vmem:[%s9200_s1 + $0x11cc] ss:$28 sps:$4 sm:$0xff]  }
 0x22c   : > { %4752 = vmatpush1.bf16.msra.mxu0 %v7105_v47  ;;  %v7176_v47 = vld [vmem:[%s9200_s1 + $0x11c8] ss:$28 sps:$4 sm:$0xff]  }
 0x22d   : > { %6243 = vmatpush3.bf16.msra.mxu1 %v7109_v49  ;;  %4753 = vmatprep.subr.bf16.mxu0 %v7112_v48  ;;  %v7179_v49 = vld [vmem:[%s9200_s1 + $0x11d0] ss:$28 sps:$4 sm:$0xff]   ;;  %v7182_v48 = vld [vmem:[%s9200_s1 + $0x1204] ss:$28 sps:$4 sm:$0xff]  }
 0x22e   : > { %6244 = vmatprep.subr.bf16.mxu1 %v7113_v50  ;;  %v7180_v50 = vld [vmem:[%s9200_s1 + $0x1200] ss:$28 sps:$4 sm:$0xff]  }
 0x230   : > { %4754 = vmatpush1.bf16.msra.mxu0 %v7110_v51  ;;  %v7183_v51 = vld [vmem:[%s9200_s1 + $0x1208] ss:$28 sps:$4 sm:$0xff]  }
 0x231   : > { %6245 = vmatpush3.bf16.msra.mxu1 %v7114_v52  ;;  %4755 = vmatprep.subr.bf16.mxu0 %v7117_v53  ;;  %v7186_v52 = vld [vmem:[%s9200_s1 + $0x123c] ss:$28 sps:$4 sm:$0xff]  }
 0x232   : > { %6246 = vmatprep.subr.bf16.mxu1 %v7118_v12  ;;  %v7184_v53 = vld [vmem:[%s9200_s1 + $0x1238] ss:$28 sps:$4 sm:$0xff]   ;;  %v7187_v12 = vld [vmem:[%s9200_s1 + $0x1240] ss:$28 sps:$4 sm:$0xff]  }
 0x234   : > { %4756 = vmatpush1.bf16.msra.mxu0 %v7115_v54 }
 0x235   : > { %6247 = vmatpush3.bf16.msra.mxu1 %v7119_v55  ;;  %4757 = vmatprep.subr.bf16.mxu0 %v7122_v56 }
 0x236   : > { %6248 = vmatprep.subr.bf16.mxu1 %v7123_v57 }
 0x238   : > { %4758 = vmatpush1.bf16.msra.mxu0 %v7120_v58 }
 0x239   : > { %6249 = vmatpush3.bf16.msra.mxu1 %v7124_v59  ;;  %4759 = vmatprep.subr.bf16.mxu0 %v7127_v8 }
 0x23a   : > { %6250 = vmatprep.subr.bf16.mxu1 %v7128_v61 }
 0x23c   : > { %4760 = vmatpush1.bf16.msra.mxu0 %v7125_v62 }
 0x23d   : > { %6251 = vmatpush3.bf16.msra.mxu1 %v7129_v39  ;;  %4761 = vmatprep.subr.bf16.mxu0 %v7132_v1 }
 0x23e   : > { %6252 = vmatprep.subr.bf16.mxu1 %v7133_v3 }
 0x240   : > { %4762 = vmatpush1.bf16.msra.mxu0 %v7130_v7 }
 0x241   : > { %6253 = vmatpush3.bf16.msra.mxu1 %v7134_v10  ;;  %4763 = vmatprep.subr.bf16.mxu0 %v7137_v11 }
 0x242   : > { %6254 = vmatprep.subr.bf16.mxu1 %v7138_v13 }
 0x244   : > { %4764 = vmatpush1.bf16.msra.mxu0 %v7135_v14 }
 0x245   : > { %6255 = vmatpush3.bf16.msra.mxu1 %v7139_v63  ;;  %4774 = vmatprep.subr.bf16.mxu0 %v7142_v4 }
 0x246   : > { %4855 = vmatprep.subr.bf16.mxu1 %v7198_v41 }
 0x247   : > { %4766 = vmatmul.mubr.bf16.vlgmr.msra.gmra.mrb[4].mxu0 %v8679_v16 }
 0x248   : > { %4848 = vmatmul.mubr.bf16.vlgmr.msra.gmra.mrb[20].mxu1 %v8679_v16  ;;  %4775 = vmatpush1.bf16.msra.mxu0 %v7140_v15  ;;  %v7148_v16 = vld [vmem:[%s9200_s1 + $0x1040] ss:$28 sps:$4 sm:$0xff]  }
 0x249   : > { %4856 = vmatpush1.bf16.msra.mxu1 %v7143_v17  ;;  %4776 = vmatprep.subr.bf16.mxu0 %v7146_v18 }
 0x24a   : > { %4857 = vmatprep.subr.bf16.mxu1 %v7198_v41  ;;  %6191 = vmatprep.mubr.msk.bf16.mxu0 %vm1647_vm0, %v8693_v21 }
 0x24b   : > { %6192 = vmatprep.mubr.msk.bf16.mxu1 %vm1647_vm0, %v8693_v21  ;;  %v7152_v21 = vld [vmem:[%s9200_s1 + $0x1078] ss:$28 sps:$4 sm:$0xff]  }
 0x24c   : > { %4777 = vmatpush1.bf16.msra.mxu0 %v7144_v19 }
 0x24d   : > { %4858 = vmatpush1.bf16.msra.mxu1 %v7147_v20  ;;  %4778 = vmatprep.subr.bf16.mxu0 %v7150_v22 }
 0x24e   : > { %4859 = vmatprep.subr.bf16.mxu1 %v7198_v41 }
 0x250   : > { %4779 = vmatpush1.bf16.msra.mxu0 %v7148_v16 }
 0x251   : > { %4860 = vmatpush1.bf16.msra.mxu1 %v7151_v24  ;;  %4780 = vmatprep.subr.bf16.mxu0 %v7154_v0 }
 0x252   : > { %4861 = vmatprep.subr.bf16.mxu1 %v7198_v41 }
 0x254   : > { %4781 = vmatpush1.bf16.msra.mxu0 %v7152_v21 }
 0x255   : > { %4862 = vmatpush1.bf16.msra.mxu1 %v7155_v25  ;;  %4782 = vmatprep.subr.bf16.mxu0 %v7158_v26 }
 0x256   : > { %4863 = vmatprep.subr.bf16.mxu1 %v7198_v41 }
 0x258   : > { %4783 = vmatpush1.bf16.msra.mxu0 %v7156_v27 }
 0x259   : > { %4864 = vmatpush1.bf16.msra.mxu1 %v7159_v28  ;;  %4784 = vmatprep.subr.bf16.mxu0 %v7162_v29 }
 0x25a   : > { %4865 = vmatprep.subr.bf16.mxu1 %v7198_v41 }
 0x25b   : > { %v6234_v60 = vpop.f32.mrb[16].mxu1 }
 0x25c   : > { %v6235_v33 = vpop.f32.mrb[17].mxu1  ;;  %4785 = vmatpush1.bf16.msra.mxu0 %v7160_v30 }
 0x25d   : > { %v6236_v34 = vadd.f32 %v6235_v33, %v6234_v60  ;;  %v6237_v35 = vpop.f32.mrb[18].mxu1  ;;  %4866 = vmatpush1.bf16.msra.mxu1 %v7163_v31  ;;  %4786 = vmatprep.subr.bf16.mxu0 %v7166_v32 }
 0x25e   : > { %v6238_v38 = vpop.f32.mrb[19].mxu1  ;;  %4867 = vmatprep.subr.bf16.mxu1 %v7198_v41 }
 0x25f   : > { %v9107_v42 = vadd.f32 %v6236_v34, %v8506_v6  ;;  %v7172_v6 = vld [vmem:[%s9200_s1 + $0x1190] ss:$28 sps:$4 sm:$0xff]  }
 0x260   : > { %4787 = vmatpush1.bf16.msra.mxu0 %v7164_v36 }
 0x261   : > { %4868 = vmatpush1.bf16.msra.mxu1 %v7167_v37  ;;  %4788 = vmatprep.subr.bf16.mxu0 %v7170_v40 }
 0x262   : > { %4869 = vmatprep.subr.bf16.mxu1 %v7198_v41 }
 0x264   : > { %4789 = vmatpush1.bf16.msra.mxu0 %v7168_v44 }
 0x265   : > { %4870 = vmatpush1.bf16.msra.mxu1 %v7171_v45  ;;  %4790 = vmatprep.subr.bf16.mxu0 %v7174_v46 }
 0x266   : > { %4871 = vmatprep.subr.bf16.mxu1 %v7198_v41 }
 0x268   : > { %4791 = vmatpush1.bf16.msra.mxu0 %v7172_v6 }
 0x269   : > { %4872 = vmatpush1.bf16.msra.mxu1 %v7175_v23  ;;  %4792 = vmatprep.subr.bf16.mxu0 %v7178_v43 }
 0x26a   : > { %4873 = vmatprep.subr.bf16.mxu1 %v7198_v41 }
 0x26c   : > { %4793 = vmatpush1.bf16.msra.mxu0 %v7176_v47 }
 0x26d   : > { %4874 = vmatpush1.bf16.msra.mxu1 %v7179_v49  ;;  %4794 = vmatprep.subr.bf16.mxu0 %v7182_v48 }
 0x26e   : > { %4875 = vmatprep.subr.bf16.mxu1 %v7198_v41 }
 0x270   : > { %4795 = vmatpush1.bf16.msra.mxu0 %v7180_v50 }
 0x271   : > { %4876 = vmatpush1.bf16.msra.mxu1 %v7183_v51  ;;  %4796 = vmatprep.subr.bf16.mxu0 %v7186_v52  ;;  %v7199_v51 = vmov 1983009808  }
 0x272   : > { %4877 = vmatprep.subr.bf16.mxu1 %v7198_v41  ;;  %v5040_v52 = vunpack.c.l.s4 %v7199_v51 }
 0x274   : > { %4797 = vmatpush1.bf16.msra.mxu0 %v7184_v53  ;;  %v5042_v53 = vlaneseq }
 0x275   : > { %4878 = vmatpush1.bf16.msra.mxu1 %v7187_v12 }
 0x277   : > { %4807 = vmatmul.mubr.bf16.vlgmr.msra.gmra.mrb[4].mxu0 %v8835_v9 }
 0x278   : > { %4888 = vmatmul.mubr.bf16.vlgmr.msra.gmra.mrb[12].mxu1 %v8835_v9 }
 0x2da   : > { %v4644_v54 = vpop.f32.mrb[8].mxu0 }
 0x2db   : > { %v6263_v55 = vadd.f32 %v4644_v54, %v8111_v2  ;;  %v4646_v56 = vpop.f32.mrb[9].mxu0 }
 0x2dc   : > { %v6265_v57 = vadd.f32 %v4646_v56, %v8116_v5  ;;  %v4648_v58 = vpop.f32.mrb[10].mxu0 }
 0x2dd   : > { %v4903_v59 = vsel %vm4902_vm1, %v6263_v55, 0.0  ;;  %v4959_v8 = vmul.f32 %v6263_v55, %v6263_v55  ;;  %v4649_v61 = vpop.f32.mrb[11].mxu0 }
 0x2de   : > { %v4904_v62 = vrot.slane %v4903_v59, 4  ;;  %v4910_v41 = vsel %vm4902_vm1, %v6265_v57, 0.0  ;;  %v4960_v39 = vmul.f32 %v6265_v57, %v6265_v57  ;;  %v5041_v61 = vunpack.c.0.s8 %v5040_v52 }
 0x2df   : > { %v4966_v1 = vsel %vm4902_vm1, %v4959_v8, 0.0  ;;  %v4911_v3 = vrot.slane %v4910_v41, 4 }
 0x2e0   : > { %v4905_v9 = vadd.f32 %v4904_v62, %v4903_v59  ;;  %v4967_v7 = vrot.slane %v4966_v1, 4  ;;  %v4973_v10 = vsel %vm4902_vm1, %v4960_v39, 0.0  ;;  %v5043_v62 = vshrl.u32 %v5042_v53, 7 }
 0x2e1   : > { %v4912_v2 = vadd.f32 %v4911_v3, %v4910_v41  ;;  %v4974_v11 = vrot.slane %v4973_v10, 4 }
 0x2e2   : > { %v4906_v13 = vrot.slane %v4905_v9, 2  ;;  %v4968_v5 = vadd.f32 %v4967_v7, %v4966_v1 }
 0x2e3   : > { %v4913_v14 = vrot.slane %v4912_v2, 2  ;;  %v4975_v63 = vadd.f32 %v4974_v11, %v4973_v10  ;;  %v9170_v10 = vsub.s32 %v5041_v61, %v5043_v62 }
 0x2e4   : > { %v4907_v4 = vadd.f32 %v4906_v13, %v4905_v9  ;;  %v4969_v15 = vrot.slane %v4968_v5, 2 }
 0x2e5   : > { %v4914_v17 = vadd.f32 %v4913_v14, %v4912_v2  ;;  %v4976_v18 = vrot.slane %v4975_v63, 2 }
 0x2e6   : > { %v4908_v19 = vrot.slane %v4907_v4, 1  ;;  %v4970_v20 = vadd.f32 %v4969_v15, %v4968_v5 }
 0x2e7   : > { %v4915_v22 = vrot.slane %v4914_v17, 1  ;;  %v4977_v16 = vadd.f32 %v4976_v18, %v4975_v63 }
 0x2e8   : > { %v4971_v24 = vrot.slane %v4970_v20, 1  ;;  %v4909_v21 = vadd.f32 %v4908_v19, %v4907_v4 }
 0x2e9   : > { %v4978_v0 = vrot.slane %v4977_v16, 1  ;;  %v4916_v26 = vadd.f32 %v4915_v22, %v4914_v17 }
 0x2ea   : > { %v4972_v25 = vadd.f32 %v4971_v24, %v4970_v20 }
 0x2eb   : > { %v4979_v27 = vadd.f32 %v4978_v0, %v4977_v16 }
 0x2ec   : > { %v5023_v28 = vsel %vm5022_vm2, %v4909_v21, %v4972_v25 }
 0x2ed   : > { %v5024_v29 = vsel %vm5022_vm2, %v4916_v26, %v4979_v27 }
 0x2ee   : > { %v5037_v30 = vcombine.low %v5023_v28, %v5024_v29 }
 0x2f0   : > { %v5045_v5 = vrot.slane %v5037_v30, %v9170_v10 }
 0x2fb   : > { %v4726_v31 = vpop.f32.mrb[4].mxu1 }
 0x2fc   : > { %v4917_v32 = vsel %vm4902_vm1, %v4726_v31, 0.0  ;;  %v4961_v60 = vmul.f32 %v4726_v31, %v4726_v31  ;;  %v4728_v33 = vpop.f32.mrb[5].mxu1 }
 0x2fd   : > { %v4918_v34 = vrot.slane %v4917_v32, 4  ;;  %v4924_v35 = vsel %vm4902_vm1, %v4728_v33, 0.0  ;;  %v4962_v36 = vmul.f32 %v4728_v33, %v4728_v33  ;;  %v4730_v37 = vpop.f32.mrb[6].mxu1 }
 0x2fe   : > { %v4980_v38 = vsel %vm4902_vm1, %v4961_v60, 0.0  ;;  %v4925_v40 = vrot.slane %v4924_v35, 4  ;;  %v4731_v44 = vpop.f32.mrb[7].mxu1 }
 0x2ff   : > { %v4919_v45 = vadd.f32 %v4918_v34, %v4917_v32  ;;  %v4981_v46 = vrot.slane %v4980_v38, 4  ;;  %v4987_v6 = vsel %vm4902_vm1, %v4962_v36, 0.0 }
 0x300   : > { %v4926_v23 = vadd.f32 %v4925_v40, %v4924_v35  ;;  %v4988_v43 = vrot.slane %v4987_v6, 4 }
 0x301   : > { %v4920_v47 = vrot.slane %v4919_v45, 2  ;;  %v4982_v49 = vadd.f32 %v4981_v46, %v4980_v38 }
 0x302   : > { %v4927_v48 = vrot.slane %v4926_v23, 2  ;;  %v4989_v50 = vadd.f32 %v4988_v43, %v4987_v6 }
 0x303   : > { %v4921_v12 = vadd.f32 %v4920_v47, %v4919_v45  ;;  %v4983_v54 = vrot.slane %v4982_v49, 2 }
 0x304   : > { %v4928_v55 = vadd.f32 %v4927_v48, %v4926_v23  ;;  %v4990_v56 = vrot.slane %v4989_v50, 2 }
 0x305   : > { %v4922_v57 = vrot.slane %v4921_v12, 1  ;;  %v4984_v58 = vadd.f32 %v4983_v54, %v4982_v49 }
 0x306   : > { %v4929_v59 = vrot.slane %v4928_v55, 1  ;;  %v4991_v8 = vadd.f32 %v4990_v56, %v4989_v50 }
 0x307   : > { %v4985_v41 = vrot.slane %v4984_v58, 1  ;;  %v4923_v1 = vadd.f32 %v4922_v57, %v4921_v12 }
 0x308   : > { %v4992_v39 = vrot.slane %v4991_v8, 1  ;;  %v4930_v9 = vadd.f32 %v4929_v59, %v4928_v55 }
 0x309   : > { %v4986_v3 = vadd.f32 %v4985_v41, %v4984_v58 }
 0x30a   : > { %v4993_v7 = vadd.f32 %v4992_v39, %v4991_v8 }
 0x30b   : > { %v5025_v2 = vsel %vm5022_vm2, %v4923_v1, %v4986_v3 }
 0x30c   : > { %v5026_v11 = vsel %vm5022_vm2, %v4930_v9, %v4993_v7 }
 0x30d   : > { %v5038_v13 = vcombine.low %v5025_v2, %v5026_v11 }
 0x30f   : > { %v5052_v14 = vrot.slane %v5038_v13, %v9170_v10 }
 0x311   : > { %v5053_v63 = vcombine.low %v5045_v5, %v5052_v14 }
 0x313   : > { %5072 = vst [vmem:[%s9180_s29] sm:$0xff] %v5053_v63 }
 0x31b   : > { %v6256_v4 = vpop.f32.mrb[20].mxu1 }
 0x31c   : > { %v6257_v15 = vpop.f32.mrb[21].mxu1 }
 0x31d   : > { %v6258_v17 = vadd.f32 %v6257_v15, %v6256_v4  ;;  %v6259_v18 = vpop.f32.mrb[22].mxu1 }
 0x31e   : > { %v6260_v19 = vpop.f32.mrb[23].mxu1 }
 0x31f   : > { %v6267_v20 = vadd.f32 %v9107_v42, %v6258_v17 }
 0x34a   : > { %v4808_v22 = vpop.f32.mrb[4].mxu0 }
 0x34b   : > { %v4889_v16 = vpop.f32.mrb[12].mxu1  ;;  %v4931_v24 = vsel %vm4902_vm1, %v4808_v22, 0.0  ;;  %v4963_v0 = vmul.f32 %v4808_v22, %v4808_v22  ;;  %v4810_v25 = vpop.f32.mrb[5].mxu0 }
 0x34c   : > { %v6268_v21 = vadd.f32 %v6267_v20, %v4889_v16  ;;  %v4891_v26 = vpop.f32.mrb[13].mxu1  ;;  %v4932_v27 = vrot.slane %v4931_v24, 4  ;;  %v4938_v28 = vsel %vm4902_vm1, %v4810_v25, 0.0  ;;  %v4964_v29 = vmul.f32 %v4810_v25, %v4810_v25  ;;  %v4812_v30 = vpop.f32.mrb[6].mxu0 }
 0x34d   : > { %v4892_v31 = vpop.f32.mrb[14].mxu1  ;;  %v4994_v32 = vsel %vm4902_vm1, %v4963_v0, 0.0  ;;  %v4939_v42 = vrot.slane %v4938_v28, 4  ;;  %v4813_v34 = vpop.f32.mrb[7].mxu0 }
 0x34e   : > { %v4945_v60 = vsel %vm4902_vm1, %v6268_v21, 0.0  ;;  %v4965_v33 = vmul.f32 %v6268_v21, %v6268_v21  ;;  %v4893_v35 = vpop.f32.mrb[15].mxu1  ;;  %v4933_v36 = vadd.f32 %v4932_v27, %v4931_v24  ;;  %v4995_v37 = vrot.slane %v4994_v32, 4 }
 0x34f   : > { %v4946_v38 = vrot.slane %v4945_v60, 4  ;;  %v5001_v40 = vsel %vm4902_vm1, %v4964_v29, 0.0  ;;  %v4940_v45 = vadd.f32 %v4939_v42, %v4938_v28 }
 0x350   : > { %v5008_v44 = vsel %vm4902_vm1, %v4965_v33, 0.0  ;;  %v5002_v46 = vrot.slane %v5001_v40, 4  ;;  %v4934_v6 = vrot.slane %v4933_v36, 2  ;;  %v4996_v23 = vadd.f32 %v4995_v37, %v4994_v32 }
 0x351   : > { %v4947_v43 = vadd.f32 %v4946_v38, %v4945_v60  ;;  %v5009_v47 = vrot.slane %v5008_v44, 4  ;;  %v4941_v49 = vrot.slane %v4940_v45, 2 }
 0x352   : > { %v5003_v48 = vadd.f32 %v5002_v46, %v5001_v40  ;;  %v4935_v50 = vadd.f32 %v4934_v6, %v4933_v36  ;;  %v4997_v51 = vrot.slane %v4996_v23, 2 }
 0x353   : > { %v4948_v52 = vrot.slane %v4947_v43, 2  ;;  %v5010_v53 = vadd.f32 %v5009_v47, %v5008_v44  ;;  %v4942_v12 = vadd.f32 %v4941_v49, %v4940_v45 }
 0x354   : > { %v5004_v54 = vrot.slane %v5003_v48, 2  ;;  %v4936_v55 = vrot.slane %v4935_v50, 1  ;;  %v4998_v56 = vadd.f32 %v4997_v51, %v4996_v23 }
 0x355   : > { %v4949_v57 = vadd.f32 %v4948_v52, %v4947_v43  ;;  %v5011_v58 = vrot.slane %v5010_v53, 2  ;;  %v4943_v59 = vrot.slane %v4942_v12, 1 }
 0x356   : > { %v5005_v8 = vadd.f32 %v5004_v54, %v5003_v48  ;;  %v4999_v61 = vrot.slane %v4998_v56, 1  ;;  %v4937_v1 = vadd.f32 %v4936_v55, %v4935_v50 }
 0x357   : > { %v4950_v62 = vrot.slane %v4949_v57, 1  ;;  %v5012_v41 = vadd.f32 %v5011_v58, %v5010_v53  ;;  %v4944_v7 = vadd.f32 %v4943_v59, %v4942_v12 }
 0x358   : > { %v5006_v39 = vrot.slane %v5005_v8, 1  ;;  %v5000_v3 = vadd.f32 %v4999_v61, %v4998_v56 }
 0x359   : > { %v5013_v9 = vrot.slane %v5012_v41, 1  ;;  %v4951_v13 = vadd.f32 %v4950_v62, %v4949_v57 }
 0x35a   : > { %v5007_v2 = vadd.f32 %v5006_v39, %v5005_v8  ;;  %v5027_v11 = vsel %vm5022_vm2, %v4937_v1, %v5000_v3 }
 0x35b   : > { %v5014_v5 = vadd.f32 %v5013_v9, %v5012_v41 }
 0x35c   : > { %v5028_v14 = vsel %vm5022_vm2, %v4944_v7, %v5007_v2 }
 0x35d   : > { %v5029_v63 = vsel %vm5022_vm2, %v4951_v13, %v5014_v5  ;;  %v5054_v4 = vcombine.low %v5027_v11, %v5028_v14 }
 0x35e   : > { %v5068_v15 = vrot.slane %v5029_v63, %v9170_v10 }
 0x35f   : > { %v5061_v17 = vrot.slane %v5054_v4, %v9170_v10 }
 0x361   : > { %v5069_v18 = vcombine.low %v5061_v17, %v5068_v15 }
 0x363   : > { %5073 = vst [vmem:[%s9180_s29 + $0x8] sm:$0x3f] %v5069_v18 }
 0x364 PF: > { %s12_s9 = sadd.s32 1, %s7196_s9  }
 0x365   : > { %p9_p4 = scmp.ge.s32.totalorder %s12_s9, 4  }
 0x367   :  { %11 = sbr.rel (!%p9_p4) target bundleno = 1 (0x1), region = 60 }

// kernel: squeeze.6
= control target key start
LH: loop header
LB: loop body
LE: loop exit
PB: predicated region body
PF: predicated region fallthrough
CT: control target
= control target key end

     0   :  { %vm3_vm0 = vcmask 261120   ;;  %s29_s12 = smov 96   ;;  %s30_s13 = smov 32   ;;  %s70_s0 = inlined_call_operand.vmem [shape: f32[896], index: 0, kind: input, shape index: {}]   ;;  %s71_s1 = inlined_call_operand.vmem [shape: f32[28,32], index: 1, kind: output, shape index: {}]  }
   0x1   :  { %v5_v0 = vld [vmem:[%s70_s0] sm:$0x7f]  }
   0x2   :  { %v17_v1 = vld [vmem:[%s70_s0] sm:$0x7f]   ;;  %6 = vrot.lane.b32.xlu0 %v5_v0, %s29_s12 }
   0x3   :  { %v2_v2 = vld [vmem:[%s70_s0] sm:$0x7f]   ;;  %18 = vrot.lane.b32.xlu1 %v17_v1, %s30_s13 }
   0x4   :  { %4 = vst.msk [vmem:[%s71_s1] ss:$4 sm:$0x7f] %vm3_vm0, %v2_v2   ;;  %v11_v3 = vld [vmem:[%s70_s0] sm:$0x7f]   ;;  %s31_s0 = smov 64  }
   0x6   :  { %12 = vrot.lane.b32.xlu0 %v11_v3, %s31_s0 }
  0x74   :  { %v7_v4 = vpop.permute.xlu0 %6  }
  0x75   :  { %v19_v5 = vpop.permute.xlu1 %18   ;;  %23 = vst.msk [vmem:[%s71_s1 + $0x1] ss:$4 sm:$0x7f] %vm3_vm0, %v7_v4  }
  0x76   :  { %25 = vst.msk [vmem:[%s71_s1 + $0x3] ss:$4 sm:$0x7f] %vm3_vm0, %v19_v5  }
  0x78   :  { %v13_v6 = vpop.permute.xlu0 %12  }
  0x79   :  { %24 = vst.msk [vmem:[%s71_s1 + $0x2] ss:$4 sm:$0x7f] %vm3_vm0, %v13_v6  }

// kernel: tile.33
= control target key start
LH: loop header
LB: loop body
LE: loop exit
PB: predicated region body
PF: predicated region fallthrough
CT: control target
= control target key end

     0   :  { %s40_s0 = inlined_call_operand.vmem [shape: f32[32], index: 0, kind: input, shape index: {}]   ;;  %s41_s1 = inlined_call_operand.vmem [shape: f32[28,32], index: 1, kind: output, shape index: {}]  }
   0x1   :  { %v4_v0 = vld [vmem:[%s40_s0] ss:$0 sm:$0xff] }
   0x2   :  { %5 = vst [vmem:[%s41_s1] sm:$0xff] %v4_v0  ;;  %12 = vst [vmem:[%s41_s1 + $0x8] sm:$0xff] %v4_v0 }
   0x3   :  { %13 = vst [vmem:[%s41_s1 + $0x10] sm:$0xff] %v4_v0  ;;  %14 = vst [vmem:[%s41_s1 + $0x18] sm:$0xff] %v4_v0 }

// kernel: tile.34
= control target key start
LH: loop header
LB: loop body
LE: loop exit
PB: predicated region body
PF: predicated region fallthrough
CT: control target
= control target key end

     0   :  { %s85_s8 = smov 96   ;;  %vm3_vm0 = vcmask 261120   ;;  %s87_s15 = smov 64   ;;  %vm10_vm1 = vcmask 1048320   ;;  %vm17_vm2 = vcmask 785920   ;;  %vm24_vm3 = vcmask 523520   ;;  %s131_s0 = inlined_call_operand.vmem [shape: f32[28,32], index: 0, kind: input, shape index: {}]   ;;  %s132_s1 = inlined_call_operand.vmem [shape: f32[1,896], index: 1, kind: output, shape index: {}]  }
   0x1   :  { %v73_v0 = vld [vmem:[%s131_s0 + $0x3] ss:$4 sm:$0x7f]   ;;  %v74_v1 = vld [vmem:[%s131_s0 + $0x2] ss:$4 sm:$0x7f]  }
   0x2   :  { %8 = vrot.lane.b32.xlu0 %v73_v0, %s85_s8  ;;  %v75_v2 = vld [vmem:[%s131_s0 + $0x1] ss:$4 sm:$0x7f]   ;;  %v2_v3 = vld [vmem:[%s131_s0] ss:$4 sm:$0x7f]  }
   0x3   :  { %s86_s0 = smov 32   ;;  %4 = vst.msk [vmem:[#allocation0] ss:$8 sm:$0xf] %vm3_vm0, %v2_v3  }
   0x4   :  { %22 = vrot.lane.b32.xlu1 %v75_v2, %s86_s0  ;;  %5 = vst.msk [vmem:[#allocation0] ss:$8 sm:$0x70] %vm3_vm0, %v2_v3  }
   0x6   :  { %15 = vrot.lane.b32.xlu0 %v74_v1, %s87_s15 }
  0x74   :  { %v9_v4 = vpop.permute.xlu0 %8  }
  0x75   :  { %11 = vst.msk [vmem:[#allocation0] ss:$8 sm:$0xf] %vm10_vm1, %v9_v4   ;;  %12 = vst.msk [vmem:[#allocation0] ss:$8 sm:$0x70] %vm10_vm1, %v9_v4  }
  0x76   :  { %v23_v5 = vpop.permute.xlu1 %22  }
  0x78   :  { %v16_v6 = vpop.permute.xlu0 %15  }
  0x79   :  { %18 = vst.msk [vmem:[#allocation0] ss:$8 sm:$0xf] %vm17_vm2, %v16_v6   ;;  %19 = vst.msk [vmem:[#allocation0] ss:$8 sm:$0x70] %vm17_vm2, %v16_v6  }
  0x7a   :  { %25 = vst.msk [vmem:[#allocation0] ss:$8 sm:$0xf] %vm24_vm3, %v23_v5   ;;  %26 = vst.msk [vmem:[#allocation0] ss:$8 sm:$0x70] %vm24_vm3, %v23_v5  }
  0x81   :  { %v30_v7 = vld [vmem:[#allocation0] sm:$0x1]  ;;  %v34_v8 = vld [vmem:[#allocation0 + $0x8] sm:$0x1]  ;;  %v39_v9 = vld [vmem:[#allocation0 + $0x10] sm:$0x1] }
  0x82   :  { %32 = vst [vmem:[%s132_s1] sm:$0x1] %v30_v7  ;;  %76 = vst [vmem:[%s132_s1 + $0x1] sm:$0x1] %v34_v8  ;;  %v45_v10 = vld [vmem:[#allocation0 + $0x18] sm:$0x1] }
  0x83   :  { %77 = vst [vmem:[%s132_s1 + $0x2] sm:$0x1] %v39_v9  ;;  %v51_v11 = vld [vmem:[#allocation0 + $0x20] sm:$0x1]  ;;  %v57_v12 = vld [vmem:[#allocation0 + $0x28] sm:$0x1] }
  0x84   :  { %78 = vst [vmem:[%s132_s1 + $0x3] sm:$0x1] %v45_v10  ;;  %79 = vst [vmem:[%s132_s1 + $0x4] sm:$0x1] %v51_v11  ;;  %v63_v13 = vld [vmem:[#allocation0 + $0x30] sm:$0x1] }
  0x85   :  { %80 = vst [vmem:[%s132_s1 + $0x5] sm:$0x1] %v57_v12  ;;  %81 = vst [vmem:[%s132_s1 + $0x6] sm:$0x1] %v63_v13 }

// kernel: cnn_forward.8
= control target key start
LH: loop header
LB: loop body
LE: loop exit
PB: predicated region body
PF: predicated region fallthrough
CT: control target
= control target key end

     0   :  { %s7284_s15 = smov 0   ;;  %s9270_s0 = inlined_call_operand.vmem [shape: bf16[2,9,448], index: 0, kind: input, shape index: {}]   ;;  %s9271_s1 = inlined_call_operand.vmem [shape: bf16[3,448,896], index: 1, kind: input, shape index: {}]   ;;  %s9272_s2 = inlined_call_operand.vmem [shape: f32[1,896], index: 2, kind: input, shape index: {}]   ;;  %s9273_s3 = inlined_call_operand.vmem [shape: f32[1,896], index: 3, kind: input, shape index: {}]   ;;  %s9274_s4 = inlined_call_operand.vmem [shape: bf16[2,7,224], index: 4, kind: output, shape index: {}]  }
   0x1 LB: > { %s5168_s16 = sadd.s32 4294967295, %s7254_s15   ;;  %p5172_p0 = scmp.ge.s32.totalorder %s7254_s15, 1  ;;  %s7254_s15 = sphi %s7284_s15, %s14_s15  }
   0x2   : > { %p162_p1 = scmp.lt.s32.totalorder %s7254_s15, 3 }
   0x4   : > { %p163_p2 = pnand %p5172_p0, %p162_p1 }
   0x5   : > { %v6398_v0 = vld [vmem:[%s9271_s1 + $0x624] ss:$28 sps:$4 sm:$0xff] (!%p163_p2)   ;;  %v6404_v4 = vld [vmem:[%s9271_s1 + $0x65c] ss:$28 sps:$4 sm:$0xff] (!%p163_p2)   ;;  %v6410_v8 = vld [vmem:[%s9271_s1 + $0x694] ss:$28 sps:$4 sm:$0xff] (!%p163_p2)  }
   0x6   : > { %166 = sbr.rel (%p163_p2) target bundleno = 1100 (0x44c), region = 36  ;;  %v6400_v1 = vld [vmem:[%s9271_s1 + $0x9a4] ss:$28 sps:$4 sm:$0xff] (!%p163_p2)   ;;  %1705 = vmatprep.subr.bf16.mxu0 (!%p163_p2), %v6398_v0  ;;  %v6406_v5 = vld [vmem:[%s9271_s1 + $0x9dc] ss:$28 sps:$4 sm:$0xff] (!%p163_p2)   ;;  %p188_p3 = scmp.lt.s32.totalorder (!%p163_p2), %s5168_s16, 1 }
   0x7   : > { %v6402_v2 = vld [vmem:[%s9271_s1 + $0x620] ss:$28 sps:$4 sm:$0xff] (!%p163_p2)   ;;  %1746 = vmatprep.subr.bf16.mxu1 (!%p163_p2), %v6400_v1  ;;  %v6408_v6 = vld [vmem:[%s9271_s1 + $0x658] ss:$28 sps:$4 sm:$0xff] (!%p163_p2)   ;;  %v6414_v10 = vld [vmem:[%s9271_s1 + $0x690] ss:$28 sps:$4 sm:$0xff] (!%p163_p2)  }
   0x8   : > { %v6403_v3 = vld [vmem:[%s9271_s1 + $0x9a0] ss:$28 sps:$4 sm:$0xff] (!%p163_p2)   ;;  %1706 = vmatpush1.bf16.msra.mxu0 (!%p163_p2), %v6402_v2  ;;  %v6409_v7 = vld [vmem:[%s9271_s1 + $0x9d8] ss:$28 sps:$4 sm:$0xff] (!%p163_p2)   ;;  %v6415_v11 = vld [vmem:[%s9271_s1 + $0xa10] ss:$28 sps:$4 sm:$0xff] (!%p163_p2)  }
   0x9   : > { %1747 = vmatpush1.bf16.msra.mxu1 (!%p163_p2), %v6403_v3  ;;  %1707 = vmatprep.subr.bf16.mxu0 (!%p163_p2), %v6404_v4  ;;  %v6412_v9 = vld [vmem:[%s9271_s1 + $0xa14] ss:$28 sps:$4 sm:$0xff] (!%p163_p2)   ;;  %v6416_v12 = vld [vmem:[%s9271_s1 + $0x6cc] ss:$28 sps:$4 sm:$0xff] (!%p163_p2)   ;;  %v6422_v16 = vld [vmem:[%s9271_s1 + $0x704] ss:$28 sps:$4 sm:$0xff] (!%p163_p2)  }
   0xa   : > { %1748 = vmatprep.subr.bf16.mxu1 (!%p163_p2), %v6406_v5  ;;  %v6418_v13 = vld [vmem:[%s9271_s1 + $0xa4c] ss:$28 sps:$4 sm:$0xff] (!%p163_p2)   ;;  %v6424_v17 = vld [vmem:[%s9271_s1 + $0xa84] ss:$28 sps:$4 sm:$0xff] (!%p163_p2)   ;;  %v6428_v20 = vld [vmem:[%s9271_s1 + $0x73c] ss:$28 sps:$4 sm:$0xff] (!%p163_p2)  }
   0xb   : > { %v6420_v14 = vld [vmem:[%s9271_s1 + $0x6c8] ss:$28 sps:$4 sm:$0xff] (!%p163_p2)   ;;  %v6426_v18 = vld [vmem:[%s9271_s1 + $0x700] ss:$28 sps:$4 sm:$0xff] (!%p163_p2)   ;;  %v6432_v22 = vld [vmem:[%s9271_s1 + $0x738] ss:$28 sps:$4 sm:$0xff] (!%p163_p2)  }
   0xc   : > { %1708 = vmatpush1.bf16.msra.mxu0 (!%p163_p2), %v6408_v6  ;;  %v6421_v15 = vld [vmem:[%s9271_s1 + $0xa48] ss:$28 sps:$4 sm:$0xff] (!%p163_p2)   ;;  %v6427_v19 = vld [vmem:[%s9271_s1 + $0xa80] ss:$28 sps:$4 sm:$0xff] (!%p163_p2)   ;;  %v6433_v23 = vld [vmem:[%s9271_s1 + $0xab8] ss:$28 sps:$4 sm:$0xff] (!%p163_p2)  }
   0xd   : > { %1749 = vmatpush1.bf16.msra.mxu1 %v6409_v7  ;;  %1709 = vmatprep.subr.bf16.mxu0 %v6410_v8  ;;  %v6430_v21 = vld [vmem:[%s9271_s1 + $0xabc] ss:$28 sps:$4 sm:$0xff]   ;;  %v6434_v24 = vld [vmem:[%s9271_s1 + $0x774] ss:$28 sps:$4 sm:$0xff]   ;;  %s9276_s16 = smov (!%p188_p3, %s5168_s16), 1  ;;  %vm1701_vm0 = vcmask 523264  }
   0xe   : > { %1750 = vmatprep.subr.bf16.mxu1 %v6412_v9  ;;  %v6436_v25 = vld [vmem:[%s9271_s1 + $0xaf4] ss:$28 sps:$4 sm:$0xff]   ;;  %v6440_v28 = vld [vmem:[%s9271_s1 + $0x7ac] ss:$28 sps:$4 sm:$0xff]   ;;  %s6236_s29 = sshll.u32 %s9276_s16, 5  ;;  %s7257_s9 = smov 32  }
   0xf   : > { %v6438_v26 = vld [vmem:[%s9271_s1 + $0x770] ss:$28 sps:$4 sm:$0xff]   ;;  %v6444_v30 = vld [vmem:[%s9271_s1 + $0x7a8] ss:$28 sps:$4 sm:$0xff]   ;;  %s7404_s14 = scalar_lea.vmem %s9270_s0, %s6236_s29  ;;  %v6450_v34 = vld [vmem:[%s9271_s1 + $0x7e0] ss:$28 sps:$4 sm:$0xff]  }
  0x10   : > { %1710 = vmatpush1.bf16.msra.mxu0 %v6414_v10  ;;  %v6439_v27 = vld [vmem:[%s9271_s1 + $0xaf0] ss:$28 sps:$4 sm:$0xff]   ;;  %v6445_v31 = vld [vmem:[%s9271_s1 + $0xb28] ss:$28 sps:$4 sm:$0xff]   ;;  %v6451_v35 = vld [vmem:[%s9271_s1 + $0xb60] ss:$28 sps:$4 sm:$0xff]  }
  0x11   : > { %1751 = vmatpush1.bf16.msra.mxu1 %v6415_v11  ;;  %1711 = vmatprep.subr.bf16.mxu0 %v6416_v12  ;;  %v6442_v29 = vld [vmem:[%s9271_s1 + $0xb2c] ss:$28 sps:$4 sm:$0xff]   ;;  %v6446_v32 = vld [vmem:[%s9271_s1 + $0x7e4] ss:$28 sps:$4 sm:$0xff]   ;;  %v6452_v36 = vld [vmem:[%s9271_s1 + $0x81c] ss:$28 sps:$4 sm:$0xff]  }
  0x12   : > { %1752 = vmatprep.subr.bf16.mxu1 %v6418_v13  ;;  %v6448_v33 = vld [vmem:[%s9271_s1 + $0xb64] ss:$28 sps:$4 sm:$0xff]   ;;  %v200_v37 = vld [vmem:[%s7404_s14 + $0x8] sm:$0xff]  ;;  %v6454_v38 = vld [vmem:[%s9271_s1 + $0xb9c] ss:$28 sps:$4 sm:$0xff]   ;;  %vm5060_vm1 = vcmask 261120  }
  0x13   : > { %v7419_v39 = vcombine.high %v200_v37, %v200_v37  ;;  %v6456_v40 = vld [vmem:[%s9271_s1 + $0x818] ss:$28 sps:$4 sm:$0xff]   ;;  %v7426_v43 = vcombine.low %v200_v37, %v200_v37  ;;  %v6462_v50 = vld [vmem:[%s9271_s1 + $0x850] ss:$28 sps:$4 sm:$0xff]   ;;  %v6468_v54 = vld [vmem:[%s9271_s1 + $0x888] ss:$28 sps:$4 sm:$0xff]  }
  0x14   : > { %1712 = vmatpush1.bf16.msra.mxu0 %v6420_v14  ;;  %v6457_v44 = vld [vmem:[%s9271_s1 + $0xb98] ss:$28 sps:$4 sm:$0xff]   ;;  %v6463_v51 = vld [vmem:[%s9271_s1 + $0xbd0] ss:$28 sps:$4 sm:$0xff]   ;;  %v6469_v55 = vld [vmem:[%s9271_s1 + $0xc08] ss:$28 sps:$4 sm:$0xff]  }
  0x15   : > { %1753 = vmatpush1.bf16.msra.mxu1 %v6421_v15  ;;  %1713 = vmatprep.subr.bf16.mxu0 %v6422_v16  ;;  %v684_v41 = vshrl.u32 %v7419_v39, 16  ;;  %v686_v42 = vshll.u32 %v7419_v39, 16  ;;  %v6458_v45 = vld [vmem:[%s9271_s1 + $0x854] ss:$28 sps:$4 sm:$0xff]   ;;  %v679_v49 = vshll.u32 %v7426_v43, 16  ;;  %v677_v56 = vshrl.u32 %v7426_v43, 16 }
  0x16   : > { %1754 = vmatprep.subr.bf16.mxu1 %v6424_v17  ;;  %v6460_v46 = vld [vmem:[%s9271_s1 + $0xbd4] ss:$28 sps:$4 sm:$0xff]   ;;  %v6464_v52 = vld [vmem:[%s9271_s1 + $0x88c] ss:$28 sps:$4 sm:$0xff]   ;;  %v199_v58 = vld [vmem:[%s7404_s14] sm:$0xff]  ;;  %s7258_s10 = smov 64  }
  0x17   : > { %v688_v47 = vrot.slane %v686_v42, 1  ;;  %v6466_v53 = vld [vmem:[%s9271_s1 + $0xc0c] ss:$28 sps:$4 sm:$0xff]   ;;  %v681_v57 = vrot.slane %v679_v49, 1  ;;  %v6471_v59 = vld [vmem:[%s9271_s1 + $0x8c4] ss:$28 sps:$4 sm:$0xff]   ;;  %v7465_v60 = vcombine.high %v199_v58, %v199_v58  ;;  %v7492_v8 = vcombine.low %v199_v58, %v199_v58 }
  0x18   : > { %1714 = vmatpush1.bf16.msra.mxu0 %v6426_v18  ;;  %v6476_v61 = vld [vmem:[%s9271_s1 + $0x62c] ss:$28 sps:$4 sm:$0xff]   ;;  %v6477_v2 = vld [vmem:[%s9271_s1 + $0x8c0] ss:$28 sps:$4 sm:$0xff]   ;;  %v6483_v9 = vld [vmem:[%s9271_s1 + $0x8f8] ss:$28 sps:$4 sm:$0xff]  }
  0x19   : > { %1755 = vmatpush1.bf16.msra.mxu1 %v6427_v19  ;;  %1715 = vmatprep.subr.bf16.mxu0 %v6428_v20  ;;  %v7437_v48 = vor.u32 %v688_v47, %v684_v41  ;;  %v670_v62 = vshrl.u32 %v7465_v60, 16  ;;  %v672_v63 = vshll.u32 %v7465_v60, 16  ;;  %v7472_v0 = vor.u32 %v681_v57, %v677_v56  ;;  %v6474_v1 = vld [vmem:[%s9271_s1 + $0x628] ss:$28 sps:$4 sm:$0xff]   ;;  %v6478_v3 = vld [vmem:[%s9271_s1 + $0x8fc] ss:$28 sps:$4 sm:$0xff]  }
  0x1a   : > { %1756 = vmatprep.subr.bf16.mxu1 %v6430_v21  ;;  %v6482_v5 = vld [vmem:[%s9271_s1 + $0x664] ss:$28 sps:$4 sm:$0xff]   ;;  %v6484_v10 = vld [vmem:[%s9271_s1 + $0x934] ss:$28 sps:$4 sm:$0xff]   ;;  %v6488_v11 = vld [vmem:[%s9271_s1 + $0x69c] ss:$28 sps:$4 sm:$0xff]  }
  0x1b   : > { %5601 = vmatprep.mubr.msk.bf16.mxu1 %vm1701_vm0, %v7437_v48  ;;  %v674_v4 = vrot.slane %v672_v63, 1  ;;  %v6480_v7 = vld [vmem:[%s9271_s1 + $0x660] ss:$28 sps:$4 sm:$0xff]   ;;  %v6486_v12 = vld [vmem:[%s9271_s1 + $0x698] ss:$28 sps:$4 sm:$0xff]   ;;  %v665_v13 = vshll.u32 %v7492_v8, 16 }
  0x1c   : > { %1716 = vmatpush1.bf16.msra.mxu0 %v6432_v22  ;;  %v6489_v14 = vld [vmem:[%s9271_s1 + $0x930] ss:$28 sps:$4 sm:$0xff]   ;;  %v663_v18 = vshrl.u32 %v7492_v8, 16  ;;  %v6495_v20 = vld [vmem:[%s9271_s1 + $0x968] ss:$28 sps:$4 sm:$0xff]   ;;  %vm5103_vm2 = vcmask 1043456  }
  0x1d   : > { %1757 = vmatpush1.bf16.msra.mxu1 %v6433_v23  ;;  %1717 = vmatprep.subr.bf16.mxu0 %v6434_v24  ;;  %v7486_v6 = vor.u32 %v674_v4, %v670_v62  ;;  %v6490_v15 = vld [vmem:[%s9271_s1 + $0x96c] ss:$28 sps:$4 sm:$0xff]   ;;  %v6494_v16 = vld [vmem:[%s9271_s1 + $0x6d4] ss:$28 sps:$4 sm:$0xff]   ;;  %v667_v19 = vrot.slane %v665_v13, 1  ;;  %s6237_s11 = sshll.u32 %s9276_s16, 3 }
  0x1e   : > { %1758 = vmatprep.subr.bf16.mxu1 %v6436_v25  ;;  %v6492_v17 = vld [vmem:[%s9271_s1 + $0x6d0] ss:$28 sps:$4 sm:$0xff]   ;;  %v6498_v24 = vld [vmem:[%s9271_s1 + $0x708] ss:$28 sps:$4 sm:$0xff]   ;;  %v6519_v37 = vld [vmem:[%s9271_s1 + $0x6d8] ss:$28 sps:$4 sm:$0xff]   ;;  %s197_s17 = scalar_lea.vmem %s9274_s4, %s6237_s11 }
  0x1f   : > { %1737 = vmatprep.mubr.bf16.mxu0 %v7486_v6  ;;  %v6500_v21 = vld [vmem:[%s9271_s1 + $0x70c] ss:$28 sps:$4 sm:$0xff]   ;;  %v6503_v22 = vld [vmem:[%s9271_s1 + $0x634] ss:$28 sps:$4 sm:$0xff]   ;;  %v7531_v23 = vor.u32 %v667_v19, %v663_v18  ;;  %v6536_v49 = vld [vmem:[%s9271_s1 + $0x85c] ss:$28 sps:$4 sm:$0xff]  }
  0x20   : > { %1718 = vmatpush1.bf16.msra.mxu0 %v6438_v26  ;;  %v6501_v25 = vld [vmem:[%s9271_s1 + $0x630] ss:$28 sps:$4 sm:$0xff]   ;;  %v6506_v26 = vld [vmem:[%s9271_s1 + $0x744] ss:$28 sps:$4 sm:$0xff]   ;;  %v6543_v56 = vld [vmem:[%s9271_s1 + $0x7b8] ss:$28 sps:$4 sm:$0xff]  }
  0x21   : > { %1759 = vmatpush1.bf16.msra.mxu1 %v6439_v27  ;;  %1719 = vmatprep.subr.bf16.mxu0 %v6440_v28  ;;  %v6509_v27 = vld [vmem:[%s9271_s1 + $0x66c] ss:$28 sps:$4 sm:$0xff]   ;;  %v6504_v28 = vld [vmem:[%s9271_s1 + $0x740] ss:$28 sps:$4 sm:$0xff]   ;;  %v6551_v58 = vld [vmem:[%s9271_s1 + $0x7f4] ss:$28 sps:$4 sm:$0xff]  }
  0x22   : > { %1760 = vmatprep.subr.bf16.mxu1 %v6442_v29  ;;  %v6507_v29 = vld [vmem:[%s9271_s1 + $0x668] ss:$28 sps:$4 sm:$0xff]   ;;  %v6525_v42 = vld [vmem:[%s9271_s1 + $0x710] ss:$28 sps:$4 sm:$0xff]   ;;  %v6576_v19 = vld [vmem:[%s9271_s1 + $0x9e0] ss:$28 sps:$4 sm:$0xff]  }
  0x23   : > { %v6522_v41 = vld [vmem:[%s9271_s1 + $0x7e8] ss:$28 sps:$4 sm:$0xff]   ;;  %vm5104_vm3 = vsmask.f32 3328  ;;  %vm5106_vm4 = vcmask 785412  }
  0x24   : > { %1720 = vmatpush1.bf16.msra.mxu0 %v6444_v30  ;;  %v6512_v30 = vld [vmem:[%s9271_s1 + $0x77c] ss:$28 sps:$4 sm:$0xff]   ;;  %v6531_v47 = vld [vmem:[%s9271_s1 + $0x748] ss:$28 sps:$4 sm:$0xff]   ;;  %vm5107_vm5 = vsmask.f32 7424  ;;  %vm5105_vm6 = vmand %vm5103_vm2, %vm5104_vm3 }
  0x25   : > { %1761 = vmatpush1.bf16.msra.mxu1 %v6445_v31  ;;  %1721 = vmatprep.subr.bf16.mxu0 %v6446_v32  ;;  %v6515_v31 = vld [vmem:[%s9271_s1 + $0x6a4] ss:$28 sps:$4 sm:$0xff]   ;;  %v6510_v32 = vld [vmem:[%s9271_s1 + $0x778] ss:$28 sps:$4 sm:$0xff]   ;;  %v6548_v57 = vld [vmem:[%s9271_s1 + $0x8cc] ss:$28 sps:$4 sm:$0xff]  }
  0x26   : > { %1762 = vmatprep.subr.bf16.mxu1 %v6448_v33  ;;  %v6513_v33 = vld [vmem:[%s9271_s1 + $0x6a0] ss:$28 sps:$4 sm:$0xff]   ;;  %v6557_v63 = vld [vmem:[%s9271_s1 + $0x82c] ss:$28 sps:$4 sm:$0xff]   ;;  %vm5108_vm7 = vmand %vm5106_vm4, %vm5107_vm5 }
  0x27   : > { %v6554_v62 = vld [vmem:[%s9271_s1 + $0x904] ss:$28 sps:$4 sm:$0xff]   ;;  %v6572_v13 = vld [vmem:[%s9271_s1 + $0x9ac] ss:$28 sps:$4 sm:$0xff]   ;;  %vm5109_vm8 = vmor %vm5108_vm7, %vm5105_vm6 }
  0x28   : > { %1722 = vmatpush1.bf16.msra.mxu0 %v6450_v34  ;;  %v6518_v34 = vld [vmem:[%s9271_s1 + $0x7b4] ss:$28 sps:$4 sm:$0xff]   ;;  %v6563_v4 = vld [vmem:[%s9271_s1 + $0x864] ss:$28 sps:$4 sm:$0xff]   ;;  %v6581_v18 = vld [vmem:[%s9271_s1 + $0x90c] ss:$28 sps:$4 sm:$0xff]  }
  0x29   : > { %1763 = vmatpush1.bf16.msra.mxu1 %v6451_v35  ;;  %1723 = vmatprep.subr.bf16.mxu0 %v6452_v36  ;;  %v6521_v35 = vld [vmem:[%s9271_s1 + $0x6dc] ss:$28 sps:$4 sm:$0xff]   ;;  %v6516_v36 = vld [vmem:[%s9271_s1 + $0x7b0] ss:$28 sps:$4 sm:$0xff]  }
  0x2a   : > { %1764 = vmatprep.subr.bf16.mxu1 %v6454_v38  ;;  %v6524_v38 = vld [vmem:[%s9271_s1 + $0x7ec] ss:$28 sps:$4 sm:$0xff]  }
  0x2c   : > { %1724 = vmatpush1.bf16.msra.mxu0 %v6456_v40  ;;  %v6527_v40 = vld [vmem:[%s9271_s1 + $0x714] ss:$28 sps:$4 sm:$0xff]  }
  0x2d   : > { %1765 = vmatpush1.bf16.msra.mxu1 %v6457_v44  ;;  %1725 = vmatprep.subr.bf16.mxu0 %v6458_v45  ;;  %v6530_v44 = vld [vmem:[%s9271_s1 + $0x824] ss:$28 sps:$4 sm:$0xff]   ;;  %v6533_v45 = vld [vmem:[%s9271_s1 + $0x74c] ss:$28 sps:$4 sm:$0xff]  }
  0x2e   : > { %1766 = vmatprep.subr.bf16.mxu1 %v6460_v46  ;;  %v6528_v46 = vld [vmem:[%s9271_s1 + $0x820] ss:$28 sps:$4 sm:$0xff]  }
  0x30   : > { %1726 = vmatpush1.bf16.msra.mxu0 %v6462_v50  ;;  %v6539_v50 = vld [vmem:[%s9271_s1 + $0x784] ss:$28 sps:$4 sm:$0xff]  }
  0x31   : > { %1767 = vmatpush1.bf16.msra.mxu1 %v6463_v51  ;;  %1727 = vmatprep.subr.bf16.mxu0 %v6464_v52  ;;  %v6534_v51 = vld [vmem:[%s9271_s1 + $0x858] ss:$28 sps:$4 sm:$0xff]   ;;  %v6537_v52 = vld [vmem:[%s9271_s1 + $0x780] ss:$28 sps:$4 sm:$0xff]  }
  0x32   : > { %1768 = vmatprep.subr.bf16.mxu1 %v6466_v53  ;;  %v6542_v53 = vld [vmem:[%s9271_s1 + $0x894] ss:$28 sps:$4 sm:$0xff]  }
  0x34   : > { %1728 = vmatpush1.bf16.msra.mxu0 %v6468_v54  ;;  %v6545_v54 = vld [vmem:[%s9271_s1 + $0x7bc] ss:$28 sps:$4 sm:$0xff]  }
  0x35   : > { %1769 = vmatpush1.bf16.msra.mxu1 %v6469_v55  ;;  %1729 = vmatprep.subr.bf16.mxu0 %v6471_v59  ;;  %v6540_v55 = vld [vmem:[%s9271_s1 + $0x890] ss:$28 sps:$4 sm:$0xff]   ;;  %v6546_v59 = vld [vmem:[%s9271_s1 + $0x8c8] ss:$28 sps:$4 sm:$0xff]  }
  0x36   : > { %1787 = vmatprep.subr.bf16.mxu1 %v6476_v61  ;;  %v6549_v61 = vld [vmem:[%s9271_s1 + $0x7f0] ss:$28 sps:$4 sm:$0xff]  }
  0x38   : > { %1779 = vmatmul.mubr.bf16.vlgmr.msra.gmra.mrb[0].mxu1 %v7472_v0  ;;  %1730 = vmatpush1.bf16.msra.mxu0 %v6477_v2  ;;  %v6555_v2 = vld [vmem:[%s9271_s1 + $0x828] ss:$28 sps:$4 sm:$0xff]  }
  0x39   : > { %1788 = vmatpush1.bf16.msra.mxu1 %v6474_v1  ;;  %1731 = vmatprep.subr.bf16.mxu0 %v6478_v3  ;;  %v6552_v1 = vld [vmem:[%s9271_s1 + $0x900] ss:$28 sps:$4 sm:$0xff]  }
  0x3a   : > { %1789 = vmatprep.subr.bf16.mxu1 %v6482_v5  ;;  %1819 = vmatprep.mubr.bf16.mxu1 %v7486_v6  ;;  %v6560_v3 = vld [vmem:[%s9271_s1 + $0x93c] ss:$28 sps:$4 sm:$0xff]  }
  0x3b   : > { %v6558_v5 = vld [vmem:[%s9271_s1 + $0x938] ss:$28 sps:$4 sm:$0xff]  }
  0x3c   : > { %1732 = vmatpush1.bf16.msra.mxu0 %v6483_v9  ;;  %v6566_v9 = vld [vmem:[%s9271_s1 + $0x974] ss:$28 sps:$4 sm:$0xff]  }
  0x3d   : > { %1790 = vmatpush1.bf16.msra.mxu1 %v6480_v7  ;;  %1733 = vmatprep.subr.bf16.mxu0 %v6484_v10  ;;  %v6561_v7 = vld [vmem:[%s9271_s1 + $0x860] ss:$28 sps:$4 sm:$0xff]  }
  0x3e   : > { %1791 = vmatprep.subr.bf16.mxu1 %v6488_v11  ;;  %v6569_v10 = vld [vmem:[%s9271_s1 + $0x89c] ss:$28 sps:$4 sm:$0xff]   ;;  %v6564_v11 = vld [vmem:[%s9271_s1 + $0x970] ss:$28 sps:$4 sm:$0xff]  }
  0x40   : > { %1734 = vmatpush1.bf16.msra.mxu0 %v6489_v14  ;;  %v6575_v14 = vld [vmem:[%s9271_s1 + $0x8d4] ss:$28 sps:$4 sm:$0xff]  }
  0x41   : > { %1792 = vmatpush1.bf16.msra.mxu1 %v6486_v12  ;;  %1735 = vmatprep.subr.bf16.mxu0 %v6490_v15  ;;  %v6567_v12 = vld [vmem:[%s9271_s1 + $0x898] ss:$28 sps:$4 sm:$0xff]   ;;  %v6570_v15 = vld [vmem:[%s9271_s1 + $0x9a8] ss:$28 sps:$4 sm:$0xff]  }
  0x42   : > { %1793 = vmatprep.subr.bf16.mxu1 %v6494_v16  ;;  %v6573_v16 = vld [vmem:[%s9271_s1 + $0x8d0] ss:$28 sps:$4 sm:$0xff]  }
  0x44   : > { %1736 = vmatpush1.bf16.msra.mxu0 %v6495_v20  ;;  %v6579_v20 = vld [vmem:[%s9271_s1 + $0x908] ss:$28 sps:$4 sm:$0xff]  }
  0x45   : > { %1794 = vmatpush1.bf16.msra.mxu1 %v6492_v17  ;;  %1869 = vmatprep.subr.bf16.mxu0 %v6503_v22  ;;  %v6578_v17 = vld [vmem:[%s9271_s1 + $0x9e4] ss:$28 sps:$4 sm:$0xff]  }
  0x46   : > { %1795 = vmatprep.subr.bf16.mxu1 %v6500_v21  ;;  %v6584_v21 = vld [vmem:[%s9271_s1 + $0xa1c] ss:$28 sps:$4 sm:$0xff]   ;;  %v6587_v22 = vld [vmem:[%s9271_s1 + $0x944] ss:$28 sps:$4 sm:$0xff]  }
  0x47   : > { %1738 = vmatmul.mubr.bf16.vlgmr.msra.gmra.mrb[0].mxu0 %v7531_v23 }
  0x48   : > { %1870 = vmatpush1.bf16.msra.mxu0 %v6501_v25  ;;  %1901 = vmatprep.mubr.bf16.mxu0 %v7486_v6  ;;  %v6585_v25 = vld [vmem:[%s9271_s1 + $0x940] ss:$28 sps:$4 sm:$0xff]  }
  0x49   : > { %1796 = vmatpush1.bf16.msra.mxu1 %v6498_v24  ;;  %1871 = vmatprep.subr.bf16.mxu0 %v6509_v27  ;;  %v6582_v24 = vld [vmem:[%s9271_s1 + $0xa18] ss:$28 sps:$4 sm:$0xff]  }
  0x4a   : > { %1797 = vmatprep.subr.bf16.mxu1 %v6506_v26  ;;  %v6590_v26 = vld [vmem:[%s9271_s1 + $0xa54] ss:$28 sps:$4 sm:$0xff]   ;;  %v6593_v27 = vld [vmem:[%s9271_s1 + $0x97c] ss:$28 sps:$4 sm:$0xff]  }
  0x4c   : > { %1872 = vmatpush1.bf16.msra.mxu0 %v6507_v29  ;;  %v6591_v29 = vld [vmem:[%s9271_s1 + $0x978] ss:$28 sps:$4 sm:$0xff]  }
  0x4d   : > { %1798 = vmatpush1.bf16.msra.mxu1 %v6504_v28  ;;  %1873 = vmatprep.subr.bf16.mxu0 %v6515_v31  ;;  %v6588_v28 = vld [vmem:[%s9271_s1 + $0xa50] ss:$28 sps:$4 sm:$0xff]  }
  0x4e   : > { %1799 = vmatprep.subr.bf16.mxu1 %v6512_v30  ;;  %v6596_v30 = vld [vmem:[%s9271_s1 + $0xa8c] ss:$28 sps:$4 sm:$0xff]   ;;  %v6599_v31 = vld [vmem:[%s9271_s1 + $0x9b4] ss:$28 sps:$4 sm:$0xff]  }
  0x50   : > { %1874 = vmatpush1.bf16.msra.mxu0 %v6513_v33  ;;  %v6597_v33 = vld [vmem:[%s9271_s1 + $0x9b0] ss:$28 sps:$4 sm:$0xff]  }
  0x51   : > { %1800 = vmatpush1.bf16.msra.mxu1 %v6510_v32  ;;  %1875 = vmatprep.subr.bf16.mxu0 %v6521_v35  ;;  %v6594_v32 = vld [vmem:[%s9271_s1 + $0xa88] ss:$28 sps:$4 sm:$0xff]  }
  0x52   : > { %1801 = vmatprep.subr.bf16.mxu1 %v6518_v34  ;;  %v6602_v34 = vld [vmem:[%s9271_s1 + $0xac4] ss:$28 sps:$4 sm:$0xff]   ;;  %v6605_v35 = vld [vmem:[%s9271_s1 + $0x9ec] ss:$28 sps:$4 sm:$0xff]  }
  0x54   : > { %1876 = vmatpush1.bf16.msra.mxu0 %v6519_v37  ;;  %v6603_v37 = vld [vmem:[%s9271_s1 + $0x9e8] ss:$28 sps:$4 sm:$0xff]  }
  0x55   : > { %1802 = vmatpush1.bf16.msra.mxu1 %v6516_v36  ;;  %1877 = vmatprep.subr.bf16.mxu0 %v6527_v40  ;;  %v6600_v36 = vld [vmem:[%s9271_s1 + $0xac0] ss:$28 sps:$4 sm:$0xff]  }
  0x56   : > { %1803 = vmatprep.subr.bf16.mxu1 %v6524_v38  ;;  %v6608_v38 = vld [vmem:[%s9271_s1 + $0xafc] ss:$28 sps:$4 sm:$0xff]   ;;  %v6611_v40 = vld [vmem:[%s9271_s1 + $0xa24] ss:$28 sps:$4 sm:$0xff]  }
  0x58   : > { %1878 = vmatpush1.bf16.msra.mxu0 %v6525_v42  ;;  %v6609_v42 = vld [vmem:[%s9271_s1 + $0xa20] ss:$28 sps:$4 sm:$0xff]  }
  0x59   : > { %1804 = vmatpush1.bf16.msra.mxu1 %v6522_v41  ;;  %1879 = vmatprep.subr.bf16.mxu0 %v6533_v45  ;;  %v6606_v41 = vld [vmem:[%s9271_s1 + $0xaf8] ss:$28 sps:$4 sm:$0xff]  }
  0x5a   : > { %1805 = vmatprep.subr.bf16.mxu1 %v6530_v44  ;;  %v6614_v44 = vld [vmem:[%s9271_s1 + $0xb34] ss:$28 sps:$4 sm:$0xff]   ;;  %v6617_v45 = vld [vmem:[%s9271_s1 + $0xa5c] ss:$28 sps:$4 sm:$0xff]  }
  0x5c   : > { %1880 = vmatpush1.bf16.msra.mxu0 %v6531_v47  ;;  %v6615_v47 = vld [vmem:[%s9271_s1 + $0xa58] ss:$28 sps:$4 sm:$0xff]  }
  0x5d   : > { %1806 = vmatpush1.bf16.msra.mxu1 %v6528_v46  ;;  %1881 = vmatprep.subr.bf16.mxu0 %v6539_v50  ;;  %v6612_v46 = vld [vmem:[%s9271_s1 + $0xb30] ss:$28 sps:$4 sm:$0xff]  }
  0x5e   : > { %1807 = vmatprep.subr.bf16.mxu1 %v6536_v49  ;;  %v6620_v49 = vld [vmem:[%s9271_s1 + $0xb6c] ss:$28 sps:$4 sm:$0xff]   ;;  %v6623_v50 = vld [vmem:[%s9271_s1 + $0xa94] ss:$28 sps:$4 sm:$0xff]  }
  0x60   : > { %1882 = vmatpush1.bf16.msra.mxu0 %v6537_v52  ;;  %v6621_v52 = vld [vmem:[%s9271_s1 + $0xa90] ss:$28 sps:$4 sm:$0xff]  }
  0x61   : > { %1808 = vmatpush1.bf16.msra.mxu1 %v6534_v51  ;;  %1883 = vmatprep.subr.bf16.mxu0 %v6545_v54  ;;  %v6618_v51 = vld [vmem:[%s9271_s1 + $0xb68] ss:$28 sps:$4 sm:$0xff]  }
  0x62   : > { %1809 = vmatprep.subr.bf16.mxu1 %v6542_v53  ;;  %v6626_v53 = vld [vmem:[%s9271_s1 + $0xba4] ss:$28 sps:$4 sm:$0xff]   ;;  %v6629_v54 = vld [vmem:[%s9271_s1 + $0xacc] ss:$28 sps:$4 sm:$0xff]  }
  0x64   : > { %1884 = vmatpush1.bf16.msra.mxu0 %v6543_v56  ;;  %v6627_v56 = vld [vmem:[%s9271_s1 + $0xac8] ss:$28 sps:$4 sm:$0xff]  }
  0x65   : > { %1810 = vmatpush1.bf16.msra.mxu1 %v6540_v55  ;;  %1885 = vmatprep.subr.bf16.mxu0 %v6551_v58  ;;  %v6624_v55 = vld [vmem:[%s9271_s1 + $0xba0] ss:$28 sps:$4 sm:$0xff]  }
  0x66   : > { %1811 = vmatprep.subr.bf16.mxu1 %v6548_v57  ;;  %v6632_v57 = vld [vmem:[%s9271_s1 + $0xbdc] ss:$28 sps:$4 sm:$0xff]   ;;  %v6635_v58 = vld [vmem:[%s9271_s1 + $0xb04] ss:$28 sps:$4 sm:$0xff]  }
  0x68   : > { %1886 = vmatpush1.bf16.msra.mxu0 %v6549_v61  ;;  %v6633_v61 = vld [vmem:[%s9271_s1 + $0xb00] ss:$28 sps:$4 sm:$0xff]  }
  0x69   : > { %1812 = vmatpush1.bf16.msra.mxu1 %v6546_v59  ;;  %1887 = vmatprep.subr.bf16.mxu0 %v6557_v63  ;;  %v6630_v59 = vld [vmem:[%s9271_s1 + $0xbd8] ss:$28 sps:$4 sm:$0xff]  }
  0x6a   : > { %1813 = vmatprep.subr.bf16.mxu1 %v6554_v62  ;;  %v6638_v62 = vld [vmem:[%s9271_s1 + $0xc14] ss:$28 sps:$4 sm:$0xff]   ;;  %v6641_v63 = vld [vmem:[%s9271_s1 + $0xb3c] ss:$28 sps:$4 sm:$0xff]  }
  0x6c   : > { %1888 = vmatpush1.bf16.msra.mxu0 %v6555_v2  ;;  %v6639_v2 = vld [vmem:[%s9271_s1 + $0xb38] ss:$28 sps:$4 sm:$0xff]  }
  0x6d   : > { %1814 = vmatpush1.bf16.msra.mxu1 %v6552_v1  ;;  %1889 = vmatprep.subr.bf16.mxu0 %v6563_v4  ;;  %v6636_v1 = vld [vmem:[%s9271_s1 + $0xc10] ss:$28 sps:$4 sm:$0xff]   ;;  %v6645_v4 = vld [vmem:[%s9271_s1 + $0x7f8] ss:$28 sps:$4 sm:$0xff]  }
  0x6e   : > { %1815 = vmatprep.subr.bf16.mxu1 %v6560_v3  ;;  %v6644_v3 = vld [vmem:[%s9271_s1 + $0xb74] ss:$28 sps:$4 sm:$0xff]  }
  0x70   : > { %1890 = vmatpush1.bf16.msra.mxu0 %v6561_v7  ;;  %v6646_v7 = vld [vmem:[%s9271_s1 + $0x638] ss:$28 sps:$4 sm:$0xff]  }
  0x71   : > { %1816 = vmatpush1.bf16.msra.mxu1 %v6558_v5  ;;  %1891 = vmatprep.subr.bf16.mxu0 %v6569_v10  ;;  %v6642_v5 = vld [vmem:[%s9271_s1 + $0xb70] ss:$28 sps:$4 sm:$0xff]  }
  0x72   : > { %1817 = vmatprep.subr.bf16.mxu1 %v6566_v9  ;;  %v6649_v9 = vld [vmem:[%s9271_s1 + $0xbac] ss:$28 sps:$4 sm:$0xff]  }
  0x73   : > { %v6650_v10 = vld [vmem:[%s9271_s1 + $0x830] ss:$28 sps:$4 sm:$0xff]  }
  0x74   : > { %1892 = vmatpush1.bf16.msra.mxu0 %v6567_v12  ;;  %v6651_v12 = vld [vmem:[%s9271_s1 + $0x670] ss:$28 sps:$4 sm:$0xff]  }
  0x75   : > { %1818 = vmatpush1.bf16.msra.mxu1 %v6564_v11  ;;  %1893 = vmatprep.subr.bf16.mxu0 %v6575_v14  ;;  %v6647_v11 = vld [vmem:[%s9271_s1 + $0xba8] ss:$28 sps:$4 sm:$0xff]  }
  0x76   : > { %1828 = vmatprep.subr.bf16.mxu1 %v6572_v13  ;;  %v6654_v13 = vld [vmem:[%s9271_s1 + $0xbe4] ss:$28 sps:$4 sm:$0xff]  }
  0x77   : > { %v6655_v14 = vld [vmem:[%s9271_s1 + $0x868] ss:$28 sps:$4 sm:$0xff]  }
  0x78   : > { %1820 = vmatmul.mubr.bf16.vlgmr.msra.gmra.mrb[4].mxu1 %v7531_v23  ;;  %1894 = vmatpush1.bf16.msra.mxu0 %v6573_v16  ;;  %v6656_v16 = vld [vmem:[%s9271_s1 + $0x6a8] ss:$28 sps:$4 sm:$0xff]  }
  0x79   : > { %1829 = vmatpush1.bf16.msra.mxu1 %v6570_v15  ;;  %1895 = vmatprep.subr.bf16.mxu0 %v6581_v18  ;;  %v6652_v15 = vld [vmem:[%s9271_s1 + $0xbe0] ss:$28 sps:$4 sm:$0xff]   ;;  %v6657_v18 = vld [vmem:[%s9271_s1 + $0xc18] ss:$28 sps:$4 sm:$0xff]  }
  0x7a   : > { %1830 = vmatprep.subr.bf16.mxu1 %v6578_v17  ;;  %5602 = vmatprep.mubr.msk.bf16.mxu1 %vm1701_vm0, %v7437_v48  ;;  %v6659_v17 = vld [vmem:[%s9271_s1 + $0xc1c] ss:$28 sps:$4 sm:$0xff]  }
  0x7c   : > { %1896 = vmatpush1.bf16.msra.mxu0 %v6579_v20  ;;  %v6662_v20 = vld [vmem:[%s9271_s1 + $0x8d8] ss:$28 sps:$4 sm:$0xff]  }
  0x7d   : > { %1831 = vmatpush1.bf16.msra.mxu1 %v6576_v19  ;;  %1897 = vmatprep.subr.bf16.mxu0 %v6587_v22  ;;  %v6661_v19 = vld [vmem:[%s9271_s1 + $0x6e0] ss:$28 sps:$4 sm:$0xff]  }
  0x7e   : > { %1832 = vmatprep.subr.bf16.mxu1 %v6584_v21  ;;  %v6665_v21 = vld [vmem:[%s9271_s1 + $0x4] ss:$28 sps:$4 sm:$0xff]  }
  0x7f   : > { %v6663_v22 = vld [vmem:[%s9271_s1] ss:$28 sps:$4 sm:$0xff]  }
  0x80   : > { %1898 = vmatpush1.bf16.msra.mxu0 %v6585_v25  ;;  %v6667_v25 = vld [vmem:[%s9271_s1 + $0x910] ss:$28 sps:$4 sm:$0xff]  }
  0x81   : > { %1833 = vmatpush1.bf16.msra.mxu1 %v6582_v24  ;;  %1899 = vmatprep.subr.bf16.mxu0 %v6593_v27  ;;  %v6666_v24 = vld [vmem:[%s9271_s1 + $0x718] ss:$28 sps:$4 sm:$0xff]  }
  0x82   : > { %1834 = vmatprep.subr.bf16.mxu1 %v6590_v26  ;;  %v6670_v26 = vld [vmem:[%s9271_s1 + $0x3c] ss:$28 sps:$4 sm:$0xff]  }
  0x83   : > { %v6668_v27 = vld [vmem:[%s9271_s1 + $0x38] ss:$28 sps:$4 sm:$0xff]  }
  0x84   : > { %1900 = vmatpush1.bf16.msra.mxu0 %v6591_v29  ;;  %v6672_v29 = vld [vmem:[%s9271_s1 + $0x948] ss:$28 sps:$4 sm:$0xff]  }
  0x85   : > { %1835 = vmatpush1.bf16.msra.mxu1 %v6588_v28  ;;  %1910 = vmatprep.subr.bf16.mxu0 %v6599_v31  ;;  %v6671_v28 = vld [vmem:[%s9271_s1 + $0x750] ss:$28 sps:$4 sm:$0xff]  }
  0x86   : > { %1836 = vmatprep.subr.bf16.mxu1 %v6596_v30  ;;  %v6675_v30 = vld [vmem:[%s9271_s1 + $0x74] ss:$28 sps:$4 sm:$0xff]  }
  0x87   : > { %1902 = vmatmul.mubr.bf16.vlgmr.msra.gmra.mrb[4].mxu0 %v7531_v23  ;;  %v6673_v31 = vld [vmem:[%s9271_s1 + $0x70] ss:$28 sps:$4 sm:$0xff]  }
  0x88   : > { %1911 = vmatpush1.bf16.msra.mxu0 %v6597_v33  ;;  %5603 = vmatprep.mubr.msk.bf16.mxu0 %vm1701_vm0, %v7437_v48  ;;  %v6677_v33 = vld [vmem:[%s9271_s1 + $0x980] ss:$28 sps:$4 sm:$0xff]  }
  0x89   : > { %1837 = vmatpush1.bf16.msra.mxu1 %v6594_v32  ;;  %1912 = vmatprep.subr.bf16.mxu0 %v6605_v35  ;;  %v6676_v32 = vld [vmem:[%s9271_s1 + $0x788] ss:$28 sps:$4 sm:$0xff]  }
  0x8a   : > { %1838 = vmatprep.subr.bf16.mxu1 %v6602_v34  ;;  %v6680_v34 = vld [vmem:[%s9271_s1 + $0xac] ss:$28 sps:$4 sm:$0xff]  }
  0x8b   : > { %v6678_v35 = vld [vmem:[%s9271_s1 + $0xa8] ss:$28 sps:$4 sm:$0xff]  }
  0x8c   : > { %1913 = vmatpush1.bf16.msra.mxu0 %v6603_v37  ;;  %v6684_v37 = vld [vmem:[%s9271_s1 + $0xe4] ss:$28 sps:$4 sm:$0xff]  }
  0x8d   : > { %1839 = vmatpush1.bf16.msra.mxu1 %v6600_v36  ;;  %1914 = vmatprep.subr.bf16.mxu0 %v6611_v40  ;;  %v6681_v36 = vld [vmem:[%s9271_s1 + $0x7c0] ss:$28 sps:$4 sm:$0xff]   ;;  %v6685_v40 = vld [vmem:[%s9271_s1 + $0x9b8] ss:$28 sps:$4 sm:$0xff]  }
  0x8e   : > { %1840 = vmatprep.subr.bf16.mxu1 %v6608_v38  ;;  %v6682_v38 = vld [vmem:[%s9271_s1 + $0xe0] ss:$28 sps:$4 sm:$0xff]  }
  0x90   : > { %1915 = vmatpush1.bf16.msra.mxu0 %v6609_v42  ;;  %v6688_v42 = vld [vmem:[%s9271_s1 + $0x11c] ss:$28 sps:$4 sm:$0xff]  }
  0x91   : > { %1841 = vmatpush1.bf16.msra.mxu1 %v6606_v41  ;;  %1916 = vmatprep.subr.bf16.mxu0 %v6617_v45  ;;  %v7256_v41 = vmov 0   ;;  %v6689_v45 = vld [vmem:[%s9271_s1 + $0x9f0] ss:$28 sps:$4 sm:$0xff]  }
  0x92   : > { %1842 = vmatprep.subr.bf16.mxu1 %v6614_v44  ;;  %v6686_v44 = vld [vmem:[%s9271_s1 + $0x118] ss:$28 sps:$4 sm:$0xff]  }
  0x94   : > { %1917 = vmatpush1.bf16.msra.mxu0 %v6615_v47  ;;  %v6693_v47 = vld [vmem:[%s9271_s1 + $0xa28] ss:$28 sps:$4 sm:$0xff]  }
  0x95   : > { %1843 = vmatpush1.bf16.msra.mxu1 %v6612_v46  ;;  %1918 = vmatprep.subr.bf16.mxu0 %v6623_v50  ;;  %v6692_v46 = vld [vmem:[%s9271_s1 + $0x154] ss:$28 sps:$4 sm:$0xff]   ;;  %v6697_v50 = vld [vmem:[%s9271_s1 + $0xa60] ss:$28 sps:$4 sm:$0xff]  }
  0x96   : > { %1844 = vmatprep.subr.bf16.mxu1 %v6620_v49  ;;  %v6696_v49 = vld [vmem:[%s9271_s1 + $0x18c] ss:$28 sps:$4 sm:$0xff]  }
  0x98   : > { %1919 = vmatpush1.bf16.msra.mxu0 %v6621_v52  ;;  %v6698_v52 = vld [vmem:[%s9271_s1 + $0x1c0] ss:$28 sps:$4 sm:$0xff]  }
  0x99   : > { %1845 = vmatpush1.bf16.msra.mxu1 %v6618_v51  ;;  %1920 = vmatprep.subr.bf16.mxu0 %v6629_v54  ;;  %v6700_v51 = vld [vmem:[%s9271_s1 + $0x1c4] ss:$28 sps:$4 sm:$0xff]   ;;  %v6704_v54 = vld [vmem:[%s9271_s1 + $0x1fc] ss:$28 sps:$4 sm:$0xff]  }
  0x9a   : > { %1846 = vmatprep.subr.bf16.mxu1 %v6626_v53  ;;  %v6701_v53 = vld [vmem:[%s9271_s1 + $0xa98] ss:$28 sps:$4 sm:$0xff]  }
  0x9c   : > { %1921 = vmatpush1.bf16.msra.mxu0 %v6627_v56  ;;  %v6705_v56 = vld [vmem:[%s9271_s1 + $0xad0] ss:$28 sps:$4 sm:$0xff]  }
  0x9d   : > { %1847 = vmatpush1.bf16.msra.mxu1 %v6624_v55  ;;  %1922 = vmatprep.subr.bf16.mxu0 %v6635_v58  ;;  %v6702_v55 = vld [vmem:[%s9271_s1 + $0x1f8] ss:$28 sps:$4 sm:$0xff]   ;;  %v6706_v58 = vld [vmem:[%s9271_s1 + $0x230] ss:$28 sps:$4 sm:$0xff]  }
  0x9e   : > { %1848 = vmatprep.subr.bf16.mxu1 %v6632_v57  ;;  %v6708_v57 = vld [vmem:[%s9271_s1 + $0x234] ss:$28 sps:$4 sm:$0xff]  }
  0xa0   : > { %1923 = vmatpush1.bf16.msra.mxu0 %v6633_v61  ;;  %v6712_v61 = vld [vmem:[%s9271_s1 + $0x26c] ss:$28 sps:$4 sm:$0xff]  }
  0xa1   : > { %1849 = vmatpush1.bf16.msra.mxu1 %v6630_v59  ;;  %1924 = vmatprep.subr.bf16.mxu0 %v6641_v63  ;;  %v6709_v59 = vld [vmem:[%s9271_s1 + $0xb08] ss:$28 sps:$4 sm:$0xff]   ;;  %v6713_v63 = vld [vmem:[%s9271_s1 + $0xb40] ss:$28 sps:$4 sm:$0xff]  }
  0xa2   : > { %1850 = vmatprep.subr.bf16.mxu1 %v6638_v62  ;;  %v6710_v62 = vld [vmem:[%s9271_s1 + $0x268] ss:$28 sps:$4 sm:$0xff]  }
  0xa4   : > { %1925 = vmatpush1.bf16.msra.mxu0 %v6639_v2  ;;  %v6714_v2 = vld [vmem:[%s9271_s1 + $0x2a0] ss:$28 sps:$4 sm:$0xff]  }
  0xa5   : > { %1851 = vmatpush1.bf16.msra.mxu1 %v6636_v1  ;;  %1926 = vmatprep.subr.bf16.mxu0 %v6644_v3  ;;  %v6716_v1 = vld [vmem:[%s9271_s1 + $0x2a4] ss:$28 sps:$4 sm:$0xff]   ;;  %v6717_v3 = vld [vmem:[%s9271_s1 + $0xb78] ss:$28 sps:$4 sm:$0xff]  }
  0xa6   : > { %6239 = vmatprep.subr.bf16.mxu1 %v6645_v4  ;;  %v6720_v4 = vld [vmem:[%s9271_s1 + $0x2dc] ss:$28 sps:$4 sm:$0xff]  }
  0xa8   : > { %1861 = vmatmul.mubr.bf16.vlgmr.msra.gmra.mrb[4].mxu1 %v7472_v0  ;;  %1927 = vmatpush1.bf16.msra.mxu0 %v6642_v5  ;;  %v6718_v5 = vld [vmem:[%s9271_s1 + $0x2d8] ss:$28 sps:$4 sm:$0xff]  }
  0xa9   : > { %6240 = vmatpush3.bf16.msra.mxu1 %v6646_v7  ;;  %1928 = vmatprep.subr.bf16.mxu0 %v6649_v9  ;;  %v6721_v7 = vld [vmem:[%s9271_s1 + $0xbb0] ss:$28 sps:$4 sm:$0xff]  }
  0xaa   : > { %6241 = vmatprep.subr.bf16.mxu1 %v6650_v10  ;;  %1983 = vmatprep.mubr.bf16.mxu1 %v7486_v6  ;;  %v6660_v6 = vld [vmem:[%s9271_s1 + $0x8a0] ss:$28 sps:$4 sm:$0xff]   ;;  %v6724_v9 = vld [vmem:[%s9271_s1 + $0x314] ss:$28 sps:$4 sm:$0xff]  }
  0xab   : > { %v6722_v10 = vld [vmem:[%s9271_s1 + $0x310] ss:$28 sps:$4 sm:$0xff]  }
  0xac   : > { %1929 = vmatpush1.bf16.msra.mxu0 %v6647_v11  ;;  %v6725_v11 = vld [vmem:[%s9271_s1 + $0xbe8] ss:$28 sps:$4 sm:$0xff]  }
  0xad   : > { %6242 = vmatpush3.bf16.msra.mxu1 %v6651_v12  ;;  %1930 = vmatprep.subr.bf16.mxu0 %v6654_v13  ;;  %v6728_v12 = vld [vmem:[%s9271_s1 + $0x34c] ss:$28 sps:$4 sm:$0xff]  }
  0xae   : > { %6243 = vmatprep.subr.bf16.mxu1 %v6655_v14  ;;  %v6726_v13 = vld [vmem:[%s9271_s1 + $0x348] ss:$28 sps:$4 sm:$0xff]   ;;  %v6729_v14 = vld [vmem:[%s9271_s1 + $0xc20] ss:$28 sps:$4 sm:$0xff]  }
  0xb0   : > { %1931 = vmatpush1.bf16.msra.mxu0 %v6652_v15  ;;  %v6732_v15 = vld [vmem:[%s9271_s1 + $0x384] ss:$28 sps:$4 sm:$0xff]  }
  0xb1   : > { %6244 = vmatpush3.bf16.msra.mxu1 %v6656_v16  ;;  %1932 = vmatprep.subr.bf16.mxu0 %v6659_v17  ;;  %v6735_v16 = vld [vmem:[%s9271_s1 + $0xc] ss:$28 sps:$4 sm:$0xff]   ;;  %v6730_v17 = vld [vmem:[%s9271_s1 + $0x380] ss:$28 sps:$4 sm:$0xff]  }
  0xb2   : > { %6245 = vmatprep.subr.bf16.mxu1 %v6660_v6  ;;  %v6733_v6 = vld [vmem:[%s9271_s1 + $0x8] ss:$28 sps:$4 sm:$0xff]  }
  0xb4   : > { %1933 = vmatpush1.bf16.msra.mxu0 %v6657_v18  ;;  %v6738_v18 = vld [vmem:[%s9271_s1 + $0x3bc] ss:$28 sps:$4 sm:$0xff]  }
  0xb5   : > { %6246 = vmatpush3.bf16.msra.mxu1 %v6661_v19  ;;  %3044 = vmatprep.subr.bf16.mxu0 %v6665_v21  ;;  %v6741_v19 = vld [vmem:[%s9271_s1 + $0x44] ss:$28 sps:$4 sm:$0xff]  }
  0xb6   : > { %6247 = vmatprep.subr.bf16.mxu1 %v6662_v20  ;;  %v6736_v20 = vld [vmem:[%s9271_s1 + $0x3b8] ss:$28 sps:$4 sm:$0xff]   ;;  %v6739_v21 = vld [vmem:[%s9271_s1 + $0x40] ss:$28 sps:$4 sm:$0xff]  }
  0xb7   : > { %1943 = vmatmul.mubr.bf16.vlgmr.msra.gmra.mrb[4].mxu0 %v7472_v0 }
  0xb8   : > { %3045 = vmatpush1.bf16.msra.mxu0 %v6663_v22  ;;  %3076 = vmatprep.mubr.bf16.mxu0 %v7465_v60  ;;  %v6744_v22 = vld [vmem:[%s9271_s1 + $0x3f4] ss:$28 sps:$4 sm:$0xff]  }
  0xb9   : > { %6248 = vmatpush3.bf16.msra.mxu1 %v6666_v24  ;;  %3046 = vmatprep.subr.bf16.mxu0 %v6670_v26  ;;  %v6747_v24 = vld [vmem:[%s9271_s1 + $0x7c] ss:$28 sps:$4 sm:$0xff]   ;;  %v6750_v26 = vld [vmem:[%s9271_s1 + $0x42c] ss:$28 sps:$4 sm:$0xff]  }
  0xba   : > { %6249 = vmatprep.subr.bf16.mxu1 %v6667_v25  ;;  %v6745_v25 = vld [vmem:[%s9271_s1 + $0x78] ss:$28 sps:$4 sm:$0xff]  }
  0xbc   : > { %3047 = vmatpush1.bf16.msra.mxu0 %v6668_v27  ;;  %v6753_v27 = vld [vmem:[%s9271_s1 + $0xb4] ss:$28 sps:$4 sm:$0xff]  }
  0xbd   : > { %6250 = vmatpush3.bf16.msra.mxu1 %v6671_v28  ;;  %3048 = vmatprep.subr.bf16.mxu0 %v6675_v30  ;;  %v6748_v28 = vld [vmem:[%s9271_s1 + $0x428] ss:$28 sps:$4 sm:$0xff]  }
  0xbe   : > { %6251 = vmatprep.subr.bf16.mxu1 %v6672_v29  ;;  %v6751_v29 = vld [vmem:[%s9271_s1 + $0xb0] ss:$28 sps:$4 sm:$0xff]   ;;  %v6756_v30 = vld [vmem:[%s9271_s1 + $0x464] ss:$28 sps:$4 sm:$0xff]  }
  0xc0   : > { %3049 = vmatpush1.bf16.msra.mxu0 %v6673_v31  ;;  %v6759_v31 = vld [vmem:[%s9271_s1 + $0xec] ss:$28 sps:$4 sm:$0xff]  }
  0xc1   : > { %6252 = vmatpush3.bf16.msra.mxu1 %v6676_v32  ;;  %3050 = vmatprep.subr.bf16.mxu0 %v6680_v34  ;;  %v6754_v32 = vld [vmem:[%s9271_s1 + $0x460] ss:$28 sps:$4 sm:$0xff]  }
  0xc2   : > { %6253 = vmatprep.subr.bf16.mxu1 %v6677_v33  ;;  %v6757_v33 = vld [vmem:[%s9271_s1 + $0xe8] ss:$28 sps:$4 sm:$0xff]   ;;  %v6762_v34 = vld [vmem:[%s9271_s1 + $0x49c] ss:$28 sps:$4 sm:$0xff]  }
  0xc4   : > { %3051 = vmatpush1.bf16.msra.mxu0 %v6678_v35  ;;  %v6765_v35 = vld [vmem:[%s9271_s1 + $0x124] ss:$28 sps:$4 sm:$0xff]  }
  0xc5   : > { %6254 = vmatpush3.bf16.msra.mxu1 %v6681_v36  ;;  %3052 = vmatprep.subr.bf16.mxu0 %v6684_v37  ;;  %v6760_v36 = vld [vmem:[%s9271_s1 + $0x498] ss:$28 sps:$4 sm:$0xff]   ;;  %v6763_v37 = vld [vmem:[%s9271_s1 + $0x120] ss:$28 sps:$4 sm:$0xff]  }
  0xc6   : > { %1991 = vmatprep.subr.bf16.mxu1 %v7256_v41 }
  0xc8   : > { %1984 = vmatmul.mubr.bf16.vlgmr.msra.gmra.mrb[8].mxu1 %v7531_v23  ;;  %3053 = vmatpush1.bf16.msra.mxu0 %v6682_v38  ;;  %v6690_v23 = vld [vmem:[%s9271_s1 + $0x150] ss:$28 sps:$4 sm:$0xff]  }
  0xc9   : > { %1992 = vmatpush1.bf16.msra.mxu1 %v6685_v40  ;;  %3054 = vmatprep.subr.bf16.mxu0 %v6688_v42  ;;  %v6768_v38 = vld [vmem:[%s9271_s1 + $0x4d4] ss:$28 sps:$4 sm:$0xff]   ;;  %v6771_v40 = vld [vmem:[%s9271_s1 + $0x15c] ss:$28 sps:$4 sm:$0xff]  }
  0xca   : > { %1993 = vmatprep.subr.bf16.mxu1 %v7256_v41  ;;  %5604 = vmatprep.mubr.msk.bf16.mxu1 %vm1701_vm0, %v7437_v48  ;;  %v6694_v48 = vld [vmem:[%s9271_s1 + $0x188] ss:$28 sps:$4 sm:$0xff]  }
  0xcc   : > { %3055 = vmatpush1.bf16.msra.mxu0 %v6686_v44  ;;  %v6766_v44 = vld [vmem:[%s9271_s1 + $0x4d0] ss:$28 sps:$4 sm:$0xff]  }
  0xcd   : > { %1994 = vmatpush1.bf16.msra.mxu1 %v6689_v45  ;;  %3056 = vmatprep.subr.bf16.mxu0 %v6692_v46  ;;  %v6769_v45 = vld [vmem:[%s9271_s1 + $0x158] ss:$28 sps:$4 sm:$0xff]  }
  0xce   : > { %1995 = vmatprep.subr.bf16.mxu1 %v7256_v41 }
  0xd0   : > { %3057 = vmatpush1.bf16.msra.mxu0 %v6690_v23 }
  0xd1   : > { %1996 = vmatpush1.bf16.msra.mxu1 %v6693_v47  ;;  %3058 = vmatprep.subr.bf16.mxu0 %v6696_v49  ;;  %v6774_v47 = vld [vmem:[%s9271_s1 + $0x50c] ss:$28 sps:$4 sm:$0xff]  }
  0xd2   : > { %1997 = vmatprep.subr.bf16.mxu1 %v7256_v41 }
  0xd4   : > { %3059 = vmatpush1.bf16.msra.mxu0 %v6694_v48  ;;  %v6777_v48 = vld [vmem:[%s9271_s1 + $0x194] ss:$28 sps:$4 sm:$0xff]  }
  0xd5   : > { %1998 = vmatpush1.bf16.msra.mxu1 %v6697_v50  ;;  %3060 = vmatprep.subr.bf16.mxu0 %v6700_v51  ;;  %v6772_v50 = vld [vmem:[%s9271_s1 + $0x508] ss:$28 sps:$4 sm:$0xff]   ;;  %v6775_v51 = vld [vmem:[%s9271_s1 + $0x190] ss:$28 sps:$4 sm:$0xff]  }
  0xd6   : > { %1999 = vmatprep.subr.bf16.mxu1 %v7256_v41 }
  0xd8   : > { %3061 = vmatpush1.bf16.msra.mxu0 %v6698_v52  ;;  %v6780_v52 = vld [vmem:[%s9271_s1 + $0x544] ss:$28 sps:$4 sm:$0xff]  }
  0xd9   : > { %2000 = vmatpush1.bf16.msra.mxu1 %v6701_v53  ;;  %3062 = vmatprep.subr.bf16.mxu0 %v6704_v54  ;;  %v6783_v53 = vld [vmem:[%s9271_s1 + $0x1cc] ss:$28 sps:$4 sm:$0xff]   ;;  %v6778_v54 = vld [vmem:[%s9271_s1 + $0x540] ss:$28 sps:$4 sm:$0xff]  }
  0xda   : > { %2001 = vmatprep.subr.bf16.mxu1 %v7256_v41 }
  0xdc   : > { %3063 = vmatpush1.bf16.msra.mxu0 %v6702_v55  ;;  %v6781_v55 = vld [vmem:[%s9271_s1 + $0x1c8] ss:$28 sps:$4 sm:$0xff]  }
  0xdd   : > { %2002 = vmatpush1.bf16.msra.mxu1 %v6705_v56  ;;  %3064 = vmatprep.subr.bf16.mxu0 %v6708_v57  ;;  %v6786_v56 = vld [vmem:[%s9271_s1 + $0x57c] ss:$28 sps:$4 sm:$0xff]   ;;  %v6789_v57 = vld [vmem:[%s9271_s1 + $0x204] ss:$28 sps:$4 sm:$0xff]  }
  0xde   : > { %2003 = vmatprep.subr.bf16.mxu1 %v7256_v41 }
  0xe0   : > { %3065 = vmatpush1.bf16.msra.mxu0 %v6706_v58  ;;  %v6784_v58 = vld [vmem:[%s9271_s1 + $0x578] ss:$28 sps:$4 sm:$0xff]  }
  0xe1   : > { %2004 = vmatpush1.bf16.msra.mxu1 %v6709_v59  ;;  %3066 = vmatprep.subr.bf16.mxu0 %v6712_v61  ;;  %v6787_v59 = vld [vmem:[%s9271_s1 + $0x200] ss:$28 sps:$4 sm:$0xff]   ;;  %v6792_v61 = vld [vmem:[%s9271_s1 + $0x5b4] ss:$28 sps:$4 sm:$0xff]  }
  0xe2   : > { %2005 = vmatprep.subr.bf16.mxu1 %v7256_v41 }
  0xe4   : > { %3067 = vmatpush1.bf16.msra.mxu0 %v6710_v62  ;;  %v6795_v62 = vld [vmem:[%s9271_s1 + $0x23c] ss:$28 sps:$4 sm:$0xff]  }
  0xe5   : > { %2006 = vmatpush1.bf16.msra.mxu1 %v6713_v63  ;;  %3068 = vmatprep.subr.bf16.mxu0 %v6716_v1  ;;  %v6790_v1 = vld [vmem:[%s9271_s1 + $0x5b0] ss:$28 sps:$4 sm:$0xff]  }
  0xe6   : > { %2007 = vmatprep.subr.bf16.mxu1 %v7256_v41 }
  0xe8   : > { %3069 = vmatpush1.bf16.msra.mxu0 %v6714_v2 }
  0xe9   : > { %2008 = vmatpush1.bf16.msra.mxu1 %v6717_v3  ;;  %3070 = vmatprep.subr.bf16.mxu0 %v6720_v4  ;;  %v6793_v4 = vld [vmem:[%s9271_s1 + $0x238] ss:$28 sps:$4 sm:$0xff]  }
  0xea   : > { %2009 = vmatprep.subr.bf16.mxu1 %v7256_v41 }
  0xec   : > { %3071 = vmatpush1.bf16.msra.mxu0 %v6718_v5 }
  0xed   : > { %2010 = vmatpush1.bf16.msra.mxu1 %v6721_v7  ;;  %3072 = vmatprep.subr.bf16.mxu0 %v6724_v9 }
  0xee   : > { %2011 = vmatprep.subr.bf16.mxu1 %v7256_v41 }
  0xf0   : > { %3073 = vmatpush1.bf16.msra.mxu0 %v6722_v10  ;;  %v6798_v10 = vld [vmem:[%s9271_s1 + $0x5ec] ss:$28 sps:$4 sm:$0xff]  }
  0xf1   : > { %2012 = vmatpush1.bf16.msra.mxu1 %v6725_v11  ;;  %3074 = vmatprep.subr.bf16.mxu0 %v6728_v12  ;;  %v6801_v11 = vld [vmem:[%s9271_s1 + $0x274] ss:$28 sps:$4 sm:$0xff]   ;;  %v6796_v12 = vld [vmem:[%s9271_s1 + $0x5e8] ss:$28 sps:$4 sm:$0xff]  }
  0xf2   : > { %2013 = vmatprep.subr.bf16.mxu1 %v7256_v41 }
  0xf4   : > { %3075 = vmatpush1.bf16.msra.mxu0 %v6726_v13  ;;  %v6799_v13 = vld [vmem:[%s9271_s1 + $0x270] ss:$28 sps:$4 sm:$0xff]  }
  0xf5   : > { %2014 = vmatpush1.bf16.msra.mxu1 %v6729_v14  ;;  %3085 = vmatprep.subr.bf16.mxu0 %v6732_v15  ;;  %v6804_v14 = vld [vmem:[%s9271_s1 + $0x2ac] ss:$28 sps:$4 sm:$0xff]   ;;  %v6807_v15 = vld [vmem:[%s9271_s1 + $0x14] ss:$28 sps:$4 sm:$0xff]  }
  0xf6   : > { %3126 = vmatprep.subr.bf16.mxu1 %v6735_v16  ;;  %v6802_v16 = vld [vmem:[%s9271_s1 + $0x2a8] ss:$28 sps:$4 sm:$0xff]  }
  0xf7   : > { %3077 = vmatmul.mubr.bf16.vlgmr.msra.gmra.mrb[8].mxu0 %v7492_v8 }
  0xf8   : > { %2024 = vmatmul.mubr.bf16.vlgmr.msra.gmra.mrb[12].mxu1 %v7472_v0  ;;  %3086 = vmatpush1.bf16.msra.mxu0 %v6730_v17  ;;  %v6742_v0 = vld [vmem:[%s9271_s1 + $0x3f0] ss:$28 sps:$4 sm:$0xff]  }
  0xf9   : > { %3127 = vmatpush1.bf16.msra.mxu1 %v6733_v6  ;;  %3087 = vmatprep.subr.bf16.mxu0 %v6738_v18  ;;  %v6805_v17 = vld [vmem:[%s9271_s1 + $0x10] ss:$28 sps:$4 sm:$0xff]   ;;  %v6810_v6 = vld [vmem:[%s9271_s1 + $0x2e4] ss:$28 sps:$4 sm:$0xff]  }
  0xfa   : > { %3128 = vmatprep.subr.bf16.mxu1 %v6741_v19  ;;  %5801 = vmatprep.mubr.msk.bf16.mxu0 %vm1701_vm0, %v7419_v39  ;;  %v6813_v18 = vld [vmem:[%s9271_s1 + $0x4c] ss:$28 sps:$4 sm:$0xff]   ;;  %v6808_v19 = vld [vmem:[%s9271_s1 + $0x2e0] ss:$28 sps:$4 sm:$0xff]  }
  0xfb   : > { %3158 = vmatprep.mubr.bf16.mxu1 %v7465_v60 }
  0xfc   : > { %3088 = vmatpush1.bf16.msra.mxu0 %v6736_v20  ;;  %v6811_v20 = vld [vmem:[%s9271_s1 + $0x48] ss:$28 sps:$4 sm:$0xff]  }
  0xfd   : > { %3129 = vmatpush1.bf16.msra.mxu1 %v6739_v21  ;;  %3089 = vmatprep.subr.bf16.mxu0 %v6744_v22  ;;  %v6816_v21 = vld [vmem:[%s9271_s1 + $0x31c] ss:$28 sps:$4 sm:$0xff]   ;;  %v6819_v22 = vld [vmem:[%s9271_s1 + $0x84] ss:$28 sps:$4 sm:$0xff]  }
  0xfe   : > { %3130 = vmatprep.subr.bf16.mxu1 %v6747_v24  ;;  %v6814_v24 = vld [vmem:[%s9271_s1 + $0x318] ss:$28 sps:$4 sm:$0xff]  }
 0x100   : > { %3090 = vmatpush1.bf16.msra.mxu0 %v6742_v0  ;;  %v6817_v0 = vld [vmem:[%s9271_s1 + $0x80] ss:$28 sps:$4 sm:$0xff]  }
 0x101   : > { %3131 = vmatpush1.bf16.msra.mxu1 %v6745_v25  ;;  %3091 = vmatprep.subr.bf16.mxu0 %v6750_v26  ;;  %v6822_v25 = vld [vmem:[%s9271_s1 + $0x354] ss:$28 sps:$4 sm:$0xff]   ;;  %v6825_v26 = vld [vmem:[%s9271_s1 + $0xbc] ss:$28 sps:$4 sm:$0xff]  }
 0x102   : > { %3132 = vmatprep.subr.bf16.mxu1 %v6753_v27  ;;  %v6820_v27 = vld [vmem:[%s9271_s1 + $0x350] ss:$28 sps:$4 sm:$0xff]  }
 0x104   : > { %3092 = vmatpush1.bf16.msra.mxu0 %v6748_v28  ;;  %v6823_v28 = vld [vmem:[%s9271_s1 + $0xb8] ss:$28 sps:$4 sm:$0xff]  }
 0x105   : > { %3133 = vmatpush1.bf16.msra.mxu1 %v6751_v29  ;;  %3093 = vmatprep.subr.bf16.mxu0 %v6756_v30  ;;  %v6828_v29 = vld [vmem:[%s9271_s1 + $0x38c] ss:$28 sps:$4 sm:$0xff]   ;;  %v6831_v30 = vld [vmem:[%s9271_s1 + $0xf4] ss:$28 sps:$4 sm:$0xff]  }
 0x106   : > { %3134 = vmatprep.subr.bf16.mxu1 %v6759_v31  ;;  %v6826_v31 = vld [vmem:[%s9271_s1 + $0x388] ss:$28 sps:$4 sm:$0xff]  }
 0x108   : > { %3094 = vmatpush1.bf16.msra.mxu0 %v6754_v32  ;;  %v6829_v32 = vld [vmem:[%s9271_s1 + $0xf0] ss:$28 sps:$4 sm:$0xff]  }
 0x109   : > { %3135 = vmatpush1.bf16.msra.mxu1 %v6757_v33  ;;  %3095 = vmatprep.subr.bf16.mxu0 %v6762_v34  ;;  %v6834_v33 = vld [vmem:[%s9271_s1 + $0x3c4] ss:$28 sps:$4 sm:$0xff]   ;;  %v6837_v34 = vld [vmem:[%s9271_s1 + $0x12c] ss:$28 sps:$4 sm:$0xff]  }
 0x10a   : > { %3136 = vmatprep.subr.bf16.mxu1 %v6765_v35  ;;  %v6832_v35 = vld [vmem:[%s9271_s1 + $0x3c0] ss:$28 sps:$4 sm:$0xff]  }
 0x10b   : > { %v1780_v42 = vpop.f32.mrb[0].mxu1 }
 0x10c   : > { %v1782_v46 = vpop.f32.mrb[1].mxu1  ;;  %3096 = vmatpush1.bf16.msra.mxu0 %v6760_v36  ;;  %v6835_v36 = vld [vmem:[%s9271_s1 + $0x128] ss:$28 sps:$4 sm:$0xff]  }
 0x10d   : > { %v1784_v23 = vpop.f32.mrb[2].mxu1  ;;  %3137 = vmatpush1.bf16.msra.mxu1 %v6763_v37  ;;  %3097 = vmatprep.subr.bf16.mxu0 %v6768_v38  ;;  %v6840_v37 = vld [vmem:[%s9271_s1 + $0x3fc] ss:$28 sps:$4 sm:$0xff]   ;;  %v6843_v38 = vld [vmem:[%s9271_s1 + $0x164] ss:$28 sps:$4 sm:$0xff]  }
 0x10e   : > { %v1785_v49 = vpop.f32.mrb[3].mxu1  ;;  %3138 = vmatprep.subr.bf16.mxu1 %v6771_v40  ;;  %v6838_v40 = vld [vmem:[%s9271_s1 + $0x3f8] ss:$28 sps:$4 sm:$0xff]  }
 0x10f   : > { %v6847_v23 = vld [vmem:[%s9271_s1 + $0x198] ss:$28 sps:$4 sm:$0xff]  }
 0x110   : > { %3098 = vmatpush1.bf16.msra.mxu0 %v6766_v44  ;;  %v6846_v44 = vld [vmem:[%s9271_s1 + $0x434] ss:$28 sps:$4 sm:$0xff]  }
 0x111   : > { %3139 = vmatpush1.bf16.msra.mxu1 %v6769_v45  ;;  %3099 = vmatprep.subr.bf16.mxu0 %v6774_v47  ;;  %v6849_v45 = vld [vmem:[%s9271_s1 + $0x19c] ss:$28 sps:$4 sm:$0xff]   ;;  %v6852_v47 = vld [vmem:[%s9271_s1 + $0x46c] ss:$28 sps:$4 sm:$0xff]   ;;  %v6855_v49 = vld [vmem:[%s9271_s1 + $0x1d4] ss:$28 sps:$4 sm:$0xff]  }
 0x112   : > { %3140 = vmatprep.subr.bf16.mxu1 %v6777_v48  ;;  %v6850_v48 = vld [vmem:[%s9271_s1 + $0x468] ss:$28 sps:$4 sm:$0xff]  }
 0x114   : > { %3100 = vmatpush1.bf16.msra.mxu0 %v6772_v50  ;;  %v6853_v50 = vld [vmem:[%s9271_s1 + $0x1d0] ss:$28 sps:$4 sm:$0xff]  }
 0x115   : > { %3141 = vmatpush1.bf16.msra.mxu1 %v6775_v51  ;;  %3101 = vmatprep.subr.bf16.mxu0 %v6780_v52  ;;  %v6858_v51 = vld [vmem:[%s9271_s1 + $0x4a4] ss:$28 sps:$4 sm:$0xff]   ;;  %v6861_v52 = vld [vmem:[%s9271_s1 + $0x20c] ss:$28 sps:$4 sm:$0xff]  }
 0x116   : > { %3142 = vmatprep.subr.bf16.mxu1 %v6783_v53  ;;  %v6856_v53 = vld [vmem:[%s9271_s1 + $0x4a0] ss:$28 sps:$4 sm:$0xff]  }
 0x118   : > { %3102 = vmatpush1.bf16.msra.mxu0 %v6778_v54  ;;  %v6859_v54 = vld [vmem:[%s9271_s1 + $0x208] ss:$28 sps:$4 sm:$0xff]  }
 0x119   : > { %3143 = vmatpush1.bf16.msra.mxu1 %v6781_v55  ;;  %3103 = vmatprep.subr.bf16.mxu0 %v6786_v56  ;;  %v6864_v55 = vld [vmem:[%s9271_s1 + $0x4dc] ss:$28 sps:$4 sm:$0xff]   ;;  %v6867_v56 = vld [vmem:[%s9271_s1 + $0x244] ss:$28 sps:$4 sm:$0xff]  }
 0x11a   : > { %3144 = vmatprep.subr.bf16.mxu1 %v6789_v57  ;;  %v1739_v63 = vpop.f32.mrb[0].mxu0  ;;  %v6862_v57 = vld [vmem:[%s9271_s1 + $0x4d8] ss:$28 sps:$4 sm:$0xff]  }
 0x11b   : > { %v8180_v2 = vadd.f32 %v1780_v42, %v1739_v63  ;;  %v1741_v3 = vpop.f32.mrb[1].mxu0  ;;  %v6841_v42 = vld [vmem:[%s9271_s1 + $0x160] ss:$28 sps:$4 sm:$0xff]   ;;  %v6871_v63 = vld [vmem:[%s9271_s1 + $0x278] ss:$28 sps:$4 sm:$0xff]  }
 0x11c   : > { %v8185_v5 = vadd.f32 %v1782_v46, %v1741_v3  ;;  %v1743_v7 = vpop.f32.mrb[2].mxu0  ;;  %3104 = vmatpush1.bf16.msra.mxu0 %v6784_v58  ;;  %v6844_v46 = vld [vmem:[%s9271_s1 + $0x430] ss:$28 sps:$4 sm:$0xff]   ;;  %v6865_v58 = vld [vmem:[%s9271_s1 + $0x240] ss:$28 sps:$4 sm:$0xff]  }
 0x11d   : > { %3145 = vmatpush1.bf16.msra.mxu1 %v6787_v59  ;;  %v1744_v9 = vpop.f32.mrb[3].mxu0  ;;  %3105 = vmatprep.subr.bf16.mxu0 %v6792_v61  ;;  %v6870_v59 = vld [vmem:[%s9271_s1 + $0x514] ss:$28 sps:$4 sm:$0xff]   ;;  %v6873_v61 = vld [vmem:[%s9271_s1 + $0x27c] ss:$28 sps:$4 sm:$0xff]  }
 0x11e   : > { %3146 = vmatprep.subr.bf16.mxu1 %v6795_v62  ;;  %v6868_v62 = vld [vmem:[%s9271_s1 + $0x510] ss:$28 sps:$4 sm:$0xff]   ;;  %v6882_v9 = vld [vmem:[%s9271_s1 + $0x584] ss:$28 sps:$4 sm:$0xff]  }
 0x11f   : > { %v6879_v3 = vld [vmem:[%s9271_s1 + $0x2b4] ss:$28 sps:$4 sm:$0xff]  }
 0x120   : > { %3106 = vmatpush1.bf16.msra.mxu0 %v6790_v1  ;;  %v6876_v1 = vld [vmem:[%s9271_s1 + $0x54c] ss:$28 sps:$4 sm:$0xff]  }
 0x121   : > { %3147 = vmatpush1.bf16.msra.mxu1 %v6793_v4  ;;  %3107 = vmatprep.subr.bf16.mxu0 %v6798_v10  ;;  %v6874_v4 = vld [vmem:[%s9271_s1 + $0x548] ss:$28 sps:$4 sm:$0xff]   ;;  %v6877_v7 = vld [vmem:[%s9271_s1 + $0x2b0] ss:$28 sps:$4 sm:$0xff]  }
 0x122   : > { %3148 = vmatprep.subr.bf16.mxu1 %v6801_v11  ;;  %v6885_v10 = vld [vmem:[%s9271_s1 + $0x2ec] ss:$28 sps:$4 sm:$0xff]   ;;  %v6880_v11 = vld [vmem:[%s9271_s1 + $0x580] ss:$28 sps:$4 sm:$0xff]  }
 0x124   : > { %3108 = vmatpush1.bf16.msra.mxu0 %v6796_v12  ;;  %v6883_v12 = vld [vmem:[%s9271_s1 + $0x2e8] ss:$28 sps:$4 sm:$0xff]  }
 0x125   : > { %3149 = vmatpush1.bf16.msra.mxu1 %v6799_v13  ;;  %3208 = vmatprep.subr.bf16.mxu0 %v6807_v15  ;;  %v6888_v13 = vld [vmem:[%s9271_s1 + $0x5bc] ss:$28 sps:$4 sm:$0xff]  }
 0x126   : > { %3150 = vmatprep.subr.bf16.mxu1 %v6804_v14  ;;  %v6891_v14 = vld [vmem:[%s9271_s1 + $0x324] ss:$28 sps:$4 sm:$0xff]   ;;  %v6886_v15 = vld [vmem:[%s9271_s1 + $0x5b8] ss:$28 sps:$4 sm:$0xff]  }
 0x127   : > { %3118 = vmatmul.mubr.bf16.vlgmr.msra.gmra.mrb[8].mxu0 %v7426_v43 }
 0x128   : > { %3209 = vmatpush1.bf16.msra.mxu0 %v6805_v17  ;;  %3240 = vmatprep.mubr.bf16.mxu0 %v7465_v60  ;;  %v6894_v17 = vld [vmem:[%s9271_s1 + $0x5f4] ss:$28 sps:$4 sm:$0xff]  }
 0x129   : > { %3151 = vmatpush1.bf16.msra.mxu1 %v6802_v16  ;;  %3210 = vmatprep.subr.bf16.mxu0 %v6813_v18  ;;  %v6889_v16 = vld [vmem:[%s9271_s1 + $0x320] ss:$28 sps:$4 sm:$0xff]   ;;  %v6892_v18 = vld [vmem:[%s9271_s1 + $0x5f0] ss:$28 sps:$4 sm:$0xff]  }
 0x12a   : > { %3152 = vmatprep.subr.bf16.mxu1 %v6810_v6  ;;  %v6897_v6 = vld [vmem:[%s9271_s1 + $0x35c] ss:$28 sps:$4 sm:$0xff]  }
 0x12c   : > { %3211 = vmatpush1.bf16.msra.mxu0 %v6811_v20  ;;  %v6900_v20 = vld [vmem:[%s9271_s1 + $0x394] ss:$28 sps:$4 sm:$0xff]  }
 0x12d   : > { %3153 = vmatpush1.bf16.msra.mxu1 %v6808_v19  ;;  %3212 = vmatprep.subr.bf16.mxu0 %v6819_v22  ;;  %v6895_v19 = vld [vmem:[%s9271_s1 + $0x358] ss:$28 sps:$4 sm:$0xff]   ;;  %v6898_v22 = vld [vmem:[%s9271_s1 + $0x390] ss:$28 sps:$4 sm:$0xff]  }
 0x12e   : > { %3154 = vmatprep.subr.bf16.mxu1 %v6816_v21  ;;  %v6901_v21 = vld [vmem:[%s9271_s1 + $0x1d8] ss:$28 sps:$4 sm:$0xff]  }
 0x130   : > { %3213 = vmatpush1.bf16.msra.mxu0 %v6817_v0  ;;  %v6905_v0 = vld [vmem:[%s9271_s1 + $0x3cc] ss:$28 sps:$4 sm:$0xff]  }
 0x131   : > { %3155 = vmatpush1.bf16.msra.mxu1 %v6814_v24  ;;  %3214 = vmatprep.subr.bf16.mxu0 %v6825_v26  ;;  %v6902_v24 = vld [vmem:[%s9271_s1 + $0x18] ss:$28 sps:$4 sm:$0xff]   ;;  %v6903_v26 = vld [vmem:[%s9271_s1 + $0x3c8] ss:$28 sps:$4 sm:$0xff]  }
 0x132   : > { %3156 = vmatprep.subr.bf16.mxu1 %v6822_v25  ;;  %v6906_v25 = vld [vmem:[%s9271_s1 + $0x210] ss:$28 sps:$4 sm:$0xff]  }
 0x134   : > { %3215 = vmatpush1.bf16.msra.mxu0 %v6823_v28  ;;  %v6910_v28 = vld [vmem:[%s9271_s1 + $0x404] ss:$28 sps:$4 sm:$0xff]  }
 0x135   : > { %3157 = vmatpush1.bf16.msra.mxu1 %v6820_v27  ;;  %3216 = vmatprep.subr.bf16.mxu0 %v6831_v30  ;;  %v6907_v27 = vld [vmem:[%s9271_s1 + $0x50] ss:$28 sps:$4 sm:$0xff]   ;;  %v6908_v30 = vld [vmem:[%s9271_s1 + $0x400] ss:$28 sps:$4 sm:$0xff]  }
 0x136   : > { %3167 = vmatprep.subr.bf16.mxu1 %v6828_v29  ;;  %v6911_v29 = vld [vmem:[%s9271_s1 + $0x248] ss:$28 sps:$4 sm:$0xff]  }
 0x138   : > { %3159 = vmatmul.mubr.bf16.vlgmr.msra.gmra.mrb[4].mxu1 %v7492_v8  ;;  %3217 = vmatpush1.bf16.msra.mxu0 %v6829_v32  ;;  %v6915_v32 = vld [vmem:[%s9271_s1 + $0x43c] ss:$28 sps:$4 sm:$0xff]  }
 0x139   : > { %3168 = vmatpush1.bf16.msra.mxu1 %v6826_v31  ;;  %3218 = vmatprep.subr.bf16.mxu0 %v6837_v34  ;;  %v6912_v31 = vld [vmem:[%s9271_s1 + $0x88] ss:$28 sps:$4 sm:$0xff]   ;;  %v6917_v34 = vld [vmem:[%s9271_s1 + $0xc0] ss:$28 sps:$4 sm:$0xff]  }
 0x13a   : > { %3169 = vmatprep.subr.bf16.mxu1 %v6834_v33  ;;  %5802 = vmatprep.mubr.msk.bf16.mxu1 %vm1701_vm0, %v7419_v39  ;;  %v6913_v33 = vld [vmem:[%s9271_s1 + $0x438] ss:$28 sps:$4 sm:$0xff]  }
 0x13c   : > { %3219 = vmatpush1.bf16.msra.mxu0 %v6835_v36  ;;  %v6921_v36 = vld [vmem:[%s9271_s1 + $0x2b8] ss:$28 sps:$4 sm:$0xff]  }
 0x13d   : > { %3170 = vmatpush1.bf16.msra.mxu1 %v6832_v35  ;;  %3220 = vmatprep.subr.bf16.mxu0 %v6843_v38  ;;  %v6920_v35 = vld [vmem:[%s9271_s1 + $0x474] ss:$28 sps:$4 sm:$0xff]  }
 0x13e   : > { %3171 = vmatprep.subr.bf16.mxu1 %v6840_v37  ;;  %v6918_v37 = vld [vmem:[%s9271_s1 + $0x470] ss:$28 sps:$4 sm:$0xff]   ;;  %v6922_v38 = vld [vmem:[%s9271_s1 + $0xf8] ss:$28 sps:$4 sm:$0xff]  }
 0x140   : > { %3221 = vmatpush1.bf16.msra.mxu0 %v6841_v42  ;;  %v6926_v42 = vld [vmem:[%s9271_s1 + $0x2f0] ss:$28 sps:$4 sm:$0xff]  }
 0x141   : > { %3172 = vmatpush1.bf16.msra.mxu1 %v6838_v40  ;;  %3222 = vmatprep.subr.bf16.mxu0 %v6849_v45  ;;  %v6925_v40 = vld [vmem:[%s9271_s1 + $0x4ac] ss:$28 sps:$4 sm:$0xff]  }
 0x142   : > { %3173 = vmatprep.subr.bf16.mxu1 %v6846_v44  ;;  %v6923_v44 = vld [vmem:[%s9271_s1 + $0x4a8] ss:$28 sps:$4 sm:$0xff]   ;;  %v6927_v45 = vld [vmem:[%s9271_s1 + $0x130] ss:$28 sps:$4 sm:$0xff]  }
 0x144   : > { %3223 = vmatpush1.bf16.msra.mxu0 %v6847_v23  ;;  %v6931_v23 = vld [vmem:[%s9271_s1 + $0x328] ss:$28 sps:$4 sm:$0xff]  }
 0x145   : > { %3174 = vmatpush1.bf16.msra.mxu1 %v6844_v46  ;;  %3224 = vmatprep.subr.bf16.mxu0 %v6855_v49  ;;  %v6930_v46 = vld [vmem:[%s9271_s1 + $0x4e4] ss:$28 sps:$4 sm:$0xff]  }
 0x146   : > { %3175 = vmatprep.subr.bf16.mxu1 %v6852_v47  ;;  %v6928_v47 = vld [vmem:[%s9271_s1 + $0x4e0] ss:$28 sps:$4 sm:$0xff]   ;;  %v6932_v49 = vld [vmem:[%s9271_s1 + $0x168] ss:$28 sps:$4 sm:$0xff]  }
 0x148   : > { %3225 = vmatpush1.bf16.msra.mxu0 %v6853_v50  ;;  %v6936_v50 = vld [vmem:[%s9271_s1 + $0x360] ss:$28 sps:$4 sm:$0xff]  }
 0x149   : > { %3176 = vmatpush1.bf16.msra.mxu1 %v6850_v48  ;;  %3226 = vmatprep.subr.bf16.mxu0 %v6861_v52  ;;  %v6935_v48 = vld [vmem:[%s9271_s1 + $0x51c] ss:$28 sps:$4 sm:$0xff]  }
 0x14a   : > { %3177 = vmatprep.subr.bf16.mxu1 %v6858_v51  ;;  %v6933_v51 = vld [vmem:[%s9271_s1 + $0x518] ss:$28 sps:$4 sm:$0xff]   ;;  %v6937_v52 = vld [vmem:[%s9271_s1 + $0x1a0] ss:$28 sps:$4 sm:$0xff]  }
 0x14c   : > { %3227 = vmatpush1.bf16.msra.mxu0 %v6859_v54  ;;  %v6938_v54 = vld [vmem:[%s9271_s1 + $0x550] ss:$28 sps:$4 sm:$0xff]  }
 0x14d   : > { %3178 = vmatpush1.bf16.msra.mxu1 %v6856_v53  ;;  %3228 = vmatprep.subr.bf16.mxu0 %v6867_v56  ;;  %v6940_v53 = vld [vmem:[%s9271_s1 + $0x554] ss:$28 sps:$4 sm:$0xff]   ;;  %v6944_v56 = vld [vmem:[%s9271_s1 + $0x58c] ss:$28 sps:$4 sm:$0xff]  }
 0x14e   : > { %3179 = vmatprep.subr.bf16.mxu1 %v6864_v55  ;;  %v6941_v55 = vld [vmem:[%s9271_s1 + $0x398] ss:$28 sps:$4 sm:$0xff]  }
 0x150   : > { %3229 = vmatpush1.bf16.msra.mxu0 %v6865_v58  ;;  %v6945_v58 = vld [vmem:[%s9271_s1 + $0x3d0] ss:$28 sps:$4 sm:$0xff]  }
 0x151   : > { %3180 = vmatpush1.bf16.msra.mxu1 %v6862_v57  ;;  %3230 = vmatprep.subr.bf16.mxu0 %v6873_v61  ;;  %v6942_v57 = vld [vmem:[%s9271_s1 + $0x588] ss:$28 sps:$4 sm:$0xff]  }
 0x152   : > { %3181 = vmatprep.subr.bf16.mxu1 %v6870_v59  ;;  %v6948_v59 = vld [vmem:[%s9271_s1 + $0x5c4] ss:$28 sps:$4 sm:$0xff]  }
 0x153   : > { %v6949_v61 = vld [vmem:[%s9271_s1 + $0x408] ss:$28 sps:$4 sm:$0xff]  }
 0x154   : > { %3231 = vmatpush1.bf16.msra.mxu0 %v6871_v63  ;;  %v8534_v63 = vld [vmem:[%s7404_s14 + $0x10] sm:$0x11] }
 0x155   : > { %3182 = vmatpush1.bf16.msra.mxu1 %v6868_v62  ;;  %3232 = vmatprep.subr.bf16.mxu0 %v6879_v3  ;;  %v6952_v62 = vld [vmem:[%s9271_s1 + $0x5fc] ss:$28 sps:$4 sm:$0xff]   ;;  %v6956_v3 = vld [vmem:[%s9271_s1 + $0xc44] ss:$28 sps:$4 sm:$0xff]  }
 0x156   : > { %3183 = vmatprep.subr.bf16.mxu1 %v6876_v1  ;;  %v6953_v1 = vld [vmem:[%s9271_s1 + $0x440] ss:$28 sps:$4 sm:$0xff]  }
 0x158   : > { %3233 = vmatpush1.bf16.msra.mxu0 %v6877_v7 }
 0x159   : > { %3184 = vmatpush1.bf16.msra.mxu1 %v6874_v4  ;;  %3234 = vmatprep.subr.bf16.mxu0 %v6885_v10  ;;  %v8547_v4 = vld [vmem:[%s7404_s14] sm:$0xff]  ;;  %v6957_v10 = vld [vmem:[%s9271_s1 + $0x478] ss:$28 sps:$4 sm:$0xff]  }
 0x15a   : > { %3185 = vmatprep.subr.bf16.mxu1 %v6882_v9  ;;  %v6030_v7 = vcombine.high %v8547_v4, %v8534_v63  ;;  %v6954_v9 = vld [vmem:[%s9271_s1 + $0xc40] ss:$28 sps:$4 sm:$0xff]  }
 0x15c   : > { %3235 = vmatpush1.bf16.msra.mxu0 %v6883_v12  ;;  %v8561_v12 = vrot.slane %v6030_v7, 1  ;;  %v7033_v7 = vld [vmem:[%s9271_s1 + $0xdd4] ss:$28 sps:$4 sm:$0xff]  }
 0x15d   : > { %3186 = vmatpush1.bf16.msra.mxu1 %v6880_v11  ;;  %3236 = vmatprep.subr.bf16.mxu0 %v6891_v14  ;;  %v6960_v11 = vld [vmem:[%s9271_s1 + $0xc7c] ss:$28 sps:$4 sm:$0xff]   ;;  %v6961_v14 = vld [vmem:[%s9271_s1 + $0x4b0] ss:$28 sps:$4 sm:$0xff]  }
 0x15e   : > { %3187 = vmatprep.subr.bf16.mxu1 %v6888_v13  ;;  %v6958_v13 = vld [vmem:[%s9271_s1 + $0xc78] ss:$28 sps:$4 sm:$0xff]  }
 0x160   : > { %3237 = vmatpush1.bf16.msra.mxu0 %v6889_v16 }
 0x161   : > { %3188 = vmatpush1.bf16.msra.mxu1 %v6886_v15  ;;  %3238 = vmatprep.subr.bf16.mxu0 %v6897_v6  ;;  %v6964_v15 = vld [vmem:[%s9271_s1 + $0xcb4] ss:$28 sps:$4 sm:$0xff]  }
 0x162   : > { %3189 = vmatprep.subr.bf16.mxu1 %v6894_v17 }
 0x164   : > { %3239 = vmatpush1.bf16.msra.mxu0 %v6895_v19  ;;  %v6962_v19 = vld [vmem:[%s9271_s1 + $0xcb0] ss:$28 sps:$4 sm:$0xff]  }
 0x165   : > { %3190 = vmatpush1.bf16.msra.mxu1 %v6892_v18  ;;  %3249 = vmatprep.subr.bf16.mxu0 %v6900_v20  ;;  %v6965_v20 = vld [vmem:[%s9271_s1 + $0x4e8] ss:$28 sps:$4 sm:$0xff]  }
 0x166   : > { %6261 = vmatprep.subr.bf16.mxu1 %v6901_v21 }
 0x167   : > { %3241 = vmatmul.mubr.bf16.vlgmr.msra.gmra.mrb[4].mxu0 %v7492_v8 }
 0x168   : > { %3200 = vmatmul.mubr.bf16.vlgmr.msra.gmra.mrb[4].mxu1 %v7426_v43  ;;  %3250 = vmatpush1.bf16.msra.mxu0 %v6898_v22  ;;  %v6968_v22 = vld [vmem:[%s9271_s1 + $0xcec] ss:$28 sps:$4 sm:$0xff]  }
 0x169   : > { %6262 = vmatpush3.bf16.msra.mxu1 %v6902_v24  ;;  %3251 = vmatprep.subr.bf16.mxu0 %v6905_v0  ;;  %v6966_v24 = vld [vmem:[%s9271_s1 + $0xce8] ss:$28 sps:$4 sm:$0xff]   ;;  %v6969_v0 = vld [vmem:[%s9271_s1 + $0x520] ss:$28 sps:$4 sm:$0xff]  }
 0x16a   : > { %6263 = vmatprep.subr.bf16.mxu1 %v6906_v25  ;;  %3322 = vmatprep.mubr.bf16.mxu1 %v7465_v60  ;;  %v6916_v60 = vld [vmem:[%s9271_s1 + $0x280] ss:$28 sps:$4 sm:$0xff]  }
 0x16b   : > { %5803 = vmatprep.mubr.msk.bf16.mxu0 %vm1701_vm0, %v7419_v39  ;;  %v6972_v25 = vld [vmem:[%s9271_s1 + $0xd24] ss:$28 sps:$4 sm:$0xff]  }
 0x16c   : > { %3252 = vmatpush1.bf16.msra.mxu0 %v6903_v26  ;;  %v6970_v26 = vld [vmem:[%s9271_s1 + $0xd20] ss:$28 sps:$4 sm:$0xff]  }
 0x16d   : > { %6264 = vmatpush3.bf16.msra.mxu1 %v6907_v27  ;;  %3253 = vmatprep.subr.bf16.mxu0 %v6910_v28  ;;  %v6973_v27 = vld [vmem:[%s9271_s1 + $0x558] ss:$28 sps:$4 sm:$0xff]  }
 0x16e   : > { %6265 = vmatprep.subr.bf16.mxu1 %v6911_v29  ;;  %v6976_v28 = vld [vmem:[%s9271_s1 + $0xd5c] ss:$28 sps:$4 sm:$0xff]  }
 0x16f   : > { %v6974_v29 = vld [vmem:[%s9271_s1 + $0xd58] ss:$28 sps:$4 sm:$0xff]  }
 0x170   : > { %3254 = vmatpush1.bf16.msra.mxu0 %v6908_v30  ;;  %v6977_v30 = vld [vmem:[%s9271_s1 + $0x590] ss:$28 sps:$4 sm:$0xff]  }
 0x171   : > { %6266 = vmatpush3.bf16.msra.mxu1 %v6912_v31  ;;  %3255 = vmatprep.subr.bf16.mxu0 %v6915_v32  ;;  %v6980_v31 = vld [vmem:[%s9271_s1 + $0xd94] ss:$28 sps:$4 sm:$0xff]  }
 0x172   : > { %6267 = vmatprep.subr.bf16.mxu1 %v6916_v60  ;;  %v6978_v32 = vld [vmem:[%s9271_s1 + $0xd90] ss:$28 sps:$4 sm:$0xff]   ;;  %v6981_v60 = vld [vmem:[%s9271_s1 + $0x5c8] ss:$28 sps:$4 sm:$0xff]  }
 0x174   : > { %3256 = vmatpush1.bf16.msra.mxu0 %v6913_v33  ;;  %v6984_v33 = vld [vmem:[%s9271_s1 + $0xdcc] ss:$28 sps:$4 sm:$0xff]  }
 0x175   : > { %6268 = vmatpush3.bf16.msra.mxu1 %v6917_v34  ;;  %3257 = vmatprep.subr.bf16.mxu0 %v6920_v35  ;;  %v6982_v34 = vld [vmem:[%s9271_s1 + $0xdc8] ss:$28 sps:$4 sm:$0xff]   ;;  %v6985_v35 = vld [vmem:[%s9271_s1 + $0x600] ss:$28 sps:$4 sm:$0xff]  }
 0x176   : > { %6269 = vmatprep.subr.bf16.mxu1 %v6921_v36  ;;  %v6988_v36 = vld [vmem:[%s9271_s1 + $0xe04] ss:$28 sps:$4 sm:$0xff]  }
 0x178   : > { %3258 = vmatpush1.bf16.msra.mxu0 %v6918_v37  ;;  %v6991_v37 = vld [vmem:[%s9271_s1 + $0xc4c] ss:$28 sps:$4 sm:$0xff]  }
 0x179   : > { %6270 = vmatpush3.bf16.msra.mxu1 %v6922_v38  ;;  %3259 = vmatprep.subr.bf16.mxu0 %v6925_v40  ;;  %v6986_v38 = vld [vmem:[%s9271_s1 + $0xe00] ss:$28 sps:$4 sm:$0xff]   ;;  %v6989_v40 = vld [vmem:[%s9271_s1 + $0xc48] ss:$28 sps:$4 sm:$0xff]  }
 0x17a   : > { %6271 = vmatprep.subr.bf16.mxu1 %v6926_v42  ;;  %v6994_v42 = vld [vmem:[%s9271_s1 + $0xe3c] ss:$28 sps:$4 sm:$0xff]  }
 0x17c   : > { %3260 = vmatpush1.bf16.msra.mxu0 %v6923_v44  ;;  %v6997_v44 = vld [vmem:[%s9271_s1 + $0xc84] ss:$28 sps:$4 sm:$0xff]  }
 0x17d   : > { %6272 = vmatpush3.bf16.msra.mxu1 %v6927_v45  ;;  %3261 = vmatprep.subr.bf16.mxu0 %v6930_v46  ;;  %v6992_v45 = vld [vmem:[%s9271_s1 + $0xe38] ss:$28 sps:$4 sm:$0xff]   ;;  %v6995_v46 = vld [vmem:[%s9271_s1 + $0xc80] ss:$28 sps:$4 sm:$0xff]  }
 0x17e   : > { %6273 = vmatprep.subr.bf16.mxu1 %v6931_v23  ;;  %v7000_v23 = vld [vmem:[%s9271_s1 + $0xe74] ss:$28 sps:$4 sm:$0xff]  }
 0x180   : > { %3262 = vmatpush1.bf16.msra.mxu0 %v6928_v47  ;;  %v6998_v47 = vld [vmem:[%s9271_s1 + $0xe70] ss:$28 sps:$4 sm:$0xff]  }
 0x181   : > { %6274 = vmatpush3.bf16.msra.mxu1 %v6932_v49  ;;  %3263 = vmatprep.subr.bf16.mxu0 %v6935_v48  ;;  %v7001_v49 = vld [vmem:[%s9271_s1 + $0xcb8] ss:$28 sps:$4 sm:$0xff]   ;;  %v7006_v48 = vld [vmem:[%s9271_s1 + $0xeac] ss:$28 sps:$4 sm:$0xff]  }
 0x182   : > { %6275 = vmatprep.subr.bf16.mxu1 %v6936_v50  ;;  %v7009_v50 = vld [vmem:[%s9271_s1 + $0xcf4] ss:$28 sps:$4 sm:$0xff]  }
 0x184   : > { %3264 = vmatpush1.bf16.msra.mxu0 %v6933_v51  ;;  %v7004_v51 = vld [vmem:[%s9271_s1 + $0xea8] ss:$28 sps:$4 sm:$0xff]  }
 0x185   : > { %6276 = vmatpush3.bf16.msra.mxu1 %v6937_v52  ;;  %3265 = vmatprep.subr.bf16.mxu0 %v6940_v53  ;;  %v7007_v52 = vld [vmem:[%s9271_s1 + $0xcf0] ss:$28 sps:$4 sm:$0xff]   ;;  %v7012_v53 = vld [vmem:[%s9271_s1 + $0xee4] ss:$28 sps:$4 sm:$0xff]  }
 0x186   : > { %3330 = vmatprep.subr.bf16.mxu1 %v7256_v41 }
 0x188   : > { %3323 = vmatmul.mubr.bf16.vlgmr.msra.gmra.mrb[16].mxu1 %v7492_v8  ;;  %3266 = vmatpush1.bf16.msra.mxu0 %v6938_v54  ;;  %v6946_v8 = vld [vmem:[%s9271_s1 + $0x5c0] ss:$28 sps:$4 sm:$0xff]   ;;  %v7015_v54 = vld [vmem:[%s9271_s1 + $0xd2c] ss:$28 sps:$4 sm:$0xff]  }
 0x189   : > { %3331 = vmatpush1.bf16.msra.mxu1 %v6941_v55  ;;  %3267 = vmatprep.subr.bf16.mxu0 %v6944_v56  ;;  %v7010_v55 = vld [vmem:[%s9271_s1 + $0xee0] ss:$28 sps:$4 sm:$0xff]   ;;  %v7013_v56 = vld [vmem:[%s9271_s1 + $0xd28] ss:$28 sps:$4 sm:$0xff]  }
 0x18a   : > { %3332 = vmatprep.subr.bf16.mxu1 %v7256_v41  ;;  %5804 = vmatprep.mubr.msk.bf16.mxu1 %vm1701_vm0, %v7419_v39  ;;  %v6950_v39 = vld [vmem:[%s9271_s1 + $0x5f8] ss:$28 sps:$4 sm:$0xff]  }
 0x18c   : > { %3268 = vmatpush1.bf16.msra.mxu0 %v6942_v57  ;;  %v7018_v57 = vld [vmem:[%s9271_s1 + $0xf1c] ss:$28 sps:$4 sm:$0xff]  }
 0x18d   : > { %3333 = vmatpush1.bf16.msra.mxu1 %v6945_v58  ;;  %3269 = vmatprep.subr.bf16.mxu0 %v6948_v59  ;;  %v7021_v58 = vld [vmem:[%s9271_s1 + $0xd64] ss:$28 sps:$4 sm:$0xff]   ;;  %v7016_v59 = vld [vmem:[%s9271_s1 + $0xf18] ss:$28 sps:$4 sm:$0xff]  }
 0x18e   : > { %3334 = vmatprep.subr.bf16.mxu1 %v7256_v41 }
 0x190   : > { %3270 = vmatpush1.bf16.msra.mxu0 %v6946_v8  ;;  %v7019_v8 = vld [vmem:[%s9271_s1 + $0xd60] ss:$28 sps:$4 sm:$0xff]  }
 0x191   : > { %3335 = vmatpush1.bf16.msra.mxu1 %v6949_v61  ;;  %3271 = vmatprep.subr.bf16.mxu0 %v6952_v62  ;;  %v7024_v61 = vld [vmem:[%s9271_s1 + $0xf54] ss:$28 sps:$4 sm:$0xff]   ;;  %v7027_v62 = vld [vmem:[%s9271_s1 + $0xd9c] ss:$28 sps:$4 sm:$0xff]  }
 0x192   : > { %3336 = vmatprep.subr.bf16.mxu1 %v7256_v41 }
 0x194   : > { %3272 = vmatpush1.bf16.msra.mxu0 %v6950_v39  ;;  %v7022_v39 = vld [vmem:[%s9271_s1 + $0xf50] ss:$28 sps:$4 sm:$0xff]  }
 0x195   : > { %3337 = vmatpush1.bf16.msra.mxu1 %v6953_v1  ;;  %4623 = vmatprep.subr.bf16.mxu0 %v6956_v3  ;;  %v7025_v1 = vld [vmem:[%s9271_s1 + $0xd98] ss:$28 sps:$4 sm:$0xff]   ;;  %v7030_v3 = vld [vmem:[%s9271_s1 + $0xf8c] ss:$28 sps:$4 sm:$0xff]  }
 0x196   : > { %3338 = vmatprep.subr.bf16.mxu1 %v7256_v41 }
 0x197   : > { %3282 = vmatmul.mubr.bf16.vlgmr.msra.gmra.mrb[4].mxu0 %v7426_v43 }
 0x198   : > { %4624 = vmatpush1.bf16.msra.mxu0 %v6954_v9  ;;  %4655 = vmatprep.mubr.bf16.mxu0 %v8561_v12  ;;  %v6029_v9 = vcombine.low %v8547_v4, %v8534_v63  ;;  %v7040_v63 = vld [vmem:[%s9271_s1 + $0xe0c] ss:$28 sps:$4 sm:$0xff]  }
 0x199   : > { %3339 = vmatpush1.bf16.msra.mxu1 %v6957_v10  ;;  %4625 = vmatprep.subr.bf16.mxu0 %v6960_v11  ;;  %v8729_v10 = vld [vmem:[%s7404_s14 + $0x18] sm:$0x11]  ;;  %v7028_v11 = vld [vmem:[%s9271_s1 + $0xf88] ss:$28 sps:$4 sm:$0xff]  }
 0x19a   : > { %3340 = vmatprep.subr.bf16.mxu1 %v7256_v41  ;;  %v8744_v4 = vld [vmem:[%s7404_s14 + $0x8] sm:$0xff] }
 0x19b   : > { %v6255_v16 = vpop.f32.mrb[8].mxu1 }
 0x19c   : > { %v6256_v17 = vpop.f32.mrb[9].mxu1  ;;  %4626 = vmatpush1.bf16.msra.mxu0 %v6958_v13  ;;  %v7031_v13 = vld [vmem:[%s9271_s1 + $0xdd0] ss:$28 sps:$4 sm:$0xff]  }
 0x19d   : > { %v8575_v6 = vadd.f32 %v6256_v17, %v6255_v16  ;;  %v6258_v18 = vpop.f32.mrb[10].mxu1  ;;  %3341 = vmatpush1.bf16.msra.mxu1 %v6961_v14  ;;  %4627 = vmatprep.subr.bf16.mxu0 %v6964_v15  ;;  %v7037_v14 = vld [vmem:[%s9271_s1 + $0xfc4] ss:$28 sps:$4 sm:$0xff]   ;;  %v6032_v15 = vcombine.high %v8744_v4, %v8729_v10  ;;  %v8748_v16 = vrot.slane %v6029_v9, 1 }
 0x19e   : > { %v6259_v21 = vpop.f32.mrb[11].mxu1  ;;  %3342 = vmatprep.subr.bf16.mxu1 %v7256_v41  ;;  %v7035_v17 = vld [vmem:[%s9271_s1 + $0xfc0] ss:$28 sps:$4 sm:$0xff]   ;;  %v7038_v18 = vld [vmem:[%s9271_s1 + $0xe08] ss:$28 sps:$4 sm:$0xff]  }
 0x19f   : > { %v8762_v21 = vrot.slane %v6032_v15, 1  ;;  %v7124_v15 = vld [vmem:[%s9271_s1 + $0x111c] ss:$28 sps:$4 sm:$0xff]  }
 0x1a0   : > { %4628 = vmatpush1.bf16.msra.mxu0 %v6962_v19  ;;  %v7044_v19 = vld [vmem:[%s9271_s1 + $0xffc] ss:$28 sps:$4 sm:$0xff]  }
 0x1a1   : > { %3343 = vmatpush1.bf16.msra.mxu1 %v6965_v20  ;;  %4629 = vmatprep.subr.bf16.mxu0 %v6968_v22  ;;  %v7047_v20 = vld [vmem:[%s9271_s1 + $0xe44] ss:$28 sps:$4 sm:$0xff]   ;;  %v7042_v22 = vld [vmem:[%s9271_s1 + $0xff8] ss:$28 sps:$4 sm:$0xff]  }
 0x1a2   : > { %3344 = vmatprep.subr.bf16.mxu1 %v7256_v41 }
 0x1a4   : > { %4630 = vmatpush1.bf16.msra.mxu0 %v6966_v24  ;;  %v7045_v24 = vld [vmem:[%s9271_s1 + $0xe40] ss:$28 sps:$4 sm:$0xff]  }
 0x1a5   : > { %3345 = vmatpush1.bf16.msra.mxu1 %v6969_v0  ;;  %4631 = vmatprep.subr.bf16.mxu0 %v6972_v25  ;;  %v7050_v0 = vld [vmem:[%s9271_s1 + $0x1034] ss:$28 sps:$4 sm:$0xff]   ;;  %v7053_v25 = vld [vmem:[%s9271_s1 + $0xe7c] ss:$28 sps:$4 sm:$0xff]  }
 0x1a6   : > { %3346 = vmatprep.subr.bf16.mxu1 %v7256_v41 }
 0x1a8   : > { %4632 = vmatpush1.bf16.msra.mxu0 %v6970_v26  ;;  %v7048_v26 = vld [vmem:[%s9271_s1 + $0x1030] ss:$28 sps:$4 sm:$0xff]  }
 0x1a9   : > { %3347 = vmatpush1.bf16.msra.mxu1 %v6973_v27  ;;  %4633 = vmatprep.subr.bf16.mxu0 %v6976_v28  ;;  %v7051_v27 = vld [vmem:[%s9271_s1 + $0xe78] ss:$28 sps:$4 sm:$0xff]   ;;  %v7056_v28 = vld [vmem:[%s9271_s1 + $0x106c] ss:$28 sps:$4 sm:$0xff]  }
 0x1aa   : > { %3348 = vmatprep.subr.bf16.mxu1 %v7256_v41 }
 0x1ac   : > { %4634 = vmatpush1.bf16.msra.mxu0 %v6974_v29  ;;  %v7059_v29 = vld [vmem:[%s9271_s1 + $0xeb4] ss:$28 sps:$4 sm:$0xff]  }
 0x1ad   : > { %3349 = vmatpush1.bf16.msra.mxu1 %v6977_v30  ;;  %4635 = vmatprep.subr.bf16.mxu0 %v6980_v31  ;;  %v7054_v30 = vld [vmem:[%s9271_s1 + $0x1068] ss:$28 sps:$4 sm:$0xff]   ;;  %v7057_v31 = vld [vmem:[%s9271_s1 + $0xeb0] ss:$28 sps:$4 sm:$0xff]  }
 0x1ae   : > { %3350 = vmatprep.subr.bf16.mxu1 %v7256_v41 }
 0x1b0   : > { %4636 = vmatpush1.bf16.msra.mxu0 %v6978_v32  ;;  %v7062_v32 = vld [vmem:[%s9271_s1 + $0x10a4] ss:$28 sps:$4 sm:$0xff]  }
 0x1b1   : > { %3351 = vmatpush1.bf16.msra.mxu1 %v6981_v60  ;;  %4637 = vmatprep.subr.bf16.mxu0 %v6984_v33  ;;  %v7065_v60 = vld [vmem:[%s9271_s1 + $0xeec] ss:$28 sps:$4 sm:$0xff]   ;;  %v7060_v33 = vld [vmem:[%s9271_s1 + $0x10a0] ss:$28 sps:$4 sm:$0xff]  }
 0x1b2   : > { %3352 = vmatprep.subr.bf16.mxu1 %v7256_v41 }
 0x1b4   : > { %4638 = vmatpush1.bf16.msra.mxu0 %v6982_v34  ;;  %v7063_v34 = vld [vmem:[%s9271_s1 + $0xee8] ss:$28 sps:$4 sm:$0xff]  }
 0x1b5   : > { %3353 = vmatpush1.bf16.msra.mxu1 %v6985_v35  ;;  %4639 = vmatprep.subr.bf16.mxu0 %v6988_v36  ;;  %v7068_v35 = vld [vmem:[%s9271_s1 + $0x10dc] ss:$28 sps:$4 sm:$0xff]   ;;  %v7071_v36 = vld [vmem:[%s9271_s1 + $0xf24] ss:$28 sps:$4 sm:$0xff]  }
 0x1b6   : > { %4705 = vmatprep.subr.bf16.mxu1 %v6991_v37  ;;  %v7066_v37 = vld [vmem:[%s9271_s1 + $0x10d8] ss:$28 sps:$4 sm:$0xff]  }
 0x1b8   : > { %3363 = vmatmul.mubr.bf16.vlgmr.msra.gmra.mrb[12].mxu1 %v7426_v43  ;;  %4640 = vmatpush1.bf16.msra.mxu0 %v6986_v38  ;;  %v7003_v43 = vld [vmem:[%s9271_s1 + $0xcbc] ss:$28 sps:$4 sm:$0xff]  }
 0x1b9   : > { %4706 = vmatpush1.bf16.msra.mxu1 %v6989_v40  ;;  %4641 = vmatprep.subr.bf16.mxu0 %v6994_v42  ;;  %v7069_v38 = vld [vmem:[%s9271_s1 + $0xf20] ss:$28 sps:$4 sm:$0xff]   ;;  %v7074_v40 = vld [vmem:[%s9271_s1 + $0x1114] ss:$28 sps:$4 sm:$0xff]  }
 0x1ba   : > { %4707 = vmatprep.subr.bf16.mxu1 %v6997_v44  ;;  %4737 = vmatprep.mubr.bf16.mxu1 %v8561_v12  ;;  %v7077_v42 = vld [vmem:[%s9271_s1 + $0xf5c] ss:$28 sps:$4 sm:$0xff]   ;;  %v7072_v44 = vld [vmem:[%s9271_s1 + $0x1110] ss:$28 sps:$4 sm:$0xff]  }
 0x1bc   : > { %4642 = vmatpush1.bf16.msra.mxu0 %v6992_v45  ;;  %v7075_v45 = vld [vmem:[%s9271_s1 + $0xf58] ss:$28 sps:$4 sm:$0xff]  }
 0x1bd   : > { %4708 = vmatpush1.bf16.msra.mxu1 %v6995_v46  ;;  %4643 = vmatprep.subr.bf16.mxu0 %v7000_v23  ;;  %v7080_v46 = vld [vmem:[%s9271_s1 + $0x114c] ss:$28 sps:$4 sm:$0xff]   ;;  %v7083_v23 = vld [vmem:[%s9271_s1 + $0xf94] ss:$28 sps:$4 sm:$0xff]  }
 0x1be   : > { %4709 = vmatprep.subr.bf16.mxu1 %v7003_v43  ;;  %v7078_v43 = vld [vmem:[%s9271_s1 + $0x1148] ss:$28 sps:$4 sm:$0xff]  }
 0x1c0   : > { %4644 = vmatpush1.bf16.msra.mxu0 %v6998_v47  ;;  %v7081_v47 = vld [vmem:[%s9271_s1 + $0xf90] ss:$28 sps:$4 sm:$0xff]  }
 0x1c1   : > { %4710 = vmatpush1.bf16.msra.mxu1 %v7001_v49  ;;  %4645 = vmatprep.subr.bf16.mxu0 %v7006_v48  ;;  %v7086_v49 = vld [vmem:[%s9271_s1 + $0x1184] ss:$28 sps:$4 sm:$0xff]   ;;  %v7089_v48 = vld [vmem:[%s9271_s1 + $0xfcc] ss:$28 sps:$4 sm:$0xff]  }
 0x1c2   : > { %4711 = vmatprep.subr.bf16.mxu1 %v7009_v50  ;;  %v7084_v50 = vld [vmem:[%s9271_s1 + $0x1180] ss:$28 sps:$4 sm:$0xff]  }
 0x1c4   : > { %4646 = vmatpush1.bf16.msra.mxu0 %v7004_v51  ;;  %v7087_v51 = vld [vmem:[%s9271_s1 + $0xfc8] ss:$28 sps:$4 sm:$0xff]  }
 0x1c5   : > { %4712 = vmatpush1.bf16.msra.mxu1 %v7007_v52  ;;  %4647 = vmatprep.subr.bf16.mxu0 %v7012_v53  ;;  %v7092_v52 = vld [vmem:[%s9271_s1 + $0x11bc] ss:$28 sps:$4 sm:$0xff]   ;;  %v7095_v53 = vld [vmem:[%s9271_s1 + $0x1004] ss:$28 sps:$4 sm:$0xff]  }
 0x1c6   : > { %4713 = vmatprep.subr.bf16.mxu1 %v7015_v54  ;;  %v7090_v54 = vld [vmem:[%s9271_s1 + $0x11b8] ss:$28 sps:$4 sm:$0xff]  }
 0x1c8   : > { %4648 = vmatpush1.bf16.msra.mxu0 %v7010_v55  ;;  %v7093_v55 = vld [vmem:[%s9271_s1 + $0x1000] ss:$28 sps:$4 sm:$0xff]  }
 0x1c9   : > { %4714 = vmatpush1.bf16.msra.mxu1 %v7013_v56  ;;  %4649 = vmatprep.subr.bf16.mxu0 %v7018_v57  ;;  %v7098_v56 = vld [vmem:[%s9271_s1 + $0x11f4] ss:$28 sps:$4 sm:$0xff]   ;;  %v7101_v57 = vld [vmem:[%s9271_s1 + $0x103c] ss:$28 sps:$4 sm:$0xff]  }
 0x1ca   : > { %4715 = vmatprep.subr.bf16.mxu1 %v7021_v58  ;;  %v7096_v58 = vld [vmem:[%s9271_s1 + $0x11f0] ss:$28 sps:$4 sm:$0xff]  }
 0x1cc   : > { %4650 = vmatpush1.bf16.msra.mxu0 %v7016_v59  ;;  %v7099_v59 = vld [vmem:[%s9271_s1 + $0x1038] ss:$28 sps:$4 sm:$0xff]  }
 0x1cd   : > { %4716 = vmatpush1.bf16.msra.mxu1 %v7019_v8  ;;  %4651 = vmatprep.subr.bf16.mxu0 %v7024_v61  ;;  %v7104_v8 = vld [vmem:[%s9271_s1 + $0x122c] ss:$28 sps:$4 sm:$0xff]   ;;  %v7107_v61 = vld [vmem:[%s9271_s1 + $0x1074] ss:$28 sps:$4 sm:$0xff]  }
 0x1ce   : > { %4717 = vmatprep.subr.bf16.mxu1 %v7027_v62  ;;  %v6031_v62 = vcombine.low %v8744_v4, %v8729_v10  ;;  %v7110_v10 = vld [vmem:[%s9271_s1 + $0x10a8] ss:$28 sps:$4 sm:$0xff]  }
 0x1cf   : > { %v7119_v4 = vld [vmem:[%s9271_s1 + $0xc88] ss:$28 sps:$4 sm:$0xff]  }
 0x1d0   : > { %4652 = vmatpush1.bf16.msra.mxu0 %v7022_v39  ;;  %v7102_v39 = vld [vmem:[%s9271_s1 + $0x1228] ss:$28 sps:$4 sm:$0xff]   ;;  %v8904_v9 = vrot.slane %v6031_v62, 1 }
 0x1d1   : > { %4718 = vmatpush1.bf16.msra.mxu1 %v7025_v1  ;;  %4653 = vmatprep.subr.bf16.mxu0 %v7030_v3  ;;  %v7105_v1 = vld [vmem:[%s9271_s1 + $0x1070] ss:$28 sps:$4 sm:$0xff]   ;;  %v7183_v62 = vld [vmem:[%s9271_s1 + $0xf28] ss:$28 sps:$4 sm:$0xff]  }
 0x1d2   : > { %4719 = vmatprep.subr.bf16.mxu1 %v7033_v7  ;;  %v7112_v3 = vld [vmem:[%s9271_s1 + $0x10ac] ss:$28 sps:$4 sm:$0xff]   ;;  %v7115_v7 = vld [vmem:[%s9271_s1 + $0xc54] ss:$28 sps:$4 sm:$0xff]  }
 0x1d4   : > { %4654 = vmatpush1.bf16.msra.mxu0 %v7028_v11  ;;  %v7113_v11 = vld [vmem:[%s9271_s1 + $0xc50] ss:$28 sps:$4 sm:$0xff]  }
 0x1d5   : > { %4720 = vmatpush1.bf16.msra.mxu1 %v7031_v13  ;;  %4664 = vmatprep.subr.bf16.mxu0 %v7037_v14  ;;  %v7118_v13 = vld [vmem:[%s9271_s1 + $0x10e4] ss:$28 sps:$4 sm:$0xff]   ;;  %v7121_v14 = vld [vmem:[%s9271_s1 + $0xc8c] ss:$28 sps:$4 sm:$0xff]  }
 0x1d6   : > { %4721 = vmatprep.subr.bf16.mxu1 %v7040_v63  ;;  %v7116_v63 = vld [vmem:[%s9271_s1 + $0x10e0] ss:$28 sps:$4 sm:$0xff]  }
 0x1d7   : > { %4656 = vmatmul.mubr.bf16.vlgmr.msra.gmra.mrb[8].mxu0 %v8748_v16 }
 0x1d8   : > { %4665 = vmatpush1.bf16.msra.mxu0 %v7035_v17  ;;  %6229 = vmatprep.mubr.msk.bf16.mxu0 %vm1701_vm0, %v8762_v21  ;;  %v7127_v17 = vld [vmem:[%s9271_s1 + $0xcc4] ss:$28 sps:$4 sm:$0xff]  }
 0x1d9   : > { %4722 = vmatpush1.bf16.msra.mxu1 %v7038_v18  ;;  %4666 = vmatprep.subr.bf16.mxu0 %v7044_v19  ;;  %v7122_v18 = vld [vmem:[%s9271_s1 + $0x1118] ss:$28 sps:$4 sm:$0xff]   ;;  %v7125_v19 = vld [vmem:[%s9271_s1 + $0xcc0] ss:$28 sps:$4 sm:$0xff]  }
 0x1da   : > { %4723 = vmatprep.subr.bf16.mxu1 %v7047_v20  ;;  %v7130_v20 = vld [vmem:[%s9271_s1 + $0x1154] ss:$28 sps:$4 sm:$0xff]  }
 0x1dc   : > { %4667 = vmatpush1.bf16.msra.mxu0 %v7042_v22  ;;  %v7133_v22 = vld [vmem:[%s9271_s1 + $0xcfc] ss:$28 sps:$4 sm:$0xff]  }
 0x1dd   : > { %4724 = vmatpush1.bf16.msra.mxu1 %v7045_v24  ;;  %4668 = vmatprep.subr.bf16.mxu0 %v7050_v0  ;;  %v7128_v24 = vld [vmem:[%s9271_s1 + $0x1150] ss:$28 sps:$4 sm:$0xff]   ;;  %v7131_v0 = vld [vmem:[%s9271_s1 + $0xcf8] ss:$28 sps:$4 sm:$0xff]  }
 0x1de   : > { %4725 = vmatprep.subr.bf16.mxu1 %v7053_v25  ;;  %v7136_v25 = vld [vmem:[%s9271_s1 + $0x118c] ss:$28 sps:$4 sm:$0xff]  }
 0x1e0   : > { %4669 = vmatpush1.bf16.msra.mxu0 %v7048_v26  ;;  %v7139_v26 = vld [vmem:[%s9271_s1 + $0xd34] ss:$28 sps:$4 sm:$0xff]  }
 0x1e1   : > { %4726 = vmatpush1.bf16.msra.mxu1 %v7051_v27  ;;  %4670 = vmatprep.subr.bf16.mxu0 %v7056_v28  ;;  %v7134_v27 = vld [vmem:[%s9271_s1 + $0x1188] ss:$28 sps:$4 sm:$0xff]   ;;  %v7137_v28 = vld [vmem:[%s9271_s1 + $0xd30] ss:$28 sps:$4 sm:$0xff]  }
 0x1e2   : > { %4727 = vmatprep.subr.bf16.mxu1 %v7059_v29  ;;  %v7142_v29 = vld [vmem:[%s9271_s1 + $0x11c4] ss:$28 sps:$4 sm:$0xff]  }
 0x1e4   : > { %4671 = vmatpush1.bf16.msra.mxu0 %v7054_v30  ;;  %v7145_v30 = vld [vmem:[%s9271_s1 + $0xd6c] ss:$28 sps:$4 sm:$0xff]  }
 0x1e5   : > { %4728 = vmatpush1.bf16.msra.mxu1 %v7057_v31  ;;  %4672 = vmatprep.subr.bf16.mxu0 %v7062_v32  ;;  %v7140_v31 = vld [vmem:[%s9271_s1 + $0x11c0] ss:$28 sps:$4 sm:$0xff]   ;;  %v7143_v32 = vld [vmem:[%s9271_s1 + $0xd68] ss:$28 sps:$4 sm:$0xff]  }
 0x1e6   : > { %4729 = vmatprep.subr.bf16.mxu1 %v7065_v60  ;;  %v7148_v60 = vld [vmem:[%s9271_s1 + $0x11fc] ss:$28 sps:$4 sm:$0xff]  }
 0x1e8   : > { %4673 = vmatpush1.bf16.msra.mxu0 %v7060_v33  ;;  %v7151_v33 = vld [vmem:[%s9271_s1 + $0xda4] ss:$28 sps:$4 sm:$0xff]  }
 0x1e9   : > { %4730 = vmatpush1.bf16.msra.mxu1 %v7063_v34  ;;  %4674 = vmatprep.subr.bf16.mxu0 %v7068_v35  ;;  %v7146_v34 = vld [vmem:[%s9271_s1 + $0x11f8] ss:$28 sps:$4 sm:$0xff]   ;;  %v7149_v35 = vld [vmem:[%s9271_s1 + $0xda0] ss:$28 sps:$4 sm:$0xff]  }
 0x1ea   : > { %4731 = vmatprep.subr.bf16.mxu1 %v7071_v36  ;;  %v7154_v36 = vld [vmem:[%s9271_s1 + $0x1234] ss:$28 sps:$4 sm:$0xff]  }
 0x1ec   : > { %4675 = vmatpush1.bf16.msra.mxu0 %v7066_v37  ;;  %v7157_v37 = vld [vmem:[%s9271_s1 + $0xddc] ss:$28 sps:$4 sm:$0xff]  }
 0x1ed   : > { %4732 = vmatpush1.bf16.msra.mxu1 %v7069_v38  ;;  %4676 = vmatprep.subr.bf16.mxu0 %v7074_v40  ;;  %v7152_v38 = vld [vmem:[%s9271_s1 + $0x1230] ss:$28 sps:$4 sm:$0xff]   ;;  %v7155_v40 = vld [vmem:[%s9271_s1 + $0xdd8] ss:$28 sps:$4 sm:$0xff]  }
 0x1ee   : > { %4733 = vmatprep.subr.bf16.mxu1 %v7077_v42  ;;  %v7160_v42 = vld [vmem:[%s9271_s1 + $0xe14] ss:$28 sps:$4 sm:$0xff]  }
 0x1f0   : > { %4677 = vmatpush1.bf16.msra.mxu0 %v7072_v44  ;;  %v7161_v44 = vld [vmem:[%s9271_s1 + $0xe18] ss:$28 sps:$4 sm:$0xff]  }
 0x1f1   : > { %4734 = vmatpush1.bf16.msra.mxu1 %v7075_v45  ;;  %4678 = vmatprep.subr.bf16.mxu0 %v7080_v46  ;;  %v7158_v45 = vld [vmem:[%s9271_s1 + $0xe10] ss:$28 sps:$4 sm:$0xff]   ;;  %v7162_v46 = vld [vmem:[%s9271_s1 + $0xc58] ss:$28 sps:$4 sm:$0xff]  }
 0x1f2   : > { %4735 = vmatprep.subr.bf16.mxu1 %v7083_v23  ;;  %v7165_v23 = vld [vmem:[%s9271_s1 + $0xe4c] ss:$28 sps:$4 sm:$0xff]  }
 0x1f4   : > { %4679 = vmatpush1.bf16.msra.mxu0 %v7078_v43  ;;  %v7166_v43 = vld [vmem:[%s9271_s1 + $0xe50] ss:$28 sps:$4 sm:$0xff]  }
 0x1f5   : > { %4736 = vmatpush1.bf16.msra.mxu1 %v7081_v47  ;;  %4680 = vmatprep.subr.bf16.mxu0 %v7086_v49  ;;  %v7163_v47 = vld [vmem:[%s9271_s1 + $0xe48] ss:$28 sps:$4 sm:$0xff]   ;;  %v7167_v49 = vld [vmem:[%s9271_s1 + $0xc90] ss:$28 sps:$4 sm:$0xff]  }
 0x1f6   : > { %4746 = vmatprep.subr.bf16.mxu1 %v7089_v48  ;;  %v7170_v48 = vld [vmem:[%s9271_s1 + $0xe84] ss:$28 sps:$4 sm:$0xff]  }
 0x1f8   : > { %4738 = vmatmul.mubr.bf16.vlgmr.msra.gmra.mrb[4].mxu1 %v8748_v16  ;;  %4681 = vmatpush1.bf16.msra.mxu0 %v7084_v50  ;;  %v7171_v50 = vld [vmem:[%s9271_s1 + $0xe88] ss:$28 sps:$4 sm:$0xff]  }
 0x1f9   : > { %4747 = vmatpush1.bf16.msra.mxu1 %v7087_v51  ;;  %4682 = vmatprep.subr.bf16.mxu0 %v7092_v52  ;;  %v7168_v51 = vld [vmem:[%s9271_s1 + $0xe80] ss:$28 sps:$4 sm:$0xff]   ;;  %v7172_v52 = vld [vmem:[%s9271_s1 + $0xcc8] ss:$28 sps:$4 sm:$0xff]  }
 0x1fa   : > { %4748 = vmatprep.subr.bf16.mxu1 %v7095_v53  ;;  %6230 = vmatprep.mubr.msk.bf16.mxu1 %vm1701_vm0, %v8762_v21  ;;  %v7175_v53 = vld [vmem:[%s9271_s1 + $0xebc] ss:$28 sps:$4 sm:$0xff]  }
 0x1fc   : > { %4683 = vmatpush1.bf16.msra.mxu0 %v7090_v54  ;;  %v7173_v54 = vld [vmem:[%s9271_s1 + $0xeb8] ss:$28 sps:$4 sm:$0xff]  }
 0x1fd   : > { %4749 = vmatpush1.bf16.msra.mxu1 %v7093_v55  ;;  %4684 = vmatprep.subr.bf16.mxu0 %v7098_v56  ;;  %v7177_v55 = vld [vmem:[%s9271_s1 + $0xd00] ss:$28 sps:$4 sm:$0xff]   ;;  %v7180_v56 = vld [vmem:[%s9271_s1 + $0xef4] ss:$28 sps:$4 sm:$0xff]  }
 0x1fe   : > { %4750 = vmatprep.subr.bf16.mxu1 %v7101_v57  ;;  %v7181_v57 = vld [vmem:[%s9271_s1 + $0xef8] ss:$28 sps:$4 sm:$0xff]  }
 0x200   : > { %4685 = vmatpush1.bf16.msra.mxu0 %v7096_v58  ;;  %v7178_v58 = vld [vmem:[%s9271_s1 + $0xef0] ss:$28 sps:$4 sm:$0xff]  }
 0x201   : > { %4751 = vmatpush1.bf16.msra.mxu1 %v7099_v59  ;;  %4686 = vmatprep.subr.bf16.mxu0 %v7104_v8  ;;  %v7182_v59 = vld [vmem:[%s9271_s1 + $0xd38] ss:$28 sps:$4 sm:$0xff]   ;;  %v7185_v8 = vld [vmem:[%s9271_s1 + $0xf2c] ss:$28 sps:$4 sm:$0xff]  }
 0x202   : > { %4752 = vmatprep.subr.bf16.mxu1 %v7107_v61  ;;  %v7186_v61 = vld [vmem:[%s9271_s1 + $0xf30] ss:$28 sps:$4 sm:$0xff]  }
 0x204   : > { %4687 = vmatpush1.bf16.msra.mxu0 %v7102_v39  ;;  %v7187_v39 = vld [vmem:[%s9271_s1 + $0xd70] ss:$28 sps:$4 sm:$0xff]  }
 0x205   : > { %4753 = vmatpush1.bf16.msra.mxu1 %v7105_v1  ;;  %4787 = vmatprep.subr.bf16.mxu0 %v7115_v7  ;;  %v7190_v1 = vld [vmem:[%s9271_s1 + $0xf64] ss:$28 sps:$4 sm:$0xff]  }
 0x206   : > { %4754 = vmatprep.subr.bf16.mxu1 %v7112_v3  ;;  %v7191_v3 = vld [vmem:[%s9271_s1 + $0xf68] ss:$28 sps:$4 sm:$0xff]   ;;  %v7188_v7 = vld [vmem:[%s9271_s1 + $0xf60] ss:$28 sps:$4 sm:$0xff]  }
 0x207   : > { %4697 = vmatmul.mubr.bf16.vlgmr.msra.gmra.mrb[8].mxu0 %v8904_v9 }
 0x208   : > { %4788 = vmatpush1.bf16.msra.mxu0 %v7113_v11  ;;  %4819 = vmatprep.mubr.bf16.mxu0 %v8561_v12  ;;  %v7195_v11 = vld [vmem:[%s9271_s1 + $0xf9c] ss:$28 sps:$4 sm:$0xff]  }
 0x209   : > { %4755 = vmatpush1.bf16.msra.mxu1 %v7110_v10  ;;  %4789 = vmatprep.subr.bf16.mxu0 %v7121_v14  ;;  %v7192_v10 = vld [vmem:[%s9271_s1 + $0xda8] ss:$28 sps:$4 sm:$0xff]   ;;  %v7193_v14 = vld [vmem:[%s9271_s1 + $0xf98] ss:$28 sps:$4 sm:$0xff]  }
 0x20a   : > { %4756 = vmatprep.subr.bf16.mxu1 %v7118_v13  ;;  %v7196_v13 = vld [vmem:[%s9271_s1 + $0xfa0] ss:$28 sps:$4 sm:$0xff]  }
 0x20c   : > { %4790 = vmatpush1.bf16.msra.mxu0 %v7119_v4  ;;  %v7200_v4 = vld [vmem:[%s9271_s1 + $0xfd4] ss:$28 sps:$4 sm:$0xff]  }
 0x20d   : > { %4757 = vmatpush1.bf16.msra.mxu1 %v7116_v63  ;;  %4791 = vmatprep.subr.bf16.mxu0 %v7127_v17  ;;  %v7197_v63 = vld [vmem:[%s9271_s1 + $0xde0] ss:$28 sps:$4 sm:$0xff]   ;;  %v7201_v17 = vld [vmem:[%s9271_s1 + $0xfd8] ss:$28 sps:$4 sm:$0xff]  }
 0x20e   : > { %4758 = vmatprep.subr.bf16.mxu1 %v7124_v15  ;;  %v7198_v15 = vld [vmem:[%s9271_s1 + $0xfd0] ss:$28 sps:$4 sm:$0xff]  }
 0x210   : > { %4792 = vmatpush1.bf16.msra.mxu0 %v7125_v19  ;;  %v7202_v19 = vld [vmem:[%s9271_s1 + $0x1008] ss:$28 sps:$4 sm:$0xff]  }
 0x211   : > { %4759 = vmatpush1.bf16.msra.mxu1 %v7122_v18  ;;  %4793 = vmatprep.subr.bf16.mxu0 %v7133_v22  ;;  %v7204_v18 = vld [vmem:[%s9271_s1 + $0x100c] ss:$28 sps:$4 sm:$0xff]   ;;  %v7208_v22 = vld [vmem:[%s9271_s1 + $0x1044] ss:$28 sps:$4 sm:$0xff]  }
 0x212   : > { %4760 = vmatprep.subr.bf16.mxu1 %v7130_v20  ;;  %v7205_v20 = vld [vmem:[%s9271_s1 + $0x1010] ss:$28 sps:$4 sm:$0xff]  }
 0x214   : > { %4794 = vmatpush1.bf16.msra.mxu0 %v7131_v0  ;;  %v7212_v0 = vld [vmem:[%s9271_s1 + $0x107c] ss:$28 sps:$4 sm:$0xff]  }
 0x215   : > { %4761 = vmatpush1.bf16.msra.mxu1 %v7128_v24  ;;  %4795 = vmatprep.subr.bf16.mxu0 %v7139_v26  ;;  %v7209_v24 = vld [vmem:[%s9271_s1 + $0x1048] ss:$28 sps:$4 sm:$0xff]   ;;  %v7216_v26 = vld [vmem:[%s9271_s1 + $0x10b4] ss:$28 sps:$4 sm:$0xff]  }
 0x216   : > { %4762 = vmatprep.subr.bf16.mxu1 %v7136_v25  ;;  %v7213_v25 = vld [vmem:[%s9271_s1 + $0x1080] ss:$28 sps:$4 sm:$0xff]  }
 0x218   : > { %4796 = vmatpush1.bf16.msra.mxu0 %v7137_v28  ;;  %v7217_v28 = vld [vmem:[%s9271_s1 + $0x10b8] ss:$28 sps:$4 sm:$0xff]  }
 0x219   : > { %4763 = vmatpush1.bf16.msra.mxu1 %v7134_v27  ;;  %4797 = vmatprep.subr.bf16.mxu0 %v7145_v30  ;;  %v7214_v27 = vld [vmem:[%s9271_s1 + $0x10b0] ss:$28 sps:$4 sm:$0xff]   ;;  %v7218_v30 = vld [vmem:[%s9271_s1 + $0x10e8] ss:$28 sps:$4 sm:$0xff]  }
 0x21a   : > { %4764 = vmatprep.subr.bf16.mxu1 %v7142_v29  ;;  %v7220_v29 = vld [vmem:[%s9271_s1 + $0x10ec] ss:$28 sps:$4 sm:$0xff]  }
 0x21c   : > { %4798 = vmatpush1.bf16.msra.mxu0 %v7143_v32  ;;  %v7224_v32 = vld [vmem:[%s9271_s1 + $0x1124] ss:$28 sps:$4 sm:$0xff]  }
 0x21d   : > { %4765 = vmatpush1.bf16.msra.mxu1 %v7140_v31  ;;  %4799 = vmatprep.subr.bf16.mxu0 %v7151_v33  ;;  %v7221_v31 = vld [vmem:[%s9271_s1 + $0x10f0] ss:$28 sps:$4 sm:$0xff]  }
 0x21e   : > { %4766 = vmatprep.subr.bf16.mxu1 %v7148_v60 }
 0x220   : > { %4800 = vmatpush1.bf16.msra.mxu0 %v7149_v35 }
 0x221   : > { %4767 = vmatpush1.bf16.msra.mxu1 %v7146_v34  ;;  %4801 = vmatprep.subr.bf16.mxu0 %v7157_v37  ;;  %v7225_v37 = vld [vmem:[%s9271_s1 + $0x1128] ss:$28 sps:$4 sm:$0xff]  }
 0x222   : > { %4768 = vmatprep.subr.bf16.mxu1 %v7154_v36  ;;  %v7222_v36 = vld [vmem:[%s9271_s1 + $0x1120] ss:$28 sps:$4 sm:$0xff]  }
 0x224   : > { %4802 = vmatpush1.bf16.msra.mxu0 %v7155_v40  ;;  %v7228_v40 = vld [vmem:[%s9271_s1 + $0x115c] ss:$28 sps:$4 sm:$0xff]  }
 0x225   : > { %4769 = vmatpush1.bf16.msra.mxu1 %v7152_v38  ;;  %4803 = vmatprep.subr.bf16.mxu0 %v7160_v42 }
 0x226   : > { %6283 = vmatprep.subr.bf16.mxu1 %v7161_v44  ;;  %v7226_v44 = vld [vmem:[%s9271_s1 + $0x1158] ss:$28 sps:$4 sm:$0xff]  }
 0x228   : > { %4779 = vmatmul.mubr.bf16.vlgmr.msra.gmra.mrb[4].mxu1 %v8904_v9  ;;  %4804 = vmatpush1.bf16.msra.mxu0 %v7158_v45  ;;  %v7229_v45 = vld [vmem:[%s9271_s1 + $0x1160] ss:$28 sps:$4 sm:$0xff]  }
 0x229   : > { %6284 = vmatpush3.bf16.msra.mxu1 %v7162_v46  ;;  %4805 = vmatprep.subr.bf16.mxu0 %v7165_v23  ;;  %v7232_v46 = vld [vmem:[%s9271_s1 + $0x1194] ss:$28 sps:$4 sm:$0xff]  }
 0x22a   : > { %6285 = vmatprep.subr.bf16.mxu1 %v7166_v43  ;;  %4901 = vmatprep.mubr.bf16.mxu1 %v8561_v12  ;;  %v7176_v12 = vld [vmem:[%s9271_s1 + $0xec0] ss:$28 sps:$4 sm:$0xff]   ;;  %v7233_v23 = vld [vmem:[%s9271_s1 + $0x1198] ss:$28 sps:$4 sm:$0xff]   ;;  %v7236_v43 = vld [vmem:[%s9271_s1 + $0x11cc] ss:$28 sps:$4 sm:$0xff]  }
 0x22c   : > { %4806 = vmatpush1.bf16.msra.mxu0 %v7163_v47  ;;  %v7234_v47 = vld [vmem:[%s9271_s1 + $0x11c8] ss:$28 sps:$4 sm:$0xff]  }
 0x22d   : > { %6286 = vmatpush3.bf16.msra.mxu1 %v7167_v49  ;;  %4807 = vmatprep.subr.bf16.mxu0 %v7170_v48  ;;  %v7237_v49 = vld [vmem:[%s9271_s1 + $0x11d0] ss:$28 sps:$4 sm:$0xff]   ;;  %v7240_v48 = vld [vmem:[%s9271_s1 + $0x1204] ss:$28 sps:$4 sm:$0xff]  }
 0x22e   : > { %6287 = vmatprep.subr.bf16.mxu1 %v7171_v50  ;;  %v7238_v50 = vld [vmem:[%s9271_s1 + $0x1200] ss:$28 sps:$4 sm:$0xff]  }
 0x230   : > { %4808 = vmatpush1.bf16.msra.mxu0 %v7168_v51  ;;  %v7241_v51 = vld [vmem:[%s9271_s1 + $0x1208] ss:$28 sps:$4 sm:$0xff]  }
 0x231   : > { %6288 = vmatpush3.bf16.msra.mxu1 %v7172_v52  ;;  %4809 = vmatprep.subr.bf16.mxu0 %v7175_v53  ;;  %v7244_v52 = vld [vmem:[%s9271_s1 + $0x123c] ss:$28 sps:$4 sm:$0xff]  }
 0x232   : > { %6289 = vmatprep.subr.bf16.mxu1 %v7176_v12  ;;  %v7242_v53 = vld [vmem:[%s9271_s1 + $0x1238] ss:$28 sps:$4 sm:$0xff]   ;;  %v7245_v12 = vld [vmem:[%s9271_s1 + $0x1240] ss:$28 sps:$4 sm:$0xff]  }
 0x234   : > { %4810 = vmatpush1.bf16.msra.mxu0 %v7173_v54 }
 0x235   : > { %6290 = vmatpush3.bf16.msra.mxu1 %v7177_v55  ;;  %4811 = vmatprep.subr.bf16.mxu0 %v7180_v56 }
 0x236   : > { %6291 = vmatprep.subr.bf16.mxu1 %v7181_v57 }
 0x238   : > { %4812 = vmatpush1.bf16.msra.mxu0 %v7178_v58 }
 0x239   : > { %6292 = vmatpush3.bf16.msra.mxu1 %v7182_v59  ;;  %4813 = vmatprep.subr.bf16.mxu0 %v7185_v8  ;;  %v4958_v8 = vlaneseq }
 0x23a   : > { %6293 = vmatprep.subr.bf16.mxu1 %v7186_v61 }
 0x23b   : > { %v9231_v61 = vshrl.u32 %v4958_v8, 7 }
 0x23c   : > { %4814 = vmatpush1.bf16.msra.mxu0 %v7183_v62  ;;  %v4956_v62 = vld [vmem:[%s9272_s2] sm:$0xff] }
 0x23d   : > { %6294 = vmatpush3.bf16.msra.mxu1 %v7187_v39  ;;  %4815 = vmatprep.subr.bf16.mxu0 %v7190_v1 }
 0x23e   : > { %6295 = vmatprep.subr.bf16.mxu1 %v7191_v3 }
 0x240   : > { %4816 = vmatpush1.bf16.msra.mxu0 %v7188_v7 }
 0x241   : > { %6296 = vmatpush3.bf16.msra.mxu1 %v7192_v10  ;;  %4817 = vmatprep.subr.bf16.mxu0 %v7195_v11 }
 0x242   : > { %6297 = vmatprep.subr.bf16.mxu1 %v7196_v13 }
 0x244   : > { %4818 = vmatpush1.bf16.msra.mxu0 %v7193_v14 }
 0x245   : > { %6298 = vmatpush3.bf16.msra.mxu1 %v7197_v63  ;;  %4828 = vmatprep.subr.bf16.mxu0 %v7200_v4 }
 0x246   : > { %4909 = vmatprep.subr.bf16.mxu1 %v7256_v41 }
 0x247   : > { %4820 = vmatmul.mubr.bf16.vlgmr.msra.gmra.mrb[4].mxu0 %v8748_v16 }
 0x248   : > { %4902 = vmatmul.mubr.bf16.vlgmr.msra.gmra.mrb[20].mxu1 %v8748_v16  ;;  %4829 = vmatpush1.bf16.msra.mxu0 %v7198_v15  ;;  %v7206_v16 = vld [vmem:[%s9271_s1 + $0x1040] ss:$28 sps:$4 sm:$0xff]  }
 0x249   : > { %4910 = vmatpush1.bf16.msra.mxu1 %v7201_v17  ;;  %4830 = vmatprep.subr.bf16.mxu0 %v7204_v18 }
 0x24a   : > { %4911 = vmatprep.subr.bf16.mxu1 %v7256_v41  ;;  %6231 = vmatprep.mubr.msk.bf16.mxu0 %vm1701_vm0, %v8762_v21 }
 0x24b   : > { %6232 = vmatprep.mubr.msk.bf16.mxu1 %vm1701_vm0, %v8762_v21  ;;  %v7210_v21 = vld [vmem:[%s9271_s1 + $0x1078] ss:$28 sps:$4 sm:$0xff]  }
 0x24c   : > { %4831 = vmatpush1.bf16.msra.mxu0 %v7202_v19  ;;  %v4968_v19 = vsub.s32 2, %v9231_v61 }
 0x24d   : > { %4912 = vmatpush1.bf16.msra.mxu1 %v7205_v20  ;;  %4832 = vmatprep.subr.bf16.mxu0 %v7208_v22  ;;  %v4980_v20 = vsub.s32 5, %v9231_v61  ;;  %v4964_v22 = vsub.s32 1, %v9231_v61 }
 0x24e   : > { %4913 = vmatprep.subr.bf16.mxu1 %v7256_v41 }
 0x250   : > { %4833 = vmatpush1.bf16.msra.mxu0 %v7206_v16  ;;  %v4984_v16 = vsub.s32 6, %v9231_v61 }
 0x251   : > { %4914 = vmatpush1.bf16.msra.mxu1 %v7209_v24  ;;  %4834 = vmatprep.subr.bf16.mxu0 %v7212_v0  ;;  %v4969_v24 = vrot.slane %v4956_v62, %v4968_v19  ;;  %v4981_v0 = vrot.slane %v4956_v62, %v4980_v20 }
 0x252   : > { %4915 = vmatprep.subr.bf16.mxu1 %v7256_v41 }
 0x254   : > { %4835 = vmatpush1.bf16.msra.mxu0 %v7210_v21  ;;  %v4965_v21 = vrot.slane %v4956_v62, %v4964_v22 }
 0x255   : > { %4916 = vmatpush1.bf16.msra.mxu1 %v7213_v25  ;;  %4836 = vmatprep.subr.bf16.mxu0 %v7216_v26  ;;  %v4985_v25 = vrot.slane %v4956_v62, %v4984_v16 }
 0x256   : > { %4917 = vmatprep.subr.bf16.mxu1 %v7256_v41 }
 0x258   : > { %4837 = vmatpush1.bf16.msra.mxu0 %v7214_v27 }
 0x259   : > { %4918 = vmatpush1.bf16.msra.mxu1 %v7217_v28  ;;  %4838 = vmatprep.subr.bf16.mxu0 %v7220_v29 }
 0x25a   : > { %4919 = vmatprep.subr.bf16.mxu1 %v7256_v41 }
 0x25b   : > { %v6277_v60 = vpop.f32.mrb[16].mxu1 }
 0x25c   : > { %v6278_v33 = vpop.f32.mrb[17].mxu1  ;;  %4839 = vmatpush1.bf16.msra.mxu0 %v7218_v30 }
 0x25d   : > { %v6279_v34 = vadd.f32 %v6278_v33, %v6277_v60  ;;  %v6280_v35 = vpop.f32.mrb[18].mxu1  ;;  %4920 = vmatpush1.bf16.msra.mxu1 %v7221_v31  ;;  %4840 = vmatprep.subr.bf16.mxu0 %v7224_v32 }
 0x25e   : > { %v6281_v38 = vpop.f32.mrb[19].mxu1  ;;  %4921 = vmatprep.subr.bf16.mxu1 %v7256_v41 }
 0x25f   : > { %v9176_v42 = vadd.f32 %v6279_v34, %v8575_v6  ;;  %v7230_v6 = vld [vmem:[%s9271_s1 + $0x1190] ss:$28 sps:$4 sm:$0xff]  }
 0x260   : > { %4841 = vmatpush1.bf16.msra.mxu0 %v7222_v36 }
 0x261   : > { %4922 = vmatpush1.bf16.msra.mxu1 %v7225_v37  ;;  %4842 = vmatprep.subr.bf16.mxu0 %v7228_v40 }
 0x262   : > { %4923 = vmatprep.subr.bf16.mxu1 %v7256_v41 }
 0x264   : > { %4843 = vmatpush1.bf16.msra.mxu0 %v7226_v44 }
 0x265   : > { %4924 = vmatpush1.bf16.msra.mxu1 %v7229_v45  ;;  %4844 = vmatprep.subr.bf16.mxu0 %v7232_v46 }
 0x266   : > { %4925 = vmatprep.subr.bf16.mxu1 %v7256_v41 }
 0x268   : > { %4845 = vmatpush1.bf16.msra.mxu0 %v7230_v6 }
 0x269   : > { %4926 = vmatpush1.bf16.msra.mxu1 %v7233_v23  ;;  %4846 = vmatprep.subr.bf16.mxu0 %v7236_v43 }
 0x26a   : > { %4927 = vmatprep.subr.bf16.mxu1 %v7256_v41 }
 0x26c   : > { %4847 = vmatpush1.bf16.msra.mxu0 %v7234_v47 }
 0x26d   : > { %4928 = vmatpush1.bf16.msra.mxu1 %v7237_v49  ;;  %4848 = vmatprep.subr.bf16.mxu0 %v7240_v48 }
 0x26e   : > { %4929 = vmatprep.subr.bf16.mxu1 %v7256_v41 }
 0x270   : > { %4849 = vmatpush1.bf16.msra.mxu0 %v7238_v50 }
 0x271   : > { %4930 = vmatpush1.bf16.msra.mxu1 %v7241_v51  ;;  %4850 = vmatprep.subr.bf16.mxu0 %v7244_v52  ;;  %v4976_v52 = vsub.s32 4, %v9231_v61 }
 0x272   : > { %4931 = vmatprep.subr.bf16.mxu1 %v7256_v41  ;;  %v4972_v41 = vsub.s32 3, %v9231_v61 }
 0x274   : > { %4851 = vmatpush1.bf16.msra.mxu0 %v7242_v53  ;;  %v4973_v39 = vrot.slane %v4956_v62, %v4972_v41  ;;  %v4960_v53 = vsub.s32 0, %v9231_v61 }
 0x275   : > { %4932 = vmatpush1.bf16.msra.mxu1 %v7245_v12  ;;  %v4977_v12 = vrot.slane %v4956_v62, %v4976_v52 }
 0x277   : > { %4861 = vmatmul.mubr.bf16.vlgmr.msra.gmra.mrb[4].mxu0 %v8904_v9 }
 0x278   : > { %4942 = vmatmul.mubr.bf16.vlgmr.msra.gmra.mrb[12].mxu1 %v8904_v9 }
 0x2da   : > { %v4698_v54 = vpop.f32.mrb[8].mxu0 }
 0x2db   : > { %v9228_v55 = vadd.f32 %v4698_v54, %v8180_v2  ;;  %v4700_v56 = vpop.f32.mrb[9].mxu0  ;;  %v5000_v2 = vld [vmem:[%s9273_s3] sm:$0xff]  ;;  %v4961_v54 = vrot.slane %v4956_v62, %v4960_v53 }
 0x2dc   : > { %v6308_v57 = vadd.f32 %v4700_v56, %v8185_v5  ;;  %v4702_v58 = vpop.f32.mrb[10].mxu0  ;;  %v5017_v1 = vrot.slane %v5000_v2, %v4972_v41  ;;  %v5025_v28 = vrot.slane %v5000_v2, %v4980_v20  ;;  %v5013_v30 = vrot.slane %v5000_v2, %v4968_v19 }
 0x2dd   : > { %v4703_v59 = vpop.f32.mrb[11].mxu0  ;;  %v5029_v33 = vrot.slane %v5000_v2, %v4984_v16  ;;  %v5009_v38 = vrot.slane %v5000_v2, %v4964_v22  ;;  %v4993_v58 = vmul.f32 %v9228_v55, %v4961_v54 }
 0x2de   : > { %v4994_v37 = vmul.f32 %v6308_v57, %v4965_v21  ;;  %v5021_v57 = vrot.slane %v5000_v2, %v4976_v52  ;;  %v5005_v59 = vrot.slane %v5000_v2, %v4960_v53 }
 0x2e0   : > { %v5038_v43 = vadd.f32 %v5009_v38, %v4994_v37 }
 0x2e2   : > { %v5045_v50 = vmax.f32 %v5038_v43, 0.0 }
 0x2fb   : > { %v4780_v9 = vpop.f32.mrb[4].mxu1 }
 0x2fc   : > { %v4782_v3 = vpop.f32.mrb[5].mxu1  ;;  %v4995_v29 = vmul.f32 %v4969_v24, %v4780_v9 }
 0x2fd   : > { %v4996_v5 = vmul.f32 %v4973_v39, %v4782_v3  ;;  %v4784_v7 = vpop.f32.mrb[6].mxu1 }
 0x2fe   : > { %v4785_v10 = vpop.f32.mrb[7].mxu1  ;;  %v5039_v46 = vadd.f32 %v5013_v30, %v4995_v29 }
 0x2ff   : > { %v9240_v11 = vadd.f32 %v5017_v1, %v4996_v5  ;;  %v5037_v1 = vadd.f32 %v5005_v59, %v4993_v58 }
 0x300   : > { %v5046_v49 = vmax.f32 %v5039_v46, 0.0 }
 0x301   : > { %v5047_v13 = vmax.f32 %v9240_v11, 0.0  ;;  %v5044_v55 = vmax.f32 %v5037_v1, 0.0 }
 0x302   : > { %v6388_v51 = vpack.i.bf16 %v5046_v49, %v5045_v50 }
 0x303   : > { %5058 = vrot.lane.b32.xlu1 %v5047_v13, %s7257_s9 }
 0x31b   : > { %v6299_v14 = vpop.f32.mrb[20].mxu1 }
 0x31c   : > { %v6300_v63 = vpop.f32.mrb[21].mxu1 }
 0x31d   : > { %v6301_v4 = vadd.f32 %v6300_v63, %v6299_v14  ;;  %v6302_v15 = vpop.f32.mrb[22].mxu1 }
 0x31e   : > { %v6303_v17 = vpop.f32.mrb[23].mxu1 }
 0x31f   : > { %v6310_v18 = vadd.f32 %v9176_v42, %v6301_v4 }
 0x34a   : > { %v4862_v26 = vpop.f32.mrb[4].mxu0 }
 0x34b   : > { %v4943_v27 = vpop.f32.mrb[12].mxu1  ;;  %v4864_v32 = vpop.f32.mrb[5].mxu0  ;;  %v4997_v56 = vmul.f32 %v4977_v12, %v4862_v26 }
 0x34c   : > { %v6311_v31 = vadd.f32 %v6310_v18, %v4943_v27  ;;  %v4945_v60 = vpop.f32.mrb[13].mxu1  ;;  %v4998_v34 = vmul.f32 %v4981_v0, %v4864_v32  ;;  %v4866_v35 = vpop.f32.mrb[6].mxu0 }
 0x34d   : > { %v4946_v36 = vpop.f32.mrb[14].mxu1  ;;  %v4867_v42 = vpop.f32.mrb[7].mxu0  ;;  %v5041_v8 = vadd.f32 %v5021_v57, %v4997_v56 }
 0x34e   : > { %v4999_v40 = vmul.f32 %v6311_v31, %v4985_v25  ;;  %v4947_v44 = vpop.f32.mrb[15].mxu1  ;;  %v5042_v45 = vadd.f32 %v5025_v28, %v4998_v34  ;;  %v5110_v25 = vld [vmem:[%s197_s17] sm:$0xff] }
 0x34f   : > { %v5048_v3 = vmax.f32 %v5041_v8, 0.0 }
 0x350   : > { %v5043_v6 = vadd.f32 %v5029_v33, %v4999_v40  ;;  %v5049_v23 = vmax.f32 %v5042_v45, 0.0 }
 0x352   : > { %v5050_v47 = vmax.f32 %v5043_v6, 0.0 }
 0x354   : > { %v6383_v48 = vpack.i.bf16 %v5050_v47, %v5049_v23 }
 0x356   : > { %6384 = vrot.lane.b32.xlu0 %v6383_v48, %s7257_s9 }
 0x35a   : > { %6389 = vrot.lane.b32.xlu0 %v6388_v51, %s7257_s9 }
 0x375   : > { %v5059_v17 = vpop.permute.xlu1 %5058 }
 0x3c8   : > { %v6385_v41 = vpop.permute.xlu0 %6384 }
 0x3c9   : > { %v6387_v39 = vunpack.i.h.bf16 %v6385_v41  ;;  %v6386_v9 = vunpack.i.l.bf16 %v6385_v41 }
 0x3cb   : > { %v5079_v5 = vmax.f32 %v5049_v23, %v6387_v39  ;;  %v5073_v7 = vsel %vm5060_vm1, %v6386_v9, %v6387_v39  ;;  %v5077_v61 = vmax.f32 %v5047_v13, %v6386_v9 }
 0x3cc   : > { %v6390_v62 = vpop.permute.xlu0 %6389  ;;  %v5078_v10 = vmax.f32 %v5048_v3, %v5073_v7 }
 0x3cd   : > { %v6392_v14 = vunpack.i.h.bf16 %v6390_v62  ;;  %v6391_v63 = vunpack.i.l.bf16 %v6390_v62  ;;  %5087 = vrot.lane.b32.xlu0 %v5079_v5, %s7258_s10 }
 0x3ce   : > { %v6393_v2 = vpack.i.bf16 %v5078_v10, %v5077_v61 }
 0x3cf   : > { %v5061_v4 = vsel %vm5060_vm1, %v6391_v63, %v6392_v14  ;;  %v5062_v18 = vsel %vm5060_vm1, %v6392_v14, %v5059_v17 }
 0x3d0   : > { %v5065_v15 = vmax.f32 %v5044_v55, %v5061_v4  ;;  %6394 = vrot.lane.b32.xlu1 %v6393_v2, %s7258_s10  ;;  %v5066_v20 = vmax.f32 %v5045_v50, %v5062_v18 }
 0x43f   : > { %v5088_v22 = vpop.permute.xlu0 %5087 }
 0x442   : > { %v6395_v11 = vpop.permute.xlu1 %6394 }
 0x443   : > { %v6397_v13 = vunpack.i.h.bf16 %v6395_v11  ;;  %v6396_v19 = vunpack.i.l.bf16 %v6395_v11 }
 0x445   : > { %v5090_v16 = vsel %vm1701_vm0, %v6397_v13, %v5088_v22  ;;  %v5089_v24 = vsel %vm1701_vm0, %v6396_v19, %v6397_v13 }
 0x446   : > { %v5094_v0 = vmax.f32 %v5066_v20, %v5090_v16  ;;  %v5093_v21 = vmax.f32 %v5065_v15, %v5089_v24 }
 0x448   : > { %v6238_v26 = vpack.c.bf16 %v5094_v0, %v5093_v21 }
 0x44a   : > { %v5111_v27 = vsel %vm5109_vm8, %v6238_v26, %v5110_v25 }
 0x44b   : > { %5112 = vst [vmem:[%s197_s17] sm:$0xff] %v5111_v27 }
 0x44c PF: > { %s14_s15 = sadd.s32 1, %s7254_s15  }
 0x44d   : > { %p11_p4 = scmp.ge.s32.totalorder %s14_s15, 4  }
 0x44f   :  { %13 = sbr.rel (!%p11_p4) target bundleno = 1 (0x1), region = 68 }

// kernel: cnn_forward.9
= control target key start
LH: loop header
LB: loop body
LE: loop exit
PB: predicated region body
PF: predicated region fallthrough
CT: control target
= control target key end

     0   :  { %s1768_s12 = smov 0   ;;  %s2099_s0 = inlined_call_operand.vmem [shape: bf16[16,1568], index: 0, kind: input, shape index: {}]   ;;  %s2100_s1 = inlined_call_operand.vmem [shape: bf16[1568,128], index: 1, kind: input, shape index: {}]   ;;  %s2101_s2 = inlined_call_operand.vmem [shape: f32[1,128], index: 2, kind: input, shape index: {}]   ;;  %s2102_s3 = inlined_call_operand.vmem [shape: f32[16,128], index: 3, kind: output, shape index: {}]  }
   0x1 LB: > { %s1351_s13 = sadd.s32 4294967295, %s1744_s12   ;;  %p1355_p0 = scmp.ge.s32.totalorder %s1744_s12, 1  ;;  %s1744_s12 = sphi %s1768_s12, %s13_s12  }
   0x2   : > { %p137_p1 = scmp.lt.s32.totalorder %s1744_s12, 3 }
   0x4   : > { %p138_p2 = pnand %p1355_p0, %p137_p1 }
   0x5   : > { %v1627_v0 = vld [vmem:[%s2100_s1 + $0x40] sm:$0xff] (!%p138_p2)   ;;  %v1631_v4 = vld [vmem:[%s2100_s1 + $0x48] sm:$0xff] (!%p138_p2)   ;;  %v1635_v8 = vld [vmem:[%s2100_s1 + $0x50] sm:$0xff] (!%p138_p2)   ;;  %p160_p3 = scmp.lt.s32.totalorder (!%p138_p2), %s1351_s13, 1  ;;  %vm1747_vm0 = vmmov (!%p138_p2), 0   ;;  %vm1013_vm1 = vcmask (!%p138_p2), 261120  }
   0x6   : > { %141 = sbr.rel (%p138_p2) target bundleno = 325 (0x145), region = 32  ;;  %v1628_v1 = vld [vmem:[%s2100_s1] sm:$0xff] (!%p138_p2)   ;;  %1473 = vmatprep.subr.bf16.mxu0 (!%p138_p2), %v1627_v0  ;;  %v1632_v5 = vld [vmem:[%s2100_s1 + $0x8] sm:$0xff] (!%p138_p2)   ;;  %v1636_v9 = vld [vmem:[%s2100_s1 + $0x10] sm:$0xff] (!%p138_p2)  }
   0x7   : > { %v1629_v2 = vld [vmem:[%s2100_s1 + $0xc0] sm:$0xff] (!%p138_p2)   ;;  %1474 = vmatpush3.bf16.msra.mxu0 (!%p138_p2), %v1628_v1  ;;  %v1633_v6 = vld [vmem:[%s2100_s1 + $0xc8] sm:$0xff] (!%p138_p2)   ;;  %v1637_v10 = vld [vmem:[%s2100_s1 + $0xd0] sm:$0xff] (!%p138_p2)  }
   0x8   : > { %v1630_v3 = vld [vmem:[%s2100_s1 + $0x80] sm:$0xff] (!%p138_p2)   ;;  %1495 = vmatprep.subr.bf16.mxu1 (!%p138_p2), %v1629_v2  ;;  %1475 = vmatprep.subr.bf16.mxu0 (!%p138_p2), %v1631_v4  ;;  %v1634_v7 = vld [vmem:[%s2100_s1 + $0x88] sm:$0xff] (!%p138_p2)   ;;  %v1638_v11 = vld [vmem:[%s2100_s1 + $0x90] sm:$0xff] (!%p138_p2)  }
   0x9   : > { %1496 = vmatpush3.bf16.msra.mxu1 (!%p138_p2), %v1630_v3  ;;  %v1639_v12 = vld [vmem:[%s2100_s1 + $0x58] sm:$0xff] (!%p138_p2)   ;;  %v1643_v16 = vld [vmem:[%s2100_s1 + $0x60] sm:$0xff] (!%p138_p2)   ;;  %v1647_v20 = vld [vmem:[%s2100_s1 + $0x68] sm:$0xff] (!%p138_p2)  }
   0xa   : > { %1497 = vmatprep.subr.bf16.mxu1 (!%p138_p2), %v1633_v6  ;;  %v1640_v13 = vld [vmem:[%s2100_s1 + $0x18] sm:$0xff] (!%p138_p2)   ;;  %v1644_v17 = vld [vmem:[%s2100_s1 + $0x20] sm:$0xff] (!%p138_p2)   ;;  %v1648_v21 = vld [vmem:[%s2100_s1 + $0x28] sm:$0xff] (!%p138_p2)  }
   0xb   : > { %1476 = vmatpush3.bf16.msra.mxu0 (!%p138_p2), %v1632_v5  ;;  %v1641_v14 = vld [vmem:[%s2100_s1 + $0xd8] sm:$0xff] (!%p138_p2)   ;;  %v1645_v18 = vld [vmem:[%s2100_s1 + $0xe0] sm:$0xff] (!%p138_p2)   ;;  %v1649_v22 = vld [vmem:[%s2100_s1 + $0xe8] sm:$0xff] (!%p138_p2)  }
   0xc   : > { %1477 = vmatprep.subr.bf16.mxu0 (!%p138_p2), %v1635_v8  ;;  %v1642_v15 = vld [vmem:[%s2100_s1 + $0x98] sm:$0xff] (!%p138_p2)   ;;  %v1646_v19 = vld [vmem:[%s2100_s1 + $0xa0] sm:$0xff] (!%p138_p2)   ;;  %v1650_v23 = vld [vmem:[%s2100_s1 + $0xa8] sm:$0xff] (!%p138_p2)  }
   0xd   : > { %1498 = vmatpush3.bf16.msra.mxu1 %v1634_v7  ;;  %s2104_s13 = smov (!%p160_p3, %s1351_s13), 1  ;;  %v1651_v24 = vld [vmem:[%s2100_s1 + $0x70] sm:$0xff]   ;;  %v1655_v28 = vld [vmem:[%s2100_s1 + $0x78] sm:$0xff]   ;;  %v1661_v35 = vld [vmem:[%s2100_s1 + $0x140] sm:$0xff]  }
   0xe   : > { %1499 = vmatprep.subr.bf16.mxu1 %v1637_v10  ;;  %v1652_v25 = vld [vmem:[%s2100_s1 + $0x30] sm:$0xff]   ;;  %s1616_s16 = smul.u32 52, %s2104_s13  ;;  %v1656_v29 = vld [vmem:[%s2100_s1 + $0x38] sm:$0xff]   ;;  %v1664_v39 = vld [vmem:[%s2100_s1 + $0x100] sm:$0xff]  }
   0xf   : > { %1478 = vmatpush3.bf16.msra.mxu0 %v1636_v9  ;;  %v1653_v26 = vld [vmem:[%s2100_s1 + $0xf0] sm:$0xff]   ;;  %v1657_v30 = vld [vmem:[%s2100_s1 + $0xf8] sm:$0xff]   ;;  %v1665_v40 = vld [vmem:[%s2100_s1 + $0x1c0] sm:$0xff]  }
  0x10   : > { %1479 = vmatprep.subr.bf16.mxu0 %v1639_v12  ;;  %v1654_v27 = vld [vmem:[%s2100_s1 + $0xb0] sm:$0xff]   ;;  %s1876_s27 = scalar_lea.vmem %s2099_s0, %s1616_s16  ;;  %v1658_v31 = vld [vmem:[%s2100_s1 + $0xb8] sm:$0xff]   ;;  %v1666_v41 = vld [vmem:[%s2100_s1 + $0x180] sm:$0xff]  }
  0x11   : > { %1500 = vmatpush3.bf16.msra.mxu1 %v1638_v11  ;;  %v170_v32 = vld [vmem:[%s1876_s27] sm:$0xff]  ;;  %v171_v36 = vld [vmem:[%s1876_s27 + $0x8] sm:$0xff]  ;;  %v1671_v46 = vld [vmem:[%s2100_s1 + $0x150] sm:$0xff]  }
  0x12   : > { %1501 = vmatprep.subr.bf16.mxu1 %v1641_v14  ;;  %v1359_v33 = vcombine.low %v170_v32, %v170_v32  ;;  %v1360_v34 = vcombine.high %v170_v32, %v170_v32  ;;  %v1361_v37 = vcombine.low %v171_v36, %v171_v36  ;;  %v1362_v38 = vcombine.high %v171_v36, %v171_v36  ;;  %v1667_v42 = vld [vmem:[%s2100_s1 + $0x148] sm:$0xff]   ;;  %v1672_v47 = vld [vmem:[%s2100_s1 + $0x110] sm:$0xff]   ;;  %v1675_v50 = vld [vmem:[%s2100_s1 + $0x158] sm:$0xff]  }
  0x13   : > { %1480 = vmatpush3.bf16.msra.mxu0 %v1640_v13  ;;  %v1668_v43 = vld [vmem:[%s2100_s1 + $0x108] sm:$0xff]   ;;  %v1673_v48 = vld [vmem:[%s2100_s1 + $0x1d0] sm:$0xff]   ;;  %v1676_v51 = vld [vmem:[%s2100_s1 + $0x118] sm:$0xff]  }
  0x14   : > { %1481 = vmatprep.subr.bf16.mxu0 %v1643_v16  ;;  %1049 = vmatprep.mubr.bf16.mxu0 %v1360_v34  ;;  %v1669_v44 = vld [vmem:[%s2100_s1 + $0x1c8] sm:$0xff]   ;;  %v1674_v49 = vld [vmem:[%s2100_s1 + $0x190] sm:$0xff]   ;;  %v1677_v52 = vld [vmem:[%s2100_s1 + $0x1d8] sm:$0xff]  }
  0x15   : > { %1502 = vmatpush3.bf16.msra.mxu1 %v1642_v15  ;;  %1089 = vmatprep.mubr.bf16.mxu1 %v1362_v38  ;;  %v1670_v45 = vld [vmem:[%s2100_s1 + $0x188] sm:$0xff]   ;;  %v1678_v53 = vld [vmem:[%s2100_s1 + $0x198] sm:$0xff]   ;;  %v1679_v54 = vld [vmem:[%s2100_s1 + $0x160] sm:$0xff]  }
  0x16   : > { %1503 = vmatprep.subr.bf16.mxu1 %v1645_v18  ;;  %v1680_v55 = vld [vmem:[%s2100_s1 + $0x120] sm:$0xff]   ;;  %v1683_v58 = vld [vmem:[%s2100_s1 + $0x168] sm:$0xff]   ;;  %v1687_v62 = vld [vmem:[%s2100_s1 + $0x170] sm:$0xff]  }
  0x17   : > { %1482 = vmatpush3.bf16.msra.mxu0 %v1644_v17  ;;  %v1681_v56 = vld [vmem:[%s2100_s1 + $0x1e0] sm:$0xff]   ;;  %v1684_v59 = vld [vmem:[%s2100_s1 + $0x128] sm:$0xff]   ;;  %v1688_v63 = vld [vmem:[%s2100_s1 + $0x130] sm:$0xff]  }
  0x18   : > { %1483 = vmatprep.subr.bf16.mxu0 %v1647_v20  ;;  %v1682_v57 = vld [vmem:[%s2100_s1 + $0x1a0] sm:$0xff]   ;;  %v1685_v60 = vld [vmem:[%s2100_s1 + $0x1e8] sm:$0xff]   ;;  %v1689_v0 = vld [vmem:[%s2100_s1 + $0x1f0] sm:$0xff]  }
  0x19   : > { %1504 = vmatpush3.bf16.msra.mxu1 %v1646_v19  ;;  %v1686_v61 = vld [vmem:[%s2100_s1 + $0x1a8] sm:$0xff]   ;;  %v1690_v1 = vld [vmem:[%s2100_s1 + $0x1b0] sm:$0xff]   ;;  %v1691_v2 = vld [vmem:[%s2100_s1 + $0x178] sm:$0xff]  }
  0x1a   : > { %1505 = vmatprep.subr.bf16.mxu1 %v1649_v22  ;;  %v1692_v3 = vld [vmem:[%s2100_s1 + $0x138] sm:$0xff]   ;;  %v172_v6 = vld [vmem:[%s1876_s27 + $0x10] sm:$0xff]  ;;  %v1697_v9 = vld [vmem:[%s2100_s1 + $0x240] sm:$0xff]  }
  0x1b   : > { %1484 = vmatpush3.bf16.msra.mxu0 %v1648_v21  ;;  %v1693_v4 = vld [vmem:[%s2100_s1 + $0x1f8] sm:$0xff]   ;;  %v1363_v7 = vcombine.low %v172_v6, %v172_v6  ;;  %v1364_v8 = vcombine.high %v172_v6, %v172_v6  ;;  %v1700_v13 = vld [vmem:[%s2100_s1 + $0x200] sm:$0xff]   ;;  %v1703_v16 = vld [vmem:[%s2100_s1 + $0x248] sm:$0xff]  }
  0x1c   : > { %1485 = vmatprep.subr.bf16.mxu0 %v1651_v24  ;;  %v1694_v5 = vld [vmem:[%s2100_s1 + $0x1b8] sm:$0xff]   ;;  %v1701_v14 = vld [vmem:[%s2100_s1 + $0x2c0] sm:$0xff]   ;;  %v1704_v17 = vld [vmem:[%s2100_s1 + $0x208] sm:$0xff]  }
  0x1d   : > { %1506 = vmatpush3.bf16.msra.mxu1 %v1650_v23  ;;  %v173_v10 = vld [vmem:[%s1876_s27 + $0x18] sm:$0xff]  ;;  %v1702_v15 = vld [vmem:[%s2100_s1 + $0x280] sm:$0xff]   ;;  %v1705_v18 = vld [vmem:[%s2100_s1 + $0x2c8] sm:$0xff]  }
  0x1e   : > { %1507 = vmatprep.subr.bf16.mxu1 %v1653_v26  ;;  %v1365_v11 = vcombine.low %v173_v10, %v173_v10  ;;  %v1366_v12 = vcombine.high %v173_v10, %v173_v10  ;;  %v1706_v19 = vld [vmem:[%s2100_s1 + $0x288] sm:$0xff]   ;;  %v1707_v20 = vld [vmem:[%s2100_s1 + $0x250] sm:$0xff]   ;;  %v1711_v24 = vld [vmem:[%s2100_s1 + $0x258] sm:$0xff]  }
  0x1f   : > { %1486 = vmatpush3.bf16.msra.mxu0 %v1652_v25  ;;  %v1708_v21 = vld [vmem:[%s2100_s1 + $0x210] sm:$0xff]   ;;  %v1712_v25 = vld [vmem:[%s2100_s1 + $0x218] sm:$0xff]   ;;  %v1719_v32 = vld [vmem:[%s2100_s1 + $0x268] sm:$0xff]  }
  0x20   : > { %1487 = vmatprep.subr.bf16.mxu0 %v1655_v28  ;;  %v1709_v22 = vld [vmem:[%s2100_s1 + $0x2d0] sm:$0xff]   ;;  %v1713_v26 = vld [vmem:[%s2100_s1 + $0x2d8] sm:$0xff]   ;;  %v1715_v28 = vld [vmem:[%s2100_s1 + $0x260] sm:$0xff]  }
  0x21   : > { %1508 = vmatpush3.bf16.msra.mxu1 %v1654_v27  ;;  %v1710_v23 = vld [vmem:[%s2100_s1 + $0x290] sm:$0xff]   ;;  %v1714_v27 = vld [vmem:[%s2100_s1 + $0x298] sm:$0xff]   ;;  %v1721_v34 = vld [vmem:[%s2100_s1 + $0x2e8] sm:$0xff]  }
  0x22   : > { %1509 = vmatprep.subr.bf16.mxu1 %v1657_v30  ;;  %v1717_v30 = vld [vmem:[%s2100_s1 + $0x2e0] sm:$0xff]   ;;  %v1723_v36 = vld [vmem:[%s2100_s1 + $0x270] sm:$0xff]  }
  0x23   : > { %1488 = vmatpush3.bf16.msra.mxu0 %v1656_v29  ;;  %v1716_v29 = vld [vmem:[%s2100_s1 + $0x220] sm:$0xff]   ;;  %v1725_v38 = vld [vmem:[%s2100_s1 + $0x2f0] sm:$0xff]  }
  0x24   : > { %1517 = vmatprep.subr.bf16.mxu0 %v1661_v35  ;;  %v1722_v35 = vld [vmem:[%s2100_s1 + $0x2a8] sm:$0xff]  }
  0x25   : > { %1510 = vmatpush3.bf16.msra.mxu1 %v1658_v31  ;;  %v1718_v31 = vld [vmem:[%s2100_s1 + $0x2a0] sm:$0xff]  }
  0x26   : > { %1050 = vmatmul.mubr.bf16.vlgmr.msra.gmra.mrb[0].mxu0 %v1359_v33  ;;  %1539 = vmatprep.subr.bf16.mxu1 %v1665_v40  ;;  %v1720_v33 = vld [vmem:[%s2100_s1 + $0x228] sm:$0xff]   ;;  %v1727_v40 = vld [vmem:[%s2100_s1 + $0x278] sm:$0xff]  }
  0x27   : > { %1518 = vmatpush3.bf16.msra.mxu0 %v1664_v39  ;;  %1129 = vmatprep.mubr.bf16.mxu0 %v1364_v8  ;;  %v1726_v39 = vld [vmem:[%s2100_s1 + $0x2b0] sm:$0xff]  }
  0x28   : > { %1090 = vmatmul.mubr.bf16.vlgmr.msra.gmra.mrb[0].mxu1 %v1361_v37  ;;  %1519 = vmatprep.subr.bf16.mxu0 %v1667_v42  ;;  %v1724_v37 = vld [vmem:[%s2100_s1 + $0x230] sm:$0xff]   ;;  %v1729_v42 = vld [vmem:[%s2100_s1 + $0x2f8] sm:$0xff]  }
  0x29   : > { %1540 = vmatpush3.bf16.msra.mxu1 %v1666_v41  ;;  %1169 = vmatprep.mubr.bf16.mxu1 %v1366_v12  ;;  %v1728_v41 = vld [vmem:[%s2100_s1 + $0x238] sm:$0xff]  }
  0x2a   : > { %1541 = vmatprep.subr.bf16.mxu1 %v1669_v44  ;;  %v174_v44 = vld [vmem:[%s1876_s27 + $0x20] sm:$0xff] }
  0x2b   : > { %1520 = vmatpush3.bf16.msra.mxu0 %v1668_v43  ;;  %v1730_v43 = vld [vmem:[%s2100_s1 + $0x2b8] sm:$0xff]  }
  0x2c   : > { %1521 = vmatprep.subr.bf16.mxu0 %v1671_v46  ;;  %v1367_v46 = vcombine.low %v174_v44, %v174_v44 }
  0x2d   : > { %1542 = vmatpush3.bf16.msra.mxu1 %v1670_v45  ;;  %v175_v45 = vld [vmem:[%s1876_s27 + $0x28] sm:$0xff] }
  0x2e   : > { %1543 = vmatprep.subr.bf16.mxu1 %v1673_v48  ;;  %v1369_v48 = vcombine.low %v175_v45, %v175_v45 }
  0x2f   : > { %1522 = vmatpush3.bf16.msra.mxu0 %v1672_v47  ;;  %v1368_v47 = vcombine.high %v174_v44, %v174_v44 }
  0x30   : > { %1523 = vmatprep.subr.bf16.mxu0 %v1675_v50  ;;  %v1735_v50 = vld [vmem:[%s2100_s1 + $0x300] sm:$0xff]  }
  0x31   : > { %1544 = vmatpush3.bf16.msra.mxu1 %v1674_v49  ;;  %v1370_v49 = vcombine.high %v175_v45, %v175_v45 }
  0x32   : > { %1545 = vmatprep.subr.bf16.mxu1 %v1677_v52  ;;  %v1736_v52 = vld [vmem:[%s2100_s1 + $0x308] sm:$0xff]  }
  0x33   : > { %1524 = vmatpush3.bf16.msra.mxu0 %v1676_v51  ;;  %v1746_v51 = vmov 0.0  }
  0x34   : > { %1525 = vmatprep.subr.bf16.mxu0 %v1679_v54 }
  0x35   : > { %1546 = vmatpush3.bf16.msra.mxu1 %v1678_v53  ;;  %v1737_v53 = vld [vmem:[%s1876_s27 + $0x30] ss:$0 sps:$4 sm:$0xff]   ;;  %s1357_s27 = sshll.u32 %s2104_s13, 3 }
  0x36   : > { %1547 = vmatprep.subr.bf16.mxu1 %v1681_v56  ;;  %s168_s23 = scalar_lea.vmem %s2102_s3, %s1357_s27 }
  0x37   : > { %1526 = vmatpush3.bf16.msra.mxu0 %v1680_v55  ;;  %v1358_v55 = vld [vmem:[%s2101_s2] ss:$0 sm:$0xff] }
  0x38   : > { %1527 = vmatprep.subr.bf16.mxu0 %v1683_v58 }
  0x39   : > { %1548 = vmatpush3.bf16.msra.mxu1 %v1682_v57 }
  0x3a   : > { %1549 = vmatprep.subr.bf16.mxu1 %v1685_v60 }
  0x3b   : > { %1528 = vmatpush3.bf16.msra.mxu0 %v1684_v59 }
  0x3c   : > { %1529 = vmatprep.subr.bf16.mxu0 %v1687_v62 }
  0x3d   : > { %1550 = vmatpush3.bf16.msra.mxu1 %v1686_v61 }
  0x3e   : > { %1551 = vmatprep.subr.bf16.mxu1 %v1689_v0 }
  0x3f   : > { %1530 = vmatpush3.bf16.msra.mxu0 %v1688_v63 }
  0x40   : > { %1531 = vmatprep.subr.bf16.mxu0 %v1691_v2 }
  0x41   : > { %1552 = vmatpush3.bf16.msra.mxu1 %v1690_v1 }
  0x42   : > { %1553 = vmatprep.subr.bf16.mxu1 %v1693_v4 }
  0x43   : > { %1532 = vmatpush3.bf16.msra.mxu0 %v1692_v3 }
  0x44   : > { %1561 = vmatprep.subr.bf16.mxu0 %v1697_v9 }
  0x45   : > { %1554 = vmatpush3.bf16.msra.mxu1 %v1694_v5 }
  0x46   : > { %1130 = vmatmul.mubr.bf16.vlgmr.msra.gmra.mrb[4].mxu0 %v1363_v7  ;;  %1583 = vmatprep.subr.bf16.mxu1 %v1701_v14 }
  0x47   : > { %1562 = vmatpush3.bf16.msra.mxu0 %v1700_v13  ;;  %1209 = vmatprep.mubr.bf16.mxu0 %v1368_v47 }
  0x48   : > { %1170 = vmatmul.mubr.bf16.vlgmr.msra.gmra.mrb[4].mxu1 %v1365_v11  ;;  %1563 = vmatprep.subr.bf16.mxu0 %v1703_v16 }
  0x49   : > { %1584 = vmatpush3.bf16.msra.mxu1 %v1702_v15  ;;  %1249 = vmatprep.mubr.bf16.mxu1 %v1370_v49 }
  0x4a   : > { %1585 = vmatprep.subr.bf16.mxu1 %v1705_v18 }
  0x4b   : > { %1564 = vmatpush3.bf16.msra.mxu0 %v1704_v17 }
  0x4c   : > { %1565 = vmatprep.subr.bf16.mxu0 %v1707_v20 }
  0x4d   : > { %1586 = vmatpush3.bf16.msra.mxu1 %v1706_v19 }
  0x4e   : > { %1587 = vmatprep.subr.bf16.mxu1 %v1709_v22 }
  0x4f   : > { %1566 = vmatpush3.bf16.msra.mxu0 %v1708_v21 }
  0x50   : > { %1567 = vmatprep.subr.bf16.mxu0 %v1711_v24 }
  0x51   : > { %1588 = vmatpush3.bf16.msra.mxu1 %v1710_v23 }
  0x52   : > { %1589 = vmatprep.subr.bf16.mxu1 %v1713_v26 }
  0x53   : > { %1568 = vmatpush3.bf16.msra.mxu0 %v1712_v25 }
  0x54   : > { %1569 = vmatprep.subr.bf16.mxu0 %v1715_v28 }
  0x55   : > { %1590 = vmatpush3.bf16.msra.mxu1 %v1714_v27 }
  0x56   : > { %1591 = vmatprep.subr.bf16.mxu1 %v1717_v30 }
  0x57   : > { %1570 = vmatpush3.bf16.msra.mxu0 %v1716_v29 }
  0x58   : > { %1571 = vmatprep.subr.bf16.mxu0 %v1719_v32 }
  0x59   : > { %1592 = vmatpush3.bf16.msra.mxu1 %v1718_v31 }
  0x5a   : > { %1593 = vmatprep.subr.bf16.mxu1 %v1721_v34 }
  0x5b   : > { %1572 = vmatpush3.bf16.msra.mxu0 %v1720_v33 }
  0x5c   : > { %1573 = vmatprep.subr.bf16.mxu0 %v1723_v36 }
  0x5d   : > { %1594 = vmatpush3.bf16.msra.mxu1 %v1722_v35 }
  0x5e   : > { %1595 = vmatprep.subr.bf16.mxu1 %v1725_v38 }
  0x5f   : > { %1574 = vmatpush3.bf16.msra.mxu0 %v1724_v37 }
  0x60   : > { %1575 = vmatprep.subr.bf16.mxu0 %v1727_v40 }
  0x61   : > { %1596 = vmatpush3.bf16.msra.mxu1 %v1726_v39 }
  0x62   : > { %1597 = vmatprep.subr.bf16.mxu1 %v1729_v42 }
  0x63   : > { %1576 = vmatpush3.bf16.msra.mxu0 %v1728_v41 }
  0x64   : > { %1608 = vmatprep.subr.bf16.mxu0 %v1746_v51 }
  0x65   : > { %1598 = vmatpush3.bf16.msra.mxu1 %v1730_v43 }
  0x66   : > { %1210 = vmatmul.mubr.bf16.vlgmr.msra.gmra.mrb[8].mxu0 %v1367_v46 }
  0x67   : > { %1609 = vmatpush3.bf16.msra.mxu0 %v1735_v50  ;;  %1612 = vmatprep.mubr.msk.bf16.mxu0 %vm1747_vm0, %v1746_v51 }
  0x68   : > { %1250 = vmatmul.mubr.bf16.vlgmr.msra.gmra.mrb[8].mxu1 %v1369_v48  ;;  %1610 = vmatprep.subr.bf16.mxu0 %v1746_v51 }
  0x6b   : > { %1611 = vmatpush3.bf16.msra.mxu0 %v1736_v52 }
  0x6e   : > { %1613 = vmatmul.mubr.msk.bf16.vlgmr.msra.gmra.mrb[12].mxu0 %vm1013_vm1, %v1737_v53 }
  0xf9   : > { %v1489_v54 = vpop.f32.mrb[0].mxu0 }
  0xfa   : > { %v1490_v56 = vpop.f32.mrb[1].mxu0 }
  0xfb   : > { %v1491_v57 = vadd.f32 %v1490_v56, %v1489_v54  ;;  %v1492_v58 = vpop.f32.mrb[2].mxu0  ;;  %v1511_v59 = vpop.f32.mrb[0].mxu1 }
  0xfc   : > { %v1493_v60 = vpop.f32.mrb[3].mxu0  ;;  %v1512_v61 = vpop.f32.mrb[1].mxu1 }
  0xfd   : > { %v1052_v62 = vadd.f32 %v1491_v57, %v1358_v55  ;;  %v1513_v63 = vadd.f32 %v1512_v61, %v1511_v59  ;;  %v1514_v0 = vpop.f32.mrb[2].mxu1 }
  0xfe   : > { %v1515_v1 = vpop.f32.mrb[3].mxu1 }
  0xff   : > { %v1092_v2 = vadd.f32 %v1513_v63, %v1052_v62 }
 0x119   : > { %v1533_v3 = vpop.f32.mrb[4].mxu0 }
 0x11a   : > { %v1534_v4 = vpop.f32.mrb[5].mxu0 }
 0x11b   : > { %v1535_v5 = vadd.f32 %v1534_v4, %v1533_v3  ;;  %v1536_v6 = vpop.f32.mrb[6].mxu0  ;;  %v1555_v7 = vpop.f32.mrb[4].mxu1 }
 0x11c   : > { %v1537_v8 = vpop.f32.mrb[7].mxu0  ;;  %v1556_v9 = vpop.f32.mrb[5].mxu1 }
 0x11d   : > { %v1132_v10 = vadd.f32 %v1535_v5, %v1092_v2  ;;  %v1557_v11 = vadd.f32 %v1556_v9, %v1555_v7  ;;  %v1558_v12 = vpop.f32.mrb[6].mxu1 }
 0x11e   : > { %v1559_v13 = vpop.f32.mrb[7].mxu1 }
 0x11f   : > { %v1172_v14 = vadd.f32 %v1557_v11, %v1132_v10 }
 0x139   : > { %v1577_v15 = vpop.f32.mrb[8].mxu0 }
 0x13a   : > { %v1578_v16 = vpop.f32.mrb[9].mxu0 }
 0x13b   : > { %v1599_v17 = vpop.f32.mrb[8].mxu1  ;;  %v1579_v18 = vadd.f32 %v1578_v16, %v1577_v15  ;;  %v1580_v19 = vpop.f32.mrb[10].mxu0 }
 0x13c   : > { %v1600_v20 = vpop.f32.mrb[9].mxu1  ;;  %v1581_v22 = vpop.f32.mrb[11].mxu0 }
 0x13d   : > { %v1601_v21 = vadd.f32 %v1600_v20, %v1599_v17  ;;  %v1602_v23 = vpop.f32.mrb[10].mxu1  ;;  %v1212_v24 = vadd.f32 %v1579_v18, %v1172_v14 }
 0x13e   : > { %v1603_v25 = vpop.f32.mrb[11].mxu1 }
 0x13f   : > { %v1252_v26 = vadd.f32 %v1601_v21, %v1212_v24 }
 0x141   : > { %v1291_v27 = vpop.f32.mrb[12].mxu0 }
 0x142   : > { %v1292_v28 = vadd.f32 %v1291_v27, %v1252_v26  ;;  %v1614_v29 = vpop.f32.mrb[13].mxu0 }
 0x143   : > { %v1294_v30 = vpop.f32.mrb[14].mxu0 }
 0x144   : > { %1297 = vst [vmem:[%s168_s23] sm:$0xff] %v1292_v28  ;;  %v1615_v31 = vpop.f32.mrb[15].mxu0 }
 0x145 PF: > { %s13_s12 = sadd.s32 1, %s1744_s12  }
 0x146   : > { %p10_p4 = scmp.ge.s32.totalorder %s13_s12, 4  }
 0x148   :  { %12 = sbr.rel (!%p10_p4) target bundleno = 1 (0x1), region = 62 }

</bundles_post_ra>
